<compile_context>
chip_gen: v5e
topology: v5e:2x2
jax: 0.10.0
libtpu: 0.0.40
codegen_flags: <defaults>
</compile_context>

<pallas_src>
import jax
import jax.numpy as jnp
from jax import lax
from jax.experimental import pallas as pl
from jax.experimental.pallas import tpu as pltpu


# -----------------------------------------------------------------------------
# Fused kernel: conv3x3 (Cin->Cmid) -> maxpool 2x2 -> conv3x3 (Cmid->Cout)
# Batch is folded into the matmul M axis; the whole thing is one grid step.
# -----------------------------------------------------------------------------
def _make_fused_kernel(B, H, W, Cin, Cmid, Cout):
    Hp, Wp = H + 2, W + 2                 # conv1 padded image dims
    Ho, Wo = H // 2, W // 2               # pooled dims
    Hop, Wop = Ho + 2, Wo + 2             # conv2 padded pooled dims
    HpWp = Hp * Wp                        # per-image padded-pixel pitch
    PW = Hop * Wop                        # per-image padded pooled pitch

    M1 = (H - 1) * Wp + W                 # rows covering every conv1 output pixel
    M1t = (B - 1) * HpWp + M1             # ... with batch folded into M
    Lp = (H - 2) * Wp + (W - 1)           # rows covering every 2x2-pool window base
    Lpt = (B - 1) * HpWp + Lp
    M2 = (Ho - 1) * Wop + Wo              # rows covering every conv2 output pixel
    M2t = (B - 1) * PW + M2

    def kernel(xp_ref, w1_ref, b1_ref, w2_ref, b2_ref, o_ref,
               y1_ref, pm_ref, pp_ref):
        # ---------------- conv1: 9 shifted-slab bf16 MXU dots, f32 acc --------
        acc = jnp.zeros((M1t, Cmid), jnp.float32)
        for ky in range(3):
            for kx in range(3):
                off = ky * Wp + kx
                acc = acc + jnp.dot(xp_ref[off:off + M1t, :],      # (M1t, Cin) bf16
                                    w1_ref[ky * 3 + kx],           # (Cin, Cmid) bf16
                                    preferred_element_type=jnp.float32)
        y1_ref[...] = acc + b1_ref[...]                            # f32 epilogue

        # -------- MaxPool2d(2): 4 shifted slab reads + 3 full-slab VPU maxes --
        pm_ref[...] = jnp.maximum(
            jnp.maximum(y1_ref[0:Lpt, :], y1_ref[1:1 + Lpt, :]),
            jnp.maximum(y1_ref[Wp:Wp + Lpt, :], y1_ref[Wp + 1:Wp + 1 + Lpt, :]))

        # -------- reflection-padded pooled maps assembled in vregs, 1 store ---
        # pooled pixel (b, ho, wo) sits at pm row  b*HpWp + 2*ho*Wp + 2*wo.
        maps = []
        for b in range(B):
            rows = []
            for ho in range(Ho):
                r0 = b * HpWp + 2 * ho * Wp
                row = pm_ref[pl.ds(r0, Wo, stride=2), :]           # (Wo, Cmid)
                # horizontal reflection: cols [1, 0..Wo-1, Wo-2]
                rows.append(jnp.concatenate(
                    [row[1:2], row, row[Wo - 2:Wo - 1]], axis=0))  # (Wop, Cmid)
            # vertical reflection: rows [1, 0..Ho-1, Ho-2]
            maps.append(jnp.concatenate(
                [rows[1]] + rows + [rows[Ho - 2]], axis=0))        # (PW, Cmid)
        pp_ref[...] = jnp.concatenate(maps, axis=0).astype(jnp.bfloat16)

        # ---------------- conv2: K-stack 9 taps -> single MXU dot -------------
        im2col = jnp.concatenate(
            [pp_ref[ky * Wop + kx: ky * Wop + kx + M2t, :]
             for ky in range(3) for kx in range(3)], axis=1)       # (M2t, 9*Cmid)
        acc2 = jnp.dot(im2col, w2_ref[...],                        # (9*Cmid, Cout)
                       preferred_element_type=jnp.float32) + b2_ref[...]

        # ---------------- drop junk rows, one aligned lane-dense store --------
        o_ref[...] = jnp.concatenate(
            [acc2[b * PW + ho * Wop: b * PW + ho * Wop + Wo, :]
             for b in range(B) for ho in range(Ho)], axis=0)       # (B*Ho*Wo, Cout)

    scratch = [
        pltpu.VMEM((M1t, Cmid), jnp.float32),       # conv1 rows (incl. junk)
        pltpu.VMEM((Lpt, Cmid), jnp.float32),       # pooled value at every row base
        pltpu.VMEM((B * PW, Cmid), jnp.bfloat16),   # padded pooled maps, flattened
    ]
    return kernel, scratch


# -----------------------------------------------------------------------------
# Wrapper: NCHW in / NCHW out, single fused pallas_call (batch folded into M)
# -----------------------------------------------------------------------------
def encoder_head_pallas(feat_nchw, params):
    B, Cin, H, W = feat_nchw.shape
    assert H % 2 == 0 and W % 2 == 0 and H >= 4 and W >= 4, \
        "MaxPool2d(2)+Conv3x3 path assumes even spatial dims >= 4"
    Hp, Wp = H + 2, W + 2
    Ho, Wo = H // 2, W // 2
    Cmid = params["w1_9"].shape[-1]
    Cout = params["w2_flat"].shape[-1]

    # NCHW -> NHWC, reflection pad, flatten (batch, pixels) onto M; feed bf16 so
    # the heavily re-read input slabs are never re-cast inside the kernel.
    x = jnp.transpose(feat_nchw, (0, 2, 3, 1))
    xp = jnp.pad(x, ((0, 0), (1, 1), (1, 1), (0, 0)), mode="reflect")
    xp_flat = xp.reshape(B * Hp * Wp, Cin).astype(jnp.bfloat16)

    kernel, scratch = _make_fused_kernel(B, H, W, Cin, Cmid, Cout)

    out_flat = pl.pallas_call(
        kernel,
        out_shape=jax.ShapeDtypeStruct((B * Ho * Wo, Cout), jnp.float32),
        grid=(1,),
        in_specs=[
            pl.BlockSpec((B * Hp * Wp, Cin), lambda i: (0, 0)),
            pl.BlockSpec((9, Cin, Cmid), lambda i: (0, 0, 0)),
            pl.BlockSpec((1, Cmid), lambda i: (0, 0)),
            pl.BlockSpec((9 * Cmid, Cout), lambda i: (0, 0)),
            pl.BlockSpec((1, Cout), lambda i: (0, 0)),
        ],
        out_specs=pl.BlockSpec((B * Ho * Wo, Cout), lambda i: (0, 0)),
        scratch_shapes=scratch,
        compiler_params=pltpu.CompilerParams(
            dimension_semantics=("arbitrary",)),
    )(xp_flat, params["w1_9"], params["b1_2d"], params["w2_flat"], params["b2_2d"])

    out = out_flat.reshape(B, Ho, Wo, Cout)
    return jnp.transpose(out, (0, 3, 1, 2))        # NHWC -> NCHW (module contract)


# -----------------------------------------------------------------------------
# Deterministic parameter init (shapes follow the module: 512->128, 128->256).
# Kernel-facing weights are stored pre-transposed and pre-cast to bf16.
# -----------------------------------------------------------------------------
def init_params(key, c_in=512, c_mid=128, c_out=256):
    k1, k2, k3, k4 = jax.random.split(key, 4)
    w1 = jax.random.normal(k1, (c_mid, c_in, 3, 3), jnp.float32) / jnp.sqrt(9.0 * c_in)
    b1 = jax.random.normal(k2, (c_mid,), jnp.float32) * 0.5
    w2 = jax.random.normal(k3, (c_out, c_mid, 3, 3), jnp.float32) / jnp.sqrt(9.0 * c_mid)
    b2 = jax.random.normal(k4, (c_out,), jnp.float32) * 0.5

    def to9(w):  # torch OIHW (Cout,Cin,3,3) -> (9, Cin, Cout), tap index = ky*3+kx
        return jnp.transpose(w, (2, 3, 1, 0)).reshape(9, w.shape[1], w.shape[0])

    w1_9 = to9(w1)
    w2_9 = to9(w2)
    return {"w1": w1, "b1": b1, "w2": w2, "b2": b2,
            "w1_9": w1_9.astype(jnp.bfloat16), "b1_2d": b1[None, :],
            "w2_flat": w2_9.reshape(9 * c_mid, c_out).astype(jnp.bfloat16),
            "b2_2d": b2[None, :]}


# -----------------------------------------------------------------------------
# Pure-JAX reference (XLA, f32) for correctness check
# -----------------------------------------------------------------------------
def _ref_conv3x3(x_nchw, w_oihw, b):
    xp = jnp.pad(x_nchw, ((0, 0), (0, 0), (1, 1), (1, 1)), mode="reflect")
    y = lax.conv_general_dilated(xp, w_oihw, (1, 1), "VALID",
                                 dimension_numbers=("NCHW", "OIHW", "NCHW"))
    return y + b[None, :, None, None]


def _ref_maxpool2(x_nchw):
    return lax.reduce_window(x_nchw, -jnp.inf, lax.max,
                             (1, 1, 2, 2), (1, 1, 2, 2), "VALID")


def encoder_head_ref(feat_nchw, params):
    y1 = _ref_conv3x3(feat_nchw, params["w1"], params["b1"])
    return _ref_conv3x3(_ref_maxpool2(y1), params["w2"], params["b2"])


if __name__ == "__main__":
    key = jax.random.PRNGKey(0)
    k_feat, k_par, k_feat2 = jax.random.split(key, 3)

    # ResnetEncoder(18) last feature map: num_ch_enc[-1] = 512, small spatial dims.
    params = init_params(k_par, c_in=512, c_mid=128, c_out=256)
    fwd = jax.jit(encoder_head_pallas)

    # Main case + a non-square case (exercises the junk-row bookkeeping beyond 8x8).
    for (B, Hf, Wf), kf in (((2, 8, 8), k_feat), ((1, 6, 12), k_feat2)):
        feat = jax.random.normal(kf, (B, 512, Hf, Wf), jnp.float32)
        out = jax.block_until_ready(fwd(feat, params))
        ref = jax.block_until_ready(encoder_head_ref(feat, params))
        assert out.shape == (B, 256, Hf // 2, Wf // 2), out.shape
        max_err = float(jnp.max(jnp.abs(out - ref)))
        # bf16 matmul operands with f32 accumulation vs. the f32 XLA reference.
        assert max_err < 5e-2, f"max abs err {max_err} at shape {(B, Hf, Wf)}"

    print("KERNEL_OK")
</pallas_src>

<mosaic_0001>
module attributes {stable_mosaic.version = 11 : i64} {
  func.func @kernel(%arg0: i32, %arg1: memref<200x512xbf16, #tpu.memory_space<vmem>>, %arg2: memref<9x512x128xbf16, #tpu.memory_space<vmem>>, %arg3: memref<1x128xf32, #tpu.memory_space<vmem>>, %arg4: memref<1152x256xbf16, #tpu.memory_space<vmem>>, %arg5: memref<1x256xf32, #tpu.memory_space<vmem>>, %arg6: memref<32x256xf32, #tpu.memory_space<vmem>>, %arg7: memref<178x128xf32, #tpu.memory_space<vmem>>, %arg8: memref<167x128xf32, #tpu.memory_space<vmem>>, %arg9: memref<72x128xbf16, #tpu.memory_space<vmem>>) attributes {dimension_semantics = [#tpu.dimension_semantics<arbitrary>], iteration_bounds = array<i64: 1>, scalar_prefetch = 0 : i64, scratch_operands = 3 : i64, tpu.core_type = #tpu.core_type<tc>, window_params = [{pipeline_mode = #tpu.pipeline_mode<synchronous>, transform_indices = @transform_0, window_bounds = array<i64: 200, 512>}, {pipeline_mode = #tpu.pipeline_mode<synchronous>, transform_indices = @transform_1, window_bounds = array<i64: 9, 512, 128>}, {pipeline_mode = #tpu.pipeline_mode<synchronous>, transform_indices = @transform_2, window_bounds = array<i64: 1, 128>}, {pipeline_mode = #tpu.pipeline_mode<synchronous>, transform_indices = @transform_3, window_bounds = array<i64: 1152, 256>}, {pipeline_mode = #tpu.pipeline_mode<synchronous>, transform_indices = @transform_4, window_bounds = array<i64: 1, 256>}, {pipeline_mode = #tpu.pipeline_mode<synchronous>, transform_indices = @transform_5, window_bounds = array<i64: 32, 256>}]} {
    %cst = arith.constant 0.000000e+00 : f32
    %0 = vector.broadcast %cst : f32 to vector<178x128xf32>
    %c0 = arith.constant 0 : index
    %c0_0 = arith.constant 0 : index
    %1 = vector.load %arg1[%c0, %c0_0] : memref<200x512xbf16, #tpu.memory_space<vmem>>, vector<178x512xbf16>
    %c0_1 = arith.constant 0 : index
    %c0_2 = arith.constant 0 : index
    %c0_3 = arith.constant 0 : index
    %2 = vector.load %arg2[%c0_1, %c0_2, %c0_3] : memref<9x512x128xbf16, #tpu.memory_space<vmem>>, vector<1x512x128xbf16>
    %3 = vector.shape_cast %2 : vector<1x512x128xbf16> to vector<512x128xbf16>
    %cst_4 = arith.constant dense<0.000000e+00> : vector<178x128xf32>
    %4 = tpu.matmul %1, %3, %cst_4 {dimension_numbers = #tpu.dot_dimension_numbers<[1], [0], [0], [1], [0, 0, 1, 1], [], []>} : vector<178x512xbf16>, vector<512x128xbf16>, vector<178x128xf32> -> vector<178x128xf32>
    %5 = arith.addf %0, %4 : vector<178x128xf32>
    %c1 = arith.constant 1 : index
    %c0_5 = arith.constant 0 : index
    %6 = vector.load %arg1[%c1, %c0_5] : memref<200x512xbf16, #tpu.memory_space<vmem>>, vector<178x512xbf16>
    %c1_6 = arith.constant 1 : index
    %c0_7 = arith.constant 0 : index
    %c0_8 = arith.constant 0 : index
    %7 = vector.load %arg2[%c1_6, %c0_7, %c0_8] : memref<9x512x128xbf16, #tpu.memory_space<vmem>>, vector<1x512x128xbf16>
    %8 = vector.shape_cast %7 : vector<1x512x128xbf16> to vector<512x128xbf16>
    %cst_9 = arith.constant dense<0.000000e+00> : vector<178x128xf32>
    %9 = tpu.matmul %6, %8, %cst_9 {dimension_numbers = #tpu.dot_dimension_numbers<[1], [0], [0], [1], [0, 0, 1, 1], [], []>} : vector<178x512xbf16>, vector<512x128xbf16>, vector<178x128xf32> -> vector<178x128xf32>
    %10 = arith.addf %5, %9 : vector<178x128xf32>
    %c2 = arith.constant 2 : index
    %c0_10 = arith.constant 0 : index
    %11 = vector.load %arg1[%c2, %c0_10] : memref<200x512xbf16, #tpu.memory_space<vmem>>, vector<178x512xbf16>
    %c2_11 = arith.constant 2 : index
    %c0_12 = arith.constant 0 : index
    %c0_13 = arith.constant 0 : index
    %12 = vector.load %arg2[%c2_11, %c0_12, %c0_13] : memref<9x512x128xbf16, #tpu.memory_space<vmem>>, vector<1x512x128xbf16>
    %13 = vector.shape_cast %12 : vector<1x512x128xbf16> to vector<512x128xbf16>
    %cst_14 = arith.constant dense<0.000000e+00> : vector<178x128xf32>
    %14 = tpu.matmul %11, %13, %cst_14 {dimension_numbers = #tpu.dot_dimension_numbers<[1], [0], [0], [1], [0, 0, 1, 1], [], []>} : vector<178x512xbf16>, vector<512x128xbf16>, vector<178x128xf32> -> vector<178x128xf32>
    %15 = arith.addf %10, %14 : vector<178x128xf32>
    %c10 = arith.constant 10 : index
    %c0_15 = arith.constant 0 : index
    %16 = vector.load %arg1[%c10, %c0_15] : memref<200x512xbf16, #tpu.memory_space<vmem>>, vector<178x512xbf16>
    %c3 = arith.constant 3 : index
    %c0_16 = arith.constant 0 : index
    %c0_17 = arith.constant 0 : index
    %17 = vector.load %arg2[%c3, %c0_16, %c0_17] : memref<9x512x128xbf16, #tpu.memory_space<vmem>>, vector<1x512x128xbf16>
    %18 = vector.shape_cast %17 : vector<1x512x128xbf16> to vector<512x128xbf16>
    %cst_18 = arith.constant dense<0.000000e+00> : vector<178x128xf32>
    %19 = tpu.matmul %16, %18, %cst_18 {dimension_numbers = #tpu.dot_dimension_numbers<[1], [0], [0], [1], [0, 0, 1, 1], [], []>} : vector<178x512xbf16>, vector<512x128xbf16>, vector<178x128xf32> -> vector<178x128xf32>
    %20 = arith.addf %15, %19 : vector<178x128xf32>
    %c11 = arith.constant 11 : index
    %c0_19 = arith.constant 0 : index
    %21 = vector.load %arg1[%c11, %c0_19] : memref<200x512xbf16, #tpu.memory_space<vmem>>, vector<178x512xbf16>
    %c4 = arith.constant 4 : index
    %c0_20 = arith.constant 0 : index
    %c0_21 = arith.constant 0 : index
    %22 = vector.load %arg2[%c4, %c0_20, %c0_21] : memref<9x512x128xbf16, #tpu.memory_space<vmem>>, vector<1x512x128xbf16>
    %23 = vector.shape_cast %22 : vector<1x512x128xbf16> to vector<512x128xbf16>
    %cst_22 = arith.constant dense<0.000000e+00> : vector<178x128xf32>
    %24 = tpu.matmul %21, %23, %cst_22 {dimension_numbers = #tpu.dot_dimension_numbers<[1], [0], [0], [1], [0, 0, 1, 1], [], []>} : vector<178x512xbf16>, vector<512x128xbf16>, vector<178x128xf32> -> vector<178x128xf32>
    %25 = arith.addf %20, %24 : vector<178x128xf32>
    %c12 = arith.constant 12 : index
    %c0_23 = arith.constant 0 : index
    %26 = vector.load %arg1[%c12, %c0_23] : memref<200x512xbf16, #tpu.memory_space<vmem>>, vector<178x512xbf16>
    %c5 = arith.constant 5 : index
    %c0_24 = arith.constant 0 : index
    %c0_25 = arith.constant 0 : index
    %27 = vector.load %arg2[%c5, %c0_24, %c0_25] : memref<9x512x128xbf16, #tpu.memory_space<vmem>>, vector<1x512x128xbf16>
    %28 = vector.shape_cast %27 : vector<1x512x128xbf16> to vector<512x128xbf16>
    %cst_26 = arith.constant dense<0.000000e+00> : vector<178x128xf32>
    %29 = tpu.matmul %26, %28, %cst_26 {dimension_numbers = #tpu.dot_dimension_numbers<[1], [0], [0], [1], [0, 0, 1, 1], [], []>} : vector<178x512xbf16>, vector<512x128xbf16>, vector<178x128xf32> -> vector<178x128xf32>
    %30 = arith.addf %25, %29 : vector<178x128xf32>
    %c20 = arith.constant 20 : index
    %c0_27 = arith.constant 0 : index
    %31 = vector.load %arg1[%c20, %c0_27] : memref<200x512xbf16, #tpu.memory_space<vmem>>, vector<178x512xbf16>
    %c6 = arith.constant 6 : index
    %c0_28 = arith.constant 0 : index
    %c0_29 = arith.constant 0 : index
    %32 = vector.load %arg2[%c6, %c0_28, %c0_29] : memref<9x512x128xbf16, #tpu.memory_space<vmem>>, vector<1x512x128xbf16>
    %33 = vector.shape_cast %32 : vector<1x512x128xbf16> to vector<512x128xbf16>
    %cst_30 = arith.constant dense<0.000000e+00> : vector<178x128xf32>
    %34 = tpu.matmul %31, %33, %cst_30 {dimension_numbers = #tpu.dot_dimension_numbers<[1], [0], [0], [1], [0, 0, 1, 1], [], []>} : vector<178x512xbf16>, vector<512x128xbf16>, vector<178x128xf32> -> vector<178x128xf32>
    %35 = arith.addf %30, %34 : vector<178x128xf32>
    %c21 = arith.constant 21 : index
    %c0_31 = arith.constant 0 : index
    %36 = vector.load %arg1[%c21, %c0_31] : memref<200x512xbf16, #tpu.memory_space<vmem>>, vector<178x512xbf16>
    %c7 = arith.constant 7 : index
    %c0_32 = arith.constant 0 : index
    %c0_33 = arith.constant 0 : index
    %37 = vector.load %arg2[%c7, %c0_32, %c0_33] : memref<9x512x128xbf16, #tpu.memory_space<vmem>>, vector<1x512x128xbf16>
    %38 = vector.shape_cast %37 : vector<1x512x128xbf16> to vector<512x128xbf16>
    %cst_34 = arith.constant dense<0.000000e+00> : vector<178x128xf32>
    %39 = tpu.matmul %36, %38, %cst_34 {dimension_numbers = #tpu.dot_dimension_numbers<[1], [0], [0], [1], [0, 0, 1, 1], [], []>} : vector<178x512xbf16>, vector<512x128xbf16>, vector<178x128xf32> -> vector<178x128xf32>
    %40 = arith.addf %35, %39 : vector<178x128xf32>
    %c22 = arith.constant 22 : index
    %c0_35 = arith.constant 0 : index
    %41 = vector.load %arg1[%c22, %c0_35] : memref<200x512xbf16, #tpu.memory_space<vmem>>, vector<178x512xbf16>
    %c8 = arith.constant 8 : index
    %c0_36 = arith.constant 0 : index
    %c0_37 = arith.constant 0 : index
    %42 = vector.load %arg2[%c8, %c0_36, %c0_37] : memref<9x512x128xbf16, #tpu.memory_space<vmem>>, vector<1x512x128xbf16>
    %43 = vector.shape_cast %42 : vector<1x512x128xbf16> to vector<512x128xbf16>
    %cst_38 = arith.constant dense<0.000000e+00> : vector<178x128xf32>
    %44 = tpu.matmul %41, %43, %cst_38 {dimension_numbers = #tpu.dot_dimension_numbers<[1], [0], [0], [1], [0, 0, 1, 1], [], []>} : vector<178x512xbf16>, vector<512x128xbf16>, vector<178x128xf32> -> vector<178x128xf32>
    %45 = arith.addf %40, %44 : vector<178x128xf32>
    %c0_39 = arith.constant 0 : index
    %c0_40 = arith.constant 0 : index
    %46 = vector.load %arg3[%c0_39, %c0_40] : memref<1x128xf32, #tpu.memory_space<vmem>>, vector<1x128xf32>
    %47 = vector.broadcast %46 : vector<1x128xf32> to vector<178x128xf32>
    %48 = arith.addf %45, %47 : vector<178x128xf32>
    %c0_41 = arith.constant 0 : index
    %c0_42 = arith.constant 0 : index
    %49 = vector.load %arg7[%c0_41, %c0_42] : memref<178x128xf32, #tpu.memory_space<vmem>>, vector<178x128xf32>
    tpu.vector_store %arg7[%c0_41, %c0_42], %48 {strides = array<i32>} : memref<178x128xf32, #tpu.memory_space<vmem>>, vector<178x128xf32>,
    %c0_43 = arith.constant 0 : index
    %c0_44 = arith.constant 0 : index
    %50 = vector.load %arg7[%c0_43, %c0_44] : memref<178x128xf32, #tpu.memory_space<vmem>>, vector<167x128xf32>
    %c1_45 = arith.constant 1 : index
    %c0_46 = arith.constant 0 : index
    %51 = vector.load %arg7[%c1_45, %c0_46] : memref<178x128xf32, #tpu.memory_space<vmem>>, vector<167x128xf32>
    %52 = arith.maximumf %50, %51 : vector<167x128xf32>
    %c10_47 = arith.constant 10 : index
    %c0_48 = arith.constant 0 : index
    %53 = vector.load %arg7[%c10_47, %c0_48] : memref<178x128xf32, #tpu.memory_space<vmem>>, vector<167x128xf32>
    %c11_49 = arith.constant 11 : index
    %c0_50 = arith.constant 0 : index
    %54 = vector.load %arg7[%c11_49, %c0_50] : memref<178x128xf32, #tpu.memory_space<vmem>>, vector<167x128xf32>
    %55 = arith.maximumf %53, %54 : vector<167x128xf32>
    %56 = arith.maximumf %52, %55 : vector<167x128xf32>
    %c0_51 = arith.constant 0 : index
    %c0_52 = arith.constant 0 : index
    %57 = vector.load %arg8[%c0_51, %c0_52] : memref<167x128xf32, #tpu.memory_space<vmem>>, vector<167x128xf32>
    tpu.vector_store %arg8[%c0_51, %c0_52], %56 {strides = array<i32>} : memref<167x128xf32, #tpu.memory_space<vmem>>, vector<167x128xf32>,
    %c0_53 = arith.constant 0 : index
    %c0_54 = arith.constant 0 : index
    %58 = tpu.strided_load %arg8[%c0_53, %c0_54] {strides = array<i32: 2, 1>} : memref<167x128xf32, #tpu.memory_space<vmem>>, vector<4x128xf32>
    %59 = vector.extract_strided_slice %58 {offsets = [1, 0], sizes = [1, 128], strides = [1, 1]} : vector<4x128xf32> to vector<1x128xf32>
    %60 = vector.extract_strided_slice %58 {offsets = [2, 0], sizes = [1, 128], strides = [1, 1]} : vector<4x128xf32> to vector<1x128xf32>
    %61 = tpu.concatenate %59, %58, %60 in 0 : vector<1x128xf32>, vector<4x128xf32>, vector<1x128xf32> -> vector<6x128xf32>
    %c20_55 = arith.constant 20 : index
    %c0_56 = arith.constant 0 : index
    %62 = tpu.strided_load %arg8[%c20_55, %c0_56] {strides = array<i32: 2, 1>} : memref<167x128xf32, #tpu.memory_space<vmem>>, vector<4x128xf32>
    %63 = vector.extract_strided_slice %62 {offsets = [1, 0], sizes = [1, 128], strides = [1, 1]} : vector<4x128xf32> to vector<1x128xf32>
    %64 = vector.extract_strided_slice %62 {offsets = [2, 0], sizes = [1, 128], strides = [1, 1]} : vector<4x128xf32> to vector<1x128xf32>
    %65 = tpu.concatenate %63, %62, %64 in 0 : vector<1x128xf32>, vector<4x128xf32>, vector<1x128xf32> -> vector<6x128xf32>
    %c40 = arith.constant 40 : index
    %c0_57 = arith.constant 0 : index
    %66 = tpu.strided_load %arg8[%c40, %c0_57] {strides = array<i32: 2, 1>} : memref<167x128xf32, #tpu.memory_space<vmem>>, vector<4x128xf32>
    %67 = vector.extract_strided_slice %66 {offsets = [1, 0], sizes = [1, 128], strides = [1, 1]} : vector<4x128xf32> to vector<1x128xf32>
    %68 = vector.extract_strided_slice %66 {offsets = [2, 0], sizes = [1, 128], strides = [1, 1]} : vector<4x128xf32> to vector<1x128xf32>
    %69 = tpu.concatenate %67, %66, %68 in 0 : vector<1x128xf32>, vector<4x128xf32>, vector<1x128xf32> -> vector<6x128xf32>
    %c60 = arith.constant 60 : index
    %c0_58 = arith.constant 0 : index
    %70 = tpu.strided_load %arg8[%c60, %c0_58] {strides = array<i32: 2, 1>} : memref<167x128xf32, #tpu.memory_space<vmem>>, vector<4x128xf32>
    %71 = vector.extract_strided_slice %70 {offsets = [1, 0], sizes = [1, 128], strides = [1, 1]} : vector<4x128xf32> to vector<1x128xf32>
    %72 = vector.extract_strided_slice %70 {offsets = [2, 0], sizes = [1, 128], strides = [1, 1]} : vector<4x128xf32> to vector<1x128xf32>
    %73 = tpu.concatenate %71, %70, %72 in 0 : vector<1x128xf32>, vector<4x128xf32>, vector<1x128xf32> -> vector<6x128xf32>
    %74 = tpu.concatenate %65, %61, %65, %69, %73, %69 in 0 : vector<6x128xf32>, vector<6x128xf32>, vector<6x128xf32>, vector<6x128xf32>, vector<6x128xf32>, vector<6x128xf32> -> vector<36x128xf32>
    %c100 = arith.constant 100 : index
    %c0_59 = arith.constant 0 : index
    %75 = tpu.strided_load %arg8[%c100, %c0_59] {strides = array<i32: 2, 1>} : memref<167x128xf32, #tpu.memory_space<vmem>>, vector<4x128xf32>
    %76 = vector.extract_strided_slice %75 {offsets = [1, 0], sizes = [1, 128], strides = [1, 1]} : vector<4x128xf32> to vector<1x128xf32>
    %77 = vector.extract_strided_slice %75 {offsets = [2, 0], sizes = [1, 128], strides = [1, 1]} : vector<4x128xf32> to vector<1x128xf32>
    %78 = tpu.concatenate %76, %75, %77 in 0 : vector<1x128xf32>, vector<4x128xf32>, vector<1x128xf32> -> vector<6x128xf32>
    %c120 = arith.constant 120 : index
    %c0_60 = arith.constant 0 : index
    %79 = tpu.strided_load %arg8[%c120, %c0_60] {strides = array<i32: 2, 1>} : memref<167x128xf32, #tpu.memory_space<vmem>>, vector<4x128xf32>
    %80 = vector.extract_strided_slice %79 {offsets = [1, 0], sizes = [1, 128], strides = [1, 1]} : vector<4x128xf32> to vector<1x128xf32>
    %81 = vector.extract_strided_slice %79 {offsets = [2, 0], sizes = [1, 128], strides = [1, 1]} : vector<4x128xf32> to vector<1x128xf32>
    %82 = tpu.concatenate %80, %79, %81 in 0 : vector<1x128xf32>, vector<4x128xf32>, vector<1x128xf32> -> vector<6x128xf32>
    %c140 = arith.constant 140 : index
    %c0_61 = arith.constant 0 : index
    %83 = tpu.strided_load %arg8[%c140, %c0_61] {strides = array<i32: 2, 1>} : memref<167x128xf32, #tpu.memory_space<vmem>>, vector<4x128xf32>
    %84 = vector.extract_strided_slice %83 {offsets = [1, 0], sizes = [1, 128], strides = [1, 1]} : vector<4x128xf32> to vector<1x128xf32>
    %85 = vector.extract_strided_slice %83 {offsets = [2, 0], sizes = [1, 128], strides = [1, 1]} : vector<4x128xf32> to vector<1x128xf32>
    %86 = tpu.concatenate %84, %83, %85 in 0 : vector<1x128xf32>, vector<4x128xf32>, vector<1x128xf32> -> vector<6x128xf32>
    %c160 = arith.constant 160 : index
    %c0_62 = arith.constant 0 : index
    %87 = tpu.strided_load %arg8[%c160, %c0_62] {strides = array<i32: 2, 1>} : memref<167x128xf32, #tpu.memory_space<vmem>>, vector<4x128xf32>
    %88 = vector.extract_strided_slice %87 {offsets = [1, 0], sizes = [1, 128], strides = [1, 1]} : vector<4x128xf32> to vector<1x128xf32>
    %89 = vector.extract_strided_slice %87 {offsets = [2, 0], sizes = [1, 128], strides = [1, 1]} : vector<4x128xf32> to vector<1x128xf32>
    %90 = tpu.concatenate %88, %87, %89 in 0 : vector<1x128xf32>, vector<4x128xf32>, vector<1x128xf32> -> vector<6x128xf32>
    %91 = tpu.concatenate %82, %78, %82, %86, %90, %86 in 0 : vector<6x128xf32>, vector<6x128xf32>, vector<6x128xf32>, vector<6x128xf32>, vector<6x128xf32>, vector<6x128xf32> -> vector<36x128xf32>
    %92 = tpu.concatenate %74, %91 in 0 : vector<36x128xf32>, vector<36x128xf32> -> vector<72x128xf32>
    %93 = arith.truncf %92 : vector<72x128xf32> to vector<72x128xbf16>
    %c0_63 = arith.constant 0 : index
    %c0_64 = arith.constant 0 : index
    %94 = vector.load %arg9[%c0_63, %c0_64] : memref<72x128xbf16, #tpu.memory_space<vmem>>, vector<72x128xbf16>
    tpu.vector_store %arg9[%c0_63, %c0_64], %93 {strides = array<i32>} : memref<72x128xbf16, #tpu.memory_space<vmem>>, vector<72x128xbf16>,
    %c0_65 = arith.constant 0 : index
    %c0_66 = arith.constant 0 : index
    %95 = vector.load %arg9[%c0_65, %c0_66] : memref<72x128xbf16, #tpu.memory_space<vmem>>, vector<58x128xbf16>
    %c1_67 = arith.constant 1 : index
    %c0_68 = arith.constant 0 : index
    %96 = vector.load %arg9[%c1_67, %c0_68] : memref<72x128xbf16, #tpu.memory_space<vmem>>, vector<58x128xbf16>
    %c2_69 = arith.constant 2 : index
    %c0_70 = arith.constant 0 : index
    %97 = vector.load %arg9[%c2_69, %c0_70] : memref<72x128xbf16, #tpu.memory_space<vmem>>, vector<58x128xbf16>
    %c6_71 = arith.constant 6 : index
    %c0_72 = arith.constant 0 : index
    %98 = vector.load %arg9[%c6_71, %c0_72] : memref<72x128xbf16, #tpu.memory_space<vmem>>, vector<58x128xbf16>
    %c7_73 = arith.constant 7 : index
    %c0_74 = arith.constant 0 : index
    %99 = vector.load %arg9[%c7_73, %c0_74] : memref<72x128xbf16, #tpu.memory_space<vmem>>, vector<58x128xbf16>
    %c8_75 = arith.constant 8 : index
    %c0_76 = arith.constant 0 : index
    %100 = vector.load %arg9[%c8_75, %c0_76] : memref<72x128xbf16, #tpu.memory_space<vmem>>, vector<58x128xbf16>
    %c12_77 = arith.constant 12 : index
    %c0_78 = arith.constant 0 : index
    %101 = vector.load %arg9[%c12_77, %c0_78] : memref<72x128xbf16, #tpu.memory_space<vmem>>, vector<58x128xbf16>
    %c13 = arith.constant 13 : index
    %c0_79 = arith.constant 0 : index
    %102 = vector.load %arg9[%c13, %c0_79] : memref<72x128xbf16, #tpu.memory_space<vmem>>, vector<58x128xbf16>
    %c14 = arith.constant 14 : index
    %c0_80 = arith.constant 0 : index
    %103 = vector.load %arg9[%c14, %c0_80] : memref<72x128xbf16, #tpu.memory_space<vmem>>, vector<58x128xbf16>
    %104 = tpu.concatenate %95, %96, %97, %98, %99, %100, %101, %102, %103 in 1 : vector<58x128xbf16>, vector<58x128xbf16>, vector<58x128xbf16>, vector<58x128xbf16>, vector<58x128xbf16>, vector<58x128xbf16>, vector<58x128xbf16>, vector<58x128xbf16>, vector<58x128xbf16> -> vector<58x1152xbf16>
    %c0_81 = arith.constant 0 : index
    %c0_82 = arith.constant 0 : index
    %105 = vector.load %arg4[%c0_81, %c0_82] : memref<1152x256xbf16, #tpu.memory_space<vmem>>, vector<1152x256xbf16>
    %cst_83 = arith.constant dense<0.000000e+00> : vector<58x256xf32>
    %106 = tpu.matmul %104, %105, %cst_83 {dimension_numbers = #tpu.dot_dimension_numbers<[1], [0], [0], [1], [0, 0, 1, 1], [], []>} : vector<58x1152xbf16>, vector<1152x256xbf16>, vector<58x256xf32> -> vector<58x256xf32>
    %c0_84 = arith.constant 0 : index
    %c0_85 = arith.constant 0 : index
    %107 = vector.load %arg5[%c0_84, %c0_85] : memref<1x256xf32, #tpu.memory_space<vmem>>, vector<1x256xf32>
    %108 = vector.broadcast %107 : vector<1x256xf32> to vector<58x256xf32>
    %109 = arith.addf %106, %108 : vector<58x256xf32>
    %110 = vector.extract_strided_slice %109 {offsets = [0, 0], sizes = [4, 256], strides = [1, 1]} : vector<58x256xf32> to vector<4x256xf32>
    %111 = vector.extract_strided_slice %109 {offsets = [6, 0], sizes = [4, 256], strides = [1, 1]} : vector<58x256xf32> to vector<4x256xf32>
    %112 = vector.extract_strided_slice %109 {offsets = [12, 0], sizes = [4, 256], strides = [1, 1]} : vector<58x256xf32> to vector<4x256xf32>
    %113 = vector.extract_strided_slice %109 {offsets = [18, 0], sizes = [4, 256], strides = [1, 1]} : vector<58x256xf32> to vector<4x256xf32>
    %114 = vector.extract_strided_slice %109 {offsets = [36, 0], sizes = [4, 256], strides = [1, 1]} : vector<58x256xf32> to vector<4x256xf32>
    %115 = vector.extract_strided_slice %109 {offsets = [42, 0], sizes = [4, 256], strides = [1, 1]} : vector<58x256xf32> to vector<4x256xf32>
    %116 = vector.extract_strided_slice %109 {offsets = [48, 0], sizes = [4, 256], strides = [1, 1]} : vector<58x256xf32> to vector<4x256xf32>
    %117 = vector.extract_strided_slice %109 {offsets = [54, 0], sizes = [4, 256], strides = [1, 1]} : vector<58x256xf32> to vector<4x256xf32>
    %118 = tpu.concatenate %110, %111, %112, %113, %114, %115, %116, %117 in 0 : vector<4x256xf32>, vector<4x256xf32>, vector<4x256xf32>, vector<4x256xf32>, vector<4x256xf32>, vector<4x256xf32>, vector<4x256xf32>, vector<4x256xf32> -> vector<32x256xf32>
    %c0_86 = arith.constant 0 : index
    %c0_87 = arith.constant 0 : index
    %119 = vector.load %arg6[%c0_86, %c0_87] : memref<32x256xf32, #tpu.memory_space<vmem>>, vector<32x256xf32>
    tpu.vector_store %arg6[%c0_86, %c0_87], %118 {strides = array<i32>} : memref<32x256xf32, #tpu.memory_space<vmem>>, vector<32x256xf32>,
    return
  }
  func.func @transform_0(%arg0: i32) -> (i32, i32) {
    %c0_i32 = arith.constant 0 : i32
    %c0_i32_0 = arith.constant 0 : i32
    %c0_i32_1 = arith.constant 0 : i32
    return %c0_i32, %c0_i32_0 : i32, i32
  }
  func.func @transform_1(%arg0: i32) -> (i32, i32, i32) {
    %c0_i32 = arith.constant 0 : i32
    %c0_i32_0 = arith.constant 0 : i32
    %c0_i32_1 = arith.constant 0 : i32
    %c0_i32_2 = arith.constant 0 : i32
    return %c0_i32, %c0_i32_0, %c0_i32_1 : i32, i32, i32
  }
  func.func @transform_2(%arg0: i32) -> (i32, i32) {
    %c0_i32 = arith.constant 0 : i32
    %c0_i32_0 = arith.constant 0 : i32
    %c0_i32_1 = arith.constant 0 : i32
    return %c0_i32, %c0_i32_0 : i32, i32
  }
  func.func @transform_3(%arg0: i32) -> (i32, i32) {
    %c0_i32 = arith.constant 0 : i32
    %c0_i32_0 = arith.constant 0 : i32
    %c0_i32_1 = arith.constant 0 : i32
    return %c0_i32, %c0_i32_0 : i32, i32
  }
  func.func @transform_4(%arg0: i32) -> (i32, i32) {
    %c0_i32 = arith.constant 0 : i32
    %c0_i32_0 = arith.constant 0 : i32
    %c0_i32_1 = arith.constant 0 : i32
    return %c0_i32, %c0_i32_0 : i32, i32
  }
  func.func @transform_5(%arg0: i32) -> (i32, i32) {
    %c0_i32 = arith.constant 0 : i32
    %c0_i32_0 = arith.constant 0 : i32
    %c0_i32_1 = arith.constant 0 : i32
    return %c0_i32, %c0_i32_0 : i32, i32
  }
}

</mosaic_0001>

<bundles_post_ra>
// kernel: encoder_head_pallas.1
= control target key start
LH: loop header
LB: loop body
LE: loop exit
PB: predicated region body
PF: predicated region fallthrough
CT: control target
= control target key end

     0   :  { %vm383_vm0 = vsmask.f32 7424  ;;  %vm1875_vm1 = vcmask 1046528   ;;  %vm3504_vm2 = vsmask.f32 6400  ;;  %vm4545_vm3 = vcmask 1045504   ;;  %s19064_s1 = inlined_call_operand.vmem [shape: bf16[9,512,128], index: 1, kind: input, shape index: {}]   ;;  %s19065_s0 = inlined_call_operand.vmem [shape: bf16[200,512], index: 0, kind: input, shape index: {}]   ;;  %s19066_s2 = inlined_call_operand.vmem [shape: f32[1,128], index: 2, kind: input, shape index: {}]   ;;  %s19067_s3 = inlined_call_operand.vmem [shape: bf16[1152,256], index: 3, kind: input, shape index: {}]   ;;  %s19068_s4 = inlined_call_operand.vmem [shape: f32[1,256], index: 4, kind: input, shape index: {}]   ;;  %s19069_s5 = inlined_call_operand.vmem [shape: f32[32,256], index: 5, kind: output, shape index: {}]  }
   0x1   :  { %v12734_v0 = vld [vmem:[%s19064_s1 + $0x138] sm:$0xff]  ;;  %v12733_v2 = vld [vmem:[%s19064_s1 + $0x130] sm:$0xff]  ;;  %v12732_v4 = vld [vmem:[%s19064_s1 + $0x128] sm:$0xff]  ;;  %vm6174_vm4 = vsmask.f32 5376  ;;  %vm7215_vm5 = vcmask 1044480  }
   0x2   :  { %v12742_v1 = vld [vmem:[%s19064_s1 + $0x178] sm:$0xff]  ;;  %1004 = vmatpush.bf16.msra.mxu0 %v12734_v0  ;;  %13265 = vmatpush.bf16.msra.mxu2 %v12734_v0  ;;  %v12741_v3 = vld [vmem:[%s19064_s1 + $0x170] sm:$0xff]  ;;  %v20_v5 = vld [vmem:[%s19065_s0] sm:$0xff]  ;;  %vm8069_vm6 = vcmask 1040384   ;;  %vm8119_vm7 = vcmask 1043456   ;;  %vm8121_vm8 = vcmask 1041408  }
   0x3   :  { %13273 = vmatpush.bf16.msra.mxu3 %v12742_v1  ;;  %1072 = vmatpush.bf16.msra.mxu1 %v12742_v1  ;;  %v13338_v6 = vld [vmem:[%s19065_s0 + $0x10] sm:$0xff]  ;;  %v12740_v7 = vld [vmem:[%s19064_s1 + $0x168] sm:$0xff]  ;;  %v12731_v8 = vld [vmem:[%s19064_s1 + $0x120] sm:$0xff]  ;;  %v243_v9 = vunpack.c.l.b16 %v20_v5  ;;  %v244_v17 = vunpack.c.h.b16 %v20_v5  ;;  %vm8361_vm9 = vsmask.f32 4352 }
   0x4   :  { %19254 = vst [vmem:[#allocation5_spill] sm:$0xff] %v13338_v6  ;;  %v19073_v10 = vunpack.c.l.b16 %v13338_v6  ;;  %v12739_v11 = vld [vmem:[%s19064_s1 + $0x160] sm:$0xff]  ;;  %v12693_v13 = vld [vmem:[%s19065_s0 + $0x14c] sm:$0xf0]  ;;  %v10139_v16 = vld [vmem:[%s19065_s0 + $0x150] sm:$0xf0]  ;;  %v19072_v18 = vunpack.c.h.b16 %v13338_v6 }
   0x5   :  { %v10137_v12 = vld [vmem:[%s19065_s0 + $0x140] sm:$0xf]  ;;  %v12691_v15 = vld [vmem:[%s19065_s0 + $0x144] sm:$0xf]  ;;  %v12730_v20 = vld [vmem:[%s19064_s1 + $0x118] sm:$0xff] }
   0x6   :  { %1005 = vmatpush.bf16.msra.mxu0 %v12733_v2  ;;  %13266 = vmatpush.bf16.msra.mxu2 %v12733_v2  ;;  %v130_v14 = vld [vmem:[%s19065_s0 + $0x160] sm:$0x33]  ;;  %v13368_v19 = vpack.c.b16 %v19073_v10, %v243_v9  ;;  %v12657_v22 = vld [vmem:[%s19065_s0 + $0x2c] sm:$0xf0]  ;;  %v13379_v24 = vor.u32 %v12693_v13, %v10137_v12  ;;  %v13381_v25 = vor.u32 %v12691_v15, %v10139_v16  ;;  %v12738_v26 = vld [vmem:[%s19064_s1 + $0x158] sm:$0xff] }
   0x7   :  { %13274 = vmatpush.bf16.msra.mxu3 %v12741_v3  ;;  %1073 = vmatpush.bf16.msra.mxu1 %v12741_v3  ;;  %v9993_v21 = vld [vmem:[%s19065_s0 + $0x20] sm:$0xf]  ;;  %v331_v23 = vunpack.c.l.b16 %v130_v14  ;;  %v332_v27 = vunpack.c.h.b16 %v130_v14  ;;  %v13388_v28 = vpack.c.b16 %v19072_v18, %v244_v17  ;;  %v12655_v29 = vld [vmem:[%s19065_s0 + $0x24] sm:$0xf]  ;;  %v9995_v30 = vld [vmem:[%s19065_s0 + $0x30] sm:$0xf0] }
   0x8   :  { %19255 = vst [vmem:[#allocation6_spill] sm:$0xff] %v13379_v24  ;;  %v13396_v31 = vor.u32 %v12657_v22, %v9993_v21  ;;  %v387_v32 = vshll.u32 %v13368_v19, 16  ;;  %v12729_v33 = vld [vmem:[%s19064_s1 + $0x110] sm:$0xff]  ;;  %v692_v35 = vshll.u32 %v13379_v24, 16  ;;  %v700_v36 = vshll.u32 %v13381_v25, 16  ;;  %v12728_v45 = vld [vmem:[%s19064_s1 + $0x108] sm:$0xff] }
   0x9   :  { %19256 = vst [vmem:[#allocation7_spill] sm:$0xff] %v13381_v25  ;;  %v13402_v34 = vpack.c.b16 %v331_v23, %v331_v23  ;;  %v12737_v37 = vld [vmem:[%s19064_s1 + $0x150] sm:$0xff]  ;;  %v13409_v38 = vpack.c.b16 %v332_v27, %v332_v27  ;;  %v13411_v39 = vor.u32 %v12655_v29, %v9995_v30  ;;  %v399_v40 = vshll.u32 %v13388_v28, 16  ;;  %v12736_v50 = vld [vmem:[%s19064_s1 + $0x148] sm:$0xff]  ;;  %v12727_v55 = vld [vmem:[%s19064_s1 + $0x100] sm:$0xff] }
   0xa   :  { %1006 = vmatpush.bf16.msra.mxu0 %v12732_v4  ;;  %13267 = vmatpush.bf16.msra.mxu2 %v12732_v4  ;;  %19257 = vst [vmem:[#allocation8_spill] sm:$0xff] %v13396_v31  ;;  %v385_v41 = vshrl.u32 %v13368_v19, 16  ;;  %v389_v42 = vrot.slane %v387_v32, 1  ;;  %v392_v43 = vshll.u32 %v13396_v31, 16  ;;  %v720_v44 = vshrl.u32 %v13379_v24, 16  ;;  %v12735_v60 = vld [vmem:[%s19064_s1 + $0x140] sm:$0xff] }
   0xb   :  { %13275 = vmatpush.bf16.msra.mxu3 %v12740_v7  ;;  %1074 = vmatpush.bf16.msra.mxu1 %v12740_v7  ;;  %19258 = vst [vmem:[#allocation9_spill] sm:$0xff] %v13402_v34  ;;  %v13420_v46 = vrot.slane %v692_v35, 1  ;;  %v724_v47 = vshll.u32 %v13402_v34, 16  ;;  %v13423_v48 = vrot.slane %v700_v36, 1  ;;  %v728_v49 = vshrl.u32 %v13381_v25, 16  ;;  %v12750_v1 = vld [vmem:[%s19064_s1 + $0x1b8] sm:$0xff] }
   0xc   :  { %19259 = vst [vmem:[#allocation10_spill] sm:$0xff] %v13409_v38  ;;  %v732_v51 = vshll.u32 %v13409_v38, 16  ;;  %v397_v52 = vshrl.u32 %v13388_v28, 16  ;;  %v401_v53 = vrot.slane %v399_v40, 1  ;;  %v404_v54 = vshll.u32 %v13411_v39, 16  ;;  %v12758_v2 = vld [vmem:[%s19064_s1 + $0x1f8] sm:$0xff] }
   0xd   :  { %19260 = vst [vmem:[#allocation11_spill] sm:$0xff] %v13411_v39  ;;  %v390_v56 = vor.u32 %v389_v42, %v385_v41  ;;  %v394_v57 = vrot.slane %v392_v43, 1  ;;  %v722_v58 = vor.u32 %v720_v44, %v13420_v46  ;;  %v726_v59 = vrot.slane %v724_v47, 1  ;;  %v10009_v9 = vld [vmem:[%s19065_s0 + $0x40] sm:$0xf]  ;;  %v12757_v12 = vld [vmem:[%s19064_s1 + $0x1f0] sm:$0xff] }
   0xe   :  { %1007 = vmatpush.bf16.msra.mxu0 %v12731_v8  ;;  %13268 = vmatpush.bf16.msra.mxu2 %v12731_v8  ;;  %v730_v61 = vor.u32 %v728_v49, %v13423_v48  ;;  %v734_v62 = vrot.slane %v732_v51, 1  ;;  %v402_v63 = vor.u32 %v401_v53, %v397_v52  ;;  %v406_v0 = vrot.slane %v404_v54, 1  ;;  %v12749_v8 = vld [vmem:[%s19064_s1 + $0x1b0] sm:$0xff]  ;;  %v12659_v13 = vld [vmem:[%s19065_s0 + $0x44] sm:$0xf]  ;;  %v12748_v17 = vld [vmem:[%s19064_s1 + $0x1a8] sm:$0xff] }
   0xf   :  { %13276 = vmatpush.bf16.msra.mxu3 %v12739_v11  ;;  %1075 = vmatpush.bf16.msra.mxu1 %v12739_v11  ;;  %v395_v3 = vsel %vm383_vm0, %v390_v56, %v394_v57  ;;  %v727_v4 = vsel %vm383_vm0, %v722_v58, %v726_v59  ;;  %v12661_v11 = vld [vmem:[%s19065_s0 + $0x4c] sm:$0xf0]  ;;  %v10011_v14 = vld [vmem:[%s19065_s0 + $0x50] sm:$0xf0]  ;;  %v432_v21 = vshrl.u32 %v13396_v31, 16  ;;  %v440_v23 = vshrl.u32 %v13411_v39, 16 }
  0x10   :  { %v735_v5 = vsel %vm383_vm0, %v730_v61, %v734_v62  ;;  %v407_v7 = vsel %vm383_vm0, %v402_v63, %v406_v0  ;;  %v13468_v15 = vor.u32 %v12661_v11, %v10009_v9  ;;  %v13470_v16 = vor.u32 %v12659_v13, %v10011_v14  ;;  %v21_v27 = vld [vmem:[%s19065_s0 + $0x8] sm:$0xff]  ;;  %v13488_v29 = vld [vmem:[%s19065_s0 + $0x18] sm:$0xff]  ;;  %v12747_v30 = vld [vmem:[%s19064_s1 + $0x1a0] sm:$0xff] }
  0x11   :  { %19261 = vst [vmem:[#allocation12_spill] sm:$0xff] %v13488_v29  ;;  %v12755_v32 = vld [vmem:[%s19064_s1 + $0x1e0] sm:$0xff]  ;;  %v752_v35 = vshrl.u32 %v13402_v34, 16  ;;  %v245_v40 = vunpack.c.l.b16 %v21_v27  ;;  %v19071_v41 = vunpack.c.l.b16 %v13488_v29  ;;  %v442_v42 = vor.u32 %v440_v23, %v406_v0  ;;  %v12746_v47 = vld [vmem:[%s19064_s1 + $0x198] sm:$0xff]  ;;  %v12745_v53 = vld [vmem:[%s19064_s1 + $0x190] sm:$0xff] }
  0x12   :  { %1008 = vmatpush.bf16.msra.mxu0 %v12730_v20  ;;  %13269 = vmatpush.bf16.msra.mxu2 %v12730_v20  ;;  %v12756_v20 = vld [vmem:[%s19064_s1 + $0x1e8] sm:$0xff]  ;;  %v436_v22 = vshll.u32 %v13468_v15, 16  ;;  %v246_v44 = vunpack.c.h.b16 %v21_v27  ;;  %v12754_v49 = vld [vmem:[%s19064_s1 + $0x1d8] sm:$0xff]  ;;  %v12753_v54 = vld [vmem:[%s19064_s1 + $0x1d0] sm:$0xff] }
  0x13   :  { %13277 = vmatpush.bf16.msra.mxu3 %v12738_v26  ;;  %1076 = vmatpush.bf16.msra.mxu1 %v12738_v26  ;;  %v444_v26 = vshll.u32 %v13470_v16, 16  ;;  %v12665_v56 = vld [vmem:[%s19065_s0 + $0x6c] sm:$0xf0]  ;;  %v12656_v61 = vld [vmem:[%s19065_s0 + $0x2c] sm:$0xf] }
  0x14   :  { %v438_v36 = vrot.slane %v436_v22, 1  ;;  %v10003_v63 = vld [vmem:[%s19065_s0 + $0x38] sm:$0xf0]  ;;  %v12663_v0 = vld [vmem:[%s19065_s0 + $0x64] sm:$0xf]  ;;  %v12744_v9 = vld [vmem:[%s19064_s1 + $0x188] sm:$0xff] }
  0x15   :  { %v446_v43 = vrot.slane %v444_v26, 1  ;;  %v12752_v11 = vld [vmem:[%s19064_s1 + $0x1c8] sm:$0xff]  ;;  %v472_v26 = vshrl.u32 %v13470_v16, 16  ;;  %v10121_v18 = vld [vmem:[%s19065_s0 + $0x120] sm:$0xf] }
  0x16   :  { %1009 = vmatpush.bf16.msra.mxu0 %v12729_v33  ;;  %13270 = vmatpush.bf16.msra.mxu2 %v12729_v33  ;;  %v434_v33 = vor.u32 %v432_v21, %v394_v57  ;;  %v13521_v57 = vpack.c.b16 %v19071_v41, %v245_v40  ;;  %v12689_v10 = vld [vmem:[%s19065_s0 + $0x12c] sm:$0xf0]  ;;  %v12704_v25 = vld [vmem:[%s19064_s1 + $0x48] sm:$0xff] }
  0x17   :  { %13278 = vmatpush.bf16.msra.mxu3 %v12737_v37  ;;  %1077 = vmatpush.bf16.msra.mxu1 %v12737_v37  ;;  %v755_v37 = vshrl.u32 %v13409_v38, 16  ;;  %v447_v58 = vsel %vm383_vm0, %v442_v42, %v446_v43 }
  0x18   :  { %v439_v51 = vsel %vm383_vm0, %v434_v33, %v438_v36  ;;  %v409_v14 = vshrl.u32 %v13521_v57, 16  ;;  %v12718_v33 = vld [vmem:[%s19064_s1 + $0xb8] sm:$0xff] }
  0x19   :  { %v757_v52 = vor.u32 %v755_v37, %v734_v62 }
  0x1a   :  { %1010 = vmatpush.bf16.msra.mxu0 %v12728_v45  ;;  %13271 = vmatpush.bf16.msra.mxu2 %v12728_v45  ;;  %v19070_v45 = vunpack.c.h.b16 %v13488_v29 }
  0x1b   :  { %13279 = vmatpush.bf16.msra.mxu3 %v12736_v50  ;;  %1078 = vmatpush.bf16.msra.mxu1 %v12736_v50  ;;  %v754_v50 = vor.u32 %v752_v35, %v726_v59  ;;  %v10001_v59 = vld [vmem:[%s19065_s0 + $0x28] sm:$0xf]  ;;  %v12726_v35 = vld [vmem:[%s19064_s1 + $0xf8] sm:$0xff] }
  0x1c   :  { %v13535_v62 = vpack.c.b16 %v19070_v45, %v246_v44 }
  0x1e   :  { %1011 = vmatpush.bf16.msra.mxu0 %v12727_v55  ;;  %13272 = vmatpush.bf16.msra.mxu2 %v12727_v55  ;;  %v10025_v55 = vld [vmem:[%s19065_s0 + $0x60] sm:$0xf]  ;;  %v421_v21 = vshrl.u32 %v13535_v62, 16 }
  0x1f   :  { %13280 = vmatpush.bf16.msra.mxu3 %v12735_v60  ;;  %1079 = vmatpush.bf16.msra.mxu1 %v12735_v60  ;;  %v12658_v60 = vld [vmem:[%s19065_s0 + $0x34] sm:$0xf0] }
  0x21   :  { %1012 = vmatmul.bf16.vlgmr.msra.gmra.mxu0 %v395_v3  ;;  %1062 = vmatmul.bf16.vlgmr.msra.gmra.mxu2 %v727_v4  ;;  %v13548_v3 = vor.u32 %v12658_v60, %v10001_v59  ;;  %v411_v4 = vshll.u32 %v13521_v57, 16  ;;  %v12660_v59 = vld [vmem:[%s19065_s0 + $0x4c] sm:$0xf]  ;;  %v12717_v60 = vld [vmem:[%s19064_s1 + $0xb0] sm:$0xff] }
  0x22   :  { %1140 = vmatpush.bf16.msrb.mxu2 %v12750_v1  ;;  %1130 = vmatmul.bf16.vlgmr.msra.gmra.mxu3 %v735_v5  ;;  %v10027_v1 = vld [vmem:[%s19065_s0 + $0x70] sm:$0xf0]  ;;  %v13551_v5 = vor.u32 %v12656_v61, %v10003_v63  ;;  %v10019_v63 = vld [vmem:[%s19065_s0 + $0x58] sm:$0xf0] }
  0x23   :  { %1208 = vmatpush.bf16.msrb.mxu3 %v12758_v2  ;;  %1080 = vmatmul.bf16.vlgmr.msra.gmra.mxu1 %v407_v7  ;;  %v13546_v2 = vor.u32 %v12665_v56, %v10025_v55  ;;  %v423_v7 = vshll.u32 %v13535_v62, 16  ;;  %v12662_v55 = vld [vmem:[%s19065_s0 + $0x54] sm:$0xf0]  ;;  %v12725_v61 = vld [vmem:[%s19064_s1 + $0xf0] sm:$0xff] }
  0x24   :  { %v428_v23 = vshll.u32 %v13551_v5, 16 }
  0x25   :  { %v468_v13 = vshll.u32 %v13546_v2, 16  ;;  %v425_v22 = vrot.slane %v423_v7, 1 }
  0x26   :  { %1141 = vmatpush.bf16.msrb.mxu2 %v12749_v8  ;;  %v13554_v8 = vor.u32 %v12663_v0, %v10027_v1  ;;  %v12667_v0 = vld [vmem:[%s19065_s0 + $0x84] sm:$0xf]  ;;  %v10043_v1 = vld [vmem:[%s19065_s0 + $0x90] sm:$0xf0] }
  0x27   :  { %1209 = vmatpush.bf16.msrb.mxu3 %v12757_v12  ;;  %v464_v12 = vshrl.u32 %v13468_v15, 16  ;;  %v470_v40 = vrot.slane %v468_v13, 1  ;;  %v13628_v13 = vor.u32 %v12667_v0, %v10043_v1  ;;  %v12701_v0 = vld [vmem:[%s19064_s1 + $0x30] sm:$0xff] }
  0x28   :  { %v476_v27 = vshll.u32 %v13554_v8, 16 }
  0x29   :  { %v466_v37 = vor.u32 %v464_v12, %v438_v36  ;;  %v12669_v36 = vld [vmem:[%s19065_s0 + $0x8c] sm:$0xf0]  ;;  %v13626_v12 = vor.u32 %v12660_v59, %v10019_v63  ;;  %v12724_v63 = vld [vmem:[%s19064_s1 + $0xe8] sm:$0xff] }
  0x2a   :  { %1142 = vmatpush.bf16.msrb.mxu2 %v12748_v17  ;;  %v413_v17 = vrot.slane %v411_v4, 1 }
  0x2b   :  { %1210 = vmatpush.bf16.msrb.mxu3 %v12756_v20  ;;  %v416_v20 = vshll.u32 %v13548_v3, 16 }
  0x2c   :  { %v414_v42 = vor.u32 %v413_v17, %v409_v14  ;;  %v496_v14 = vshrl.u32 %v13546_v2, 16 }
  0x2d   :  { %v418_v44 = vrot.slane %v416_v20, 1  ;;  %v448_v20 = vshrl.u32 %v13548_v3, 16 }
  0x2e   :  { %1143 = vmatpush.bf16.msrb.mxu2 %v12747_v30  ;;  %v12743_v30 = vld [vmem:[%s19064_s1 + $0x180] sm:$0xff] }
  0x2f   :  { %1211 = vmatpush.bf16.msrb.mxu3 %v12755_v32  ;;  %v12751_v32 = vld [vmem:[%s19064_s1 + $0x1c0] sm:$0xff] }
  0x31   :  { %1017 = vmatmul.bf16.gmra.mxu0 %v439_v51  ;;  %1067 = vmatmul.bf16.gmra.mxu2 %v754_v50  ;;  %v474_v50 = vor.u32 %v472_v26, %v446_v43  ;;  %v478_v51 = vrot.slane %v476_v27, 1  ;;  %v10017_v43 = vld [vmem:[%s19065_s0 + $0x48] sm:$0xf]  ;;  %v504_v26 = vshrl.u32 %v13554_v8, 16  ;;  %v508_v27 = vshll.u32 %v13628_v13, 16 }
  0x32   :  { %1144 = vmatpush.bf16.msrb.mxu2 %v12746_v47  ;;  %1135 = vmatmul.bf16.gmra.mxu3 %v757_v52  ;;  %v426_v47 = vor.u32 %v425_v22, %v421_v21  ;;  %v10041_v52 = vld [vmem:[%s19065_s0 + $0x80] sm:$0xf]  ;;  %v13618_v7 = vor.u32 %v12662_v55, %v10017_v43  ;;  %v456_v22 = vshrl.u32 %v13551_v5, 16  ;;  %v12664_v43 = vld [vmem:[%s19065_s0 + $0x6c] sm:$0xf] }
  0x33   :  { %1212 = vmatpush.bf16.msrb.mxu3 %v12754_v49  ;;  %1085 = vmatmul.bf16.gmra.mxu1 %v447_v58  ;;  %v430_v49 = vrot.slane %v428_v23, 1  ;;  %v479_v58 = vsel %vm383_vm0, %v474_v50, %v478_v51  ;;  %v13616_v4 = vor.u32 %v12669_v36, %v10041_v52  ;;  %v460_v23 = vshll.u32 %v13626_v12, 16  ;;  %v12673_v36 = vld [vmem:[%s19065_s0 + $0xac] sm:$0xf0]  ;;  %v10035_v55 = vld [vmem:[%s19065_s0 + $0x78] sm:$0xf0] }
  0x34   :  { %v452_v21 = vshll.u32 %v13618_v7, 16  ;;  %v510_v50 = vrot.slane %v508_v27, 1  ;;  %v13679_v1 = vor.u32 %v12664_v43, %v10035_v55  ;;  %v12668_v43 = vld [vmem:[%s19065_s0 + $0x8c] sm:$0xf]  ;;  %v10051_v55 = vld [vmem:[%s19065_s0 + $0x98] sm:$0xf0] }
  0x35   :  { %v431_v56 = vsel %vm383_vm0, %v426_v47, %v430_v49  ;;  %v500_v17 = vshll.u32 %v13616_v4, 16  ;;  %v506_v47 = vor.u32 %v504_v26, %v478_v51  ;;  %v12666_v51 = vld [vmem:[%s19065_s0 + $0x74] sm:$0xf0]  ;;  %v536_v26 = vshrl.u32 %v13628_v13, 16 }
  0x36   :  { %1145 = vmatpush.bf16.msrb.mxu2 %v12745_v53  ;;  %v471_v53 = vsel %vm383_vm0, %v466_v37, %v470_v40  ;;  %v458_v37 = vor.u32 %v456_v22, %v430_v49  ;;  %v10033_v49 = vld [vmem:[%s19065_s0 + $0x68] sm:$0xf]  ;;  %v488_v22 = vshrl.u32 %v13626_v12, 16 }
  0x37   :  { %1213 = vmatpush.bf16.msrb.mxu3 %v12753_v54  ;;  %v419_v54 = vsel %vm383_vm0, %v414_v42, %v418_v44  ;;  %v462_v42 = vrot.slane %v460_v23, 1  ;;  %v492_v23 = vshll.u32 %v13679_v1, 16 }
  0x3a   :  { %1146 = vmatpush.bf16.msrb.mxu2 %v12744_v9  ;;  %v12702_v9 = vld [vmem:[%s19064_s1 + $0x38] sm:$0xff] }
  0x3b   :  { %1214 = vmatpush.bf16.msrb.mxu3 %v12752_v11  ;;  %v12710_v11 = vld [vmem:[%s19064_s1 + $0x78] sm:$0xff]  ;;  %1526 = vmatpush.bf16.msrb.mxu0 %v12702_v9 }
  0x3c   :  { %1594 = vmatpush.bf16.msrb.mxu1 %v12710_v11  ;;  %v12709_v11 = vld [vmem:[%s19064_s1 + $0x70] sm:$0xff] }
  0x3e   :  { %1147 = vmatpush.bf16.msrb.mxu2 %v12743_v30  ;;  %v498_v30 = vor.u32 %v496_v14, %v470_v40  ;;  %v463_v40 = vsel %vm383_vm0, %v458_v37, %v462_v42  ;;  %v528_v14 = vshrl.u32 %v13616_v4, 16 }
  0x3f   :  { %1215 = vmatpush.bf16.msrb.mxu3 %v12751_v32  ;;  %v502_v32 = vrot.slane %v500_v17, 1  ;;  %1527 = vmatpush.bf16.msrb.mxu0 %v12701_v0  ;;  %v12715_v0 = vld [vmem:[%s19064_s1 + $0xa0] sm:$0xff] }
  0x40   :  { %1595 = vmatpush.bf16.msrb.mxu1 %v12709_v11  ;;  %v12723_v11 = vld [vmem:[%s19064_s1 + $0xe0] sm:$0xff] }
  0x41   :  { %1022 = vmatmul.bf16.gmra.mxu0 %v471_v53  ;;  %1148 = vmatmul.bf16.vlgmr.msrb.gmra.mxu2 %v419_v54  ;;  %v503_v52 = vsel %vm383_vm0, %v498_v30, %v502_v32  ;;  %v10057_v54 = vld [vmem:[%s19065_s0 + $0xa0] sm:$0xf]  ;;  %v530_v30 = vor.u32 %v528_v14, %v502_v32  ;;  %v12700_v14 = vld [vmem:[%s19064_s1 + $0x28] sm:$0xff] }
  0x42   :  { %1662 = vmatpush.bf16.msra.mxu2 %v12718_v33  ;;  %1216 = vmatmul.bf16.vlgmr.msrb.gmra.mxu3 %v431_v56  ;;  %v450_v33 = vor.u32 %v448_v20, %v418_v44  ;;  %v511_v44 = vsel %vm383_vm0, %v506_v47, %v510_v50  ;;  %v12671_v56 = vld [vmem:[%s19065_s0 + $0xa4] sm:$0xf]  ;;  %v13666_v59 = vor.u32 %v12673_v36, %v10057_v54  ;;  %v480_v20 = vshrl.u32 %v13618_v7, 16 }
  0x43   :  { %1730 = vmatpush.bf16.msra.mxu3 %v12726_v35  ;;  %1090 = vmatmul.bf16.gmra.mxu1 %v479_v58  ;;  %v454_v35 = vrot.slane %v452_v21, 1  ;;  %v10059_v58 = vld [vmem:[%s19065_s0 + $0xb0] sm:$0xf0]  ;;  %v538_v54 = vor.u32 %v536_v26, %v510_v50  ;;  %v12670_v50 = vld [vmem:[%s19065_s0 + $0x94] sm:$0xf0] }
  0x44   :  { %v13681_v9 = vor.u32 %v12671_v56, %v10059_v58  ;;  %v532_v17 = vshll.u32 %v13666_v59, 16  ;;  %v12675_v56 = vld [vmem:[%s19065_s0 + $0xc4] sm:$0xf]  ;;  %v10075_v58 = vld [vmem:[%s19065_s0 + $0xd0] sm:$0xf0]  ;;  %1528 = vmatpush.bf16.msrb.mxu0 %v12700_v14 }
  0x45   :  { %v455_v53 = vsel %vm383_vm0, %v450_v33, %v454_v35  ;;  %v482_v37 = vor.u32 %v480_v20, %v454_v35  ;;  %v13737_v20 = vor.u32 %v12675_v56, %v10075_v58  ;;  %v10089_v56 = vld [vmem:[%s19065_s0 + $0xe0] sm:$0xf]  ;;  %v12681_v58 = vld [vmem:[%s19065_s0 + $0xec] sm:$0xf0]  ;;  %v12679_v14 = vld [vmem:[%s19065_s0 + $0xe4] sm:$0xf] }
  0x46   :  { %1663 = vmatpush.bf16.msra.mxu2 %v12717_v60  ;;  %v13668_v60 = vor.u32 %v12666_v51, %v10033_v49  ;;  %v540_v27 = vshll.u32 %v13681_v9, 16  ;;  %v534_v33 = vrot.slane %v532_v17, 1  ;;  %v10073_v49 = vld [vmem:[%s19065_s0 + $0xc0] sm:$0xf]  ;;  %v12677_v51 = vld [vmem:[%s19065_s0 + $0xcc] sm:$0xf0]  ;;  %v13735_v17 = vor.u32 %v12668_v43, %v10051_v55 }
  0x47   :  { %1731 = vmatpush.bf16.msra.mxu3 %v12725_v61  ;;  %v12716_v61 = vld [vmem:[%s19064_s1 + $0xa8] sm:$0xff]  ;;  %19262 = vst [vmem:[#allocation13_spill] sm:$0xff] %v13737_v20 }
  0x48   :  { %v484_v21 = vshll.u32 %v13668_v60, 16  ;;  %v542_v36 = vrot.slane %v540_v27, 1  ;;  %v512_v26 = vshrl.u32 %v13668_v60, 16 }
  0x4a   :  { %1664 = vmatpush.bf16.msra.mxu2 %v12716_v61  ;;  %v486_v47 = vrot.slane %v484_v21, 1  ;;  %v543_v35 = vsel %vm383_vm0, %v538_v54, %v542_v36  ;;  %v13722_v61 = vor.u32 %v12677_v51, %v10073_v49  ;;  %v12708_v21 = vld [vmem:[%s19064_s1 + $0x68] sm:$0xff]  ;;  %v572_v54 = vshll.u32 %v13737_v20, 16 }
  0x4b   :  { %1732 = vmatpush.bf16.msra.mxu3 %v12724_v63  ;;  %1596 = vmatpush.bf16.msrb.mxu1 %v12708_v21  ;;  %v10091_v21 = vld [vmem:[%s19065_s0 + $0xf0] sm:$0xf0] }
  0x4c   :  { %v514_v49 = vor.u32 %v512_v26, %v486_v47 }
  0x4e   :  { %1665 = vmatpush.bf16.msra.mxu2 %v12715_v0  ;;  %v12672_v0 = vld [vmem:[%s19065_s0 + $0xac] sm:$0xf] }
  0x4f   :  { %1733 = vmatpush.bf16.msra.mxu3 %v12723_v11  ;;  %v10067_v11 = vld [vmem:[%s19065_s0 + $0xb8] sm:$0xf0] }
  0x50   :  { %v13782_v26 = vor.u32 %v12672_v0, %v10067_v11 }
  0x51   :  { %1027 = vmatmul.bf16.gmra.mxu0 %v503_v52  ;;  %1153 = vmatmul.bf16.gmra.mxu2 %v455_v53  ;;  %v490_v52 = vor.u32 %v488_v22, %v462_v42  ;;  %v494_v53 = vrot.slane %v492_v23, 1  ;;  %v10049_v42 = vld [vmem:[%s19065_s0 + $0x88] sm:$0xf]  ;;  %v560_v22 = vshrl.u32 %v13666_v59, 16  ;;  %v564_v23 = vshll.u32 %v13722_v61, 16 }
  0x52   :  { %1221 = vmatmul.bf16.gmra.mxu3 %v463_v40  ;;  %v535_v40 = vsel %vm383_vm0, %v530_v30, %v534_v33  ;;  %v13724_v63 = vor.u32 %v12670_v50, %v10049_v42  ;;  %v520_v30 = vshrl.u32 %v13679_v1, 16  ;;  %v574_v50 = vrot.slane %v572_v54, 1 }
  0x53   :  { %1095 = vmatmul.bf16.gmra.mxu1 %v511_v44  ;;  %v487_v44 = vsel %vm383_vm0, %v482_v37, %v486_v47  ;;  %v495_v32 = vsel %vm383_vm0, %v490_v52, %v494_v53  ;;  %v524_v37 = vshll.u32 %v13735_v17, 16  ;;  %v568_v52 = vshrl.u32 %v13681_v9, 16 }
  0x54   :  { %v516_v27 = vshll.u32 %v13724_v63, 16 }
  0x55   :  { %v570_v42 = vor.u32 %v568_v52, %v542_v36  ;;  %v12674_v36 = vld [vmem:[%s19065_s0 + $0xb4] sm:$0xf0]  ;;  %v544_v52 = vshrl.u32 %v13724_v63, 16 }
  0x56   :  { %v518_v51 = vrot.slane %v516_v27, 1  ;;  %v13784_v27 = vor.u32 %v12679_v14, %v10091_v21  ;;  %v10105_v14 = vld [vmem:[%s19065_s0 + $0x100] sm:$0xf]  ;;  %v12685_v21 = vld [vmem:[%s19065_s0 + $0x10c] sm:$0xf0] }
  0x57   :  { %v575_v47 = vsel %vm383_vm0, %v570_v42, %v574_v50 }
  0x58   :  { %v519_v55 = vsel %vm383_vm0, %v514_v49, %v518_v51  ;;  %19264 = vst [vmem:[#allocation15_spill] sm:$0xff] %v13784_v27  ;;  %v556_v49 = vshll.u32 %v13782_v26, 16  ;;  %v604_v42 = vshll.u32 %v13784_v27, 16 }
  0x61   :  { %1032 = vmatmul.bf16.gmra.mxu0 %v535_v40  ;;  %1158 = vmatmul.bf16.gmra.mxu2 %v487_v44  ;;  %v562_v40 = vor.u32 %v560_v22, %v534_v33  ;;  %v566_v44 = vrot.slane %v564_v23, 1  ;;  %v13778_v22 = vor.u32 %v12681_v58, %v10089_v56  ;;  %v546_v56 = vor.u32 %v544_v52, %v518_v51  ;;  %v12683_v52 = vld [vmem:[%s19065_s0 + $0x104] sm:$0xf] }
  0x62   :  { %1226 = vmatmul.bf16.gmra.mxu3 %v495_v32  ;;  %v522_v32 = vor.u32 %v520_v30, %v494_v53  ;;  %v10065_v53 = vld [vmem:[%s19065_s0 + $0xa8] sm:$0xf]  ;;  %v592_v30 = vshrl.u32 %v13722_v61, 16 }
  0x63   :  { %1100 = vmatmul.bf16.gmra.mxu1 %v543_v35  ;;  %v526_v35 = vrot.slane %v524_v37, 1  ;;  %v567_v43 = vsel %vm383_vm0, %v562_v40, %v566_v44  ;;  %19263 = vst [vmem:[#allocation14_spill] sm:$0xff] %v13778_v22  ;;  %v13780_v23 = vor.u32 %v12674_v36, %v10065_v53  ;;  %v596_v37 = vshll.u32 %v13778_v22, 16 }
  0x64   :  { %v552_v40 = vshrl.u32 %v13735_v17, 16  ;;  %v606_v36 = vrot.slane %v604_v42, 1  ;;  %v12707_v42 = vld [vmem:[%s19064_s1 + $0x60] sm:$0xff] }
  0x65   :  { %v527_v33 = vsel %vm383_vm0, %v522_v32, %v526_v35  ;;  %v548_v54 = vshll.u32 %v13780_v23, 16  ;;  %v600_v32 = vshrl.u32 %v13737_v20, 16  ;;  %1597 = vmatpush.bf16.msrb.mxu1 %v12707_v42 }
  0x67   :  { %v550_v58 = vrot.slane %v548_v54, 1  ;;  %v602_v53 = vor.u32 %v600_v32, %v574_v50  ;;  %v12678_v50 = vld [vmem:[%s19065_s0 + $0xd4] sm:$0xf0]  ;;  %v10107_v54 = vld [vmem:[%s19065_s0 + $0x110] sm:$0xf0]  ;;  %v12699_v32 = vld [vmem:[%s19064_s1 + $0x20] sm:$0xff] }
  0x68   :  { %1529 = vmatpush.bf16.msrb.mxu0 %v12699_v32 }
  0x69   :  { %v551_v11 = vsel %vm383_vm0, %v546_v56, %v550_v58  ;;  %v607_v51 = vsel %vm383_vm0, %v602_v53, %v606_v36  ;;  %v12722_v53 = vld [vmem:[%s19064_s1 + $0xd8] sm:$0xff] }
  0x6a   :  { %1734 = vmatpush.bf16.msra.mxu3 %v12722_v53 }
  0x71   :  { %1037 = vmatmul.bf16.gmra.mxu0 %v567_v43  ;;  %1163 = vmatmul.bf16.gmra.mxu2 %v519_v55  ;;  %v594_v43 = vor.u32 %v592_v30, %v566_v44  ;;  %v598_v55 = vrot.slane %v596_v37, 1  ;;  %v12676_v30 = vld [vmem:[%s19065_s0 + $0xcc] sm:$0xf]  ;;  %v10083_v37 = vld [vmem:[%s19065_s0 + $0xd8] sm:$0xf0] }
  0x72   :  { %1231 = vmatmul.bf16.gmra.mxu3 %v527_v33  ;;  %v554_v33 = vor.u32 %v552_v40, %v526_v35  ;;  %v10081_v35 = vld [vmem:[%s19065_s0 + $0xc8] sm:$0xf]  ;;  %v13822_v40 = vor.u32 %v12685_v21, %v10105_v14  ;;  %v13835_v56 = vor.u32 %v12676_v30, %v10083_v37  ;;  %v576_v14 = vshrl.u32 %v13780_v23, 16 }
  0x73   :  { %1105 = vmatmul.bf16.gmra.mxu1 %v575_v47  ;;  %v558_v47 = vrot.slane %v556_v49, 1  ;;  %v599_v0 = vsel %vm383_vm0, %v594_v43, %v598_v55  ;;  %v13824_v49 = vor.u32 %v12678_v50, %v10081_v35  ;;  %v12714_v43 = vld [vmem:[%s19064_s1 + $0x98] sm:$0xff]  ;;  %v632_v35 = vshrl.u32 %v13784_v27, 16 }
  0x74   :  { %19265 = vst [vmem:[#allocation16_spill] sm:$0xff] %v13822_v40  ;;  %1666 = vmatpush.bf16.msra.mxu2 %v12714_v43 }
  0x75   :  { %v559_v44 = vsel %vm383_vm0, %v554_v33, %v558_v47  ;;  %19266 = vst [vmem:[#allocation17_spill] sm:$0xff] %v13824_v49  ;;  %v13837_v33 = vor.u32 %v12683_v52, %v10107_v54  ;;  %v580_v21 = vshll.u32 %v13824_v49, 16  ;;  %v578_v52 = vor.u32 %v576_v14, %v550_v58  ;;  %v12687_v14 = vld [vmem:[%s19065_s0 + $0x124] sm:$0xf] }
  0x76   :  { %19267 = vst [vmem:[#allocation18_spill] sm:$0xff] %v13835_v56  ;;  %v634_v43 = vor.u32 %v632_v35, %v606_v36  ;;  %v12682_v36 = vld [vmem:[%s19065_s0 + $0xf4] sm:$0xf0] }
  0x77   :  { %19268 = vst [vmem:[#allocation19_spill] sm:$0xff] %v13837_v33  ;;  %v636_v50 = vshll.u32 %v13837_v33, 16  ;;  %v582_v54 = vrot.slane %v580_v21, 1  ;;  %v10123_v21 = vld [vmem:[%s19065_s0 + $0x130] sm:$0xf0] }
  0x79   :  { %v638_v53 = vrot.slane %v636_v50, 1  ;;  %v583_v41 = vsel %vm383_vm0, %v578_v52, %v582_v54  ;;  %v656_v52 = vshrl.u32 %v13822_v40, 16 }
  0x7b   :  { %v639_v58 = vsel %vm383_vm0, %v634_v43, %v638_v53  ;;  %v616_v43 = vshrl.u32 %v13835_v56, 16 }
  0x81   :  { %1042 = vmatmul.bf16.gmra.mxu0 %v599_v0  ;;  %1168 = vmatmul.bf16.gmra.mxu2 %v551_v11  ;;  %v624_v0 = vshrl.u32 %v13778_v22, 16  ;;  %v628_v11 = vshll.u32 %v13822_v40, 16 }
  0x82   :  { %1236 = vmatmul.bf16.gmra.mxu3 %v559_v44  ;;  %v584_v44 = vshrl.u32 %v13782_v26, 16 }
  0x83   :  { %1110 = vmatmul.bf16.gmra.mxu1 %v607_v51  ;;  %v588_v51 = vshll.u32 %v13835_v56, 16  ;;  %v626_v30 = vor.u32 %v624_v0, %v598_v55  ;;  %v630_v37 = vrot.slane %v628_v11, 1  ;;  %v12680_v0 = vld [vmem:[%s19065_s0 + $0xec] sm:$0xf]  ;;  %v10099_v11 = vld [vmem:[%s19065_s0 + $0xf8] sm:$0xf0] }
  0x84   :  { %v586_v32 = vor.u32 %v584_v44, %v558_v47  ;;  %v10097_v47 = vld [vmem:[%s19065_s0 + $0xe8] sm:$0xf]  ;;  %v12698_v44 = vld [vmem:[%s19064_s1 + $0x18] sm:$0xff]  ;;  %v13885_v50 = vor.u32 %v12680_v0, %v10099_v11  ;;  %v12713_v0 = vld [vmem:[%s19064_s1 + $0x90] sm:$0xff] }
  0x85   :  { %v590_v42 = vrot.slane %v588_v51, 1  ;;  %v631_v45 = vsel %vm383_vm0, %v626_v30, %v630_v37  ;;  %v13881_v51 = vor.u32 %v12689_v10, %v10121_v18  ;;  %v13883_v35 = vor.u32 %v12682_v36, %v10097_v47  ;;  %1530 = vmatpush.bf16.msrb.mxu0 %v12698_v44  ;;  %v12705_v36 = vld [vmem:[%s19064_s1 + $0x50] sm:$0xff]  ;;  %v12696_v11 = vld [vmem:[%s19064_s1 + $0x8] sm:$0xff]  ;;  %1667 = vmatpush.bf16.msra.mxu2 %v12713_v0 }
  0x86   :  { %19271 = vst [vmem:[#allocation22_spill] sm:$0xff] %v13885_v50  ;;  %v13887_v30 = vor.u32 %v12687_v14, %v10123_v21  ;;  %v608_v18 = vshrl.u32 %v13824_v49, 16  ;;  %v12721_v14 = vld [vmem:[%s19064_s1 + $0xd0] sm:$0xff]  ;;  %v658_v21 = vor.u32 %v656_v52, %v630_v37 }
  0x87   :  { %v591_v55 = vsel %vm383_vm0, %v586_v32, %v590_v42  ;;  %19269 = vst [vmem:[#allocation20_spill] sm:$0xff] %v13881_v51  ;;  %v660_v10 = vshll.u32 %v13881_v51, 16  ;;  %v612_v32 = vshll.u32 %v13883_v35, 16  ;;  %1735 = vmatpush.bf16.msra.mxu3 %v12721_v14  ;;  %v618_v38 = vor.u32 %v616_v43, %v590_v42 }
  0x88   :  { %19270 = vst [vmem:[#allocation21_spill] sm:$0xff] %v13883_v35  ;;  %v668_v47 = vshll.u32 %v13887_v30, 16 }
  0x89   :  { %19272 = vst [vmem:[#allocation23_spill] sm:$0xff] %v13887_v30  ;;  %v662_v44 = vrot.slane %v660_v10, 1 }
  0x8a   :  { %v670_v6 = vrot.slane %v668_v47, 1 }
  0x91   :  { %1047 = vmatmul.bf16.gmra.mxu0 %v631_v45  ;;  %1173 = vmatmul.bf16.gmra.mxu2 %v583_v41  ;;  %v12706_v45 = vld [vmem:[%s19064_s1 + $0x58] sm:$0xff]  ;;  %v12697_v41 = vld [vmem:[%s19064_s1 + $0x10] sm:$0xff] }
  0x92   :  { %1241 = vmatmul.bf16.gmra.mxu3 %v591_v55  ;;  %1598 = vmatpush.bf16.msrb.mxu1 %v12706_v45  ;;  %v620_v55 = vshll.u32 %v13885_v50, 16  ;;  %v610_v45 = vor.u32 %v608_v18, %v582_v54  ;;  %v663_v54 = vsel %vm383_vm0, %v658_v21, %v662_v44  ;;  %v10113_v18 = vld [vmem:[%s19065_s0 + $0x108] sm:$0xf]  ;;  %v688_v21 = vshrl.u32 %v13881_v51, 16 }
  0x93   :  { %1115 = vmatmul.bf16.gmra.mxu1 %v639_v58  ;;  %v664_v58 = vshrl.u32 %v13837_v33, 16  ;;  %1531 = vmatpush.bf16.msrb.mxu0 %v12697_v41  ;;  %v614_v41 = vrot.slane %v612_v32, 1  ;;  %v12703_v32 = vld [vmem:[%s19064_s1 + $0x40] sm:$0xff] }
  0x94   :  { %v622_v34 = vrot.slane %v620_v55, 1 }
  0x95   :  { %v666_v29 = vor.u32 %v664_v58, %v638_v53  ;;  %v615_v52 = vsel %vm383_vm0, %v610_v45, %v614_v41  ;;  %v640_v45 = vshrl.u32 %v13883_v35, 16 }
  0x96   :  { %1599 = vmatpush.bf16.msrb.mxu1 %v12705_v36  ;;  %v12695_v36 = vld [vmem:[%s19064_s1] sm:$0xff]  ;;  %v623_v42 = vsel %vm383_vm0, %v618_v38, %v622_v34  ;;  %v12684_v38 = vld [vmem:[%s19065_s0 + $0x10c] sm:$0xf] }
  0x97   :  { %1532 = vmatpush.bf16.msrb.mxu0 %v12696_v11  ;;  %v671_v53 = vsel %vm383_vm0, %v666_v29, %v670_v6  ;;  %v10115_v29 = vld [vmem:[%s19065_s0 + $0x118] sm:$0xf0] }
  0x98   :  { %v13944_v58 = vor.u32 %v12684_v38, %v10115_v29 }
  0x9a   :  { %1600 = vmatpush.bf16.msrb.mxu1 %v12704_v25  ;;  %v12686_v25 = vld [vmem:[%s19065_s0 + $0x114] sm:$0xf0]  ;;  %19274 = vst [vmem:[#allocation25_spill] sm:$0xff] %v13944_v58 }
  0x9b   :  { %1533 = vmatpush.bf16.msrb.mxu0 %v12695_v36  ;;  %v13942_v55 = vor.u32 %v12686_v25, %v10113_v18  ;;  %v642_v18 = vor.u32 %v640_v45, %v614_v41  ;;  %v12712_v45 = vld [vmem:[%s19064_s1 + $0x88] sm:$0xff] }
  0x9c   :  { %1668 = vmatpush.bf16.msra.mxu2 %v12712_v45 }
  0x9d   :  { %19273 = vst [vmem:[#allocation24_spill] sm:$0xff] %v13942_v55  ;;  %v644_v36 = vshll.u32 %v13942_v55, 16 }
  0x9e   :  { %v1013_v37 = vpop.f32.mrf.mxu0  ;;  %1601 = vmatpush.bf16.msrb.mxu1 %v12703_v32 }
  0x9f   :  { %v646_v25 = vrot.slane %v644_v36, 1 }
  0xa0   :  { %v1081_v10 = vpop.f32.mrf.mxu1 }
  0xa1   :  { %v13934_v43 = vadd.f32 %v1081_v10, %v1013_v37  ;;  %1052 = vmatmul.bf16.gmra.mxu0 %v663_v54  ;;  %1178 = vmatmul.bf16.gmra.mxu2 %v615_v52  ;;  %v648_v54 = vshrl.u32 %v13885_v50, 16  ;;  %v652_v52 = vshll.u32 %v13944_v58, 16  ;;  %v696_v10 = vshrl.u32 %v13887_v30, 16 }
  0xa2   :  { %1246 = vmatmul.bf16.gmra.mxu3 %v623_v42  ;;  %v647_v56 = vsel %vm383_vm0, %v642_v18, %v646_v25 }
  0xa3   :  { %1120 = vmatmul.bf16.gmra.mxu1 %v671_v53  ;;  %v690_v53 = vor.u32 %v688_v21, %v662_v44  ;;  %v650_v32 = vor.u32 %v648_v54, %v622_v34  ;;  %v654_v38 = vrot.slane %v652_v52, 1  ;;  %v698_v29 = vor.u32 %v696_v10, %v670_v6  ;;  %v10129_v6 = vld [vmem:[%s19065_s0 + $0x128] sm:$0xf]  ;;  %v12690_v34 = vld [vmem:[%s19065_s0 + $0x134] sm:$0xf0] }
  0xa4   :  { %v1063_v47 = vpop.f32.mrf.mxu2  ;;  %v10131_v21 = vld [vmem:[%s19065_s0 + $0x138] sm:$0xf0]  ;;  %v672_v54 = vshrl.u32 %v13942_v55, 16 }
  0xa5   :  { %v1131_v0 = vpop.f32.mrf.mxu3  ;;  %v695_v50 = vsel %vm383_vm0, %v690_v53, %v13420_v46  ;;  %v703_v44 = vsel %vm383_vm0, %v698_v29, %v13423_v48  ;;  %v12688_v46 = vld [vmem:[%s19065_s0 + $0x12c] sm:$0xf]  ;;  %v13978_v48 = vor.u32 %v12690_v34, %v10129_v6  ;;  %v680_v53 = vshrl.u32 %v13944_v58, 16 }
  0xa6   :  { %v13946_v11 = vadd.f32 %v1131_v0, %v1063_v47  ;;  %v1015_v14 = vpop.f32.mrf.mxu0  ;;  %v674_v29 = vor.u32 %v672_v54, %v646_v25 }
  0xa7   :  { %19276 = vst [vmem:[#allocation27_spill] sm:$0xff] %v13978_v48  ;;  %v676_v52 = vshll.u32 %v13978_v48, 16 }
  0xa8   :  { %19275 = vst [vmem:[#allocation26_spill] sm:$0xff] %v13946_v11  ;;  %v1083_v37 = vpop.f32.mrf.mxu1 }
  0xa9   :  { %v13954_v42 = vadd.f32 %v1083_v37, %v1015_v14  ;;  %v655_v14 = vsel %vm383_vm0, %v650_v32, %v654_v38 }
  0xac   :  { %v1065_v47 = vpop.f32.mrf.mxu2 }
  0xad   :  { %v1133_v0 = vpop.f32.mrf.mxu3 }
  0xae   :  { %v13956_v35 = vadd.f32 %v1133_v0, %v1065_v47  ;;  %v1018_v11 = vpop.f32.mrf.mxu0  ;;  %v678_v47 = vrot.slane %v676_v52, 1  ;;  %v682_v0 = vor.u32 %v680_v53, %v654_v38  ;;  %v12692_v38 = vld [vmem:[%s19065_s0 + $0x14c] sm:$0xf] }
  0xb0   :  { %v1086_v49 = vpop.f32.mrf.mxu1 }
  0xb1   :  { %v13970_v41 = vadd.f32 %v1086_v49, %v1018_v11  ;;  %1057 = vmatmul.bf16.gmra.mxu0 %v695_v50  ;;  %1183 = vmatmul.bf16.gmra.mxu2 %v647_v56  ;;  %v12720_v49 = vld [vmem:[%s19064_s1 + $0xc8] sm:$0xff]  ;;  %v13986_v11 = vor.u32 %v12688_v46, %v10131_v21  ;;  %v679_v46 = vsel %vm383_vm0, %v674_v29, %v678_v47  ;;  %v704_v29 = vshrl.u32 %v13978_v48, 16 }
  0xb2   :  { %1251 = vmatmul.bf16.gmra.mxu3 %v655_v14 }
  0xb3   :  { %1125 = vmatmul.bf16.gmra.mxu1 %v703_v44  ;;  %19277 = vst [vmem:[#allocation28_spill] sm:$0xff] %v13986_v11  ;;  %1736 = vmatpush.bf16.msra.mxu3 %v12720_v49  ;;  %v684_v18 = vshll.u32 %v13986_v11, 16  ;;  %v10145_v49 = vld [vmem:[%s19065_s0 + $0x148] sm:$0xf] }
  0xb4   :  { %v1068_v36 = vpop.f32.mrf.mxu2 }
  0xb5   :  { %v1136_v37 = vpop.f32.mrf.mxu3  ;;  %v686_v14 = vrot.slane %v684_v18, 1 }
  0xb6   :  { %v13988_v50 = vadd.f32 %v1136_v37, %v1068_v36  ;;  %v1020_v56 = vpop.f32.mrf.mxu0  ;;  %v12694_v36 = vld [vmem:[%s19065_s0 + $0x154] sm:$0xf0]  ;;  %v10147_v37 = vld [vmem:[%s19065_s0 + $0x158] sm:$0xf0] }
  0xb7   :  { %v687_v45 = vsel %vm383_vm0, %v682_v0, %v686_v14  ;;  %v14016_v54 = vor.u32 %v12692_v38, %v10147_v37  ;;  %v131_v38 = vld [vmem:[%s19065_s0 + $0x168] sm:$0x33] }
  0xb8   :  { %v1088_v10 = vpop.f32.mrf.mxu1 }
  0xb9   :  { %v13994_v32 = vadd.f32 %v1088_v10, %v1020_v56  ;;  %v14014_v56 = vor.u32 %v12694_v36, %v10145_v49  ;;  %19279 = vst [vmem:[#allocation30_spill] sm:$0xff] %v14016_v54 }
  0xbb   :  { %19278 = vst [vmem:[#allocation29_spill] sm:$0xff] %v14014_v56  ;;  %v708_v0 = vshll.u32 %v14014_v56, 16 }
  0xbc   :  { %v1070_v44 = vpop.f32.mrf.mxu2 }
  0xbd   :  { %v1138_v6 = vpop.f32.mrf.mxu3 }
  0xbe   :  { %v1023_v34 = vpop.f32.mrf.mxu0 }
  0xc0   :  { %v1091_v21 = vpop.f32.mrf.mxu1 }
  0xc1   :  { %v14004_v25 = vadd.f32 %v1091_v21, %v1023_v34  ;;  %1188 = vmatmul.bf16.gmra.mxu2 %v679_v46  ;;  %1534 = vmatmul.bf16.vlgmr.msrb.gmra.mxu0 %v13368_v19  ;;  %v712_v19 = vshrl.u32 %v13986_v11, 16  ;;  %v12711_v46 = vld [vmem:[%s19064_s1 + $0x80] sm:$0xff]  ;;  %v706_v21 = vor.u32 %v704_v29, %v678_v47 }
  0xc2   :  { %1256 = vmatmul.bf16.gmra.mxu3 %v687_v45  ;;  %v710_v45 = vrot.slane %v708_v0, 1  ;;  %1669 = vmatpush.bf16.msra.mxu2 %v12711_v46  ;;  %v334_v0 = vunpack.c.h.b16 %v131_v38 }
  0xc3   :  { %1602 = vmatmul.bf16.vlgmr.msrb.gmra.mxu1 %v13388_v28  ;;  %v716_v28 = vshll.u32 %v14016_v54, 16  ;;  %v714_v49 = vor.u32 %v712_v19, %v686_v14 }
  0xc4   :  { %v1149_v52 = vpop.f32.mrf.mxu2  ;;  %v14047_v19 = vpack.c.b16 %v334_v0, %v334_v0 }
  0xc5   :  { %v1150_v10 = vadd.f32 %v1149_v52, %v13934_v43  ;;  %v1217_v53 = vpop.f32.mrf.mxu3  ;;  %v12719_v43 = vld [vmem:[%s19064_s1 + $0xc0] sm:$0xff]  ;;  %v718_v36 = vrot.slane %v716_v28, 1 }
  0xc6   :  { %v1025_v18 = vpop.f32.mrf.mxu0  ;;  %1737 = vmatpush.bf16.msra.mxu3 %v12719_v43  ;;  %19281 = vst [vmem:[#allocation32_spill] sm:$0xff] %v14047_v19 }
  0xc7   :  { %v14021_v44 = vadd.f32 %v1217_v53, %v1150_v10  ;;  %v719_v29 = vsel %vm383_vm0, %v714_v49, %v718_v36  ;;  %v736_v49 = vshrl.u32 %v14014_v56, 16 }
  0xc8   :  { %v1093_v6 = vpop.f32.mrf.mxu1 }
  0xc9   :  { %v14025_v34 = vadd.f32 %v1093_v6, %v1025_v18  ;;  %v711_v18 = vsel %vm383_vm0, %v706_v21, %v710_v45  ;;  %v333_v6 = vunpack.c.l.b16 %v131_v38 }
  0xcc   :  { %v1151_v37 = vpop.f32.mrf.mxu2 }
  0xcd   :  { %v1152_v52 = vadd.f32 %v1151_v37, %v13954_v42  ;;  %v1219_v10 = vpop.f32.mrf.mxu3  ;;  %v14045_v42 = vpack.c.b16 %v333_v6, %v333_v6  ;;  %v738_v6 = vor.u32 %v736_v49, %v710_v45 }
  0xce   :  { %v1028_v53 = vpop.f32.mrf.mxu0 }
  0xcf   :  { %v14038_v11 = vadd.f32 %v1219_v10, %v1152_v52  ;;  %19280 = vst [vmem:[#allocation31_spill] sm:$0xff] %v14045_v42  ;;  %v740_v38 = vshll.u32 %v14045_v42, 16  ;;  %v744_v10 = vshrl.u32 %v14016_v54, 16 }
  0xd0   :  { %v1096_v47 = vpop.f32.mrf.mxu1 }
  0xd1   :  { %v14041_v14 = vadd.f32 %v1096_v47, %v1028_v53  ;;  %1193 = vmatmul.bf16.gmra.mxu2 %v711_v18  ;;  %1539 = vmatmul.bf16.gmra.mxu0 %v13396_v31  ;;  %v748_v53 = vshll.u32 %v14047_v19, 16  ;;  %v742_v47 = vrot.slane %v740_v38, 1  ;;  %v12766_v38 = vld [vmem:[%s19064_s1 + $0x238] sm:$0xff] }
  0xd2   :  { %1261 = vmatmul.bf16.gmra.mxu3 %v719_v29  ;;  %v746_v29 = vor.u32 %v744_v10, %v718_v36  ;;  %2208 = vmatpush.bf16.msra.mxu0 %v12766_v38 }
  0xd3   :  { %1607 = vmatmul.bf16.gmra.mxu1 %v13411_v39  ;;  %v750_v0 = vrot.slane %v748_v53, 1  ;;  %v743_v56 = vsel %vm383_vm0, %v738_v6, %v742_v47  ;;  %v758_v53 = vshrl.u32 %v14045_v42, 16 }
  0xd4   :  { %v1154_v28 = vpop.f32.mrf.mxu2 }
  0xd5   :  { %v1155_v46 = vadd.f32 %v1154_v28, %v13970_v41  ;;  %v1222_v43 = vpop.f32.mrf.mxu3 }
  0xd6   :  { %v1030_v21 = vpop.f32.mrf.mxu0 }
  0xd7   :  { %v14052_v37 = vadd.f32 %v1222_v43, %v1155_v46  ;;  %v751_v43 = vsel %vm383_vm0, %v746_v29, %v750_v0 }
  0xd8   :  { %v1098_v52 = vpop.f32.mrf.mxu1 }
  0xd9   :  { %v1099_v18 = vadd.f32 %v1098_v52, %v1030_v21  ;;  %v12774_v52 = vld [vmem:[%s19064_s1 + $0x278] sm:$0xff] }
  0xda   :  { %2276 = vmatpush.bf16.msra.mxu1 %v12774_v52  ;;  %v12789_v52 = vld [vmem:[%s19064_s1 + $0x2f0] sm:$0xff] }
  0xdc   :  { %v1156_v39 = vpop.f32.mrf.mxu2 }
  0xdd   :  { %v1157_v41 = vadd.f32 %v1156_v39, %v13994_v32  ;;  %v1224_v28 = vpop.f32.mrf.mxu3  ;;  %v12782_v39 = vld [vmem:[%s19064_s1 + $0x2b8] sm:$0xff] }
  0xde   :  { %v1033_v31 = vpop.f32.mrf.mxu0  ;;  %v12790_v32 = vld [vmem:[%s19064_s1 + $0x2f8] sm:$0xff]  ;;  %2344 = vmatpush.bf16.msrb.mxu2 %v12782_v39 }
  0xdf   :  { %v14058_v48 = vadd.f32 %v1224_v28, %v1157_v41  ;;  %2412 = vmatpush.bf16.msrb.mxu3 %v12790_v32  ;;  %v760_v28 = vor.u32 %v758_v53, %v742_v47 }
  0xe0   :  { %v1101_v46 = vpop.f32.mrf.mxu1 }
  0xe1   :  { %v1102_v54 = vadd.f32 %v1101_v46, %v1033_v31  ;;  %1198 = vmatmul.bf16.gmra.mxu2 %v743_v56  ;;  %1544 = vmatmul.bf16.gmra.mxu0 %v13468_v15 }
  0xe2   :  { %1266 = vmatmul.bf16.gmra.mxu3 %v751_v43 }
  0xe3   :  { %1612 = vmatmul.bf16.gmra.mxu1 %v13470_v16  ;;  %2413 = vmatpush.bf16.msrb.mxu3 %v12789_v52 }
  0xe4   :  { %v1159_v45 = vpop.f32.mrf.mxu2 }
  0xe5   :  { %v1160_v36 = vadd.f32 %v1159_v45, %v14004_v25  ;;  %v1227_v31 = vpop.f32.mrf.mxu3  ;;  %v761_v25 = vshrl.u32 %v14047_v19, 16 }
  0xe6   :  { %v1035_v56 = vpop.f32.mrf.mxu0 }
  0xe7   :  { %v14070_v21 = vadd.f32 %v1227_v31, %v1160_v36  ;;  %v763_v43 = vor.u32 %v761_v25, %v750_v0  ;;  %v12781_v0 = vld [vmem:[%s19064_s1 + $0x2b0] sm:$0xff] }
  0xe8   :  { %v1103_v49 = vpop.f32.mrf.mxu1  ;;  %2345 = vmatpush.bf16.msrb.mxu2 %v12781_v0 }
  0xe9   :  { %v1104_v10 = vadd.f32 %v1103_v49, %v1035_v56 }
  0xec   :  { %v1161_v6 = vpop.f32.mrf.mxu2 }
  0xed   :  { %v1162_v29 = vadd.f32 %v1161_v6, %v14025_v34  ;;  %v1229_v41 = vpop.f32.mrf.mxu3 }
  0xee   :  { %v1038_v46 = vpop.f32.mrf.mxu0 }
  0xef   :  { %v14081_v39 = vadd.f32 %v1229_v41, %v1162_v29 }
  0xf0   :  { %v1106_v32 = vpop.f32.mrf.mxu1 }
  0xf1   :  { %v1107_v45 = vadd.f32 %v1106_v32, %v1038_v46  ;;  %1203 = vmatmul.bf16.gmra.mxu2 %v760_v28  ;;  %1549 = vmatmul.bf16.gmra.mxu0 %v13546_v2  ;;  %v12765_v28 = vld [vmem:[%s19064_s1 + $0x230] sm:$0xff] }
  0xf2   :  { %1271 = vmatmul.bf16.gmra.mxu3 %v763_v43  ;;  %v12773_v46 = vld [vmem:[%s19064_s1 + $0x270] sm:$0xff]  ;;  %2209 = vmatpush.bf16.msra.mxu0 %v12765_v28 }
  0xf3   :  { %1617 = vmatmul.bf16.gmra.mxu1 %v13554_v8 }
  0xf4   :  { %v1164_v36 = vpop.f32.mrf.mxu2  ;;  %2277 = vmatpush.bf16.msra.mxu1 %v12773_v46 }
  0xf5   :  { %v1165_v31 = vadd.f32 %v1164_v36, %v14041_v14  ;;  %v1232_v56 = vpop.f32.mrf.mxu3 }
  0xf6   :  { %v1040_v49 = vpop.f32.mrf.mxu0 }
  0xf7   :  { %v14086_v34 = vadd.f32 %v1232_v56, %v1165_v31 }
  0xf8   :  { %v1108_v47 = vpop.f32.mrf.mxu1 }
  0xf9   :  { %v1109_v38 = vadd.f32 %v1108_v47, %v1040_v49 }
  0xfc   :  { %v1166_v53 = vpop.f32.mrf.mxu2 }
  0xfd   :  { %v1167_v25 = vadd.f32 %v1166_v53, %v1099_v18  ;;  %v1234_v6 = vpop.f32.mrf.mxu3 }
  0xfe   :  { %v1043_v14 = vpop.f32.mrf.mxu0 }
  0xff   :  { %v14094_v29 = vadd.f32 %v1234_v6, %v1167_v25 }
 0x100   :  { %v1111_v41 = vpop.f32.mrf.mxu1 }
 0x101   :  { %v1112_v43 = vadd.f32 %v1111_v41, %v1043_v14  ;;  %1554 = vmatmul.bf16.gmra.mxu0 %v13616_v4  ;;  %1670 = vmatmul.bf16.vlgmr.msra.gmra.mxu2 %v13521_v57 }
 0x102   :  { %1738 = vmatmul.bf16.vlgmr.msra.gmra.mxu3 %v13535_v62 }
 0x103   :  { %1622 = vmatmul.bf16.gmra.mxu1 %v13628_v13 }
 0x104   :  { %v1169_v18 = vpop.f32.mrf.mxu2 }
 0x105   :  { %v1170_v32 = vadd.f32 %v1169_v18, %v1102_v54  ;;  %v1237_v36 = vpop.f32.mrf.mxu3  ;;  %v12780_v54 = vld [vmem:[%s19064_s1 + $0x2a8] sm:$0xff] }
 0x106   :  { %v1045_v31 = vpop.f32.mrf.mxu0  ;;  %2346 = vmatpush.bf16.msrb.mxu2 %v12780_v54 }
 0x107   :  { %v14106_v56 = vadd.f32 %v1237_v36, %v1170_v32  ;;  %v12764_v36 = vld [vmem:[%s19064_s1 + $0x228] sm:$0xff] }
 0x108   :  { %v1113_v49 = vpop.f32.mrf.mxu1  ;;  %2210 = vmatpush.bf16.msra.mxu0 %v12764_v36  ;;  %v12779_v36 = vld [vmem:[%s19064_s1 + $0x2a0] sm:$0xff] }
 0x109   :  { %v1114_v47 = vadd.f32 %v1113_v49, %v1045_v31  ;;  %v12772_v31 = vld [vmem:[%s19064_s1 + $0x268] sm:$0xff] }
 0x10a   :  { %2278 = vmatpush.bf16.msra.mxu1 %v12772_v31  ;;  %v12787_v31 = vld [vmem:[%s19064_s1 + $0x2e0] sm:$0xff]  ;;  %2347 = vmatpush.bf16.msrb.mxu2 %v12779_v36 }
 0x10c   :  { %v1171_v0 = vpop.f32.mrf.mxu2 }
 0x10d   :  { %v1172_v52 = vadd.f32 %v1171_v0, %v1104_v10  ;;  %v1239_v53 = vpop.f32.mrf.mxu3  ;;  %v12788_v10 = vld [vmem:[%s19064_s1 + $0x2e8] sm:$0xff] }
 0x10e   :  { %v1048_v25 = vpop.f32.mrf.mxu0  ;;  %2414 = vmatpush.bf16.msrb.mxu3 %v12788_v10 }
 0x10f   :  { %v14108_v6 = vadd.f32 %v1239_v53, %v1172_v52 }
 0x110   :  { %v1116_v57 = vpop.f32.mrf.mxu1 }
 0x111   :  { %v1117_v62 = vadd.f32 %v1116_v57, %v1048_v25  ;;  %1559 = vmatmul.bf16.gmra.mxu0 %v13666_v59  ;;  %1675 = vmatmul.bf16.gmra.mxu2 %v13548_v3 }
 0x112   :  { %1743 = vmatmul.bf16.gmra.mxu3 %v13551_v5 }
 0x113   :  { %1627 = vmatmul.bf16.gmra.mxu1 %v13681_v9  ;;  %2415 = vmatpush.bf16.msrb.mxu3 %v12787_v31 }
 0x114   :  { %v1174_v14 = vpop.f32.mrf.mxu2 }
 0x115   :  { %v1175_v41 = vadd.f32 %v1174_v14, %v1107_v45  ;;  %v1242_v28 = vpop.f32.mrf.mxu3 }
 0x116   :  { %v1050_v46 = vpop.f32.mrf.mxu0 }
 0x117   :  { %v14120_v18 = vadd.f32 %v1242_v28, %v1175_v41 }
 0x118   :  { %v1118_v32 = vpop.f32.mrf.mxu1 }
 0x119   :  { %v1119_v49 = vadd.f32 %v1118_v32, %v1050_v46 }
 0x11c   :  { %v1176_v0 = vpop.f32.mrf.mxu2 }
 0x11d   :  { %v1177_v52 = vadd.f32 %v1176_v0, %v1109_v38  ;;  %v1244_v53 = vpop.f32.mrf.mxu3 }
 0x11e   :  { %v1053_v45 = vpop.f32.mrf.mxu0 }
 0x11f   :  { %v14128_v25 = vadd.f32 %v1244_v53, %v1177_v52 }
 0x120   :  { %v1121_v57 = vpop.f32.mrf.mxu1 }
 0x121   :  { %v1122_v54 = vadd.f32 %v1121_v57, %v1053_v45  ;;  %1564 = vmatmul.bf16.gmra.mxu0 %v13722_v61  ;;  %1680 = vmatmul.bf16.gmra.mxu2 %v13618_v7 }
 0x122   :  { %1748 = vmatmul.bf16.gmra.mxu3 %v13626_v12 }
 0x123   :  { %1632 = vmatmul.bf16.gmra.mxu1 %v13737_v20 }
 0x124   :  { %v1179_v10 = vpop.f32.mrf.mxu2 }
 0x125   :  { %v1180_v14 = vadd.f32 %v1179_v10, %v1112_v43  ;;  %v1247_v41 = vpop.f32.mrf.mxu3  ;;  %v12763_v10 = vld [vmem:[%s19064_s1 + $0x220] sm:$0xff] }
 0x126   :  { %v1055_v28 = vpop.f32.mrf.mxu0  ;;  %2211 = vmatpush.bf16.msra.mxu0 %v12763_v10 }
 0x127   :  { %v14134_v46 = vadd.f32 %v1247_v41, %v1180_v14  ;;  %v12771_v14 = vld [vmem:[%s19064_s1 + $0x260] sm:$0xff] }
 0x128   :  { %v1123_v38 = vpop.f32.mrf.mxu1  ;;  %2279 = vmatpush.bf16.msra.mxu1 %v12771_v14 }
 0x129   :  { %v1124_v32 = vadd.f32 %v1123_v38, %v1055_v28 }
 0x12c   :  { %v1181_v0 = vpop.f32.mrf.mxu2 }
 0x12d   :  { %v1182_v52 = vadd.f32 %v1181_v0, %v1114_v47  ;;  %v1249_v53 = vpop.f32.mrf.mxu3 }
 0x12e   :  { %v1058_v43 = vpop.f32.mrf.mxu0 }
 0x12f   :  { %v14142_v45 = vadd.f32 %v1249_v53, %v1182_v52 }
 0x130   :  { %v1126_v57 = vpop.f32.mrf.mxu1 }
 0x131   :  { %v1127_v41 = vadd.f32 %v1126_v57, %v1058_v43  ;;  %1569 = vmatmul.bf16.gmra.mxu0 %v13778_v22  ;;  %1685 = vmatmul.bf16.gmra.mxu2 %v13668_v60 }
 0x132   :  { %1753 = vmatmul.bf16.gmra.mxu3 %v13679_v1 }
 0x133   :  { %1637 = vmatmul.bf16.gmra.mxu1 %v13784_v27 }
 0x134   :  { %v1184_v47 = vpop.f32.mrf.mxu2 }
 0x135   :  { %v1185_v28 = vadd.f32 %v1184_v47, %v1117_v62  ;;  %v1252_v38 = vpop.f32.mrf.mxu3  ;;  %v12778_v62 = vld [vmem:[%s19064_s1 + $0x298] sm:$0xff] }
 0x136   :  { %v1060_v36 = vpop.f32.mrf.mxu0  ;;  %2348 = vmatpush.bf16.msrb.mxu2 %v12778_v62  ;;  %v12762_v47 = vld [vmem:[%s19064_s1 + $0x218] sm:$0xff] }
 0x137   :  { %v14154_v31 = vadd.f32 %v1252_v38, %v1185_v28  ;;  %v12770_v28 = vld [vmem:[%s19064_s1 + $0x258] sm:$0xff]  ;;  %2212 = vmatpush.bf16.msra.mxu0 %v12762_v47 }
 0x138   :  { %v1128_v0 = vpop.f32.mrf.mxu1  ;;  %2280 = vmatpush.bf16.msra.mxu1 %v12770_v28  ;;  %v12785_v28 = vld [vmem:[%s19064_s1 + $0x2d0] sm:$0xff] }
 0x139   :  { %v1129_v52 = vadd.f32 %v1128_v0, %v1060_v36 }
 0x13c   :  { %v1186_v53 = vpop.f32.mrf.mxu2 }
 0x13d   :  { %v1187_v43 = vadd.f32 %v1186_v53, %v1119_v49  ;;  %v1254_v57 = vpop.f32.mrf.mxu3  ;;  %v12786_v49 = vld [vmem:[%s19064_s1 + $0x2d8] sm:$0xff] }
 0x13e   :  { %v1535_v19 = vpop.f32.mrf.mxu0  ;;  %2416 = vmatpush.bf16.msrb.mxu3 %v12786_v49 }
 0x13f   :  { %v14156_v42 = vadd.f32 %v1254_v57, %v1187_v43  ;;  %v1536_v22 = vadd.f32 %v1535_v19, %v14021_v44 }
 0x140   :  { %v1603_v20 = vpop.f32.mrf.mxu1 }
 0x141   :  { %v14159_v27 = vadd.f32 %v1603_v20, %v1536_v22  ;;  %1574 = vmatmul.bf16.gmra.mxu0 %v13822_v40  ;;  %1690 = vmatmul.bf16.gmra.mxu2 %v13724_v63 }
 0x142   :  { %1758 = vmatmul.bf16.gmra.mxu3 %v13735_v17 }
 0x143   :  { %1642 = vmatmul.bf16.gmra.mxu1 %v13837_v33  ;;  %2417 = vmatpush.bf16.msrb.mxu3 %v12785_v28  ;;  %v19286_v28 = vld [vmem:[#allocation7_spill] sm:$0xff] }
 0x144   :  { %v1189_v44 = vpop.f32.mrf.mxu2 }
 0x145   :  { %v1190_v20 = vadd.f32 %v1189_v44, %v1122_v54  ;;  %v1257_v22 = vpop.f32.mrf.mxu3 }
 0x146   :  { %v14171_v19 = vpop.f32.mrf.mxu0 }
 0x147   :  { %v14173_v10 = vadd.f32 %v1257_v22, %v1190_v20 }
 0x148   :  { %v14175_v14 = vpop.f32.mrf.mxu1 }
 0x14c   :  { %v1191_v38 = vpop.f32.mrf.mxu2 }
 0x14d   :  { %v1192_v36 = vadd.f32 %v1191_v38, %v1124_v32  ;;  %v1259_v54 = vpop.f32.mrf.mxu3 }
 0x14e   :  { %v1540_v0 = vpop.f32.mrf.mxu0 }
 0x14f   :  { %v14183_v53 = vadd.f32 %v1259_v54, %v1192_v36  ;;  %v1541_v43 = vadd.f32 %v1540_v0, %v14052_v37  ;;  %v12777_v37 = vld [vmem:[%s19064_s1 + $0x290] sm:$0xff] }
 0x150   :  { %v1608_v57 = vpop.f32.mrf.mxu1  ;;  %2349 = vmatpush.bf16.msrb.mxu2 %v12777_v37  ;;  %v12761_v54 = vld [vmem:[%s19064_s1 + $0x210] sm:$0xff] }
 0x151   :  { %19282 = vst [vmem:[#allocation33_spill] sm:$0xff] %v14183_v53  ;;  %v14186_v62 = vadd.f32 %v1608_v57, %v1541_v43  ;;  %1579 = vmatmul.bf16.gmra.mxu0 %v13881_v51  ;;  %1695 = vmatmul.bf16.gmra.mxu2 %v13780_v23  ;;  %v12769_v0 = vld [vmem:[%s19064_s1 + $0x250] sm:$0xff] }
 0x152   :  { %1763 = vmatmul.bf16.gmra.mxu3 %v13782_v26  ;;  %2213 = vmatpush.bf16.msra.mxu0 %v12761_v54  ;;  %v19285_v37 = vld [vmem:[#allocation18_spill] sm:$0xff] }
 0x153   :  { %1647 = vmatmul.bf16.gmra.mxu1 %v13887_v30  ;;  %v19287_v30 = vld [vmem:[#allocation26_spill] sm:$0xff] }
 0x154   :  { %v1194_v49 = vpop.f32.mrf.mxu2  ;;  %2281 = vmatpush.bf16.msra.mxu1 %v12769_v0 }
 0x155   :  { %v1195_v44 = vadd.f32 %v1194_v49, %v1127_v41  ;;  %v1262_v32 = vpop.f32.mrf.mxu3 }
 0x156   :  { %v14192_v20 = vpop.f32.mrf.mxu0 }
 0x157   :  { %v14194_v22 = vadd.f32 %v1262_v32, %v1195_v44 }
 0x158   :  { %v14196_v47 = vpop.f32.mrf.mxu1 }
 0x15c   :  { %v1196_v38 = vpop.f32.mrf.mxu2 }
 0x15d   :  { %v1197_v36 = vadd.f32 %v1196_v38, %v1129_v52  ;;  %v1264_v41 = vpop.f32.mrf.mxu3  ;;  %v19284_v52 = vld [vmem:[#allocation17_spill] sm:$0xff] }
 0x15e   :  { %v1545_v43 = vpop.f32.mrf.mxu0 }
 0x15f   :  { %v14210_v57 = vadd.f32 %v1264_v41, %v1197_v36  ;;  %v1546_v49 = vadd.f32 %v1545_v43, %v14070_v21  ;;  %v64_v21 = vld [vmem:[%s19065_s0 + $0x160] sm:$0x11] }
 0x160   :  { %v1613_v44 = vpop.f32.mrf.mxu1  ;;  %v1278_v43 = vunpack.c.l.b16 %v64_v21 }
 0x161   :  { %19283 = vst [vmem:[#allocation34_spill] sm:$0xff] %v14210_v57  ;;  %v14213_v32 = vadd.f32 %v1613_v44, %v1546_v49  ;;  %1584 = vmatmul.bf16.gmra.mxu0 %v13379_v24  ;;  %1700 = vmatmul.bf16.gmra.mxu2 %v19284_v52  ;;  %v1279_v49 = vunpack.c.h.b16 %v64_v21  ;;  %v12760_v21 = vld [vmem:[%s19064_s1 + $0x208] sm:$0xff] }
 0x162   :  { %1768 = vmatmul.bf16.gmra.mxu3 %v19285_v37  ;;  %v1282_v57 = vpack.c.b16 %v1278_v43, %v1278_v43  ;;  %v12768_v43 = vld [vmem:[%s19064_s1 + $0x248] sm:$0xff]  ;;  %2214 = vmatpush.bf16.msra.mxu0 %v12760_v21  ;;  %v1538_v21 = vadd.f32 %v14171_v19, %v14038_v11 }
 0x163   :  { %1652 = vmatmul.bf16.gmra.mxu1 %v19286_v28 }
 0x164   :  { %v1199_v38 = vpop.f32.mrf.mxu2  ;;  %2282 = vmatpush.bf16.msra.mxu1 %v12768_v43 }
 0x165   :  { %v1200_v51 = vadd.f32 %v1199_v38, %v19287_v30  ;;  %v1267_v36 = vpop.f32.mrf.mxu3  ;;  %v1283_v30 = vpack.c.b16 %v1279_v49, %v1279_v49 }
 0x166   :  { %v14220_v41 = vpop.f32.mrf.mxu0 }
 0x167   :  { %v14225_v54 = vadd.f32 %v1267_v36, %v1200_v51  ;;  %v19289_v51 = vld [vmem:[#allocation21_spill] sm:$0xff]  ;;  %v19290_v36 = vld [vmem:[#allocation22_spill] sm:$0xff] }
 0x168   :  { %v14227_v0 = vpop.f32.mrf.mxu1 }
 0x16c   :  { %v1201_v44 = vpop.f32.mrf.mxu2 }
 0x16d   :  { %v1202_v24 = vadd.f32 %v1201_v44, %v13956_v35  ;;  %v1269_v28 = vpop.f32.mrf.mxu3  ;;  %v12776_v35 = vld [vmem:[%s19064_s1 + $0x288] sm:$0xff] }
 0x16e   :  { %v1550_v33 = vpop.f32.mrf.mxu0  ;;  %2350 = vmatpush.bf16.msrb.mxu2 %v12776_v35 }
 0x16f   :  { %v14230_v38 = vadd.f32 %v1269_v28, %v1202_v24  ;;  %v1551_v40 = vadd.f32 %v1550_v33, %v14086_v34  ;;  %v12784_v24 = vld [vmem:[%s19064_s1 + $0x2c8] sm:$0xff] }
 0x170   :  { %v1618_v37 = vpop.f32.mrf.mxu1  ;;  %2418 = vmatpush.bf16.msrb.mxu3 %v12784_v24 }
 0x171   :  { %19288 = vst [vmem:[#allocation26_spill] sm:$0xff] %v14230_v38  ;;  %v14233_v52 = vadd.f32 %v1618_v37, %v1551_v40  ;;  %1589 = vmatmul.bf16.gmra.mxu0 %v1282_v57  ;;  %1705 = vmatmul.bf16.gmra.mxu2 %v19289_v51 }
 0x172   :  { %1773 = vmatmul.bf16.gmra.mxu3 %v19290_v36  ;;  %v19300_v36 = vld [vmem:[#allocation11_spill] sm:$0xff] }
 0x173   :  { %1657 = vmatmul.bf16.gmra.mxu1 %v1283_v30  ;;  %v1880_v51 = vrot.slane %v19300_v36, 1  ;;  %v19302_v36 = vld [vmem:[#allocation30_spill] sm:$0xff] }
 0x174   :  { %v1204_v28 = vpop.f32.mrf.mxu2 }
 0x175   :  { %v1205_v40 = vadd.f32 %v1204_v28, %v13988_v50  ;;  %v1272_v33 = vpop.f32.mrf.mxu3 }
 0x176   :  { %v14244_v34 = vpop.f32.mrf.mxu0 }
 0x177   :  { %v14246_v57 = vadd.f32 %v1272_v33, %v1205_v40 }
 0x178   :  { %v14248_v37 = vpop.f32.mrf.mxu1 }
 0x17c   :  { %v1206_v49 = vpop.f32.mrf.mxu2 }
 0x17d   :  { %v1274_v44 = vpop.f32.mrf.mxu3 }
 0x17e   :  { %v1555_v50 = vpop.f32.mrf.mxu0  ;;  %v12783_v44 = vld [vmem:[%s19064_s1 + $0x2c0] sm:$0xff] }
 0x17f   :  { %v1556_v30 = vadd.f32 %v1555_v50, %v14106_v56  ;;  %v12775_v56 = vld [vmem:[%s19064_s1 + $0x280] sm:$0xff]  ;;  %2419 = vmatpush.bf16.msrb.mxu3 %v12783_v44 }
 0x180   :  { %v1623_v35 = vpop.f32.mrf.mxu1  ;;  %2351 = vmatpush.bf16.msrb.mxu2 %v12775_v56  ;;  %v19294_v56 = vld [vmem:[#allocation28_spill] sm:$0xff] }
 0x181   :  { %v14257_v24 = vadd.f32 %v1623_v35, %v1556_v30  ;;  %1710 = vmatmul.bf16.gmra.mxu2 %v13942_v55 }
 0x182   :  { %1778 = vmatmul.bf16.gmra.mxu3 %v13944_v58 }
 0x184   :  { %v1671_v28 = vpop.f32.mrf.mxu2 }
 0x185   :  { %v1672_v40 = vadd.f32 %v1671_v28, %v14159_v27  ;;  %v1739_v33 = vpop.f32.mrf.mxu3  ;;  %v1606_v27 = vadd.f32 %v14175_v14, %v1538_v21  ;;  %v19293_v21 = vld [vmem:[#allocation27_spill] sm:$0xff] }
 0x186   :  { %v14262_v38 = vpop.f32.mrf.mxu0 }
 0x187   :  { %v14266_v43 = vadd.f32 %v1739_v33, %v1672_v40  ;;  %v12759_v33 = vld [vmem:[%s19064_s1 + $0x200] sm:$0xff] }
 0x188   :  { %v14268_v49 = vpop.f32.mrf.mxu1  ;;  %2215 = vmatpush.bf16.msra.mxu0 %v12759_v33 }
 0x189   :  { %19291 = vst [vmem:[#allocation35_spill] sm:$0xff] %v14266_v43  ;;  %v12767_v43 = vld [vmem:[%s19064_s1 + $0x240] sm:$0xff] }
 0x18a   :  { %2283 = vmatpush.bf16.msra.mxu1 %v12767_v43  ;;  %v19296_v43 = vld [vmem:[#allocation5_spill] sm:$0xff] }
 0x18c   :  { %v1673_v50 = vpop.f32.mrf.mxu2 }
 0x18d   :  { %v1674_v30 = vadd.f32 %v1673_v50, %v1606_v27  ;;  %v1741_v35 = vpop.f32.mrf.mxu3  ;;  %v1543_v50 = vadd.f32 %v14192_v20, %v14058_v48 }
 0x18e   :  { %v1560_v11 = vpop.f32.mrf.mxu0 }
 0x18f   :  { %v14277_v19 = vadd.f32 %v1741_v35, %v1674_v30  ;;  %v1561_v28 = vadd.f32 %v1560_v11, %v14120_v18  ;;  %v1798_v35 = vld [vmem:[%s19065_s0] sm:$0xee]  ;;  %v1611_v48 = vadd.f32 %v14196_v47, %v1543_v50 }
 0x190   :  { %v1628_v40 = vpop.f32.mrf.mxu1  ;;  %v1868_v33 = vunpack.c.h.b16 %v1798_v35  ;;  %v19301_v50 = vld [vmem:[#allocation29_spill] sm:$0xff] }
 0x191   :  { %19292 = vst [vmem:[#allocation36_spill] sm:$0xff] %v14277_v19  ;;  %v14286_v14 = vadd.f32 %v1628_v40, %v1561_v28  ;;  %1715 = vmatmul.bf16.gmra.mxu2 %v19293_v21  ;;  %v1867_v40 = vunpack.c.l.b16 %v1798_v35  ;;  %v19297_v19 = vunpack.c.l.b16 %v19296_v43  ;;  %v19299_v21 = vld [vmem:[#allocation8_spill] sm:$0xff] }
 0x192   :  { %1783 = vmatmul.bf16.gmra.mxu3 %v19294_v56  ;;  %v1877_v58 = vrot.slane %v19299_v21, 1 }
 0x193   :  { %v1871_v56 = vpack.c.b16 %v19297_v19, %v1867_v40 }
 0x194   :  { %v1676_v44 = vpop.f32.mrf.mxu2 }
 0x195   :  { %v1677_v18 = vadd.f32 %v1676_v44, %v14186_v62  ;;  %v1744_v27 = vpop.f32.mrf.mxu3  ;;  %v19298_v62 = vunpack.c.h.b16 %v19296_v43  ;;  %v1876_v20 = vrot.slane %v1871_v56, 1 }
 0x196   :  { %v14293_v30 = vpop.f32.mrf.mxu0 }
 0x197   :  { %v14298_v11 = vadd.f32 %v1744_v27, %v1677_v18  ;;  %v1872_v44 = vpack.c.b16 %v19298_v62, %v1868_v33  ;;  %v1878_v35 = vsel %vm1875_vm1, %v1876_v20, %v1877_v58  ;;  %v12854_v33 = vld [vmem:[%s19064_s1 + $0x3b8] sm:$0xff]  ;;  %v65_v62 = vld [vmem:[%s19065_s0 + $0x168] sm:$0x11] }
 0x198   :  { %v14300_v28 = vpop.f32.mrf.mxu1  ;;  %2216 = vmatmul.bf16.vlgmr.msra.gmra.mxu0 %v1878_v35  ;;  %3268 = vmatpush.bf16.msra.mxu2 %v12854_v33  ;;  %v1281_v35 = vunpack.c.h.b16 %v65_v62 }
 0x199   :  { %19295 = vst [vmem:[#allocation37_spill] sm:$0xff] %v14298_v11  ;;  %v1879_v55 = vrot.slane %v1872_v44, 1  ;;  %v1548_v44 = vadd.f32 %v14220_v41, %v14081_v39  ;;  %v1888_v39 = vrot.slane %v13468_v15, 1  ;;  %v1890_v41 = vrot.slane %v13470_v16, 1  ;;  %v1799_v15 = vld [vmem:[%s19065_s0 + $0x8] sm:$0xee] }
 0x19b   :  { %v1881_v53 = vsel %vm1875_vm1, %v1879_v55, %v1880_v51  ;;  %v12862_v55 = vld [vmem:[%s19064_s1 + $0x3f8] sm:$0xff] }
 0x19c   :  { %v1678_v18 = vpop.f32.mrf.mxu2  ;;  %2284 = vmatmul.bf16.vlgmr.msra.gmra.mxu1 %v1881_v53  ;;  %3336 = vmatpush.bf16.msra.mxu3 %v12862_v55 }
 0x19d   :  { %v1679_v27 = vadd.f32 %v1678_v18, %v1611_v48  ;;  %v1746_v11 = vpop.f32.mrf.mxu3  ;;  %v12838_v18 = vld [vmem:[%s19064_s1 + $0x338] sm:$0xff] }
 0x19e   :  { %v1565_v19 = vpop.f32.mrf.mxu0  ;;  %3132 = vmatpush.bf16.msrb.mxu0 %v12838_v18 }
 0x19f   :  { %v14311_v40 = vadd.f32 %v1746_v11, %v1679_v27  ;;  %v1566_v47 = vadd.f32 %v1565_v19, %v14134_v46  ;;  %v1280_v27 = vunpack.c.l.b16 %v65_v62  ;;  %v1616_v19 = vadd.f32 %v14227_v0, %v1548_v44 }
 0x1a0   :  { %v1633_v56 = vpop.f32.mrf.mxu1  ;;  %v1870_v44 = vunpack.c.h.b16 %v1799_v15 }
 0x1a1   :  { %v14314_v21 = vadd.f32 %v1633_v56, %v1566_v47  ;;  %1720 = vmatmul.bf16.gmra.mxu2 %v19301_v50  ;;  %v1284_v55 = vpack.c.b16 %v1280_v27, %v1280_v27 }
 0x1a2   :  { %1788 = vmatmul.bf16.gmra.mxu3 %v19302_v36 }
 0x1a4   :  { %v1681_v53 = vpop.f32.mrf.mxu2 }
 0x1a5   :  { %v1682_v46 = vadd.f32 %v1681_v53, %v14213_v32  ;;  %v1749_v11 = vpop.f32.mrf.mxu3  ;;  %v12846_v32 = vld [vmem:[%s19064_s1 + $0x378] sm:$0xff]  ;;  %v1889_v53 = vsel %vm1875_vm1, %v1877_v58, %v1888_v39  ;;  %v1869_v58 = vunpack.c.l.b16 %v1799_v15  ;;  %v1896_v15 = vrot.slane %v13546_v2, 1 }
 0x1a6   :  { %v14325_v43 = vpop.f32.mrf.mxu0  ;;  %3200 = vmatpush.bf16.msrb.mxu1 %v12846_v32 }
 0x1a7   :  { %v14332_v48 = vadd.f32 %v1749_v11, %v1682_v46  ;;  %v1891_v46 = vsel %vm1875_vm1, %v1880_v51, %v1890_v41 }
 0x1a8   :  { %v14334_v20 = vpop.f32.mrf.mxu1  ;;  %2221 = vmatmul.bf16.gmra.mxu0 %v1889_v53 }
 0x1a9   :  { %19303 = vst [vmem:[#allocation5_spill] sm:$0xff] %v14332_v48  ;;  %v1285_v48 = vpack.c.b16 %v1281_v35, %v1281_v35  ;;  %v1553_v35 = vadd.f32 %v14244_v34, %v14094_v29  ;;  %v12861_v29 = vld [vmem:[%s19064_s1 + $0x3f0] sm:$0xff] }
 0x1aa   :  { %3337 = vmatpush.bf16.msra.mxu3 %v12861_v29 }
 0x1ab   :  { %v1621_v34 = vadd.f32 %v14248_v37, %v1553_v35 }
 0x1ac   :  { %v1683_v47 = vpop.f32.mrf.mxu2  ;;  %2289 = vmatmul.bf16.gmra.mxu1 %v1891_v46 }
 0x1ad   :  { %v1684_v56 = vadd.f32 %v1683_v47, %v1616_v19  ;;  %v1751_v33 = vpop.f32.mrf.mxu3 }
 0x1ae   :  { %v1570_v11 = vpop.f32.mrf.mxu0 }
 0x1af   :  { %v14347_v18 = vadd.f32 %v1751_v33, %v1684_v56  ;;  %v1571_v0 = vadd.f32 %v1570_v11, %v14154_v31  ;;  %v19304_v31 = vld [vmem:[#allocation12_spill] sm:$0xff]  ;;  %v1883_v11 = vrot.slane %v13548_v3, 1 }
 0x1b0   :  { %v1638_v62 = vpop.f32.mrf.mxu1  ;;  %v19305_v47 = vunpack.c.l.b16 %v19304_v31 }
 0x1b1   :  { %v14353_v16 = vadd.f32 %v1638_v62, %v1571_v0  ;;  %1725 = vmatmul.bf16.gmra.mxu2 %v1284_v55  ;;  %v1886_v62 = vrot.slane %v13551_v5, 1 }
 0x1b2   :  { %1793 = vmatmul.bf16.gmra.mxu3 %v1285_v48  ;;  %v1873_v56 = vpack.c.b16 %v19305_v47, %v1869_v58  ;;  %v19306_v48 = vunpack.c.h.b16 %v19304_v31  ;;  %v1898_v58 = vrot.slane %v13554_v8, 1  ;;  %v12837_v8 = vld [vmem:[%s19064_s1 + $0x330] sm:$0xff] }
 0x1b3   :  { %3133 = vmatpush.bf16.msrb.mxu0 %v12837_v8 }
 0x1b4   :  { %v1686_v51 = vpop.f32.mrf.mxu2  ;;  %v1874_v55 = vpack.c.b16 %v19306_v48, %v1870_v44  ;;  %v1882_v46 = vrot.slane %v1873_v56, 1  ;;  %v1899_v31 = vsel %vm1875_vm1, %v1890_v41, %v1898_v58 }
 0x1b5   :  { %v1687_v32 = vadd.f32 %v1686_v51, %v14233_v52  ;;  %v1754_v27 = vpop.f32.mrf.mxu3  ;;  %v12853_v52 = vld [vmem:[%s19064_s1 + $0x3b0] sm:$0xff] }
 0x1b6   :  { %v14358_v19 = vpop.f32.mrf.mxu0  ;;  %v1885_v0 = vrot.slane %v1874_v55, 1  ;;  %3269 = vmatpush.bf16.msra.mxu2 %v12853_v52  ;;  %v1884_v35 = vsel %vm1875_vm1, %v1882_v46, %v1883_v11  ;;  %v1558_v52 = vadd.f32 %v14262_v38, %v14108_v6  ;;  %v1892_v46 = vrot.slane %v13618_v7, 1 }
 0x1b7   :  { %v14362_v33 = vadd.f32 %v1754_v27, %v1687_v32  ;;  %v1897_v27 = vsel %vm1875_vm1, %v1888_v39, %v1896_v15  ;;  %v12845_v39 = vld [vmem:[%s19064_s1 + $0x370] sm:$0xff] }
 0x1b8   :  { %v14364_v53 = vpop.f32.mrf.mxu1  ;;  %2226 = vmatmul.bf16.gmra.mxu0 %v1897_v27  ;;  %v1887_v2 = vsel %vm1875_vm1, %v1885_v0, %v1886_v62  ;;  %3201 = vmatpush.bf16.msrb.mxu1 %v12845_v39  ;;  %v1626_v0 = vadd.f32 %v14268_v49, %v1558_v52  ;;  %v12836_v39 = vld [vmem:[%s19064_s1 + $0x328] sm:$0xff] }
 0x1b9   :  { %3134 = vmatpush.bf16.msrb.mxu0 %v12836_v39 }
 0x1bc   :  { %v1688_v44 = vpop.f32.mrf.mxu2  ;;  %2294 = vmatmul.bf16.gmra.mxu1 %v1899_v31 }
 0x1bd   :  { %v1689_v51 = vadd.f32 %v1688_v44, %v1621_v34  ;;  %v1756_v32 = vpop.f32.mrf.mxu3  ;;  %v1894_v44 = vrot.slane %v13626_v12, 1 }
 0x1be   :  { %v1575_v37 = vpop.f32.mrf.mxu0 }
 0x1bf   :  { %v14382_v3 = vadd.f32 %v1756_v32, %v1689_v51  ;;  %v1576_v5 = vadd.f32 %v1575_v37, %v14173_v10  ;;  %v1904_v51 = vrot.slane %v13616_v4, 1  ;;  %v1895_v4 = vsel %vm1875_vm1, %v1886_v62, %v1894_v44 }
 0x1c0   :  { %v1643_v47 = vpop.f32.mrf.mxu1  ;;  %v1563_v62 = vadd.f32 %v14293_v30, %v14128_v25  ;;  %v1902_v25 = vrot.slane %v13679_v1, 1  ;;  %v1912_v30 = vrot.slane %v13666_v59, 1 }
 0x1c1   :  { %v14392_v41 = vadd.f32 %v1643_v47, %v1576_v5  ;;  %2352 = vmatmul.bf16.vlgmr.msrb.gmra.mxu2 %v1884_v35  ;;  %v1905_v37 = vsel %vm1875_vm1, %v1896_v15, %v1904_v51  ;;  %v1893_v35 = vsel %vm1875_vm1, %v1883_v11, %v1892_v46  ;;  %v12852_v15 = vld [vmem:[%s19064_s1 + $0x3a8] sm:$0xff] }
 0x1c2   :  { %2420 = vmatmul.bf16.vlgmr.msrb.gmra.mxu3 %v1887_v2  ;;  %v12860_v11 = vld [vmem:[%s19064_s1 + $0x3e8] sm:$0xff]  ;;  %3270 = vmatpush.bf16.msra.mxu2 %v12852_v15  ;;  %v1903_v59 = vsel %vm1875_vm1, %v1894_v44, %v1902_v25  ;;  %v12859_v44 = vld [vmem:[%s19064_s1 + $0x3e0] sm:$0xff] }
 0x1c3   :  { %3338 = vmatpush.bf16.msra.mxu3 %v12860_v11  ;;  %v19307_v15 = vld [vmem:[#allocation13_spill] sm:$0xff] }
 0x1c4   :  { %v1691_v56 = vpop.f32.mrf.mxu2  ;;  %v1922_v11 = vrot.slane %v19307_v15, 1  ;;  %v19310_v15 = vld [vmem:[#allocation33_spill] sm:$0xff] }
 0x1c5   :  { %v1692_v10 = vadd.f32 %v1691_v56, %v14257_v24  ;;  %v1759_v48 = vpop.f32.mrf.mxu3  ;;  %v1906_v24 = vrot.slane %v13628_v13, 1  ;;  %v12844_v56 = vld [vmem:[%s19064_s1 + $0x368] sm:$0xff] }
 0x1c6   :  { %v14395_v55 = vpop.f32.mrf.mxu0  ;;  %3202 = vmatpush.bf16.msrb.mxu1 %v12844_v56 }
 0x1c7   :  { %v14399_v29 = vadd.f32 %v1759_v48, %v1692_v10  ;;  %v1907_v6 = vsel %vm1875_vm1, %v1898_v58, %v1906_v24  ;;  %v1631_v10 = vadd.f32 %v14300_v28, %v1563_v62  ;;  %v1914_v48 = vrot.slane %v13681_v9, 1  ;;  %3339 = vmatpush.bf16.msra.mxu3 %v12859_v44  ;;  %v12858_v44 = vld [vmem:[%s19064_s1 + $0x3d8] sm:$0xff] }
 0x1c8   :  { %v14401_v34 = vpop.f32.mrf.mxu1  ;;  %2231 = vmatmul.bf16.gmra.mxu0 %v1905_v37 }
 0x1c9   :  { %v1923_v39 = vsel %vm1875_vm1, %v1914_v48, %v1922_v11 }
 0x1cb   :  { %3340 = vmatpush.bf16.msra.mxu3 %v12858_v44 }
 0x1cc   :  { %v1693_v32 = vpop.f32.mrf.mxu2  ;;  %2299 = vmatmul.bf16.gmra.mxu1 %v1907_v6 }
 0x1cd   :  { %v1694_v27 = vadd.f32 %v1693_v32, %v1626_v0  ;;  %v1761_v31 = vpop.f32.mrf.mxu3 }
 0x1ce   :  { %v1580_v38 = vpop.f32.mrf.mxu0 }
 0x1cf   :  { %v14411_v7 = vadd.f32 %v1761_v31, %v1694_v27  ;;  %v1581_v12 = vadd.f32 %v1580_v38, %v14194_v22  ;;  %v1913_v27 = vsel %vm1875_vm1, %v1904_v51, %v1912_v30  ;;  %v1915_v31 = vsel %vm1875_vm1, %v1906_v24, %v1914_v48 }
 0x1d0   :  { %v1648_v49 = vpop.f32.mrf.mxu1 }
 0x1d1   :  { %v14415_v13 = vadd.f32 %v1648_v49, %v1581_v12  ;;  %2357 = vmatmul.bf16.gmra.mxu2 %v1893_v35 }
 0x1d2   :  { %2425 = vmatmul.bf16.gmra.mxu3 %v1895_v4 }
 0x1d4   :  { %v1696_v58 = vpop.f32.mrf.mxu2 }
 0x1d5   :  { %v1697_v22 = vadd.f32 %v1696_v58, %v14286_v14  ;;  %v1764_v5 = vpop.f32.mrf.mxu3  ;;  %v1900_v14 = vrot.slane %v13668_v60, 1 }
 0x1d6   :  { %v14424_v47 = vpop.f32.mrf.mxu0 }
 0x1d7   :  { %v14428_v2 = vadd.f32 %v1764_v5, %v1697_v22  ;;  %v1901_v6 = vsel %vm1875_vm1, %v1892_v46, %v1900_v14  ;;  %v1568_v46 = vadd.f32 %v14325_v43, %v14142_v45  ;;  %v1910_v45 = vrot.slane %v13735_v17, 1 }
 0x1d8   :  { %v14430_v8 = vpop.f32.mrf.mxu1  ;;  %2236 = vmatmul.bf16.gmra.mxu0 %v1913_v27  ;;  %v1920_v43 = vrot.slane %v13722_v61, 1 }
 0x1d9   :  { %v1636_v4 = vadd.f32 %v14334_v20, %v1568_v46  ;;  %v1911_v61 = vsel %vm1875_vm1, %v1902_v25, %v1910_v45  ;;  %v1573_v25 = vadd.f32 %v14358_v19, %v14156_v42 }
 0x1da   :  { %v1921_v62 = vsel %vm1875_vm1, %v1912_v30, %v1920_v43  ;;  %v12843_v30 = vld [vmem:[%s19064_s1 + $0x360] sm:$0xff] }
 0x1db   :  { %3203 = vmatpush.bf16.msrb.mxu1 %v12843_v30 }
 0x1dc   :  { %v1698_v52 = vpop.f32.mrf.mxu2  ;;  %2304 = vmatmul.bf16.gmra.mxu1 %v1915_v31 }
 0x1dd   :  { %v1699_v0 = vadd.f32 %v1698_v52, %v1631_v10  ;;  %v1766_v32 = vpop.f32.mrf.mxu3  ;;  %v12835_v52 = vld [vmem:[%s19064_s1 + $0x320] sm:$0xff] }
 0x1de   :  { %v1585_v37 = vpop.f32.mrf.mxu0  ;;  %3135 = vmatpush.bf16.msrb.mxu0 %v12835_v52 }
 0x1df   :  { %v14446_v60 = vadd.f32 %v1766_v32, %v1699_v0  ;;  %v1586_v1 = vadd.f32 %v1585_v37, %v14225_v54  ;;  %v12851_v54 = vld [vmem:[%s19064_s1 + $0x3a0] sm:$0xff]  ;;  %v1916_v37 = vrot.slane %v13780_v23, 1 }
 0x1e0   :  { %v1653_v28 = vpop.f32.mrf.mxu1  ;;  %3271 = vmatpush.bf16.msra.mxu2 %v12851_v54 }
 0x1e1   :  { %v14450_v9 = vadd.f32 %v1653_v28, %v1586_v1  ;;  %2362 = vmatmul.bf16.gmra.mxu2 %v1901_v6  ;;  %v1641_v6 = vadd.f32 %v14364_v53, %v1573_v25  ;;  %v1918_v1 = vrot.slane %v13782_v26, 1  ;;  %v19308_v28 = vld [vmem:[#allocation14_spill] sm:$0xff]  ;;  %v12850_v26 = vld [vmem:[%s19064_s1 + $0x398] sm:$0xff] }
 0x1e2   :  { %2430 = vmatmul.bf16.gmra.mxu3 %v1903_v59  ;;  %v1928_v59 = vrot.slane %v19308_v28, 1  ;;  %v19315_v28 = vld [vmem:[#allocation34_spill] sm:$0xff] }
 0x1e3   :  { %v1919_v53 = vsel %vm1875_vm1, %v1910_v45, %v1918_v1 }
 0x1e4   :  { %v1701_v38 = vpop.f32.mrf.mxu2  ;;  %v1929_v54 = vsel %vm1875_vm1, %v1920_v43, %v1928_v59  ;;  %3272 = vmatpush.bf16.msra.mxu2 %v12850_v26 }
 0x1e5   :  { %v1702_v51 = vadd.f32 %v1701_v38, %v14314_v21  ;;  %v1769_v24 = vpop.f32.mrf.mxu3  ;;  %v1908_v21 = vrot.slane %v13724_v63, 1  ;;  %v19309_v38 = vld [vmem:[#allocation15_spill] sm:$0xff] }
 0x1e6   :  { %v14453_v35 = vpop.f32.mrf.mxu0 }
 0x1e7   :  { %v14457_v12 = vadd.f32 %v1769_v24, %v1702_v51  ;;  %v1909_v10 = vsel %vm1875_vm1, %v1900_v14, %v1908_v21  ;;  %v1930_v51 = vrot.slane %v19309_v38, 1  ;;  %v1917_v19 = vsel %vm1875_vm1, %v1908_v21, %v1916_v37 }
 0x1e8   :  { %v14459_v49 = vpop.f32.mrf.mxu1  ;;  %2241 = vmatmul.bf16.gmra.mxu0 %v1921_v62  ;;  %v1583_v38 = vadd.f32 %v14424_v47, %v19315_v28 }
 0x1e9   :  { %v1931_v42 = vsel %vm1875_vm1, %v1922_v11, %v1930_v51  ;;  %v1578_v11 = vadd.f32 %v14395_v55, %v19310_v15 }
 0x1ec   :  { %v1703_v58 = vpop.f32.mrf.mxu2  ;;  %2309 = vmatmul.bf16.gmra.mxu1 %v1923_v39  ;;  %v19312_v39 = vld [vmem:[#allocation18_spill] sm:$0xff] }
 0x1ed   :  { %v1704_v22 = vadd.f32 %v1703_v58, %v1636_v4  ;;  %v1771_v5 = vpop.f32.mrf.mxu3  ;;  %v12834_v58 = vld [vmem:[%s19064_s1 + $0x318] sm:$0xff] }
 0x1ee   :  { %v1590_v56 = vpop.f32.mrf.mxu0  ;;  %3136 = vmatpush.bf16.msrb.mxu0 %v12834_v58  ;;  %v12841_v58 = vld [vmem:[%s19064_s1 + $0x350] sm:$0xff] }
 0x1ef   :  { %v14475_v63 = vadd.f32 %v1771_v5, %v1704_v22  ;;  %v1591_v17 = vadd.f32 %v1590_v56, %v14246_v57  ;;  %v12842_v22 = vld [vmem:[%s19064_s1 + $0x358] sm:$0xff]  ;;  %v19311_v5 = vld [vmem:[#allocation17_spill] sm:$0xff]  ;;  %v1926_v56 = vrot.slane %v19312_v39, 1 }
 0x1f0   :  { %v1658_v20 = vpop.f32.mrf.mxu1  ;;  %3204 = vmatpush.bf16.msrb.mxu1 %v12842_v22  ;;  %v1924_v62 = vrot.slane %v19311_v5, 1 }
 0x1f1   :  { %v14485_v48 = vadd.f32 %v1658_v20, %v1591_v17  ;;  %2367 = vmatmul.bf16.gmra.mxu2 %v1909_v10  ;;  %v19313_v10 = vld [vmem:[#allocation16_spill] sm:$0xff]  ;;  %v19314_v17 = vld [vmem:[#allocation19_spill] sm:$0xff] }
 0x1f2   :  { %2435 = vmatmul.bf16.gmra.mxu3 %v1911_v61  ;;  %v1936_v55 = vrot.slane %v19313_v10, 1  ;;  %v1938_v20 = vrot.slane %v19314_v17, 1 }
 0x1f4   :  { %v1706_v14 = vpop.f32.mrf.mxu2  ;;  %3205 = vmatpush.bf16.msrb.mxu1 %v12841_v58 }
 0x1f5   :  { %v1707_v57 = vadd.f32 %v1706_v14, %v14353_v16  ;;  %v1774_v0 = vpop.f32.mrf.mxu3  ;;  %v1937_v14 = vsel %vm1875_vm1, %v1928_v59, %v1936_v55 }
 0x1f6   :  { %v1592_v32 = vpop.f32.mrf.mxu0 }
 0x1f7   :  { %v14490_v27 = vadd.f32 %v1774_v0, %v1707_v57  ;;  %v1939_v57 = vsel %vm1875_vm1, %v1930_v51, %v1938_v20  ;;  %v1925_v0 = vsel %vm1875_vm1, %v1916_v37, %v1924_v62  ;;  %v12849_v37 = vld [vmem:[%s19064_s1 + $0x390] sm:$0xff] }
 0x1f8   :  { %v1660_v31 = vpop.f32.mrf.mxu1  ;;  %2246 = vmatmul.bf16.gmra.mxu0 %v1929_v54  ;;  %v12857_v51 = vld [vmem:[%s19064_s1 + $0x3d0] sm:$0xff]  ;;  %3273 = vmatpush.bf16.msra.mxu2 %v12849_v37 }
 0x1f9   :  { %3341 = vmatpush.bf16.msra.mxu3 %v12857_v51 }
 0x1fc   :  { %v1708_v24 = vpop.f32.mrf.mxu2  ;;  %2314 = vmatmul.bf16.gmra.mxu1 %v1931_v42  ;;  %v19318_v42 = vld [vmem:[#allocation20_spill] sm:$0xff] }
 0x1fd   :  { %v1709_v16 = vadd.f32 %v1708_v24, %v1641_v6  ;;  %v1776_v46 = vpop.f32.mrf.mxu3 }
 0x1ff   :  { %v14500_v23 = vadd.f32 %v1776_v46, %v1709_v16  ;;  %v19317_v16 = vld [vmem:[#allocation22_spill] sm:$0xff] }
 0x200   :  { %v1934_v46 = vrot.slane %v19317_v16, 1 }
 0x201   :  { %2372 = vmatmul.bf16.gmra.mxu2 %v1917_v19  ;;  %v1944_v19 = vrot.slane %v19318_v42, 1  ;;  %v12848_v42 = vld [vmem:[%s19064_s1 + $0x388] sm:$0xff] }
 0x202   :  { %2440 = vmatmul.bf16.gmra.mxu3 %v1919_v53  ;;  %v19319_v53 = vld [vmem:[#allocation23_spill] sm:$0xff]  ;;  %3274 = vmatpush.bf16.msra.mxu2 %v12848_v42 }
 0x203   :  { %v1946_v26 = vrot.slane %v19319_v53, 1  ;;  %v1945_v15 = vsel %vm1875_vm1, %v1936_v55, %v1944_v19 }
 0x204   :  { %v1711_v4 = vpop.f32.mrf.mxu2 }
 0x205   :  { %v1712_v21 = vadd.f32 %v1711_v4, %v14392_v41  ;;  %v1779_v43 = vpop.f32.mrf.mxu3  ;;  %v1646_v41 = vadd.f32 %v14401_v34, %v1578_v11  ;;  %v1927_v34 = vsel %vm1875_vm1, %v1918_v1, %v1926_v56  ;;  %v19316_v1 = vld [vmem:[#allocation21_spill] sm:$0xff]  ;;  %v1947_v11 = vsel %vm1875_vm1, %v1938_v20, %v1946_v26 }
 0x206   :  { %v1932_v24 = vrot.slane %v19316_v1, 1 }
 0x207   :  { %v14512_v45 = vadd.f32 %v1779_v43, %v1712_v21 }
 0x208   :  { %2251 = vmatmul.bf16.gmra.mxu0 %v1937_v14  ;;  %v1933_v22 = vsel %vm1875_vm1, %v1924_v62, %v1932_v24  ;;  %v19321_v14 = vld [vmem:[#allocation24_spill] sm:$0xff] }
 0x20c   :  { %v1713_v61 = vpop.f32.mrf.mxu2  ;;  %2319 = vmatmul.bf16.gmra.mxu1 %v1939_v57  ;;  %v1940_v57 = vrot.slane %v19321_v14, 1 }
 0x20d   :  { %v1714_v52 = vadd.f32 %v1713_v61, %v1646_v41  ;;  %v1781_v30 = vpop.f32.mrf.mxu3  ;;  %v1935_v41 = vsel %vm1875_vm1, %v1926_v56, %v1934_v46 }
 0x20f   :  { %v14528_v32 = vadd.f32 %v1781_v30, %v1714_v52  ;;  %v19320_v52 = vld [vmem:[#allocation26_spill] sm:$0xff] }
 0x210   :  { %v1588_v62 = vadd.f32 %v14453_v35, %v19320_v52 }
 0x211   :  { %2377 = vmatmul.bf16.gmra.mxu2 %v1925_v0  ;;  %v19322_v0 = vld [vmem:[#allocation25_spill] sm:$0xff] }
 0x212   :  { %2445 = vmatmul.bf16.gmra.mxu3 %v1927_v34  ;;  %v1656_v56 = vadd.f32 %v14459_v49, %v1588_v62  ;;  %v1942_v34 = vrot.slane %v19322_v0, 1 }
 0x214   :  { %v1716_v25 = vpop.f32.mrf.mxu2 }
 0x215   :  { %v1717_v31 = vadd.f32 %v1716_v25, %v14415_v13  ;;  %v1784_v6 = vpop.f32.mrf.mxu3  ;;  %v1651_v13 = vadd.f32 %v14430_v8, %v1583_v38  ;;  %v2217_v54 = vpop.f32.mrf.mxu0  ;;  %v12833_v8 = vld [vmem:[%s19064_s1 + $0x310] sm:$0xff] }
 0x216   :  { %3137 = vmatpush.bf16.msrb.mxu0 %v12833_v8  ;;  %v19324_v38 = vld [vmem:[#allocation7_spill] sm:$0xff] }
 0x217   :  { %v14534_v59 = vadd.f32 %v1784_v6, %v1717_v31  ;;  %v19323_v6 = vld [vmem:[#allocation6_spill] sm:$0xff]  ;;  %v1954_v37 = vrot.slane %v19324_v38, 1  ;;  %v19325_v8 = vld [vmem:[#allocation27_spill] sm:$0xff] }
 0x218   :  { %2256 = vmatmul.bf16.gmra.mxu0 %v1945_v15  ;;  %v1952_v28 = vrot.slane %v19323_v6, 1  ;;  %v12832_v15 = vld [vmem:[%s19064_s1 + $0x308] sm:$0xff]  ;;  %v1948_v58 = vrot.slane %v19325_v8, 1 }
 0x219   :  { %v2285_v47 = vpop.f32.mrf.mxu1  ;;  %v1955_v16 = vsel %vm1875_vm1, %v1946_v26, %v1954_v37 }
 0x21a   :  { %v14547_v4 = vadd.f32 %v2285_v47, %v2217_v54  ;;  %v1953_v35 = vsel %vm1875_vm1, %v1944_v19, %v1952_v28  ;;  %v1941_v54 = vsel %vm1875_vm1, %v1932_v24, %v1940_v57  ;;  %v1943_v47 = vsel %vm1875_vm1, %v1934_v46, %v1942_v34  ;;  %v12856_v19 = vld [vmem:[%s19064_s1 + $0x3c8] sm:$0xff]  ;;  %3138 = vmatpush.bf16.msrb.mxu0 %v12832_v15 }
 0x21b   :  { %3342 = vmatpush.bf16.msra.mxu3 %v12856_v19 }
 0x21c   :  { %v1718_v44 = vpop.f32.mrf.mxu2  ;;  %2324 = vmatmul.bf16.gmra.mxu1 %v1947_v11  ;;  %v12840_v11 = vld [vmem:[%s19064_s1 + $0x348] sm:$0xff] }
 0x21d   :  { %v1719_v21 = vadd.f32 %v1718_v44, %v1651_v13  ;;  %v1786_v43 = vpop.f32.mrf.mxu3  ;;  %v2219_v39 = vpop.f32.mrf.mxu0  ;;  %3206 = vmatpush.bf16.msrb.mxu1 %v12840_v11 }
 0x21f   :  { %v14558_v5 = vadd.f32 %v1786_v43, %v1719_v21 }
 0x221   :  { %2382 = vmatmul.bf16.gmra.mxu2 %v1933_v22  ;;  %v2287_v10 = vpop.f32.mrf.mxu1  ;;  %v19326_v22 = vld [vmem:[#allocation28_spill] sm:$0xff] }
 0x222   :  { %2450 = vmatmul.bf16.gmra.mxu3 %v1935_v41  ;;  %v14561_v17 = vadd.f32 %v2287_v10, %v2219_v39  ;;  %v1950_v41 = vrot.slane %v19326_v22, 1 }
 0x224   :  { %v1721_v55 = vpop.f32.mrf.mxu2 }
 0x225   :  { %v1722_v20 = vadd.f32 %v1721_v55, %v14450_v9  ;;  %v1789_v61 = vpop.f32.mrf.mxu3  ;;  %v2222_v25 = vpop.f32.mrf.mxu0 }
 0x227   :  { %v14566_v30 = vadd.f32 %v1789_v61, %v1722_v20  ;;  %v19328_v20 = vld [vmem:[#allocation10_spill] sm:$0xff] }
 0x228   :  { %2261 = vmatmul.bf16.gmra.mxu0 %v1953_v35  ;;  %v1962_v61 = vrot.slane %v19328_v20, 1 }
 0x229   :  { %v2290_v31 = vpop.f32.mrf.mxu1 }
 0x22a   :  { %v14573_v9 = vadd.f32 %v2290_v31, %v2222_v25  ;;  %v1963_v0 = vsel %vm1875_vm1, %v1954_v37, %v1962_v61  ;;  %v1949_v25 = vsel %vm1875_vm1, %v1940_v57, %v1948_v58  ;;  %v1951_v31 = vsel %vm1875_vm1, %v1942_v34, %v1950_v41  ;;  %v12847_v57 = vld [vmem:[%s19064_s1 + $0x380] sm:$0xff] }
 0x22b   :  { %v12855_v34 = vld [vmem:[%s19064_s1 + $0x3c0] sm:$0xff]  ;;  %v1956_v37 = vrot.slane %v19301_v50, 1  ;;  %3275 = vmatpush.bf16.msra.mxu2 %v12847_v57 }
 0x22c   :  { %v1723_v51 = vpop.f32.mrf.mxu2  ;;  %2329 = vmatmul.bf16.gmra.mxu1 %v1955_v16  ;;  %3343 = vmatpush.bf16.msra.mxu3 %v12855_v34  ;;  %v19330_v50 = vld [vmem:[#allocation36_spill] sm:$0xff] }
 0x22d   :  { %v1724_v1 = vadd.f32 %v1723_v51, %v1656_v56  ;;  %v1791_v13 = vpop.f32.mrf.mxu3  ;;  %v2224_v53 = vpop.f32.mrf.mxu0  ;;  %v19335_v34 = vld [vmem:[#allocation32_spill] sm:$0xff] }
 0x22f   :  { %v14578_v49 = vadd.f32 %v1791_v13, %v1724_v1 }
 0x231   :  { %2387 = vmatmul.bf16.gmra.mxu2 %v1941_v54  ;;  %v2292_v26 = vpop.f32.mrf.mxu1 }
 0x232   :  { %2455 = vmatmul.bf16.gmra.mxu3 %v1943_v47  ;;  %v14587_v24 = vadd.f32 %v2292_v26, %v2224_v53  ;;  %v1958_v47 = vrot.slane %v19302_v36, 1  ;;  %v12831_v36 = vld [vmem:[%s19064_s1 + $0x300] sm:$0xff] }
 0x233   :  { %3139 = vmatpush.bf16.msrb.mxu0 %v12831_v36 }
 0x234   :  { %v1726_v44 = vpop.f32.mrf.mxu2  ;;  %v1959_v15 = vsel %vm1875_vm1, %v1950_v41, %v1958_v47 }
 0x235   :  { %v1727_v21 = vadd.f32 %v1726_v44, %v14485_v48  ;;  %v1794_v46 = vpop.f32.mrf.mxu3  ;;  %v2227_v39 = vpop.f32.mrf.mxu0  ;;  %v19327_v48 = vld [vmem:[#allocation9_spill] sm:$0xff] }
 0x236   :  { %v1960_v55 = vrot.slane %v19327_v48, 1  ;;  %v2503_v48 = vld [vmem:[%s19065_s0 + $0x10] sm:$0xee] }
 0x237   :  { %v14590_v43 = vadd.f32 %v1794_v46, %v1727_v21  ;;  %v1957_v21 = vsel %vm1875_vm1, %v1948_v58, %v1956_v37 }
 0x238   :  { %v1961_v56 = vsel %vm1875_vm1, %v1952_v28, %v1960_v55  ;;  %v19329_v28 = vld [vmem:[#allocation35_spill] sm:$0xff] }
 0x239   :  { %v2295_v10 = vpop.f32.mrf.mxu1  ;;  %2266 = vmatmul.bf16.gmra.mxu0 %v1961_v56  ;;  %v10665_v56 = vld [vmem:[%s19065_s0 + $0x30] sm:$0xf] }
 0x23a   :  { %v14602_v62 = vadd.f32 %v2295_v10, %v2227_v39 }
 0x23c   :  { %v1728_v52 = vpop.f32.mrf.mxu2  ;;  %2334 = vmatmul.bf16.gmra.mxu1 %v1963_v0  ;;  %v12791_v0 = vld [vmem:[%s19065_s0 + $0x34] sm:$0xf] }
 0x23d   :  { %v1796_v14 = vpop.f32.mrf.mxu3  ;;  %v2229_v6 = vpop.f32.mrf.mxu0 }
 0x23e   :  { %v2661_v14 = vunpack.c.h.b16 %v2503_v48 }
 0x241   :  { %2392 = vmatmul.bf16.gmra.mxu2 %v1949_v25  ;;  %v2297_v38 = vpop.f32.mrf.mxu1 }
 0x242   :  { %2460 = vmatmul.bf16.gmra.mxu3 %v1951_v31  ;;  %v14608_v1 = vadd.f32 %v2297_v38, %v2229_v6  ;;  %v19332_v31 = vld [vmem:[#allocation37_spill] sm:$0xff] }
 0x244   :  { %v2353_v51 = vpop.f32.mrf.mxu2 }
 0x245   :  { %v2354_v13 = vadd.f32 %v2353_v51, %v14547_v4  ;;  %v2421_v35 = vpop.f32.mrf.mxu3  ;;  %v2232_v42 = vpop.f32.mrf.mxu0 }
 0x247   :  { %v2422_v16 = vadd.f32 %v2421_v35, %v2354_v13  ;;  %v10667_v13 = vld [vmem:[%s19065_s0 + $0x40] sm:$0xf0]  ;;  %v19334_v35 = vld [vmem:[#allocation31_spill] sm:$0xff] }
 0x248   :  { %v14675_v57 = vor.u32 %v12791_v0, %v10667_v13  ;;  %v10681_v0 = vld [vmem:[%s19065_s0 + $0x50] sm:$0xf]  ;;  %v12795_v13 = vld [vmem:[%s19065_s0 + $0x54] sm:$0xf] }
 0x249   :  { %v14612_v54 = vadd.f32 %v2422_v16, %v19329_v28  ;;  %v2300_v4 = vpop.f32.mrf.mxu1  ;;  %2271 = vmatmul.bf16.gmra.mxu0 %v1960_v55  ;;  %v14645_v55 = vld [vmem:[%s19065_s0 + $0x20] sm:$0xff]  ;;  %v1964_v16 = vrot.slane %v19334_v35, 1 }
 0x24a   :  { %v14622_v53 = vadd.f32 %v2300_v4, %v2232_v42  ;;  %19331 = vst [vmem:[#allocation8_spill] sm:$0xff] %v14645_v55  ;;  %v19115_v52 = vunpack.c.l.b16 %v14645_v55  ;;  %v19114_v25 = vunpack.c.h.b16 %v14645_v55  ;;  %v1966_v42 = vrot.slane %v19335_v34, 1  ;;  %v19336_v35 = vld [vmem:[#allocation5_spill] sm:$0xff]  ;;  %v12809_v55 = vld [vmem:[%s19065_s0 + $0xbc] sm:$0xf0] }
 0x24c   :  { %v2355_v19 = vpop.f32.mrf.mxu2  ;;  %2339 = vmatmul.bf16.gmra.mxu1 %v1962_v61  ;;  %v2660_v61 = vunpack.c.l.b16 %v2503_v48  ;;  %v14673_v28 = vpack.c.b16 %v19114_v25, %v2661_v14 }
 0x24d   :  { %v2356_v26 = vadd.f32 %v2355_v19, %v14561_v17  ;;  %v2423_v44 = vpop.f32.mrf.mxu3  ;;  %v12839_v17 = vld [vmem:[%s19064_s1 + $0x340] sm:$0xff]  ;;  %v2234_v8 = vpop.f32.mrf.mxu0 }
 0x24e   :  { %3207 = vmatpush.bf16.msrb.mxu1 %v12839_v17  ;;  %v14663_v38 = vpack.c.b16 %v19115_v52, %v2660_v61 }
 0x24f   :  { %v2424_v46 = vadd.f32 %v2423_v44, %v2356_v26 }
 0x250   :  { %v2800_v26 = vrot.slane %v14663_v38, 1 }
 0x251   :  { %v14628_v11 = vadd.f32 %v2424_v46, %v19330_v50  ;;  %2397 = vmatmul.bf16.gmra.mxu2 %v1957_v21  ;;  %v2302_v58 = vpop.f32.mrf.mxu1  ;;  %v2804_v50 = vrot.slane %v14675_v57, 1 }
 0x252   :  { %2465 = vmatmul.bf16.gmra.mxu3 %v1959_v15  ;;  %v14636_v39 = vadd.f32 %v2302_v58, %v2234_v8  ;;  %v2803_v15 = vrot.slane %v14673_v28, 1  ;;  %v1965_v58 = vsel %vm1875_vm1, %v1956_v37, %v1964_v16  ;;  %v12894_v37 = vld [vmem:[%s19064_s1 + $0x4f8] sm:$0xff] }
 0x253   :  { %4377 = vmatpush.bf16.msrb.mxu3 %v12894_v37 }
 0x254   :  { %v2358_v22 = vpop.f32.mrf.mxu2 }
 0x255   :  { %v2359_v41 = vadd.f32 %v2358_v22, %v14573_v9  ;;  %v2426_v10 = vpop.f32.mrf.mxu3  ;;  %v12793_v9 = vld [vmem:[%s19065_s0 + $0x3c] sm:$0xf0]  ;;  %v2237_v4 = vpop.f32.mrf.mxu0  ;;  %v2805_v22 = vsel %vm1875_vm1, %v2803_v15, %v2804_v50 }
 0x256   :  { %v14665_v51 = vor.u32 %v12793_v9, %v10665_v56 }
 0x257   :  { %v2427_v20 = vadd.f32 %v2426_v10, %v2359_v41  ;;  %v1967_v10 = vsel %vm1875_vm1, %v1958_v47, %v1966_v42 }
 0x258   :  { %19333 = vst [vmem:[#allocation11_spill] sm:$0xff] %v14665_v51  ;;  %v2801_v44 = vrot.slane %v14665_v51, 1 }
 0x259   :  { %v14659_v6 = vadd.f32 %v2427_v20, %v19332_v31  ;;  %v2305_v19 = vpop.f32.mrf.mxu1  ;;  %v12797_v31 = vld [vmem:[%s19065_s0 + $0x5c] sm:$0xf0] }
 0x25a   :  { %v14680_v46 = vadd.f32 %v2305_v19, %v2237_v4  ;;  %v2802_v8 = vsel %vm1875_vm1, %v2800_v26, %v2801_v44  ;;  %v12878_v4 = vld [vmem:[%s19064_s1 + $0x478] sm:$0xff]  ;;  %v14719_v19 = vor.u32 %v12797_v31, %v10681_v0  ;;  %v10683_v26 = vld [vmem:[%s19065_s0 + $0x60] sm:$0xf0] }
 0x25b   :  { %3140 = vmatmul.bf16.vlgmr.msrb.gmra.mxu0 %v2802_v8  ;;  %4241 = vmatpush.bf16.msra.mxu1 %v12878_v4 }
 0x25c   :  { %v2360_v21 = vpop.f32.mrf.mxu2  ;;  %3208 = vmatmul.bf16.vlgmr.msrb.gmra.mxu1 %v2805_v22 }
 0x25d   :  { %v2361_v36 = vadd.f32 %v2360_v21, %v14587_v24  ;;  %v2428_v17 = vpop.f32.mrf.mxu3  ;;  %v12886_v24 = vld [vmem:[%s19064_s1 + $0x4b8] sm:$0xff]  ;;  %v2239_v20 = vpop.f32.mrf.mxu0  ;;  %v14724_v21 = vor.u32 %v12795_v13, %v10683_v26 }
 0x25e   :  { %4309 = vmatpush.bf16.msrb.mxu2 %v12886_v24 }
 0x25f   :  { %v2429_v41 = vadd.f32 %v2428_v17, %v2361_v36  ;;  %v2812_v17 = vrot.slane %v14719_v19, 1  ;;  %v2814_v22 = vrot.slane %v14724_v21, 1 }
 0x261   :  { %v14690_v48 = vadd.f32 %v2429_v41, %v14311_v40  ;;  %2402 = vmatmul.bf16.gmra.mxu2 %v1965_v58  ;;  %v2307_v61 = vpop.f32.mrf.mxu1  ;;  %v2813_v24 = vsel %vm1875_vm1, %v2801_v44, %v2812_v17  ;;  %v2815_v37 = vsel %vm1875_vm1, %v2804_v50, %v2814_v22  ;;  %v10673_v50 = vld [vmem:[%s19065_s0 + $0x38] sm:$0xf] }
 0x262   :  { %2470 = vmatmul.bf16.gmra.mxu3 %v1967_v10  ;;  %v14698_v56 = vadd.f32 %v2307_v61, %v2239_v20  ;;  %v2504_v61 = vld [vmem:[%s19065_s0 + $0x18] sm:$0xee] }
 0x264   :  { %v2363_v14 = vpop.f32.mrf.mxu2 }
 0x265   :  { %v2364_v40 = vadd.f32 %v2363_v14, %v14602_v62  ;;  %v2431_v47 = vpop.f32.mrf.mxu3  ;;  %v12870_v62 = vld [vmem:[%s19064_s1 + $0x438] sm:$0xff]  ;;  %v2242_v15 = vpop.f32.mrf.mxu0  ;;  %v14739_v14 = vld [vmem:[%s19065_s0 + $0x28] sm:$0xff] }
 0x266   :  { %4173 = vmatpush.bf16.msra.mxu0 %v12870_v62  ;;  %19337 = vst [vmem:[#allocation29_spill] sm:$0xff] %v14739_v14  ;;  %v19113_v44 = vunpack.c.l.b16 %v14739_v14  ;;  %v19112_v0 = vunpack.c.h.b16 %v14739_v14 }
 0x267   :  { %v2432_v9 = vadd.f32 %v2431_v47, %v2364_v40  ;;  %v12794_v47 = vld [vmem:[%s19065_s0 + $0x44] sm:$0xf0] }
 0x269   :  { %v14711_v34 = vadd.f32 %v2432_v9, %v19336_v35  ;;  %v2310_v36 = vpop.f32.mrf.mxu1  ;;  %v2663_v9 = vunpack.c.h.b16 %v2504_v61 }
 0x26a   :  { %v14727_v58 = vadd.f32 %v2310_v36, %v2242_v15  ;;  %v14765_v15 = vor.u32 %v12794_v47, %v10673_v50  ;;  %v10699_v50 = vld [vmem:[%s19065_s0 + $0x80] sm:$0xf0] }
 0x26b   :  { %3145 = vmatmul.bf16.gmra.mxu0 %v2813_v24  ;;  %v12799_v24 = vld [vmem:[%s19065_s0 + $0x74] sm:$0xf] }
 0x26c   :  { %v2365_v8 = vpop.f32.mrf.mxu2  ;;  %3213 = vmatmul.bf16.gmra.mxu1 %v2815_v37  ;;  %19338 = vst [vmem:[#allocation30_spill] sm:$0xff] %v14765_v15 }
 0x26d   :  { %v2366_v41 = vadd.f32 %v2365_v8, %v14608_v1  ;;  %v2433_v10 = vpop.f32.mrf.mxu3  ;;  %v2662_v1 = vunpack.c.l.b16 %v2504_v61  ;;  %v2244_v31 = vpop.f32.mrf.mxu0  ;;  %v14769_v8 = vpack.c.b16 %v19112_v0, %v2663_v9  ;;  %v12893_v61 = vld [vmem:[%s19064_s1 + $0x4f0] sm:$0xff]  ;;  %v2807_v9 = vrot.slane %v14765_v15, 1 }
 0x26e   :  { %4378 = vmatpush.bf16.msrb.mxu3 %v12893_v61 }
 0x26f   :  { %v2434_v20 = vadd.f32 %v2433_v10, %v2366_v41  ;;  %v14763_v26 = vpack.c.b16 %v19113_v44, %v2662_v1  ;;  %v10697_v10 = vld [vmem:[%s19065_s0 + $0x70] sm:$0xf] }
 0x271   :  { %v14742_v40 = vadd.f32 %v2434_v20, %v14347_v18  ;;  %2407 = vmatmul.bf16.gmra.mxu2 %v1964_v16  ;;  %v2312_v13 = vpop.f32.mrf.mxu1  ;;  %v12792_v16 = vld [vmem:[%s19065_s0 + $0x3c] sm:$0xf]  ;;  %v12885_v20 = vld [vmem:[%s19064_s1 + $0x4b0] sm:$0xff]  ;;  %v2806_v47 = vrot.slane %v14763_v26, 1 }
 0x272   :  { %2475 = vmatmul.bf16.gmra.mxu3 %v1966_v42  ;;  %v10675_v42 = vld [vmem:[%s19065_s0 + $0x48] sm:$0xf0]  ;;  %v14758_v35 = vadd.f32 %v2312_v13, %v2244_v31  ;;  %v2809_v31 = vrot.slane %v14769_v8, 1  ;;  %4310 = vmatpush.bf16.msrb.mxu2 %v12885_v20 }
 0x273   :  { %v14771_v41 = vor.u32 %v12792_v16, %v10675_v42 }
 0x274   :  { %v2368_v18 = vpop.f32.mrf.mxu2 }
 0x275   :  { %v2369_v62 = vadd.f32 %v2368_v18, %v14622_v53  ;;  %v2436_v4 = vpop.f32.mrf.mxu3  ;;  %19339 = vst [vmem:[#allocation12_spill] sm:$0xff] %v14771_v41  ;;  %v12801_v53 = vld [vmem:[%s19065_s0 + $0x7c] sm:$0xf0]  ;;  %v2810_v13 = vrot.slane %v14771_v41, 1  ;;  %v2247_v18 = vpop.f32.mrf.mxu0 }
 0x276   :  { %v14791_v1 = vor.u32 %v12801_v53, %v10697_v10 }
 0x277   :  { %v2437_v36 = vadd.f32 %v2436_v4, %v2369_v62  ;;  %v2811_v61 = vsel %vm1875_vm1, %v2809_v31, %v2810_v13 }
 0x278   :  { %19340 = vst [vmem:[#allocation13_spill] sm:$0xff] %v14791_v1  ;;  %v2820_v42 = vrot.slane %v14791_v1, 1 }
 0x279   :  { %v14783_v37 = vadd.f32 %v2437_v36, %v14362_v33  ;;  %v14798_v33 = vor.u32 %v12799_v24, %v10699_v50  ;;  %v2315_v16 = vpop.f32.mrf.mxu1  ;;  %v2808_v50 = vsel %vm1875_vm1, %v2806_v47, %v2807_v9  ;;  %v12798_v47 = vld [vmem:[%s19065_s0 + $0x64] sm:$0xf0] }
 0x27a   :  { %v14803_v4 = vadd.f32 %v2315_v16, %v2247_v18  ;;  %v2821_v24 = vsel %vm1875_vm1, %v2812_v17, %v2820_v42  ;;  %v12877_v17 = vld [vmem:[%s19064_s1 + $0x470] sm:$0xff]  ;;  %v12796_v18 = vld [vmem:[%s19065_s0 + $0x5c] sm:$0xf]  ;;  %v10691_v16 = vld [vmem:[%s19065_s0 + $0x68] sm:$0xf0] }
 0x27b   :  { %19341 = vst [vmem:[#allocation14_spill] sm:$0xff] %v14798_v33  ;;  %v2822_v36 = vrot.slane %v14798_v33, 1  ;;  %3150 = vmatmul.bf16.gmra.mxu0 %v2821_v24  ;;  %4242 = vmatpush.bf16.msra.mxu1 %v12877_v17  ;;  %v12803_v17 = vld [vmem:[%s19065_s0 + $0x94] sm:$0xf] }
 0x27c   :  { %v2370_v62 = vpop.f32.mrf.mxu2 }
 0x27d   :  { %v2371_v10 = vadd.f32 %v2370_v62, %v14636_v39  ;;  %v2438_v53 = vpop.f32.mrf.mxu3  ;;  %v2823_v20 = vsel %vm1875_vm1, %v2814_v22, %v2822_v36  ;;  %v12869_v39 = vld [vmem:[%s19064_s1 + $0x430] sm:$0xff]  ;;  %v10689_v22 = vld [vmem:[%s19065_s0 + $0x58] sm:$0xf] }
 0x27e   :  { %3218 = vmatmul.bf16.gmra.mxu1 %v2823_v20  ;;  %4174 = vmatpush.bf16.msra.mxu0 %v12869_v39  ;;  %v14835_v24 = vor.u32 %v12798_v47, %v10689_v22  ;;  %v14837_v20 = vor.u32 %v12796_v18, %v10691_v16  ;;  %v12805_v39 = vld [vmem:[%s19065_s0 + $0x9c] sm:$0xf0]  ;;  %v10715_v47 = vld [vmem:[%s19065_s0 + $0xa0] sm:$0xf0] }
 0x27f   :  { %v2439_v0 = vadd.f32 %v2438_v53, %v2371_v10 }
 0x281   :  { %v14812_v44 = vadd.f32 %v2439_v0, %v14382_v3  ;;  %3276 = vmatmul.bf16.vlgmr.msra.gmra.mxu2 %v2808_v50  ;;  %v2249_v3 = vpop.f32.mrf.mxu0  ;;  %v2317_v0 = vpop.f32.mrf.mxu1 }
 0x282   :  { %3344 = vmatmul.bf16.vlgmr.msra.gmra.mxu3 %v2811_v61  ;;  %v14832_v62 = vadd.f32 %v2317_v0, %v2249_v3  ;;  %v10713_v61 = vld [vmem:[%s19065_s0 + $0x90] sm:$0xf]  ;;  %v2816_v3 = vrot.slane %v14835_v24, 1  ;;  %v14857_v0 = vor.u32 %v12803_v17, %v10715_v47 }
 0x283   :  { %v14851_v22 = vor.u32 %v12805_v39, %v10713_v61 }
 0x284   :  { %v2373_v31 = vpop.f32.mrf.mxu2  ;;  %v2817_v52 = vsel %vm1875_vm1, %v2807_v9, %v2816_v3  ;;  %v12892_v9 = vld [vmem:[%s19064_s1 + $0x4e8] sm:$0xff] }
 0x285   :  { %v2374_v10 = vadd.f32 %v2373_v31, %v14680_v46  ;;  %v2441_v53 = vpop.f32.mrf.mxu3  ;;  %v19118_v31 = vrot.slane %v14837_v20, 1  ;;  %4379 = vmatpush.bf16.msrb.mxu3 %v12892_v9  ;;  %v12868_v9 = vld [vmem:[%s19064_s1 + $0x428] sm:$0xff] }
 0x286   :  { %4175 = vmatpush.bf16.msra.mxu0 %v12868_v9 }
 0x287   :  { %v2442_v50 = vadd.f32 %v2441_v53, %v2374_v10  ;;  %v2828_v10 = vrot.slane %v14851_v22, 1  ;;  %v2819_v14 = vsel %vm1875_vm1, %v2810_v13, %v19118_v31  ;;  %v12802_v13 = vld [vmem:[%s19065_s0 + $0x84] sm:$0xf0]  ;;  %v10729_v31 = vld [vmem:[%s19065_s0 + $0xb0] sm:$0xf] }
 0x289   :  { %v14849_v46 = vadd.f32 %v2442_v50, %v14399_v29  ;;  %v2252_v18 = vpop.f32.mrf.mxu0  ;;  %v2320_v16 = vpop.f32.mrf.mxu1  ;;  %v2830_v29 = vrot.slane %v14857_v0, 1  ;;  %v2829_v39 = vsel %vm1875_vm1, %v2820_v42, %v2828_v10  ;;  %v10705_v42 = vld [vmem:[%s19065_s0 + $0x78] sm:$0xf] }
 0x28a   :  { %v14861_v25 = vadd.f32 %v2320_v16, %v2252_v18  ;;  %v10707_v16 = vld [vmem:[%s19065_s0 + $0x88] sm:$0xf0] }
 0x28b   :  { %3155 = vmatmul.bf16.gmra.mxu0 %v2829_v39  ;;  %v2831_v17 = vsel %vm1875_vm1, %v2822_v36, %v2830_v29  ;;  %v14895_v39 = vor.u32 %v12802_v13, %v10705_v42  ;;  %v12876_v42 = vld [vmem:[%s19064_s1 + $0x468] sm:$0xff]  ;;  %v14917_v13 = vor.u32 %v12809_v55, %v10729_v31 }
 0x28c   :  { %v2375_v53 = vpop.f32.mrf.mxu2  ;;  %4243 = vmatpush.bf16.msra.mxu1 %v12876_v42 }
 0x28d   :  { %v2376_v50 = vadd.f32 %v2375_v53, %v14698_v56  ;;  %v2443_v61 = vpop.f32.mrf.mxu3  ;;  %v12884_v56 = vld [vmem:[%s19064_s1 + $0x4a8] sm:$0xff]  ;;  %19342 = vst [vmem:[#allocation15_spill] sm:$0xff] %v14895_v39 }
 0x28e   :  { %3223 = vmatmul.bf16.gmra.mxu1 %v2831_v17  ;;  %4311 = vmatpush.bf16.msrb.mxu2 %v12884_v56  ;;  %v12807_v56 = vld [vmem:[%s19065_s0 + $0xb4] sm:$0xf]  ;;  %19344 = vst [vmem:[#allocation17_spill] sm:$0xff] %v14917_v13 }
 0x28f   :  { %v2444_v47 = vadd.f32 %v2443_v61, %v2376_v50 }
 0x291   :  { %v14872_v18 = vadd.f32 %v2444_v47, %v14411_v7  ;;  %3281 = vmatmul.bf16.gmra.mxu2 %v2817_v52  ;;  %v2254_v7 = vpop.f32.mrf.mxu0  ;;  %v2322_v36 = vpop.f32.mrf.mxu1 }
 0x292   :  { %3349 = vmatmul.bf16.gmra.mxu3 %v2819_v14  ;;  %v12800_v14 = vld [vmem:[%s19065_s0 + $0x7c] sm:$0xf]  ;;  %v14892_v53 = vadd.f32 %v2322_v36, %v2254_v7  ;;  %v10731_v7 = vld [vmem:[%s19065_s0 + $0xc0] sm:$0xf0]  ;;  %v2824_v36 = vrot.slane %v14895_v39, 1 }
 0x293   :  { %v14897_v47 = vor.u32 %v12800_v14, %v10707_v16 }
 0x294   :  { %v2378_v52 = vpop.f32.mrf.mxu2 }
 0x295   :  { %v2379_v50 = vadd.f32 %v2378_v52, %v14727_v58  ;;  %v2446_v61 = vpop.f32.mrf.mxu3  ;;  %v14923_v52 = vor.u32 %v12807_v56, %v10731_v7  ;;  %v2825_v56 = vsel %vm1875_vm1, %v2816_v3, %v2824_v36  ;;  %v19346_v7 = vrot.slane %v14837_v20, 1  ;;  %v12806_v3 = vld [vmem:[%s19065_s0 + $0xa4] sm:$0xf0] }
 0x297   :  { %v2447_v17 = vadd.f32 %v2446_v61, %v2379_v50  ;;  %19345 = vst [vmem:[#allocation18_spill] sm:$0xff] %v14923_v52  ;;  %v2836_v50 = vrot.slane %v14917_v13, 1  ;;  %v2838_v55 = vrot.slane %v14923_v52, 1 }
 0x299   :  { %v14909_v58 = vadd.f32 %v2447_v17, %v14428_v2  ;;  %v2826_v2 = vrot.slane %v14897_v47, 1  ;;  %v2257_v14 = vpop.f32.mrf.mxu0  ;;  %v2325_v16 = vpop.f32.mrf.mxu1  ;;  %v2837_v39 = vsel %vm1875_vm1, %v2828_v10, %v2836_v50  ;;  %v2839_v9 = vsel %vm1875_vm1, %v2830_v29, %v2838_v55 }
 0x29a   :  { %v14927_v17 = vadd.f32 %v2325_v16, %v2257_v14 }
 0x29b   :  { %19343 = vst [vmem:[#allocation33_spill] sm:$0xff] %v14909_v58  ;;  %3160 = vmatmul.bf16.gmra.mxu0 %v2837_v39  ;;  %v2827_v13 = vsel %vm1875_vm1, %v19346_v7, %v2826_v2  ;;  %v12813_v7 = vld [vmem:[%s19065_s0 + $0xdc] sm:$0xf0] }
 0x29c   :  { %v2380_v61 = vpop.f32.mrf.mxu2 }
 0x29d   :  { %v2381_v31 = vadd.f32 %v2380_v61, %v14758_v35  ;;  %v2448_v58 = vpop.f32.mrf.mxu3  ;;  %v10721_v35 = vld [vmem:[%s19065_s0 + $0x98] sm:$0xf] }
 0x29e   :  { %3228 = vmatmul.bf16.gmra.mxu1 %v2839_v9 }
 0x29f   :  { %v2449_v42 = vadd.f32 %v2448_v58, %v2381_v31  ;;  %v12804_v58 = vld [vmem:[%s19065_s0 + $0x9c] sm:$0xf]  ;;  %v14955_v31 = vor.u32 %v12806_v3, %v10721_v35  ;;  %v12883_v35 = vld [vmem:[%s19064_s1 + $0x4a0] sm:$0xff] }
 0x2a0   :  { %v12891_v3 = vld [vmem:[%s19064_s1 + $0x4e0] sm:$0xff]  ;;  %4312 = vmatpush.bf16.msrb.mxu2 %v12883_v35 }
 0x2a1   :  { %v14938_v14 = vadd.f32 %v2449_v42, %v14446_v60  ;;  %3286 = vmatmul.bf16.gmra.mxu2 %v2825_v56  ;;  %v2259_v10 = vpop.f32.mrf.mxu0  ;;  %v2327_v29 = vpop.f32.mrf.mxu1  ;;  %v10723_v60 = vld [vmem:[%s19065_s0 + $0xa8] sm:$0xf0]  ;;  %19348 = vst [vmem:[#allocation19_spill] sm:$0xff] %v14955_v31  ;;  %v10745_v42 = vld [vmem:[%s19065_s0 + $0xd0] sm:$0xf]  ;;  %4380 = vmatpush.bf16.msrb.mxu3 %v12891_v3 }
 0x2a2   :  { %3354 = vmatmul.bf16.gmra.mxu3 %v2827_v13  ;;  %v14952_v13 = vadd.f32 %v2327_v29, %v2259_v10  ;;  %v14957_v9 = vor.u32 %v12804_v58, %v10723_v60  ;;  %v12811_v10 = vld [vmem:[%s19065_s0 + $0xd4] sm:$0xf]  ;;  %v14977_v29 = vor.u32 %v12813_v7, %v10745_v42  ;;  %v2832_v58 = vrot.slane %v14955_v31, 1 }
 0x2a3   :  { %19347 = vst [vmem:[#allocation16_spill] sm:$0xff] %v14938_v14 }
 0x2a4   :  { %v2383_v39 = vpop.f32.mrf.mxu2  ;;  %19349 = vst [vmem:[#allocation34_spill] sm:$0xff] %v14957_v9 }
 0x2a5   :  { %v2384_v16 = vadd.f32 %v2383_v39, %v14803_v4  ;;  %v2451_v61 = vpop.f32.mrf.mxu3  ;;  %19351 = vst [vmem:[#allocation22_spill] sm:$0xff] %v14977_v29  ;;  %v10747_v39 = vld [vmem:[%s19065_s0 + $0xe0] sm:$0xf0] }
 0x2a6   :  { %v14983_v60 = vor.u32 %v12811_v10, %v10747_v39  ;;  %v2833_v10 = vsel %vm1875_vm1, %v2824_v36, %v2832_v58  ;;  %v10737_v36 = vld [vmem:[%s19065_s0 + $0xb8] sm:$0xf] }
 0x2a7   :  { %v2452_v56 = vadd.f32 %v2451_v61, %v2384_v16 }
 0x2a8   :  { %19352 = vst [vmem:[#allocation20_spill] sm:$0xff] %v14983_v60  ;;  %v2846_v42 = vrot.slane %v14983_v60, 1 }
 0x2a9   :  { %v14969_v4 = vadd.f32 %v2452_v56, %v14457_v12  ;;  %v2834_v12 = vrot.slane %v14957_v9, 1  ;;  %v2262_v16 = vpop.f32.mrf.mxu0  ;;  %v2330_v61 = vpop.f32.mrf.mxu1  ;;  %v2844_v56 = vrot.slane %v14977_v29, 1 }
 0x2aa   :  { %v14987_v14 = vadd.f32 %v2330_v61, %v2262_v16  ;;  %v2847_v35 = vsel %vm1875_vm1, %v2838_v55, %v2846_v42 }
 0x2ab   :  { %19350 = vst [vmem:[#allocation21_spill] sm:$0xff] %v14969_v4  ;;  %v2845_v31 = vsel %vm1875_vm1, %v2836_v50, %v2844_v56  ;;  %v2835_v3 = vsel %vm1875_vm1, %v2826_v2, %v2834_v12  ;;  %v12875_v50 = vld [vmem:[%s19064_s1 + $0x460] sm:$0xff] }
 0x2ac   :  { %v2385_v4 = vpop.f32.mrf.mxu2  ;;  %3165 = vmatmul.bf16.gmra.mxu0 %v2845_v31  ;;  %4244 = vmatpush.bf16.msra.mxu1 %v12875_v50  ;;  %v12808_v31 = vld [vmem:[%s19065_s0 + $0xbc] sm:$0xf]  ;;  %v12815_v50 = vld [vmem:[%s19065_s0 + $0xf4] sm:$0xf] }
 0x2ad   :  { %v2386_v7 = vadd.f32 %v2385_v4, %v14832_v62  ;;  %v2453_v52 = vpop.f32.mrf.mxu3  ;;  %v12867_v62 = vld [vmem:[%s19064_s1 + $0x420] sm:$0xff]  ;;  %v10739_v4 = vld [vmem:[%s19065_s0 + $0xc8] sm:$0xf0] }
 0x2ae   :  { %3233 = vmatmul.bf16.gmra.mxu1 %v2847_v35  ;;  %4176 = vmatpush.bf16.msra.mxu0 %v12867_v62  ;;  %v12817_v62 = vld [vmem:[%s19065_s0 + $0xfc] sm:$0xf0] }
 0x2af   :  { %v2454_v39 = vadd.f32 %v2453_v52, %v2386_v7  ;;  %v12810_v52 = vld [vmem:[%s19065_s0 + $0xc4] sm:$0xf0] }
 0x2b1   :  { %v14996_v29 = vadd.f32 %v2454_v39, %v14475_v63  ;;  %3291 = vmatmul.bf16.gmra.mxu2 %v2833_v10  ;;  %v2264_v63 = vpop.f32.mrf.mxu0  ;;  %v2332_v2 = vpop.f32.mrf.mxu1  ;;  %v15019_v10 = vor.u32 %v12810_v52, %v10737_v36  ;;  %v15021_v39 = vor.u32 %v12808_v31, %v10739_v4  ;;  %v10763_v52 = vld [vmem:[%s19065_s0 + $0x100] sm:$0xf0] }
 0x2b2   :  { %3359 = vmatmul.bf16.gmra.mxu3 %v2835_v3  ;;  %v15016_v16 = vadd.f32 %v2332_v2, %v2264_v63  ;;  %v10761_v3 = vld [vmem:[%s19065_s0 + $0xf0] sm:$0xf]  ;;  %v15041_v2 = vor.u32 %v12815_v50, %v10763_v52 }
 0x2b3   :  { %19353 = vst [vmem:[#allocation23_spill] sm:$0xff] %v14996_v29  ;;  %v15035_v36 = vor.u32 %v12817_v62, %v10761_v3  ;;  %v2840_v63 = vrot.slane %v15019_v10, 1 }
 0x2b4   :  { %v2388_v55 = vpop.f32.mrf.mxu2  ;;  %19354 = vst [vmem:[#allocation26_spill] sm:$0xff] %v15021_v39 }
 0x2b5   :  { %v2389_v61 = vadd.f32 %v2388_v55, %v14861_v25  ;;  %v2456_v7 = vpop.f32.mrf.mxu3  ;;  %19356 = vst [vmem:[#allocation25_spill] sm:$0xff] %v15035_v36  ;;  %v19133_v55 = vrot.slane %v15021_v39, 1 }
 0x2b6   :  { %19357 = vst [vmem:[#allocation6_spill] sm:$0xff] %v15041_v2 }
 0x2b7   :  { %v2457_v35 = vadd.f32 %v2456_v7, %v2389_v61  ;;  %v2852_v61 = vrot.slane %v15035_v36, 1  ;;  %v2843_v36 = vsel %vm1875_vm1, %v2834_v12, %v19133_v55  ;;  %v12814_v12 = vld [vmem:[%s19065_s0 + $0xe4] sm:$0xf0]  ;;  %v10777_v55 = vld [vmem:[%s19065_s0 + $0x110] sm:$0xf] }
 0x2b9   :  { %v15033_v25 = vadd.f32 %v2457_v35, %v14490_v27  ;;  %v2267_v31 = vpop.f32.mrf.mxu0  ;;  %v2335_v4 = vpop.f32.mrf.mxu1  ;;  %v2854_v27 = vrot.slane %v15041_v2, 1  ;;  %v2853_v62 = vsel %vm1875_vm1, %v2844_v56, %v2852_v61  ;;  %v10753_v56 = vld [vmem:[%s19065_s0 + $0xd8] sm:$0xf] }
 0x2ba   :  { %v15045_v29 = vadd.f32 %v2335_v4, %v2267_v31  ;;  %v10755_v4 = vld [vmem:[%s19065_s0 + $0xe8] sm:$0xf0] }
 0x2bb   :  { %19355 = vst [vmem:[#allocation24_spill] sm:$0xff] %v15033_v25  ;;  %v2841_v25 = vsel %vm1875_vm1, %v2832_v58, %v2840_v63  ;;  %v2855_v50 = vsel %vm1875_vm1, %v2846_v42, %v2854_v27  ;;  %v12890_v58 = vld [vmem:[%s19064_s1 + $0x4d8] sm:$0xff] }
 0x2bc   :  { %v2390_v7 = vpop.f32.mrf.mxu2  ;;  %3170 = vmatmul.bf16.gmra.mxu0 %v2853_v62  ;;  %4381 = vmatpush.bf16.msrb.mxu3 %v12890_v58  ;;  %v15079_v62 = vor.u32 %v12814_v12, %v10753_v56  ;;  %v12866_v58 = vld [vmem:[%s19064_s1 + $0x418] sm:$0xff] }
 0x2bd   :  { %v2391_v35 = vadd.f32 %v2390_v7, %v14892_v53  ;;  %v2458_v3 = vpop.f32.mrf.mxu3  ;;  %v12882_v53 = vld [vmem:[%s19064_s1 + $0x498] sm:$0xff]  ;;  %4177 = vmatpush.bf16.msra.mxu0 %v12866_v58 }
 0x2be   :  { %3238 = vmatmul.bf16.gmra.mxu1 %v2855_v50  ;;  %4313 = vmatpush.bf16.msrb.mxu2 %v12882_v53  ;;  %19359 = vst [vmem:[#allocation27_spill] sm:$0xff] %v15079_v62  ;;  %v12819_v53 = vld [vmem:[%s19065_s0 + $0x114] sm:$0xf]  ;;  %v12874_v56 = vld [vmem:[%s19064_s1 + $0x458] sm:$0xff] }
 0x2bf   :  { %v2459_v52 = vadd.f32 %v2458_v3, %v2391_v35  ;;  %4245 = vmatpush.bf16.msra.mxu1 %v12874_v56 }
 0x2c1   :  { %v15056_v31 = vadd.f32 %v2459_v52, %v14500_v23  ;;  %3296 = vmatmul.bf16.gmra.mxu2 %v2841_v25  ;;  %v2269_v23 = vpop.f32.mrf.mxu0  ;;  %v2337_v42 = vpop.f32.mrf.mxu1 }
 0x2c2   :  { %3364 = vmatmul.bf16.gmra.mxu3 %v2843_v36  ;;  %v12812_v36 = vld [vmem:[%s19065_s0 + $0xdc] sm:$0xf]  ;;  %v15076_v7 = vadd.f32 %v2337_v42, %v2269_v23  ;;  %v10779_v23 = vld [vmem:[%s19065_s0 + $0x120] sm:$0xf0]  ;;  %v2848_v42 = vrot.slane %v15079_v62, 1 }
 0x2c3   :  { %19358 = vst [vmem:[#allocation7_spill] sm:$0xff] %v15056_v31  ;;  %v15081_v52 = vor.u32 %v12812_v36, %v10755_v4  ;;  %v12821_v31 = vld [vmem:[%s19065_s0 + $0x11c] sm:$0xf0] }
 0x2c4   :  { %v2393_v25 = vpop.f32.mrf.mxu2  ;;  %v15101_v12 = vor.u32 %v12821_v31, %v10777_v55 }
 0x2c5   :  { %v2394_v35 = vadd.f32 %v2393_v25, %v14927_v17  ;;  %v2461_v3 = vpop.f32.mrf.mxu3  ;;  %19360 = vst [vmem:[#allocation28_spill] sm:$0xff] %v15081_v52  ;;  %v15107_v25 = vor.u32 %v12819_v53, %v10779_v23  ;;  %v2849_v53 = vsel %vm1875_vm1, %v2840_v63, %v2848_v42  ;;  %v19364_v23 = vrot.slane %v15021_v39, 1  ;;  %v12818_v63 = vld [vmem:[%s19065_s0 + $0x104] sm:$0xf0] }
 0x2c6   :  { %19362 = vst [vmem:[#allocation10_spill] sm:$0xff] %v15101_v12 }
 0x2c7   :  { %v2462_v50 = vadd.f32 %v2461_v3, %v2394_v35  ;;  %19363 = vst [vmem:[#allocation35_spill] sm:$0xff] %v15107_v25  ;;  %v2860_v35 = vrot.slane %v15101_v12, 1  ;;  %v2862_v55 = vrot.slane %v15107_v25, 1 }
 0x2c9   :  { %v15093_v17 = vadd.f32 %v2462_v50, %v14512_v45  ;;  %v2850_v45 = vrot.slane %v15081_v52, 1  ;;  %v2272_v36 = vpop.f32.mrf.mxu0  ;;  %v2340_v4 = vpop.f32.mrf.mxu1  ;;  %v2861_v62 = vsel %vm1875_vm1, %v2852_v61, %v2860_v35  ;;  %v2863_v58 = vsel %vm1875_vm1, %v2854_v27, %v2862_v55 }
 0x2ca   :  { %v15111_v50 = vadd.f32 %v2340_v4, %v2272_v36 }
 0x2cb   :  { %19361 = vst [vmem:[#allocation9_spill] sm:$0xff] %v15093_v17  ;;  %v2851_v12 = vsel %vm1875_vm1, %v19364_v23, %v2850_v45  ;;  %v12823_v23 = vld [vmem:[%s19065_s0 + $0x134] sm:$0xf] }
 0x2cc   :  { %v2395_v3 = vpop.f32.mrf.mxu2  ;;  %3175 = vmatmul.bf16.gmra.mxu0 %v2861_v62 }
 0x2cd   :  { %v2396_v31 = vadd.f32 %v2395_v3, %v14952_v13  ;;  %v2463_v17 = vpop.f32.mrf.mxu3  ;;  %v10769_v13 = vld [vmem:[%s19065_s0 + $0xf8] sm:$0xf] }
 0x2ce   :  { %3243 = vmatmul.bf16.gmra.mxu1 %v2863_v58  ;;  %v15137_v3 = vor.u32 %v12818_v63, %v10769_v13  ;;  %v10793_v58 = vld [vmem:[%s19065_s0 + $0x130] sm:$0xf] }
 0x2cf   :  { %v2464_v56 = vadd.f32 %v2463_v17, %v2396_v31  ;;  %v12816_v17 = vld [vmem:[%s19065_s0 + $0xfc] sm:$0xf]  ;;  %v12881_v13 = vld [vmem:[%s19064_s1 + $0x490] sm:$0xff] }
 0x2d0   :  { %19366 = vst [vmem:[#allocation37_spill] sm:$0xff] %v15137_v3  ;;  %v12889_v63 = vld [vmem:[%s19064_s1 + $0x4d0] sm:$0xff]  ;;  %4314 = vmatpush.bf16.msrb.mxu2 %v12881_v13 }
 0x2d1   :  { %v15122_v36 = vadd.f32 %v2464_v56, %v14528_v32  ;;  %3301 = vmatmul.bf16.gmra.mxu2 %v2849_v53  ;;  %v2274_v61 = vpop.f32.mrf.mxu0  ;;  %v2342_v27 = vpop.f32.mrf.mxu1  ;;  %v10771_v32 = vld [vmem:[%s19065_s0 + $0x108] sm:$0xf0]  ;;  %v12825_v56 = vld [vmem:[%s19065_s0 + $0x13c] sm:$0xf0]  ;;  %4382 = vmatpush.bf16.msrb.mxu3 %v12889_v63  ;;  %v12873_v13 = vld [vmem:[%s19064_s1 + $0x450] sm:$0xff] }
 0x2d2   :  { %3369 = vmatmul.bf16.gmra.mxu3 %v2851_v12  ;;  %v15139_v53 = vor.u32 %v12816_v17, %v10771_v32  ;;  %v15159_v61 = vor.u32 %v12825_v56, %v10793_v58  ;;  %v10795_v27 = vld [vmem:[%s19065_s0 + $0x140] sm:$0xf0]  ;;  %4246 = vmatpush.bf16.msra.mxu1 %v12873_v13 }
 0x2d3   :  { %19365 = vst [vmem:[#allocation36_spill] sm:$0xff] %v15122_v36  ;;  %v15165_v17 = vor.u32 %v12823_v23, %v10795_v27  ;;  %v12865_v23 = vld [vmem:[%s19064_s1 + $0x410] sm:$0xff] }
 0x2d4   :  { %v2398_v62 = vpop.f32.mrf.mxu2  ;;  %4178 = vmatpush.bf16.msra.mxu0 %v12865_v23 }
 0x2d5   :  { %v2399_v12 = vadd.f32 %v2398_v62, %v14987_v14  ;;  %v2466_v4 = vpop.f32.mrf.mxu3  ;;  %v2856_v62 = vrot.slane %v15137_v3, 1  ;;  %19368 = vst [vmem:[#allocation32_spill] sm:$0xff] %v15165_v17  ;;  %v2870_v58 = vrot.slane %v15165_v17, 1 }
 0x2d7   :  { %v2467_v31 = vadd.f32 %v2466_v4, %v2399_v12  ;;  %v2868_v12 = vrot.slane %v15159_v61, 1  ;;  %v2857_v63 = vsel %vm1875_vm1, %v2848_v42, %v2856_v62  ;;  %v2871_v27 = vsel %vm1875_vm1, %v2862_v55, %v2870_v58  ;;  %v12822_v42 = vld [vmem:[%s19065_s0 + $0x124] sm:$0xf0] }
 0x2d9   :  { %v15151_v14 = vadd.f32 %v2467_v31, %v14534_v59  ;;  %v2858_v59 = vrot.slane %v15139_v53, 1  ;;  %v3141_v32 = vpop.f32.mrf.mxu0  ;;  %v3209_v31 = vpop.f32.mrf.mxu1  ;;  %v2869_v3 = vsel %vm1875_vm1, %v2860_v35, %v2868_v12 }
 0x2da   :  { %v15171_v36 = vadd.f32 %v3209_v31, %v3141_v32  ;;  %v10785_v32 = vld [vmem:[%s19065_s0 + $0x118] sm:$0xf] }
 0x2db   :  { %19367 = vst [vmem:[#allocation31_spill] sm:$0xff] %v15151_v14 }
 0x2dc   :  { %v2400_v4 = vpop.f32.mrf.mxu2  ;;  %3180 = vmatmul.bf16.gmra.mxu0 %v2869_v3 }
 0x2dd   :  { %v2401_v56 = vadd.f32 %v2400_v4, %v15016_v16  ;;  %v2468_v14 = vpop.f32.mrf.mxu3  ;;  %v2859_v16 = vsel %vm1875_vm1, %v2850_v45, %v2858_v59  ;;  %v12820_v45 = vld [vmem:[%s19065_s0 + $0x11c] sm:$0xf] }
 0x2de   :  { %3248 = vmatmul.bf16.gmra.mxu1 %v2871_v27  ;;  %v12829_v27 = vld [vmem:[%s19065_s0 + $0x15c] sm:$0xf0] }
 0x2df   :  { %v2469_v17 = vadd.f32 %v2468_v14, %v2401_v56  ;;  %v15201_v56 = vor.u32 %v12822_v42, %v10785_v32  ;;  %v10811_v42 = vld [vmem:[%s19065_s0 + $0x160] sm:$0xf0] }
 0x2e1   :  { %v15184_v35 = vadd.f32 %v2469_v17, %v14558_v5  ;;  %3306 = vmatmul.bf16.gmra.mxu2 %v2857_v63  ;;  %v3143_v55 = vpop.f32.mrf.mxu0  ;;  %v10787_v5 = vld [vmem:[%s19065_s0 + $0x128] sm:$0xf0]  ;;  %v3211_v14 = vpop.f32.mrf.mxu1  ;;  %19369 = vst [vmem:[#allocation5_spill] sm:$0xff] %v15201_v56  ;;  %v10809_v63 = vld [vmem:[%s19065_s0 + $0x150] sm:$0xf] }
 0x2e2   :  { %3374 = vmatmul.bf16.gmra.mxu3 %v2859_v16  ;;  %v15199_v31 = vadd.f32 %v3211_v14, %v3143_v55  ;;  %v15203_v13 = vor.u32 %v12820_v45, %v10787_v5  ;;  %v15217_v32 = vor.u32 %v12829_v27, %v10809_v63  ;;  %v2864_v55 = vrot.slane %v15201_v56, 1 }
 0x2e4   :  { %v2403_v3 = vpop.f32.mrf.mxu2  ;;  %19370 = vst [vmem:[#allocation38_spill] sm:$0xff] %v15203_v13  ;;  %v2866_v45 = vrot.slane %v15203_v13, 1  ;;  %v2876_v14 = vrot.slane %v15217_v32, 1  ;;  %v2865_v56 = vsel %vm1875_vm1, %v2856_v62, %v2864_v55  ;;  %v12888_v62 = vld [vmem:[%s19064_s1 + $0x4c8] sm:$0xff] }
 0x2e5   :  { %v2404_v17 = vadd.f32 %v2403_v3, %v15045_v29  ;;  %v2471_v4 = vpop.f32.mrf.mxu3  ;;  %v12827_v29 = vld [vmem:[%s19065_s0 + $0x154] sm:$0xf]  ;;  %19372 = vst [vmem:[#allocation40_spill] sm:$0xff] %v15217_v32  ;;  %4383 = vmatpush.bf16.msrb.mxu3 %v12888_v62  ;;  %v12872_v62 = vld [vmem:[%s19064_s1 + $0x448] sm:$0xff] }
 0x2e6   :  { %v15223_v3 = vor.u32 %v12827_v29, %v10811_v42  ;;  %v2867_v13 = vsel %vm1875_vm1, %v2858_v59, %v2866_v45  ;;  %v12826_v59 = vld [vmem:[%s19065_s0 + $0x144] sm:$0xf0]  ;;  %4247 = vmatpush.bf16.msra.mxu1 %v12872_v62 }
 0x2e7   :  { %v2472_v23 = vadd.f32 %v2471_v4, %v2404_v17  ;;  %v12830_v62 = vld [vmem:[%s19065_s0 + $0x164] sm:$0xf0] }
 0x2e8   :  { %19373 = vst [vmem:[#allocation41_spill] sm:$0xff] %v15223_v3 }
 0x2e9   :  { %v15215_v16 = vadd.f32 %v2472_v23, %v14566_v30  ;;  %v3146_v5 = vpop.f32.mrf.mxu0  ;;  %v3214_v4 = vpop.f32.mrf.mxu1  ;;  %v2878_v30 = vrot.slane %v15223_v3, 1 }
 0x2ea   :  { %v15229_v27 = vadd.f32 %v3214_v4, %v3146_v5 }
 0x2eb   :  { %19371 = vst [vmem:[#allocation39_spill] sm:$0xff] %v15215_v16  ;;  %v2877_v16 = vsel %vm1875_vm1, %v2868_v12, %v2876_v14  ;;  %v2879_v29 = vsel %vm1875_vm1, %v2870_v58, %v2878_v30  ;;  %v10801_v12 = vld [vmem:[%s19065_s0 + $0x138] sm:$0xf] }
 0x2ec   :  { %v2405_v17 = vpop.f32.mrf.mxu2  ;;  %3185 = vmatmul.bf16.gmra.mxu0 %v2877_v16 }
 0x2ed   :  { %v2406_v23 = vadd.f32 %v2405_v17, %v15076_v7  ;;  %v2473_v63 = vpop.f32.mrf.mxu3  ;;  %v12880_v7 = vld [vmem:[%s19064_s1 + $0x488] sm:$0xff] }
 0x2ee   :  { %3253 = vmatmul.bf16.gmra.mxu1 %v2879_v29  ;;  %4315 = vmatpush.bf16.msrb.mxu2 %v12880_v7 }
 0x2ef   :  { %v2474_v42 = vadd.f32 %v2473_v63, %v2406_v23  ;;  %v15259_v23 = vor.u32 %v12826_v59, %v10801_v12  ;;  %v2547_v63 = vld [vmem:[%s19065_s0 + $0x170] sm:$0x33] }
 0x2f0   :  { %v2749_v3 = vunpack.c.h.b16 %v2547_v63 }
 0x2f1   :  { %v15236_v32 = vadd.f32 %v2474_v42, %v14578_v49  ;;  %3311 = vmatmul.bf16.gmra.mxu2 %v2865_v56  ;;  %v3148_v49 = vpop.f32.mrf.mxu0  ;;  %v12824_v56 = vld [vmem:[%s19065_s0 + $0x13c] sm:$0xf]  ;;  %v3216_v16 = vpop.f32.mrf.mxu1  ;;  %19375 = vst [vmem:[#allocation43_spill] sm:$0xff] %v15259_v23 }
 0x2f2   :  { %3379 = vmatmul.bf16.gmra.mxu3 %v2867_v13  ;;  %v10803_v13 = vld [vmem:[%s19065_s0 + $0x148] sm:$0xf0]  ;;  %v15257_v4 = vadd.f32 %v3216_v16, %v3148_v49  ;;  %v2797_v59 = vpack.c.b16 %v2749_v3, %v2749_v3  ;;  %v2872_v49 = vrot.slane %v15259_v23, 1 }
 0x2f3   :  { %19374 = vst [vmem:[#allocation42_spill] sm:$0xff] %v15236_v32  ;;  %v15264_v42 = vor.u32 %v12824_v56, %v10803_v13  ;;  %v2748_v32 = vunpack.c.l.b16 %v2547_v63 }
 0x2f4   :  { %v2408_v58 = vpop.f32.mrf.mxu2 }
 0x2f5   :  { %v2409_v5 = vadd.f32 %v2408_v58, %v15111_v50  ;;  %v2476_v17 = vpop.f32.mrf.mxu3  ;;  %19376 = vst [vmem:[#allocation44_spill] sm:$0xff] %v15264_v42  ;;  %v12864_v50 = vld [vmem:[%s19064_s1 + $0x408] sm:$0xff]  ;;  %v2796_v12 = vpack.c.b16 %v2748_v32, %v2748_v32  ;;  %v2874_v58 = vrot.slane %v15264_v42, 1  ;;  %v2873_v32 = vsel %vm1875_vm1, %v2864_v55, %v2872_v49  ;;  %v12828_v55 = vld [vmem:[%s19065_s0 + $0x15c] sm:$0xf] }
 0x2f6   :  { %4179 = vmatpush.bf16.msra.mxu0 %v12864_v50  ;;  %v10817_v50 = vld [vmem:[%s19065_s0 + $0x158] sm:$0xf] }
 0x2f7   :  { %v2477_v29 = vadd.f32 %v2476_v17, %v2409_v5  ;;  %v2884_v13 = vrot.slane %v2796_v12, 1  ;;  %v2875_v3 = vsel %vm1875_vm1, %v2866_v45, %v2874_v58  ;;  %v10819_v45 = vld [vmem:[%s19065_s0 + $0x168] sm:$0xf0] }
 0x2f9   :  { %v15267_v7 = vadd.f32 %v2477_v29, %v14590_v43  ;;  %v3151_v56 = vpop.f32.mrf.mxu0  ;;  %v2886_v43 = vrot.slane %v2797_v59, 1  ;;  %v2885_v29 = vsel %vm1875_vm1, %v2876_v14, %v2884_v13 }
 0x2fb   :  { %19377 = vst [vmem:[#allocation45_spill] sm:$0xff] %v15267_v7  ;;  %v3219_v5 = vpop.f32.mrf.mxu1  ;;  %v2887_v7 = vsel %vm1875_vm1, %v2878_v30, %v2886_v43 }
 0x2fc   :  { %v2410_v16 = vpop.f32.mrf.mxu2  ;;  %v15277_v63 = vadd.f32 %v3219_v5, %v3151_v56  ;;  %3190 = vmatmul.bf16.gmra.mxu0 %v2885_v29 }
 0x2fd   :  { %v2478_v17 = vpop.f32.mrf.mxu3  ;;  %v15298_v16 = vor.u32 %v12830_v62, %v10817_v50 }
 0x2fe   :  { %3258 = vmatmul.bf16.gmra.mxu1 %v2887_v7  ;;  %v15300_v17 = vor.u32 %v12828_v55, %v10819_v45 }
 0x301   :  { %3316 = vmatmul.bf16.gmra.mxu2 %v2873_v32  ;;  %v3153_v12 = vpop.f32.mrf.mxu0  ;;  %v12879_v32 = vld [vmem:[%s19064_s1 + $0x480] sm:$0xff] }
 0x302   :  { %3384 = vmatmul.bf16.gmra.mxu3 %v2875_v3  ;;  %v12887_v3 = vld [vmem:[%s19064_s1 + $0x4c0] sm:$0xff]  ;;  %4316 = vmatpush.bf16.msrb.mxu2 %v12879_v32 }
 0x303   :  { %v3221_v30 = vpop.f32.mrf.mxu1  ;;  %4384 = vmatpush.bf16.msrb.mxu3 %v12887_v3  ;;  %v12863_v32 = vld [vmem:[%s19064_s1 + $0x400] sm:$0xff] }
 0x304   :  { %v3277_v14 = vpop.f32.mrf.mxu2  ;;  %v15296_v56 = vadd.f32 %v3221_v30, %v3153_v12  ;;  %v19150_v12 = vrot.slane %v15300_v17, 1  ;;  %4180 = vmatpush.bf16.msra.mxu0 %v12863_v32  ;;  %v3517_v32 = vshll.u32 %v14665_v51, 16 }
 0x305   :  { %v3278_v7 = vadd.f32 %v3277_v14, %v15171_v36  ;;  %v3345_v59 = vpop.f32.mrf.mxu3  ;;  %v19151_v36 = vrot.slane %v15298_v16, 1 }
 0x307   :  { %v3346_v5 = vadd.f32 %v3345_v59, %v3278_v7  ;;  %v2881_v30 = vsel %vm1875_vm1, %v2872_v49, %v19151_v36  ;;  %v2883_v59 = vsel %vm1875_vm1, %v2874_v58, %v19150_v12  ;;  %v12871_v49 = vld [vmem:[%s19064_s1 + $0x440] sm:$0xff] }
 0x308   :  { %4248 = vmatpush.bf16.msra.mxu1 %v12871_v49  ;;  %v3523_v49 = vshrl.u32 %v14673_v28, 16 }
 0x309   :  { %v15303_v29 = vadd.f32 %v3346_v5, %v14612_v54  ;;  %v3156_v50 = vpop.f32.mrf.mxu0  ;;  %v2548_v5 = vld [vmem:[%s19065_s0 + $0x178] sm:$0x33] }
 0x30a   :  { %v2751_v58 = vunpack.c.h.b16 %v2548_v5 }
 0x30b   :  { %19378 = vst [vmem:[#allocation46_spill] sm:$0xff] %v15303_v29  ;;  %v3224_v14 = vpop.f32.mrf.mxu1 }
 0x30c   :  { %v3279_v62 = vpop.f32.mrf.mxu2  ;;  %v15314_v45 = vadd.f32 %v3224_v14, %v3156_v50  ;;  %3195 = vmatmul.bf16.gmra.mxu0 %v2884_v13  ;;  %v2750_v13 = vunpack.c.l.b16 %v2548_v5  ;;  %v3514_v5 = vshrl.u32 %v14665_v51, 16 }
 0x30d   :  { %v3280_v54 = vadd.f32 %v3279_v62, %v15199_v31  ;;  %v3347_v55 = vpop.f32.mrf.mxu3 }
 0x30e   :  { %3263 = vmatmul.bf16.gmra.mxu1 %v2886_v43 }
 0x30f   :  { %v3348_v7 = vadd.f32 %v3347_v55, %v3280_v54  ;;  %v15337_v54 = vpack.c.b16 %v2750_v13, %v2750_v13  ;;  %v15339_v55 = vpack.c.b16 %v2751_v58, %v2751_v58 }
 0x311   :  { %v15326_v31 = vadd.f32 %v3348_v7, %v14628_v11  ;;  %3321 = vmatmul.bf16.gmra.mxu2 %v2881_v30  ;;  %v3158_v3 = vpop.f32.mrf.mxu0  ;;  %v3506_v7 = vshrl.u32 %v14663_v38, 16  ;;  %v2890_v36 = vrot.slane %v15339_v55, 1 }
 0x312   :  { %3389 = vmatmul.bf16.gmra.mxu3 %v2883_v59  ;;  %v3509_v59 = vshll.u32 %v14663_v38, 16  ;;  %v3525_v38 = vrot.slane %v3523_v49, 1  ;;  %v19380_v49 = vrot.slane %v15298_v16, 1 }
 0x313   :  { %19379 = vst [vmem:[#allocation47_spill] sm:$0xff] %v15326_v31  ;;  %v3226_v43 = vpop.f32.mrf.mxu1  ;;  %v3508_v58 = vrot.slane %v3506_v7, 1 }
 0x314   :  { %v3282_v50 = vpop.f32.mrf.mxu2  ;;  %v15335_v14 = vadd.f32 %v3226_v43, %v3158_v3  ;;  %v3531_v3 = vshrl.u32 %v14675_v57, 16  ;;  %v3516_v43 = vrot.slane %v3514_v5, 1 }
 0x315   :  { %v3283_v11 = vadd.f32 %v3282_v50, %v15229_v27  ;;  %v3350_v62 = vpop.f32.mrf.mxu3  ;;  %v3526_v27 = vshll.u32 %v14673_v28, 16  ;;  %v3511_v50 = vrot.slane %v3509_v59, 2  ;;  %v3534_v28 = vshll.u32 %v14675_v57, 16 }
 0x316   :  { %v3533_v29 = vrot.slane %v3531_v3, 1 }
 0x317   :  { %v3351_v30 = vadd.f32 %v3350_v62, %v3283_v11  ;;  %v2888_v11 = vrot.slane %v15337_v54, 1  ;;  %v3519_v62 = vrot.slane %v3517_v32, 2  ;;  %v3528_v12 = vrot.slane %v3526_v27, 2 }
 0x318   :  { %v3512_v31 = vor.u32 %v3511_v50, %v3508_v58  ;;  %v3536_v32 = vrot.slane %v3534_v28, 2  ;;  %v19381_v50 = vrot.slane %v15300_v17, 1 }
 0x319   :  { %v15349_v13 = vadd.f32 %v3351_v30, %v14659_v6  ;;  %v3161_v51 = vpop.f32.mrf.mxu0  ;;  %v3520_v6 = vor.u32 %v3519_v62, %v3516_v43  ;;  %v3529_v5 = vor.u32 %v3528_v12, %v3525_v38  ;;  %v2889_v27 = vsel %vm1875_vm1, %v19380_v49, %v2888_v11  ;;  %v12918_v12 = vld [vmem:[%s19064_s1 + $0x5b8] sm:$0xff] }
 0x31a   :  { %5014 = vmatpush.bf16.msra.mxu2 %v12918_v12  ;;  %v3586_v49 = vshll.u32 %v14724_v21, 16 }
 0x31b   :  { %v3229_v23 = vpop.f32.mrf.mxu1  ;;  %v3521_v3 = vsel %vm3504_vm2, %v3512_v31, %v3520_v6  ;;  %v12926_v31 = vld [vmem:[%s19064_s1 + $0x5f8] sm:$0xff] }
 0x31c   :  { %v3284_v42 = vpop.f32.mrf.mxu2  ;;  %v15355_v59 = vadd.f32 %v3229_v23, %v3161_v51  ;;  %4181 = vmatmul.bf16.vlgmr.msra.gmra.mxu0 %v3521_v3  ;;  %v3537_v51 = vor.u32 %v3536_v32, %v3533_v29  ;;  %5082 = vmatpush.bf16.msra.mxu3 %v12926_v31  ;;  %v3583_v32 = vshrl.u32 %v14724_v21, 16  ;;  %v12902_v3 = vld [vmem:[%s19064_s1 + $0x538] sm:$0xff] }
 0x31d   :  { %v3285_v30 = vadd.f32 %v3284_v42, %v15257_v4  ;;  %v3352_v7 = vpop.f32.mrf.mxu3  ;;  %v2891_v4 = vsel %vm1875_vm1, %v19381_v50, %v2890_v36  ;;  %4878 = vmatpush.bf16.msrb.mxu0 %v12902_v3 }
 0x31e   :  { %v3538_v42 = vsel %vm3504_vm2, %v3529_v5, %v3537_v51  ;;  %v3577_v5 = vshll.u32 %v14719_v19, 16 }
 0x31f   :  { %v3353_v58 = vadd.f32 %v3352_v7, %v3285_v30  ;;  %4249 = vmatmul.bf16.vlgmr.msra.gmra.mxu1 %v3538_v42  ;;  %v3574_v7 = vshrl.u32 %v14719_v19, 16  ;;  %v3588_v42 = vrot.slane %v3586_v49, 2  ;;  %v3543_v49 = vshll.u32 %v14763_v26, 16 }
 0x320   :  { %v3579_v50 = vrot.slane %v3577_v5, 2 }
 0x321   :  { %v15369_v23 = vadd.f32 %v3353_v58, %v14690_v48  ;;  %3326 = vmatmul.bf16.gmra.mxu2 %v2889_v27  ;;  %v3163_v43 = vpop.f32.mrf.mxu0  ;;  %v3576_v58 = vrot.slane %v3574_v7, 1 }
 0x322   :  { %3394 = vmatmul.bf16.gmra.mxu3 %v2891_v4  ;;  %v3585_v4 = vrot.slane %v3583_v32, 1  ;;  %v3540_v32 = vshrl.u32 %v14763_v26, 16  ;;  %v3568_v26 = vshll.u32 %v14771_v41, 16 }
 0x323   :  { %v3231_v29 = vpop.f32.mrf.mxu1  ;;  %v15394_v31 = vor.u32 %v3579_v50, %v3576_v58  ;;  %v3565_v58 = vshrl.u32 %v14771_v41, 16 }
 0x324   :  { %v3287_v62 = vpop.f32.mrf.mxu2  ;;  %v15379_v28 = vadd.f32 %v3231_v29, %v3163_v43  ;;  %v3542_v54 = vrot.slane %v3540_v32, 1  ;;  %v3619_v32 = vshrl.u32 %v14798_v33, 16 }
 0x325   :  { %v3288_v48 = vadd.f32 %v3287_v62, %v15277_v63  ;;  %v3355_v38 = vpop.f32.mrf.mxu3  ;;  %v12910_v63 = vld [vmem:[%s19064_s1 + $0x578] sm:$0xff]  ;;  %v15396_v62 = vor.u32 %v3588_v42, %v3585_v4 }
 0x326   :  { %4946 = vmatpush.bf16.msrb.mxu1 %v12910_v63  ;;  %v3551_v63 = vshll.u32 %v14765_v15, 16 }
 0x327   :  { %v3356_v30 = vadd.f32 %v3355_v38, %v3288_v48  ;;  %v3590_v5 = vsel %vm3504_vm2, %v3537_v51, %v15396_v62  ;;  %v3560_v51 = vshll.u32 %v14769_v8, 16 }
 0x328   :  { %v3553_v55 = vrot.slane %v3551_v63, 2  ;;  %v12925_v63 = vld [vmem:[%s19064_s1 + $0x5f0] sm:$0xff] }
 0x329   :  { %v15386_v27 = vadd.f32 %v3356_v30, %v14711_v34  ;;  %v3166_v12 = vpop.f32.mrf.mxu0  ;;  %v3581_v30 = vsel %vm3504_vm2, %v3520_v6, %v15394_v31  ;;  %v3557_v6 = vshrl.u32 %v14769_v8, 16  ;;  %v3567_v8 = vrot.slane %v3565_v58, 1  ;;  %5083 = vmatpush.bf16.msra.mxu3 %v12925_v63 }
 0x32a   :  { %v3621_v58 = vrot.slane %v3619_v32, 1 }
 0x32b   :  { %v3234_v34 = vpop.f32.mrf.mxu1 }
 0x32c   :  { %v3289_v43 = vpop.f32.mrf.mxu2  ;;  %v15399_v38 = vadd.f32 %v3234_v34, %v3166_v12  ;;  %4186 = vmatmul.bf16.gmra.mxu0 %v3581_v30  ;;  %v3559_v34 = vrot.slane %v3557_v6, 1 }
 0x32d   :  { %v3290_v29 = vadd.f32 %v3289_v43, %v15296_v56  ;;  %v3357_v48 = vpop.f32.mrf.mxu3  ;;  %v3548_v56 = vshrl.u32 %v14765_v15, 16 }
 0x32f   :  { %v3358_v7 = vadd.f32 %v3357_v48, %v3290_v29  ;;  %4254 = vmatmul.bf16.gmra.mxu1 %v3590_v5  ;;  %v3550_v43 = vrot.slane %v3548_v56, 1  ;;  %v3562_v29 = vrot.slane %v3560_v51, 2  ;;  %v3570_v48 = vrot.slane %v3568_v26, 2  ;;  %v12917_v56 = vld [vmem:[%s19064_s1 + $0x5b0] sm:$0xff] }
 0x330   :  { %v3613_v5 = vshll.u32 %v14791_v1, 16  ;;  %5015 = vmatpush.bf16.msra.mxu2 %v12917_v56 }
 0x331   :  { %v15408_v3 = vadd.f32 %v3358_v7, %v14742_v40  ;;  %3331 = vmatmul.bf16.gmra.mxu2 %v2888_v11  ;;  %v3168_v40 = vpop.f32.mrf.mxu0  ;;  %v3545_v11 = vrot.slane %v3543_v49, 2  ;;  %v3610_v7 = vshrl.u32 %v14791_v1, 16  ;;  %v3622_v49 = vshll.u32 %v14798_v33, 16 }
 0x332   :  { %3399 = vmatmul.bf16.gmra.mxu3 %v2890_v36  ;;  %v3615_v51 = vrot.slane %v3613_v5, 2 }
 0x333   :  { %v3236_v4 = vpop.f32.mrf.mxu1  ;;  %v3612_v6 = vrot.slane %v3610_v7, 1  ;;  %v3546_v26 = vor.u32 %v3545_v11, %v3542_v54 }
 0x334   :  { %v3292_v50 = vpop.f32.mrf.mxu2  ;;  %v15421_v36 = vadd.f32 %v3236_v4, %v3168_v40  ;;  %v15436_v40 = vor.u32 %v3553_v55, %v3550_v43  ;;  %v3563_v4 = vor.u32 %v3562_v29, %v3559_v34 }
 0x335   :  { %v3293_v42 = vadd.f32 %v3292_v50, %v15314_v45  ;;  %v3360_v12 = vpop.f32.mrf.mxu3  ;;  %v3624_v50 = vrot.slane %v3622_v49, 2 }
 0x336   :  { %v3555_v11 = vsel %vm3504_vm2, %v3546_v26, %v15436_v40  ;;  %v3646_v26 = vshrl.u32 %v14851_v22, 16 }
 0x337   :  { %v3361_v30 = vadd.f32 %v3360_v12, %v3293_v42  ;;  %v15438_v42 = vor.u32 %v3570_v48, %v3567_v8  ;;  %v3616_v12 = vor.u32 %v3615_v51, %v3612_v6  ;;  %v3625_v1 = vor.u32 %v3624_v50, %v3621_v58 }
 0x338   :  { %v3649_v50 = vshll.u32 %v14851_v22, 16 }
 0x339   :  { %v15428_v45 = vadd.f32 %v3361_v30, %v14783_v37  ;;  %v3171_v37 = vpop.f32.mrf.mxu0  ;;  %v3617_v54 = vsel %vm3504_vm2, %v15394_v31, %v3616_v12  ;;  %v3572_v55 = vsel %vm3504_vm2, %v3563_v4, %v15438_v42  ;;  %v3626_v34 = vsel %vm3504_vm2, %v15396_v62, %v3625_v1 }
 0x33a   :  { %v3601_v31 = vshrl.u32 %v14837_v20, 16  ;;  %v3604_v62 = vshll.u32 %v14837_v20, 16  ;;  %v3655_v4 = vshrl.u32 %v14857_v0, 16 }
 0x33b   :  { %v3239_v33 = vpop.f32.mrf.mxu1 }
 0x33c   :  { %v3294_v30 = vpop.f32.mrf.mxu2  ;;  %v15441_v7 = vadd.f32 %v3239_v33, %v3171_v37  ;;  %4191 = vmatmul.bf16.gmra.mxu0 %v3617_v54  ;;  %v12901_v33 = vld [vmem:[%s19064_s1 + $0x530] sm:$0xff]  ;;  %v3603_v6 = vrot.slane %v3601_v31, 1  ;;  %v3606_v51 = vrot.slane %v3604_v62, 2  ;;  %v3658_v37 = vshll.u32 %v14857_v0, 16 }
 0x33d   :  { %v3295_v41 = vadd.f32 %v3294_v30, %v15335_v14  ;;  %v3362_v15 = vpop.f32.mrf.mxu3  ;;  %v12909_v14 = vld [vmem:[%s19064_s1 + $0x570] sm:$0xff]  ;;  %4879 = vmatpush.bf16.msrb.mxu0 %v12901_v33  ;;  %v3651_v54 = vrot.slane %v3649_v50, 2 }
 0x33e   :  { %4947 = vmatpush.bf16.msrb.mxu1 %v12909_v14 }
 0x33f   :  { %v3363_v43 = vadd.f32 %v3362_v15, %v3295_v41  ;;  %v3592_v15 = vshrl.u32 %v14835_v24, 16  ;;  %v3595_v41 = vshll.u32 %v14835_v24, 16  ;;  %4259 = vmatmul.bf16.gmra.mxu1 %v3626_v34  ;;  %v15476_v34 = vor.u32 %v3606_v51, %v3603_v6 }
 0x340   :  { %v3637_v51 = vshrl.u32 %v14897_v47, 16 }
 0x341   :  { %v15452_v29 = vadd.f32 %v3363_v43, %v14812_v44  ;;  %4317 = vmatmul.bf16.vlgmr.msrb.gmra.mxu2 %v3555_v11  ;;  %v3173_v44 = vpop.f32.mrf.mxu0  ;;  %v3594_v56 = vrot.slane %v3592_v15, 1  ;;  %v3597_v63 = vrot.slane %v3595_v41, 2  ;;  %v3657_v11 = vrot.slane %v3655_v4, 1 }
 0x342   :  { %4385 = vmatmul.bf16.vlgmr.msrb.gmra.mxu3 %v3572_v55  ;;  %v3660_v55 = vrot.slane %v3658_v37, 2 }
 0x343   :  { %v3241_v48 = vpop.f32.mrf.mxu1  ;;  %v15474_v43 = vor.u32 %v3597_v63, %v3594_v56 }
 0x344   :  { %v3297_v8 = vpop.f32.mrf.mxu2  ;;  %v15465_v49 = vadd.f32 %v3241_v48, %v3173_v44  ;;  %v3661_v31 = vor.u32 %v3660_v55, %v3657_v11  ;;  %v3639_v11 = vrot.slane %v3637_v51, 1 }
 0x345   :  { %v3298_v5 = vadd.f32 %v3297_v8, %v15355_v59  ;;  %v3365_v32 = vpop.f32.mrf.mxu3  ;;  %v3648_v59 = vrot.slane %v3646_v26, 1  ;;  %v3599_v48 = vsel %vm3504_vm2, %v15436_v40, %v15474_v43  ;;  %v3640_v40 = vshll.u32 %v14897_v47, 16 }
 0x346   :  { %v3662_v56 = vsel %vm3504_vm2, %v3625_v1, %v3661_v31  ;;  %v12924_v1 = vld [vmem:[%s19064_s1 + $0x5e8] sm:$0xff] }
 0x347   :  { %v3366_v58 = vadd.f32 %v3365_v32, %v3298_v5  ;;  %v3652_v14 = vor.u32 %v3651_v54, %v3648_v59  ;;  %v3608_v32 = vsel %vm3504_vm2, %v15438_v42, %v15476_v34  ;;  %v12916_v42 = vld [vmem:[%s19064_s1 + $0x5a8] sm:$0xff]  ;;  %5084 = vmatpush.bf16.msra.mxu3 %v12924_v1  ;;  %v3642_v55 = vrot.slane %v3640_v40, 2 }
 0x348   :  { %5016 = vmatpush.bf16.msra.mxu2 %v12916_v42 }
 0x349   :  { %v15472_v30 = vadd.f32 %v3366_v58, %v14849_v46  ;;  %v3176_v33 = vpop.f32.mrf.mxu0  ;;  %v3653_v46 = vsel %vm3504_vm2, %v3616_v12, %v3652_v14  ;;  %v15520_v1 = vor.u32 %v3642_v55, %v3639_v11 }
 0x34b   :  { %v3244_v41 = vpop.f32.mrf.mxu1  ;;  %v3644_v11 = vsel %vm3504_vm2, %v15476_v34, %v15520_v1 }
 0x34c   :  { %v3299_v15 = vpop.f32.mrf.mxu2  ;;  %v15479_v8 = vadd.f32 %v3244_v41, %v3176_v33  ;;  %4196 = vmatmul.bf16.gmra.mxu0 %v3653_v46 }
 0x34d   :  { %v3300_v62 = vadd.f32 %v3299_v15, %v15379_v28  ;;  %v3367_v44 = vpop.f32.mrf.mxu3  ;;  %v19382_v28 = vld [vmem:[#allocation15_spill] sm:$0xff]  ;;  %v19383_v15 = vld [vmem:[#allocation17_spill] sm:$0xff] }
 0x34e   :  { %v3628_v6 = vshrl.u32 %v19382_v28, 16  ;;  %v3631_v12 = vshll.u32 %v19382_v28, 16  ;;  %v3682_v41 = vshrl.u32 %v19383_v15, 16 }
 0x34f   :  { %v3368_v5 = vadd.f32 %v3367_v44, %v3300_v62  ;;  %4264 = vmatmul.bf16.gmra.mxu1 %v3662_v56  ;;  %v3685_v62 = vshll.u32 %v19383_v15, 16  ;;  %v19384_v44 = vld [vmem:[#allocation18_spill] sm:$0xff] }
 0x350   :  { %v3630_v59 = vrot.slane %v3628_v6, 1  ;;  %v3633_v54 = vrot.slane %v3631_v12, 2  ;;  %v3691_v46 = vshrl.u32 %v19384_v44, 16  ;;  %v12908_v56 = vld [vmem:[%s19064_s1 + $0x568] sm:$0xff]  ;;  %v3684_v6 = vrot.slane %v3682_v41, 1 }
 0x351   :  { %v15490_v63 = vadd.f32 %v3368_v5, %v14872_v18  ;;  %4322 = vmatmul.bf16.gmra.mxu2 %v3599_v48  ;;  %v3178_v18 = vpop.f32.mrf.mxu0  ;;  %v3694_v48 = vshll.u32 %v19384_v44, 16  ;;  %v19385_v5 = vld [vmem:[#allocation33_spill] sm:$0xff]  ;;  %v3687_v12 = vrot.slane %v3685_v62, 2  ;;  %4948 = vmatpush.bf16.msrb.mxu1 %v12908_v56  ;;  %v19386_v62 = vld [vmem:[#allocation16_spill] sm:$0xff] }
 0x352   :  { %4390 = vmatmul.bf16.gmra.mxu3 %v3608_v32  ;;  %v3693_v51 = vrot.slane %v3691_v46, 1  ;;  %v15518_v40 = vor.u32 %v3633_v54, %v3630_v59 }
 0x353   :  { %v3246_v26 = vpop.f32.mrf.mxu1  ;;  %v3696_v42 = vrot.slane %v3694_v48, 2 }
 0x354   :  { %v3302_v58 = vpop.f32.mrf.mxu2  ;;  %v15503_v37 = vadd.f32 %v3246_v26, %v3178_v18  ;;  %v3635_v59 = vsel %vm3504_vm2, %v15474_v43, %v15518_v40  ;;  %v3676_v43 = vshll.u32 %v14957_v9, 16 }
 0x355   :  { %v3303_v50 = vadd.f32 %v3302_v58, %v15399_v38  ;;  %v3370_v4 = vpop.f32.mrf.mxu3  ;;  %v12900_v38 = vld [vmem:[%s19064_s1 + $0x528] sm:$0xff]  ;;  %v3688_v58 = vor.u32 %v3687_v12, %v3684_v6 }
 0x356   :  { %4880 = vmatpush.bf16.msrb.mxu0 %v12900_v38  ;;  %v3673_v38 = vshrl.u32 %v14957_v9, 16 }
 0x357   :  { %v3371_v33 = vadd.f32 %v3370_v4, %v3303_v50  ;;  %v3697_v4 = vor.u32 %v3696_v42, %v3693_v51  ;;  %v3689_v41 = vsel %vm3504_vm2, %v3652_v14, %v3688_v58 }
 0x359   :  { %v15510_v32 = vadd.f32 %v3371_v33, %v19385_v5  ;;  %v3181_v18 = vpop.f32.mrf.mxu0  ;;  %v3698_v55 = vsel %vm3504_vm2, %v3661_v31, %v3697_v4 }
 0x35b   :  { %v3249_v50 = vpop.f32.mrf.mxu1 }
 0x35c   :  { %v3304_v26 = vpop.f32.mrf.mxu2  ;;  %v15523_v44 = vadd.f32 %v3249_v50, %v3181_v18  ;;  %4201 = vmatmul.bf16.gmra.mxu0 %v3689_v41  ;;  %v3678_v50 = vrot.slane %v3676_v43, 2 }
 0x35d   :  { %v3305_v33 = vadd.f32 %v3304_v26, %v15421_v36  ;;  %v3372_v5 = vpop.f32.mrf.mxu3  ;;  %v19387_v36 = vld [vmem:[#allocation19_spill] sm:$0xff]  ;;  %v3675_v26 = vrot.slane %v3673_v38, 1 }
 0x35e   :  { %v3664_v48 = vshrl.u32 %v19387_v36, 16  ;;  %v3667_v14 = vshll.u32 %v19387_v36, 16 }
 0x35f   :  { %v3373_v54 = vadd.f32 %v3372_v5, %v3305_v33  ;;  %4269 = vmatmul.bf16.gmra.mxu1 %v3698_v55  ;;  %v19388_v5 = vld [vmem:[#allocation22_spill] sm:$0xff]  ;;  %v19389_v55 = vld [vmem:[#allocation21_spill] sm:$0xff] }
 0x360   :  { %v3666_v42 = vrot.slane %v3664_v48, 1  ;;  %v3669_v18 = vrot.slane %v3667_v14, 2  ;;  %v3718_v41 = vshrl.u32 %v19388_v5, 16  ;;  %v12923_v48 = vld [vmem:[%s19064_s1 + $0x5e0] sm:$0xff] }
 0x361   :  { %v15534_v46 = vadd.f32 %v3373_v54, %v19386_v62  ;;  %4327 = vmatmul.bf16.gmra.mxu2 %v3635_v59  ;;  %v3183_v56 = vpop.f32.mrf.mxu0  ;;  %v3721_v59 = vshll.u32 %v19388_v5, 16  ;;  %v3727_v54 = vshrl.u32 %v14983_v60, 16  ;;  %5085 = vmatpush.bf16.msra.mxu3 %v12923_v48 }
 0x362   :  { %4395 = vmatmul.bf16.gmra.mxu3 %v3644_v11  ;;  %v3730_v11 = vshll.u32 %v14983_v60, 16  ;;  %v3720_v14 = vrot.slane %v3718_v41, 1 }
 0x363   :  { %v3251_v34 = vpop.f32.mrf.mxu1  ;;  %v3723_v38 = vrot.slane %v3721_v59, 2  ;;  %v3729_v43 = vrot.slane %v3727_v54, 1  ;;  %v19390_v59 = vld [vmem:[#allocation23_spill] sm:$0xff] }
 0x364   :  { %v3307_v6 = vpop.f32.mrf.mxu2  ;;  %v15541_v51 = vadd.f32 %v3251_v34, %v3183_v56  ;;  %v15556_v56 = vor.u32 %v3669_v18, %v3666_v42  ;;  %v15558_v34 = vor.u32 %v3678_v50, %v3675_v26 }
 0x365   :  { %v3308_v12 = vadd.f32 %v3307_v6, %v15441_v7  ;;  %v3375_v31 = vpop.f32.mrf.mxu3  ;;  %v12915_v7 = vld [vmem:[%s19064_s1 + $0x5a0] sm:$0xff]  ;;  %v3732_v6 = vrot.slane %v3730_v11, 2 }
 0x366   :  { %5017 = vmatpush.bf16.msra.mxu2 %v12915_v7  ;;  %v3671_v42 = vsel %vm3504_vm2, %v15518_v40, %v15556_v56  ;;  %v3680_v26 = vsel %vm3504_vm2, %v15520_v1, %v15558_v34  ;;  %v12907_v40 = vld [vmem:[%s19064_s1 + $0x560] sm:$0xff]  ;;  %v3703_v1 = vshll.u32 %v15019_v10, 16 }
 0x367   :  { %v3376_v33 = vadd.f32 %v3375_v31, %v3308_v12  ;;  %v3724_v31 = vor.u32 %v3723_v38, %v3720_v14  ;;  %v3733_v60 = vor.u32 %v3732_v6, %v3729_v43  ;;  %4949 = vmatpush.bf16.msrb.mxu1 %v12907_v40 }
 0x368   :  { %v3705_v6 = vrot.slane %v3703_v1, 2 }
 0x369   :  { %v15548_v62 = vadd.f32 %v3376_v33, %v19389_v55  ;;  %v3186_v12 = vpop.f32.mrf.mxu0  ;;  %v3725_v41 = vsel %vm3504_vm2, %v3688_v58, %v3724_v31  ;;  %v3734_v50 = vsel %vm3504_vm2, %v3697_v4, %v3733_v60  ;;  %v3709_v58 = vshrl.u32 %v15021_v39, 16 }
 0x36a   :  { %v3712_v4 = vshll.u32 %v15021_v39, 16 }
 0x36b   :  { %v3254_v55 = vpop.f32.mrf.mxu1 }
 0x36c   :  { %v3309_v33 = vpop.f32.mrf.mxu2  ;;  %v15561_v36 = vadd.f32 %v3254_v55, %v3186_v12  ;;  %4206 = vmatmul.bf16.gmra.mxu0 %v3725_v41  ;;  %v3711_v12 = vrot.slane %v3709_v58, 1  ;;  %v19391_v41 = vld [vmem:[#allocation25_spill] sm:$0xff] }
 0x36d   :  { %v3310_v5 = vadd.f32 %v3309_v33, %v15465_v49  ;;  %v3377_v9 = vpop.f32.mrf.mxu3  ;;  %v12899_v49 = vld [vmem:[%s19064_s1 + $0x520] sm:$0xff]  ;;  %v3714_v33 = vrot.slane %v3712_v4, 2 }
 0x36e   :  { %4881 = vmatpush.bf16.msrb.mxu0 %v12899_v49 }
 0x36f   :  { %v3378_v18 = vadd.f32 %v3377_v9, %v3310_v5  ;;  %v3700_v9 = vshrl.u32 %v15019_v10, 16  ;;  %4274 = vmatmul.bf16.gmra.mxu1 %v3734_v50  ;;  %v3766_v50 = vshll.u32 %v15041_v2, 16  ;;  %v15596_v1 = vor.u32 %v3714_v33, %v3711_v12 }
 0x371   :  { %v15572_v54 = vadd.f32 %v3378_v18, %v19390_v59  ;;  %4332 = vmatmul.bf16.gmra.mxu2 %v3671_v42  ;;  %v3188_v5 = vpop.f32.mrf.mxu0  ;;  %v3702_v43 = vrot.slane %v3700_v9, 1  ;;  %v3754_v42 = vshrl.u32 %v19391_v41, 16  ;;  %v3757_v18 = vshll.u32 %v19391_v41, 16  ;;  %v19392_v59 = vld [vmem:[#allocation24_spill] sm:$0xff] }
 0x372   :  { %4400 = vmatmul.bf16.gmra.mxu3 %v3680_v26  ;;  %v3763_v26 = vshrl.u32 %v15041_v2, 16  ;;  %v3768_v9 = vrot.slane %v3766_v50, 2  ;;  %v3716_v12 = vsel %vm3504_vm2, %v15558_v34, %v15596_v1  ;;  %v3745_v50 = vshrl.u32 %v15081_v52, 16 }
 0x373   :  { %v3256_v7 = vpop.f32.mrf.mxu1  ;;  %v3759_v40 = vrot.slane %v3757_v18, 2 }
 0x374   :  { %v3312_v11 = vpop.f32.mrf.mxu2  ;;  %v15585_v38 = vadd.f32 %v3256_v7, %v3188_v5  ;;  %v3765_v5 = vrot.slane %v3763_v26, 1 }
 0x375   :  { %v3313_v48 = vadd.f32 %v3312_v11, %v15479_v8  ;;  %v3380_v14 = vpop.f32.mrf.mxu3  ;;  %v3756_v8 = vrot.slane %v3754_v42, 1  ;;  %v15594_v11 = vor.u32 %v3705_v6, %v3702_v43  ;;  %v19393_v42 = vld [vmem:[#allocation7_spill] sm:$0xff] }
 0x377   :  { %v3381_v55 = vadd.f32 %v3380_v14, %v3313_v48  ;;  %v3760_v4 = vor.u32 %v3759_v40, %v3756_v8  ;;  %v3769_v14 = vor.u32 %v3768_v9, %v3765_v5  ;;  %v3707_v43 = vsel %vm3504_vm2, %v15556_v56, %v15594_v11  ;;  %v12914_v56 = vld [vmem:[%s19064_s1 + $0x598] sm:$0xff] }
 0x378   :  { %5018 = vmatpush.bf16.msra.mxu2 %v12914_v56  ;;  %v19396_v56 = vld [vmem:[#allocation9_spill] sm:$0xff] }
 0x379   :  { %v15592_v49 = vadd.f32 %v3381_v55, %v19392_v59  ;;  %v3191_v58 = vpop.f32.mrf.mxu0  ;;  %v3761_v55 = vsel %vm3504_vm2, %v3724_v31, %v3760_v4  ;;  %v3770_v33 = vsel %vm3504_vm2, %v3733_v60, %v3769_v14  ;;  %v12922_v60 = vld [vmem:[%s19064_s1 + $0x5d8] sm:$0xff] }
 0x37a   :  { %5086 = vmatpush.bf16.msra.mxu3 %v12922_v60 }
 0x37b   :  { %v3259_v48 = vpop.f32.mrf.mxu1 }
 0x37c   :  { %v3314_v7 = vpop.f32.mrf.mxu2  ;;  %v15599_v2 = vadd.f32 %v3259_v48, %v3191_v58  ;;  %4211 = vmatmul.bf16.gmra.mxu0 %v3761_v55 }
 0x37d   :  { %v3315_v41 = vadd.f32 %v3314_v7, %v15503_v37  ;;  %v3382_v39 = vpop.f32.mrf.mxu3  ;;  %v19394_v37 = vld [vmem:[#allocation27_spill] sm:$0xff]  ;;  %v3747_v7 = vrot.slane %v3745_v50, 1 }
 0x37e   :  { %v3736_v26 = vshrl.u32 %v19394_v37, 16  ;;  %v3739_v31 = vshll.u32 %v19394_v37, 16 }
 0x37f   :  { %v3383_v6 = vadd.f32 %v3382_v39, %v3315_v41  ;;  %v3748_v39 = vshll.u32 %v15081_v52, 16  ;;  %4279 = vmatmul.bf16.gmra.mxu1 %v3770_v33  ;;  %v3799_v33 = vshrl.u32 %v15107_v25, 16 }
 0x380   :  { %v3738_v9 = vrot.slane %v3736_v26, 1  ;;  %v3741_v58 = vrot.slane %v3739_v31, 2  ;;  %v12906_v26 = vld [vmem:[%s19064_s1 + $0x558] sm:$0xff] }
 0x381   :  { %v15610_v18 = vadd.f32 %v3383_v6, %v19393_v42  ;;  %4337 = vmatmul.bf16.gmra.mxu2 %v3707_v43  ;;  %v3193_v34 = vpop.f32.mrf.mxu0  ;;  %v3750_v48 = vrot.slane %v3748_v39, 2  ;;  %v19395_v43 = vld [vmem:[#allocation10_spill] sm:$0xff]  ;;  %v3802_v42 = vshll.u32 %v15107_v25, 16  ;;  %v3801_v39 = vrot.slane %v3799_v33, 1  ;;  %4950 = vmatpush.bf16.msrb.mxu1 %v12906_v26 }
 0x382   :  { %4405 = vmatmul.bf16.gmra.mxu3 %v3716_v12  ;;  %v3790_v6 = vshrl.u32 %v19395_v43, 16  ;;  %v3793_v12 = vshll.u32 %v19395_v43, 16 }
 0x383   :  { %v3261_v59 = vpop.f32.mrf.mxu1 }
 0x384   :  { %v3317_v41 = vpop.f32.mrf.mxu2  ;;  %v15623_v5 = vadd.f32 %v3261_v59, %v3193_v34  ;;  %v3792_v31 = vrot.slane %v3790_v6, 1  ;;  %v3795_v50 = vrot.slane %v3793_v12, 2  ;;  %v3742_v34 = vor.u32 %v3741_v58, %v3738_v9 }
 0x385   :  { %v3318_v8 = vadd.f32 %v3317_v41, %v15523_v44  ;;  %v3385_v40 = vpop.f32.mrf.mxu3  ;;  %v12898_v44 = vld [vmem:[%s19064_s1 + $0x518] sm:$0xff]  ;;  %v3804_v41 = vrot.slane %v3802_v42, 2  ;;  %v3751_v59 = vor.u32 %v3750_v48, %v3747_v7 }
 0x386   :  { %4882 = vmatpush.bf16.msrb.mxu0 %v12898_v44  ;;  %v3743_v6 = vsel %vm3504_vm2, %v15594_v11, %v3742_v34  ;;  %v19398_v48 = vld [vmem:[#allocation36_spill] sm:$0xff]  ;;  %v3784_v11 = vshll.u32 %v15139_v53, 16 }
 0x387   :  { %v3386_v55 = vadd.f32 %v3385_v40, %v3318_v8  ;;  %v3796_v40 = vor.u32 %v3795_v50, %v3792_v31  ;;  %v3805_v25 = vor.u32 %v3804_v41, %v3801_v39  ;;  %v3752_v58 = vsel %vm3504_vm2, %v15596_v1, %v3751_v59 }
 0x388   :  { %v3786_v50 = vrot.slane %v3784_v11, 2  ;;  %v3826_v41 = vshrl.u32 %v15159_v61, 16 }
 0x389   :  { %v15630_v60 = vadd.f32 %v3386_v55, %v19396_v56  ;;  %v3196_v8 = vpop.f32.mrf.mxu0  ;;  %v3806_v7 = vsel %vm3504_vm2, %v3769_v14, %v3805_v25 }
 0x38b   :  { %19397 = vst [vmem:[#allocation15_spill] sm:$0xff] %v15630_v60  ;;  %v3264_v56 = vpop.f32.mrf.mxu1  ;;  %v3797_v60 = vsel %vm3504_vm2, %v3760_v4, %v3796_v40  ;;  %v3781_v4 = vshrl.u32 %v15139_v53, 16 }
 0x38c   :  { %v3319_v55 = vpop.f32.mrf.mxu2  ;;  %v15639_v37 = vadd.f32 %v3264_v56, %v3196_v8  ;;  %4216 = vmatmul.bf16.gmra.mxu0 %v3797_v60  ;;  %v3829_v8 = vshll.u32 %v15159_v61, 16 }
 0x38d   :  { %v3320_v43 = vadd.f32 %v3319_v55, %v15541_v51  ;;  %v3387_v52 = vpop.f32.mrf.mxu3  ;;  %v19399_v51 = vld [vmem:[#allocation37_spill] sm:$0xff]  ;;  %v3783_v31 = vrot.slane %v3781_v4, 1  ;;  %v19400_v55 = vld [vmem:[#allocation32_spill] sm:$0xff] }
 0x38e   :  { %v3772_v33 = vshrl.u32 %v19399_v51, 16  ;;  %v3775_v42 = vshll.u32 %v19399_v51, 16  ;;  %v3835_v56 = vshrl.u32 %v19400_v55, 16 }
 0x38f   :  { %v3388_v9 = vadd.f32 %v3387_v52, %v3320_v43  ;;  %4284 = vmatmul.bf16.gmra.mxu1 %v3806_v7  ;;  %v12921_v7 = vld [vmem:[%s19064_s1 + $0x5d0] sm:$0xff] }
 0x390   :  { %v3774_v44 = vrot.slane %v3772_v33, 1  ;;  %v3777_v26 = vrot.slane %v3775_v42, 2  ;;  %v3831_v33 = vrot.slane %v3829_v8, 2  ;;  %v3837_v42 = vrot.slane %v3835_v56, 1  ;;  %5087 = vmatpush.bf16.msra.mxu3 %v12921_v7  ;;  %v19404_v7 = vld [vmem:[#allocation38_spill] sm:$0xff] }
 0x391   :  { %v15648_v12 = vadd.f32 %v3388_v9, %v19398_v48  ;;  %4342 = vmatmul.bf16.gmra.mxu2 %v3743_v6  ;;  %v3198_v52 = vpop.f32.mrf.mxu0  ;;  %v3838_v6 = vshll.u32 %v19400_v55, 16  ;;  %v19401_v9 = vld [vmem:[#allocation31_spill] sm:$0xff]  ;;  %v3828_v48 = vrot.slane %v3826_v41, 1 }
 0x392   :  { %4410 = vmatmul.bf16.gmra.mxu3 %v3752_v58  ;;  %v3778_v4 = vor.u32 %v3777_v26, %v3774_v44  ;;  %v3787_v52 = vor.u32 %v3786_v50, %v3783_v31  ;;  %v12897_v41 = vld [vmem:[%s19064_s1 + $0x510] sm:$0xff] }
 0x393   :  { %v3266_v1 = vpop.f32.mrf.mxu1  ;;  %v3840_v11 = vrot.slane %v3838_v6, 2  ;;  %v12905_v44 = vld [vmem:[%s19064_s1 + $0x550] sm:$0xff]  ;;  %4883 = vmatpush.bf16.msrb.mxu0 %v12897_v41  ;;  %v19403_v6 = vld [vmem:[#allocation5_spill] sm:$0xff]  ;;  %v19405_v41 = vld [vmem:[#allocation40_spill] sm:$0xff] }
 0x394   :  { %v3322_v43 = vpop.f32.mrf.mxu2  ;;  %v3779_v26 = vsel %vm3504_vm2, %v3742_v34, %v3778_v4  ;;  %v3788_v50 = vsel %vm3504_vm2, %v3751_v59, %v3787_v52  ;;  %4951 = vmatpush.bf16.msrb.mxu1 %v12905_v44  ;;  %v3811_v34 = vshll.u32 %v19403_v6, 16  ;;  %v3820_v59 = vshll.u32 %v19404_v7, 16 }
 0x395   :  { %v3323_v60 = vadd.f32 %v3322_v43, %v15561_v36  ;;  %v3390_v14 = vpop.f32.mrf.mxu3  ;;  %v12913_v36 = vld [vmem:[%s19064_s1 + $0x590] sm:$0xff]  ;;  %v3832_v43 = vor.u32 %v3831_v33, %v3828_v48  ;;  %v3817_v48 = vshrl.u32 %v19404_v7, 16  ;;  %v3862_v44 = vshrl.u32 %v19405_v41, 16 }
 0x396   :  { %5019 = vmatpush.bf16.msra.mxu2 %v12913_v36  ;;  %v3808_v36 = vshrl.u32 %v19403_v6, 16  ;;  %v19407_v7 = vld [vmem:[#allocation39_spill] sm:$0xff] }
 0x397   :  { %v3391_v39 = vadd.f32 %v3390_v14, %v3323_v60  ;;  %v3841_v14 = vor.u32 %v3840_v11, %v3837_v42  ;;  %v3833_v55 = vsel %vm3504_vm2, %v3796_v40, %v3832_v43 }
 0x398   :  { %v3810_v11 = vrot.slane %v3808_v36, 1 }
 0x399   :  { %v15660_v58 = vadd.f32 %v3391_v39, %v19401_v9  ;;  %v4182_v60 = vpop.f32.mrf.mxu0 }
 0x39c   :  { %v3324_v1 = vpop.f32.mrf.mxu2  ;;  %v4250_v8 = vpop.f32.mrf.mxu1  ;;  %4221 = vmatmul.bf16.gmra.mxu0 %v3833_v55 }
 0x39d   :  { %v3325_v39 = vadd.f32 %v3324_v1, %v15585_v38  ;;  %v3392_v9 = vpop.f32.mrf.mxu3  ;;  %v3842_v38 = vsel %vm3504_vm2, %v3805_v25, %v3841_v14  ;;  %v15679_v56 = vadd.f32 %v4250_v8, %v4182_v60  ;;  %v3813_v1 = vrot.slane %v3811_v34, 2 }
 0x39e   :  { %v3822_v60 = vrot.slane %v3820_v59, 2 }
 0x39f   :  { %v3393_v31 = vadd.f32 %v3392_v9, %v3325_v39  ;;  %4289 = vmatmul.bf16.gmra.mxu1 %v3842_v38 }
 0x3a1   :  { %v15682_v40 = vadd.f32 %v3393_v31, %v15184_v35  ;;  %4347 = vmatmul.bf16.gmra.mxu2 %v3779_v26  ;;  %v4184_v25 = vpop.f32.mrf.mxu0  ;;  %v3819_v35 = vrot.slane %v3817_v48, 1  ;;  %v3865_v26 = vshll.u32 %v19405_v41, 16  ;;  %v19406_v31 = vld [vmem:[#allocation41_spill] sm:$0xff]  ;;  %v15698_v48 = vor.u32 %v3813_v1, %v3810_v11 }
 0x3a2   :  { %4415 = vmatmul.bf16.gmra.mxu3 %v3788_v50  ;;  %v3871_v50 = vshrl.u32 %v19406_v31, 16  ;;  %v3874_v38 = vshll.u32 %v19406_v31, 16 }
 0x3a3   :  { %19402 = vst [vmem:[#allocation17_spill] sm:$0xff] %v15682_v40  ;;  %v3867_v36 = vrot.slane %v3865_v26, 2  ;;  %v19408_v26 = vld [vmem:[#allocation42_spill] sm:$0xff] }
 0x3a4   :  { %v3327_v55 = vpop.f32.mrf.mxu2  ;;  %v4252_v9 = vpop.f32.mrf.mxu1  ;;  %v3873_v34 = vrot.slane %v3871_v50, 1  ;;  %v3876_v59 = vrot.slane %v3874_v38, 2  ;;  %v19410_v50 = vld [vmem:[#allocation43_spill] sm:$0xff] }
 0x3a5   :  { %v3328_v33 = vadd.f32 %v3327_v55, %v15599_v2  ;;  %v3395_v42 = vpop.f32.mrf.mxu3  ;;  %v15692_v8 = vadd.f32 %v4252_v9, %v4184_v25  ;;  %v3864_v2 = vrot.slane %v3862_v44, 1  ;;  %v15700_v55 = vor.u32 %v3822_v60, %v3819_v35 }
 0x3a6   :  { %v15704_v40 = vor.u32 %v3876_v59, %v3873_v34  ;;  %v3847_v38 = vshll.u32 %v19410_v50, 16 }
 0x3a7   :  { %v3396_v39 = vadd.f32 %v3395_v42, %v3328_v33  ;;  %v15702_v33 = vor.u32 %v3867_v36, %v3864_v2  ;;  %v3824_v1 = vsel %vm3504_vm2, %v3787_v52, %v15700_v55  ;;  %v3427_v36 = vld [vmem:[%s19065_s0 + $0x170] sm:$0x77] }
 0x3a8   :  { %v3878_v60 = vsel %vm3504_vm2, %v3841_v14, %v15704_v40  ;;  %v12912_v14 = vld [vmem:[%s19064_s1 + $0x588] sm:$0xff]  ;;  %v3496_v34 = vunpack.c.l.b16 %v3427_v36  ;;  %v3497_v59 = vunpack.c.h.b16 %v3427_v36 }
 0x3a9   :  { %v15696_v6 = vadd.f32 %v3396_v39, %v19407_v7  ;;  %v4187_v41 = vpop.f32.mrf.mxu0  ;;  %v3869_v7 = vsel %vm3504_vm2, %v3832_v43, %v15702_v33  ;;  %v3815_v39 = vsel %vm3504_vm2, %v3778_v4, %v15698_v48  ;;  %v3844_v43 = vshrl.u32 %v19410_v50, 16  ;;  %v19411_v4 = vld [vmem:[#allocation44_spill] sm:$0xff]  ;;  %5020 = vmatpush.bf16.msra.mxu2 %v12912_v14 }
 0x3aa   :  { %v3853_v2 = vshrl.u32 %v19411_v4, 16  ;;  %v3856_v52 = vshll.u32 %v19411_v4, 16 }
 0x3ac   :  { %v3329_v42 = vpop.f32.mrf.mxu2  ;;  %v4255_v35 = vpop.f32.mrf.mxu1  ;;  %4226 = vmatmul.bf16.gmra.mxu0 %v3869_v7 }
 0x3ad   :  { %v3330_v25 = vadd.f32 %v3329_v42, %v15623_v5  ;;  %v3397_v9 = vpop.f32.mrf.mxu3  ;;  %v15715_v44 = vadd.f32 %v4255_v35, %v4187_v41  ;;  %v12920_v41 = vld [vmem:[%s19064_s1 + $0x5c8] sm:$0xff]  ;;  %v3849_v35 = vrot.slane %v3847_v38, 2 }
 0x3ae   :  { %5088 = vmatpush.bf16.msra.mxu3 %v12920_v41  ;;  %v12904_v38 = vld [vmem:[%s19064_s1 + $0x548] sm:$0xff] }
 0x3af   :  { %v3398_v11 = vadd.f32 %v3397_v9, %v3330_v25  ;;  %4294 = vmatmul.bf16.gmra.mxu1 %v3878_v60  ;;  %v3855_v60 = vrot.slane %v3853_v2, 1 }
 0x3b0   :  { %4952 = vmatpush.bf16.msrb.mxu1 %v12904_v38  ;;  %v3428_v38 = vld [vmem:[%s19065_s0 + $0x178] sm:$0x77] }
 0x3b1   :  { %v15718_v5 = vadd.f32 %v3398_v11, %v19408_v26  ;;  %4352 = vmatmul.bf16.gmra.mxu2 %v3815_v39  ;;  %v4189_v25 = vpop.f32.mrf.mxu0  ;;  %v15734_v39 = vpack.c.b16 %v3496_v34, %v3496_v34  ;;  %v15736_v11 = vpack.c.b16 %v3497_v59, %v3497_v59  ;;  %v3858_v26 = vrot.slane %v3856_v52, 2  ;;  %v19414_v34 = vld [vmem:[#allocation45_spill] sm:$0xff] }
 0x3b2   :  { %4420 = vmatmul.bf16.gmra.mxu3 %v3824_v1  ;;  %v3846_v1 = vrot.slane %v3844_v43, 1  ;;  %v12896_v43 = vld [vmem:[%s19064_s1 + $0x508] sm:$0xff] }
 0x3b3   :  { %19409 = vst [vmem:[#allocation33_spill] sm:$0xff] %v15718_v5  ;;  %v3898_v5 = vshrl.u32 %v15734_v39, 16  ;;  %v3901_v36 = vshll.u32 %v15734_v39, 16  ;;  %v3907_v14 = vshrl.u32 %v15736_v11, 16  ;;  %4884 = vmatpush.bf16.msrb.mxu0 %v12896_v43 }
 0x3b4   :  { %v3332_v42 = vpop.f32.mrf.mxu2  ;;  %19412 = vst [vmem:[#allocation16_spill] sm:$0xff] %v15734_v39  ;;  %v4257_v50 = vpop.f32.mrf.mxu1 }
 0x3b5   :  { %v3333_v9 = vadd.f32 %v3332_v42, %v15639_v37  ;;  %v3400_v7 = vpop.f32.mrf.mxu3  ;;  %19413 = vst [vmem:[#allocation21_spill] sm:$0xff] %v15736_v11  ;;  %v15741_v41 = vadd.f32 %v4257_v50, %v4189_v25  ;;  %v3910_v37 = vshll.u32 %v15736_v11, 16  ;;  %v3900_v2 = vrot.slane %v3898_v5, 1 }
 0x3b6   :  { %v3903_v52 = vrot.slane %v3901_v36, 2  ;;  %v3909_v59 = vrot.slane %v3907_v14, 1  ;;  %v3859_v50 = vor.u32 %v3858_v26, %v3855_v60 }
 0x3b7   :  { %v3401_v4 = vadd.f32 %v3400_v7, %v3333_v9  ;;  %v3850_v9 = vor.u32 %v3849_v35, %v3846_v1  ;;  %v3912_v7 = vrot.slane %v3910_v37, 2 }
 0x3b8   :  { %v3904_v25 = vor.u32 %v3903_v52, %v3900_v2  ;;  %v3860_v5 = vsel %vm3504_vm2, %v15700_v55, %v3859_v50 }
 0x3b9   :  { %v15745_v42 = vadd.f32 %v3401_v4, %v19414_v34  ;;  %v4192_v4 = vpop.f32.mrf.mxu0  ;;  %v3913_v34 = vor.u32 %v3912_v7, %v3909_v59  ;;  %v3851_v31 = vsel %vm3504_vm2, %v15698_v48, %v3850_v9  ;;  %v3892_v48 = vshll.u32 %v15300_v17, 16  ;;  %v19416_v59 = vld [vmem:[#allocation46_spill] sm:$0xff] }
 0x3bb   :  { %19415 = vst [vmem:[#allocation23_spill] sm:$0xff] %v15745_v42  ;;  %v3905_v42 = vsel %vm3504_vm2, %v15702_v33, %v3904_v25  ;;  %v3914_v1 = vsel %vm3504_vm2, %v15704_v40, %v3913_v34  ;;  %v3889_v33 = vshrl.u32 %v15300_v17, 16 }
 0x3bc   :  { %v3334_v11 = vpop.f32.mrf.mxu2  ;;  %v4260_v36 = vpop.f32.mrf.mxu1  ;;  %4231 = vmatmul.bf16.gmra.mxu0 %v3905_v42 }
 0x3bd   :  { %v3402_v39 = vpop.f32.mrf.mxu3  ;;  %v15761_v35 = vadd.f32 %v4260_v36, %v4192_v4  ;;  %v3883_v11 = vshll.u32 %v15298_v16, 16  ;;  %v3891_v43 = vrot.slane %v3889_v33, 1  ;;  %v12919_v4 = vld [vmem:[%s19064_s1 + $0x5c0] sm:$0xff]  ;;  %v3498_v36 = vunpack.c.l.b16 %v3428_v38 }
 0x3be   :  { %v3880_v39 = vshrl.u32 %v15298_v16, 16  ;;  %5089 = vmatpush.bf16.msra.mxu3 %v12919_v4 }
 0x3bf   :  { %4299 = vmatmul.bf16.gmra.mxu1 %v3914_v1  ;;  %v3885_v40 = vrot.slane %v3883_v11, 2  ;;  %v3499_v1 = vunpack.c.h.b16 %v3428_v38 }
 0x3c0   :  { %v3882_v37 = vrot.slane %v3880_v39, 1 }
 0x3c1   :  { %4357 = vmatmul.bf16.gmra.mxu2 %v3851_v31  ;;  %v4194_v55 = vpop.f32.mrf.mxu0  ;;  %v3894_v31 = vrot.slane %v3892_v48, 2 }
 0x3c2   :  { %4425 = vmatmul.bf16.gmra.mxu3 %v3860_v5  ;;  %v3886_v5 = vor.u32 %v3885_v40, %v3882_v37 }
 0x3c3   :  { %v3895_v39 = vor.u32 %v3894_v31, %v3891_v43  ;;  %v19419_v43 = vld [vmem:[#allocation47_spill] sm:$0xff] }
 0x3c4   :  { %v4318_v60 = vpop.f32.mrf.mxu2  ;;  %v4262_v2 = vpop.f32.mrf.mxu1 }
 0x3c5   :  { %v4319_v26 = vadd.f32 %v4318_v60, %v15679_v56  ;;  %v4386_v14 = vpop.f32.mrf.mxu3  ;;  %v15771_v52 = vadd.f32 %v4262_v2, %v4194_v55  ;;  %v12911_v56 = vld [vmem:[%s19064_s1 + $0x580] sm:$0xff]  ;;  %v3887_v55 = vsel %vm3504_vm2, %v3850_v9, %v3886_v5  ;;  %v3896_v2 = vsel %vm3504_vm2, %v3859_v50, %v3895_v39 }
 0x3c6   :  { %5021 = vmatpush.bf16.msra.mxu2 %v12911_v56  ;;  %v12903_v9 = vld [vmem:[%s19064_s1 + $0x540] sm:$0xff] }
 0x3c7   :  { %v4387_v42 = vadd.f32 %v4386_v14, %v4319_v26  ;;  %v15784_v26 = vpack.c.b16 %v3498_v36, %v3498_v36  ;;  %v15786_v14 = vpack.c.b16 %v3499_v1, %v3499_v1  ;;  %4953 = vmatpush.bf16.msrb.mxu1 %v12903_v9  ;;  %v19421_v9 = vld [vmem:[#allocation8_spill] sm:$0xff] }
 0x3c9   :  { %v15774_v7 = vadd.f32 %v4387_v42, %v19416_v59  ;;  %v4197_v33 = vpop.f32.mrf.mxu0  ;;  %19417 = vst [vmem:[#allocation24_spill] sm:$0xff] %v15784_v26  ;;  %v3916_v38 = vshrl.u32 %v15784_v26, 16  ;;  %v3919_v50 = vshll.u32 %v15784_v26, 16  ;;  %v3928_v59 = vshll.u32 %v15786_v14, 16  ;;  %v19424_v26 = vld [vmem:[#allocation11_spill] sm:$0xff] }
 0x3ca   :  { %19418 = vst [vmem:[#allocation7_spill] sm:$0xff] %v15786_v14 }
 0x3cc   :  { %v4320_v11 = vpop.f32.mrf.mxu2  ;;  %v4265_v37 = vpop.f32.mrf.mxu1  ;;  %4236 = vmatmul.bf16.gmra.mxu0 %v3904_v25  ;;  %v3925_v25 = vshrl.u32 %v15786_v14, 16 }
 0x3cd   :  { %v4321_v48 = vadd.f32 %v4320_v11, %v15692_v8  ;;  %v4388_v60 = vpop.f32.mrf.mxu3  ;;  %v15789_v40 = vadd.f32 %v4265_v37, %v4197_v33  ;;  %v12895_v8 = vld [vmem:[%s19064_s1 + $0x500] sm:$0xff]  ;;  %v3918_v11 = vrot.slane %v3916_v38, 1  ;;  %v3921_v33 = vrot.slane %v3919_v50, 2 }
 0x3ce   :  { %4885 = vmatpush.bf16.msrb.mxu0 %v12895_v8  ;;  %v19423_v38 = vunpack.c.h.b16 %v19421_v9 }
 0x3cf   :  { %v4389_v42 = vadd.f32 %v4388_v60, %v4321_v48  ;;  %4304 = vmatmul.bf16.gmra.mxu1 %v3913_v34  ;;  %v3927_v48 = vrot.slane %v3925_v25, 1  ;;  %v3930_v60 = vrot.slane %v3928_v59, 2  ;;  %v3922_v25 = vor.u32 %v3921_v33, %v3918_v11 }
 0x3d1   :  { %v15792_v31 = vadd.f32 %v4389_v42, %v19419_v43  ;;  %4362 = vmatmul.bf16.gmra.mxu2 %v3887_v55  ;;  %v4199_v4 = vpop.f32.mrf.mxu0  ;;  %v4468_v55 = vld [vmem:[%s19065_s0 + $0x10] sm:$0xcc]  ;;  %v3931_v59 = vor.u32 %v3930_v60, %v3927_v48 }
 0x3d2   :  { %4430 = vmatmul.bf16.gmra.mxu3 %v3896_v2  ;;  %v4537_v37 = vunpack.c.l.b16 %v4468_v55  ;;  %v4538_v43 = vunpack.c.h.b16 %v4468_v55 }
 0x3d3   :  { %19420 = vst [vmem:[#allocation9_spill] sm:$0xff] %v15792_v31  ;;  %v4547_v31 = vrot.slane %v19424_v26, 2  ;;  %v3932_v11 = vsel %vm3504_vm2, %v3895_v39, %v3931_v59 }
 0x3d4   :  { %v4323_v56 = vpop.f32.mrf.mxu2  ;;  %v4267_v2 = vpop.f32.mrf.mxu1  ;;  %v4542_v50 = vpack.c.b16 %v19423_v38, %v4538_v43 }
 0x3d5   :  { %v4324_v36 = vadd.f32 %v4323_v56, %v15715_v44  ;;  %v4391_v1 = vpop.f32.mrf.mxu3  ;;  %v15808_v34 = vadd.f32 %v4267_v2, %v4199_v4  ;;  %v19422_v44 = vunpack.c.l.b16 %v19421_v9 }
 0x3d7   :  { %v4392_v42 = vadd.f32 %v4391_v1, %v4324_v36  ;;  %v4541_v56 = vpack.c.b16 %v19422_v44, %v4537_v37  ;;  %v4549_v36 = vrot.slane %v4542_v50, 2  ;;  %v4550_v1 = vrot.slane %v14675_v57, 2  ;;  %v12974_v50 = vld [vmem:[%s19064_s1 + $0x638] sm:$0xff] }
 0x3d8   :  { %v3923_v37 = vsel %vm3504_vm2, %v3886_v5, %v3922_v25  ;;  %v12998_v5 = vld [vmem:[%s19064_s1 + $0x6f8] sm:$0xff]  ;;  %5802 = vmatpush.bf16.msra.mxu0 %v12974_v50 }
 0x3d9   :  { %v15811_v8 = vadd.f32 %v4392_v42, %v15349_v13  ;;  %v4546_v14 = vrot.slane %v4541_v56, 2  ;;  %v4202_v4 = vpop.f32.mrf.mxu0  ;;  %v4551_v26 = vsel %vm4545_vm3, %v4549_v36, %v4550_v1  ;;  %6006 = vmatpush.bf16.msrb.mxu3 %v12998_v5  ;;  %v12982_v36 = vld [vmem:[%s19064_s1 + $0x678] sm:$0xff] }
 0x3da   :  { %5870 = vmatpush.bf16.msra.mxu1 %v12982_v36 }
 0x3db   :  { %v4548_v2 = vsel %vm4545_vm3, %v4546_v14, %v4547_v31 }
 0x3dc   :  { %v4325_v55 = vpop.f32.mrf.mxu2  ;;  %v4270_v33 = vpop.f32.mrf.mxu1  ;;  %4886 = vmatmul.bf16.vlgmr.msrb.gmra.mxu0 %v4548_v2 }
 0x3dd   :  { %v4326_v13 = vadd.f32 %v4325_v55, %v15741_v41  ;;  %v4393_v42 = vpop.f32.mrf.mxu3  ;;  %v15824_v48 = vadd.f32 %v4270_v33, %v4202_v4  ;;  %v12990_v41 = vld [vmem:[%s19064_s1 + $0x6b8] sm:$0xff]  ;;  %v4560_v55 = vrot.slane %v14724_v21, 2 }
 0x3de   :  { %5938 = vmatpush.bf16.msrb.mxu2 %v12990_v41 }
 0x3df   :  { %v4394_v9 = vadd.f32 %v4393_v42, %v4326_v13  ;;  %4954 = vmatmul.bf16.vlgmr.msrb.gmra.mxu1 %v4551_v26  ;;  %v4561_v33 = vsel %vm4545_vm3, %v4550_v1, %v4560_v55 }
 0x3e1   :  { %v15827_v57 = vadd.f32 %v4394_v9, %v15369_v23  ;;  %4367 = vmatmul.bf16.gmra.mxu2 %v3923_v37  ;;  %v4204_v14 = vpop.f32.mrf.mxu0  ;;  %v4469_v9 = vld [vmem:[%s19065_s0 + $0x18] sm:$0xcc] }
 0x3e2   :  { %4435 = vmatmul.bf16.gmra.mxu3 %v3932_v11  ;;  %v4539_v21 = vunpack.c.l.b16 %v4469_v9 }
 0x3e4   :  { %v4328_v39 = vpop.f32.mrf.mxu2  ;;  %v4272_v44 = vpop.f32.mrf.mxu1 }
 0x3e5   :  { %v4329_v60 = vadd.f32 %v4328_v39, %v15761_v35  ;;  %v4396_v43 = vpop.f32.mrf.mxu3  ;;  %v15836_v56 = vadd.f32 %v4272_v44, %v4204_v14  ;;  %v4558_v35 = vrot.slane %v14719_v19, 2  ;;  %v19425_v14 = vld [vmem:[#allocation29_spill] sm:$0xff] }
 0x3e6   :  { %v19427_v1 = vunpack.c.h.b16 %v19425_v14 }
 0x3e7   :  { %v4397_v23 = vadd.f32 %v4396_v43, %v4329_v60  ;;  %v4559_v2 = vsel %vm4545_vm3, %v4547_v31, %v4558_v35  ;;  %v19426_v60 = vunpack.c.l.b16 %v19425_v14 }
 0x3e9   :  { %v15839_v38 = vadd.f32 %v4397_v23, %v15386_v27  ;;  %v4207_v13 = vpop.f32.mrf.mxu0  ;;  %v4543_v43 = vpack.c.b16 %v19426_v60, %v4539_v21 }
 0x3eb   :  { %v4552_v36 = vrot.slane %v4543_v43, 2 }
 0x3ec   :  { %v4330_v4 = vpop.f32.mrf.mxu2  ;;  %v4275_v11 = vpop.f32.mrf.mxu1  ;;  %4891 = vmatmul.bf16.gmra.mxu0 %v4559_v2 }
 0x3ed   :  { %v4331_v42 = vadd.f32 %v4330_v4, %v15771_v52  ;;  %v4398_v27 = vpop.f32.mrf.mxu3  ;;  %v15855_v26 = vadd.f32 %v4275_v11, %v4207_v13  ;;  %v4540_v52 = vunpack.c.h.b16 %v4469_v9  ;;  %v19428_v4 = vld [vmem:[#allocation30_spill] sm:$0xff] }
 0x3ee   :  { %v4553_v13 = vrot.slane %v19428_v4, 2 }
 0x3ef   :  { %v4399_v37 = vadd.f32 %v4398_v27, %v4331_v42  ;;  %4959 = vmatmul.bf16.gmra.mxu1 %v4561_v33  ;;  %v4544_v44 = vpack.c.b16 %v19427_v1, %v4540_v52  ;;  %v19429_v27 = vld [vmem:[#allocation12_spill] sm:$0xff] }
 0x3f0   :  { %v4556_v2 = vrot.slane %v19429_v27, 2  ;;  %v4564_v27 = vrot.slane %v14837_v20, 2 }
 0x3f1   :  { %v15858_v19 = vadd.f32 %v4399_v37, %v15408_v3  ;;  %4372 = vmatmul.bf16.gmra.mxu2 %v3922_v25  ;;  %v4209_v41 = vpop.f32.mrf.mxu0  ;;  %v4555_v42 = vrot.slane %v4544_v44, 2  ;;  %v19430_v37 = vld [vmem:[#allocation13_spill] sm:$0xff] }
 0x3f2   :  { %4440 = vmatmul.bf16.gmra.mxu3 %v3931_v59  ;;  %v12989_v59 = vld [vmem:[%s19064_s1 + $0x6b0] sm:$0xff]  ;;  %v4566_v9 = vrot.slane %v19430_v37, 2  ;;  %v4574_v37 = vrot.slane %v14851_v22, 2 }
 0x3f3   :  { %5939 = vmatpush.bf16.msrb.mxu2 %v12989_v59  ;;  %v4557_v14 = vsel %vm4545_vm3, %v4555_v42, %v4556_v2  ;;  %v4562_v42 = vrot.slane %v14835_v24, 2 }
 0x3f4   :  { %v4333_v31 = vpop.f32.mrf.mxu2  ;;  %v4277_v50 = vpop.f32.mrf.mxu1 }
 0x3f5   :  { %v4334_v5 = vadd.f32 %v4333_v31, %v15789_v40  ;;  %v4401_v39 = vpop.f32.mrf.mxu3  ;;  %v15865_v3 = vadd.f32 %v4277_v50, %v4209_v41  ;;  %v12997_v40 = vld [vmem:[%s19064_s1 + $0x6f0] sm:$0xff]  ;;  %v4567_v41 = vsel %vm4545_vm3, %v4558_v35, %v4566_v9 }
 0x3f6   :  { %6007 = vmatpush.bf16.msrb.mxu3 %v12997_v40  ;;  %v12981_v35 = vld [vmem:[%s19064_s1 + $0x670] sm:$0xff] }
 0x3f7   :  { %v4402_v23 = vadd.f32 %v4401_v39, %v4334_v5  ;;  %v4554_v5 = vsel %vm4545_vm3, %v4552_v36, %v4553_v13  ;;  %5871 = vmatpush.bf16.msra.mxu1 %v12981_v35  ;;  %v12980_v35 = vld [vmem:[%s19064_s1 + $0x668] sm:$0xff] }
 0x3f9   :  { %v15868_v25 = vadd.f32 %v4402_v23, %v15428_v45  ;;  %v19431_v45 = vld [vmem:[#allocation14_spill] sm:$0xff]  ;;  %v4212_v21 = vpop.f32.mrf.mxu0 }
 0x3fa   :  { %v4568_v11 = vrot.slane %v19431_v45, 2  ;;  %v4576_v45 = vrot.slane %v14857_v0, 2  ;;  %v12988_v0 = vld [vmem:[%s19064_s1 + $0x6a8] sm:$0xff] }
 0x3fb   :  { %5940 = vmatpush.bf16.msrb.mxu2 %v12988_v0  ;;  %5872 = vmatpush.bf16.msra.mxu1 %v12980_v35  ;;  %v19433_v0 = vld [vmem:[#allocation19_spill] sm:$0xff] }
 0x3fc   :  { %v4335_v33 = vpop.f32.mrf.mxu2  ;;  %v4280_v60 = vpop.f32.mrf.mxu1  ;;  %4896 = vmatmul.bf16.gmra.mxu0 %v4567_v41  ;;  %v4569_v43 = vsel %vm4545_vm3, %v4560_v55, %v4568_v11  ;;  %v4563_v41 = vsel %vm4545_vm3, %v4553_v13, %v4562_v42  ;;  %v4577_v24 = vsel %vm4545_vm3, %v4568_v11, %v4576_v45 }
 0x3fd   :  { %v4336_v52 = vadd.f32 %v4335_v33, %v15808_v34  ;;  %v4403_v31 = vpop.f32.mrf.mxu3  ;;  %v15885_v23 = vadd.f32 %v4280_v60, %v4212_v21  ;;  %v12973_v34 = vld [vmem:[%s19064_s1 + $0x630] sm:$0xff] }
 0x3fe   :  { %5803 = vmatpush.bf16.msra.mxu0 %v12973_v34  ;;  %v12972_v34 = vld [vmem:[%s19064_s1 + $0x628] sm:$0xff] }
 0x3ff   :  { %v4404_v39 = vadd.f32 %v4403_v31, %v4336_v52  ;;  %4964 = vmatmul.bf16.gmra.mxu1 %v4569_v43  ;;  %v4575_v31 = vsel %vm4545_vm3, %v4566_v9, %v4574_v37 }
 0x401   :  { %v15888_v1 = vadd.f32 %v4404_v39, %v15452_v29  ;;  %5022 = vmatmul.bf16.vlgmr.msra.gmra.mxu2 %v4554_v5  ;;  %v4214_v55 = vpop.f32.mrf.mxu0 }
 0x402   :  { %5090 = vmatmul.bf16.vlgmr.msra.gmra.mxu3 %v4557_v14  ;;  %5804 = vmatpush.bf16.msra.mxu0 %v12972_v34 }
 0x404   :  { %v4338_v44 = vpop.f32.mrf.mxu2  ;;  %v4282_v40 = vpop.f32.mrf.mxu1 }
 0x405   :  { %v4339_v50 = vadd.f32 %v4338_v44, %v15824_v48  ;;  %v4406_v59 = vpop.f32.mrf.mxu3  ;;  %v15897_v36 = vadd.f32 %v4282_v40, %v4214_v55  ;;  %v4570_v44 = vrot.slane %v19382_v28, 2  ;;  %v4582_v55 = vrot.slane %v19383_v15, 2 }
 0x407   :  { %v4407_v29 = vadd.f32 %v4406_v59, %v4339_v50  ;;  %v19432_v50 = vld [vmem:[#allocation18_spill] sm:$0xff] }
 0x408   :  { %v4584_v59 = vrot.slane %v19432_v50, 2 }
 0x409   :  { %v15900_v4 = vadd.f32 %v4407_v29, %v15472_v30  ;;  %v4217_v21 = vpop.f32.mrf.mxu0  ;;  %v4565_v30 = vsel %vm4545_vm3, %v4556_v2, %v4564_v27 }
 0x40c   :  { %v4340_v33 = vpop.f32.mrf.mxu2  ;;  %v4285_v39 = vpop.f32.mrf.mxu1  ;;  %4901 = vmatmul.bf16.gmra.mxu0 %v4575_v31 }
 0x40d   :  { %v4341_v48 = vadd.f32 %v4340_v33, %v15836_v56  ;;  %v4408_v52 = vpop.f32.mrf.mxu3  ;;  %v15911_v20 = vadd.f32 %v4285_v39, %v4217_v21  ;;  %v12996_v56 = vld [vmem:[%s19064_s1 + $0x6e8] sm:$0xff]  ;;  %v4583_v21 = vsel %vm4545_vm3, %v4574_v37, %v4582_v55 }
 0x40e   :  { %6008 = vmatpush.bf16.msrb.mxu3 %v12996_v56  ;;  %v4578_v56 = vrot.slane %v19433_v0, 2 }
 0x40f   :  { %v4409_v5 = vadd.f32 %v4408_v52, %v4341_v48  ;;  %4969 = vmatmul.bf16.gmra.mxu1 %v4577_v24  ;;  %v4571_v48 = vsel %vm4545_vm3, %v4562_v42, %v4570_v44 }
 0x411   :  { %v15914_v22 = vadd.f32 %v4409_v5, %v15490_v63  ;;  %5027 = vmatmul.bf16.gmra.mxu2 %v4563_v41  ;;  %v4219_v2 = vpop.f32.mrf.mxu0 }
 0x412   :  { %5095 = vmatmul.bf16.gmra.mxu3 %v4565_v30 }
 0x414   :  { %v4343_v13 = vpop.f32.mrf.mxu2  ;;  %v4287_v14 = vpop.f32.mrf.mxu1 }
 0x415   :  { %v4344_v9 = vadd.f32 %v4343_v13, %v15855_v26  ;;  %v4411_v11 = vpop.f32.mrf.mxu3  ;;  %v15923_v60 = vadd.f32 %v4287_v14, %v4219_v2  ;;  %v4572_v26 = vrot.slane %v14897_v47, 2  ;;  %v4585_v47 = vsel %vm4545_vm3, %v4576_v45, %v4584_v59  ;;  %v12995_v45 = vld [vmem:[%s19064_s1 + $0x6e0] sm:$0xff]  ;;  %v19434_v13 = vld [vmem:[#allocation34_spill] sm:$0xff] }
 0x416   :  { %6009 = vmatpush.bf16.msrb.mxu3 %v12995_v45  ;;  %v19435_v2 = vld [vmem:[#allocation22_spill] sm:$0xff] }
 0x417   :  { %v4412_v63 = vadd.f32 %v4411_v11, %v4344_v9  ;;  %v4573_v28 = vsel %vm4545_vm3, %v4564_v27, %v4572_v26  ;;  %v4590_v9 = vrot.slane %v19435_v2, 2  ;;  %v19436_v11 = vld [vmem:[#allocation20_spill] sm:$0xff] }
 0x419   :  { %v15926_v43 = vadd.f32 %v4412_v63, %v15510_v32  ;;  %v4222_v29 = vpop.f32.mrf.mxu0  ;;  %v4592_v63 = vrot.slane %v19436_v11, 2  ;;  %v4591_v50 = vsel %vm4545_vm3, %v4582_v55, %v4590_v9 }
 0x41c   :  { %v4345_v32 = vpop.f32.mrf.mxu2  ;;  %v4290_v31 = vpop.f32.mrf.mxu1  ;;  %4906 = vmatmul.bf16.gmra.mxu0 %v4583_v21  ;;  %v4593_v21 = vsel %vm4545_vm3, %v4584_v59, %v4592_v63 }
 0x41d   :  { %v4346_v40 = vadd.f32 %v4345_v32, %v15865_v3  ;;  %v4413_v33 = vpop.f32.mrf.mxu3  ;;  %v15943_v41 = vadd.f32 %v4290_v31, %v4222_v29  ;;  %v4579_v32 = vsel %vm4545_vm3, %v4570_v44, %v4578_v56  ;;  %v12979_v44 = vld [vmem:[%s19064_s1 + $0x660] sm:$0xff] }
 0x41e   :  { %5873 = vmatpush.bf16.msra.mxu1 %v12979_v44  ;;  %v12978_v44 = vld [vmem:[%s19064_s1 + $0x658] sm:$0xff] }
 0x41f   :  { %v4414_v52 = vadd.f32 %v4413_v33, %v4346_v40  ;;  %4974 = vmatmul.bf16.gmra.mxu1 %v4585_v47 }
 0x421   :  { %v15946_v15 = vadd.f32 %v4414_v52, %v15534_v46  ;;  %5032 = vmatmul.bf16.gmra.mxu2 %v4571_v48  ;;  %v4224_v5 = vpop.f32.mrf.mxu0  ;;  %v12987_v46 = vld [vmem:[%s19064_s1 + $0x6a0] sm:$0xff] }
 0x422   :  { %5100 = vmatmul.bf16.gmra.mxu3 %v4573_v28  ;;  %5941 = vmatpush.bf16.msrb.mxu2 %v12987_v46  ;;  %v19439_v46 = vld [vmem:[#allocation6_spill] sm:$0xff] }
 0x423   :  { %v4600_v45 = vrot.slane %v19439_v46, 2  ;;  %5874 = vmatpush.bf16.msra.mxu1 %v12978_v44 }
 0x424   :  { %v4348_v3 = vpop.f32.mrf.mxu2  ;;  %v4292_v39 = vpop.f32.mrf.mxu1 }
 0x425   :  { %v4349_v37 = vadd.f32 %v4348_v3, %v15885_v23  ;;  %v4416_v42 = vpop.f32.mrf.mxu3  ;;  %v15949_v27 = vadd.f32 %v4292_v39, %v4224_v5  ;;  %v4580_v23 = vrot.slane %v19434_v13, 2  ;;  %v4586_v5 = vrot.slane %v15019_v10, 2 }
 0x426   :  { %v4601_v10 = vsel %vm4545_vm3, %v4592_v63, %v4600_v45 }
 0x427   :  { %v4417_v30 = vadd.f32 %v4416_v42, %v4349_v37  ;;  %v4581_v40 = vsel %vm4545_vm3, %v4572_v26, %v4580_v23  ;;  %v19437_v37 = vld [vmem:[#allocation26_spill] sm:$0xff] }
 0x428   :  { %v4588_v42 = vrot.slane %v19437_v37, 2 }
 0x429   :  { %v15952_v24 = vadd.f32 %v4417_v30, %v15548_v62  ;;  %v4227_v14 = vpop.f32.mrf.mxu0  ;;  %v19438_v30 = vld [vmem:[#allocation25_spill] sm:$0xff] }
 0x42a   :  { %v4598_v39 = vrot.slane %v19438_v30, 2 }
 0x42c   :  { %v4350_v62 = vpop.f32.mrf.mxu2  ;;  %v4295_v33 = vpop.f32.mrf.mxu1  ;;  %4911 = vmatmul.bf16.gmra.mxu0 %v4591_v50  ;;  %v4599_v11 = vsel %vm4545_vm3, %v4590_v9, %v4598_v39 }
 0x42d   :  { %v4351_v34 = vadd.f32 %v4350_v62, %v15897_v36  ;;  %v4418_v35 = vpop.f32.mrf.mxu3  ;;  %v15969_v48 = vadd.f32 %v4295_v33, %v4227_v14  ;;  %v12971_v36 = vld [vmem:[%s19064_s1 + $0x620] sm:$0xff]  ;;  %v4587_v62 = vsel %vm4545_vm3, %v4578_v56, %v4586_v5  ;;  %v12994_v56 = vld [vmem:[%s19064_s1 + $0x6d8] sm:$0xff] }
 0x42e   :  { %5805 = vmatpush.bf16.msra.mxu0 %v12971_v36  ;;  %6010 = vmatpush.bf16.msrb.mxu3 %v12994_v56  ;;  %v19440_v33 = vld [vmem:[#allocation15_spill] sm:$0xff] }
 0x42f   :  { %v4419_v29 = vadd.f32 %v4418_v35, %v4351_v34  ;;  %4979 = vmatmul.bf16.gmra.mxu1 %v4593_v21  ;;  %v12970_v36 = vld [vmem:[%s19064_s1 + $0x618] sm:$0xff] }
 0x431   :  { %v15972_v52 = vadd.f32 %v4419_v29, %v15572_v54  ;;  %5037 = vmatmul.bf16.gmra.mxu2 %v4579_v32  ;;  %v4229_v55 = vpop.f32.mrf.mxu0 }
 0x432   :  { %5105 = vmatmul.bf16.gmra.mxu3 %v4581_v40  ;;  %5806 = vmatpush.bf16.msra.mxu0 %v12970_v36 }
 0x434   :  { %v4353_v26 = vpop.f32.mrf.mxu2  ;;  %v4297_v31 = vpop.f32.mrf.mxu1 }
 0x435   :  { %v4354_v59 = vadd.f32 %v4353_v26, %v15911_v20  ;;  %v4421_v28 = vpop.f32.mrf.mxu3  ;;  %v15981_v47 = vadd.f32 %v4297_v31, %v4229_v55  ;;  %v19441_v26 = vld [vmem:[#allocation27_spill] sm:$0xff] }
 0x436   :  { %v4594_v55 = vrot.slane %v19441_v26, 2  ;;  %v19444_v31 = vld [vmem:[#allocation35_spill] sm:$0xff] }
 0x437   :  { %v4422_v54 = vadd.f32 %v4421_v28, %v4354_v59  ;;  %v19442_v59 = vld [vmem:[#allocation28_spill] sm:$0xff]  ;;  %v19443_v28 = vld [vmem:[#allocation10_spill] sm:$0xff]  ;;  %v4608_v37 = vrot.slane %v19444_v31, 2 }
 0x438   :  { %v12969_v26 = vld [vmem:[%s19064_s1 + $0x610] sm:$0xff] }
 0x439   :  { %v15984_v3 = vadd.f32 %v4422_v54, %v15592_v49  ;;  %v4232_v13 = vpop.f32.mrf.mxu0  ;;  %v4589_v49 = vsel %vm4545_vm3, %v4580_v23, %v4588_v42  ;;  %v4606_v54 = vrot.slane %v19443_v28, 2  ;;  %5807 = vmatpush.bf16.msra.mxu0 %v12969_v26 }
 0x43c   :  { %v4355_v0 = vpop.f32.mrf.mxu2  ;;  %v4300_v34 = vpop.f32.mrf.mxu1  ;;  %4916 = vmatmul.bf16.gmra.mxu0 %v4599_v11 }
 0x43d   :  { %v4356_v20 = vadd.f32 %v4355_v0, %v15923_v60  ;;  %v4423_v2 = vpop.f32.mrf.mxu3  ;;  %v15995_v35 = vadd.f32 %v4300_v34, %v4232_v13  ;;  %v12986_v60 = vld [vmem:[%s19064_s1 + $0x698] sm:$0xff] }
 0x43e   :  { %5942 = vmatpush.bf16.msrb.mxu2 %v12986_v60 }
 0x43f   :  { %v4424_v14 = vadd.f32 %v4423_v2, %v4356_v20  ;;  %4984 = vmatmul.bf16.gmra.mxu1 %v4601_v10  ;;  %v4607_v20 = vsel %vm4545_vm3, %v4598_v39, %v4606_v54  ;;  %v4595_v2 = vsel %vm4545_vm3, %v4586_v5, %v4594_v55 }
 0x441   :  { %v15998_v50 = vadd.f32 %v4424_v14, %v15610_v18  ;;  %5042 = vmatmul.bf16.gmra.mxu2 %v4587_v62  ;;  %v4234_v9 = vpop.f32.mrf.mxu0 }
 0x442   :  { %5110 = vmatmul.bf16.gmra.mxu3 %v4589_v49  ;;  %v4609_v49 = vsel %vm4545_vm3, %v4600_v45, %v4608_v37  ;;  %v12985_v45 = vld [vmem:[%s19064_s1 + $0x690] sm:$0xff] }
 0x443   :  { %5943 = vmatpush.bf16.msrb.mxu2 %v12985_v45 }
 0x444   :  { %v4358_v23 = vpop.f32.mrf.mxu2  ;;  %v4302_v29 = vpop.f32.mrf.mxu1 }
 0x445   :  { %v4359_v63 = vadd.f32 %v4358_v23, %v15943_v41  ;;  %v4426_v32 = vpop.f32.mrf.mxu3  ;;  %v16007_v40 = vadd.f32 %v4302_v29, %v4234_v9  ;;  %v4596_v41 = vrot.slane %v19442_v59, 2  ;;  %v4602_v9 = vrot.slane %v19399_v51, 2 }
 0x447   :  { %v4427_v18 = vadd.f32 %v4426_v32, %v4359_v63  ;;  %v4597_v62 = vsel %vm4545_vm3, %v4588_v42, %v4596_v41  ;;  %v4604_v63 = vrot.slane %v15139_v53, 2  ;;  %v19445_v32 = vld [vmem:[#allocation32_spill] sm:$0xff]  ;;  %v12977_v53 = vld [vmem:[%s19064_s1 + $0x650] sm:$0xff]  ;;  %v4603_v51 = vsel %vm4545_vm3, %v4594_v55, %v4602_v9 }
 0x448   :  { %5875 = vmatpush.bf16.msra.mxu1 %v12977_v53 }
 0x449   :  { %v16010_v21 = vadd.f32 %v4427_v18, %v19440_v33  ;;  %v4237_v46 = vpop.f32.mrf.mxu0  ;;  %v4616_v18 = vrot.slane %v19445_v32, 2  ;;  %v4605_v59 = vsel %vm4545_vm3, %v4596_v41, %v4604_v63 }
 0x44c   :  { %v4360_v30 = vpop.f32.mrf.mxu2  ;;  %v4305_v14 = vpop.f32.mrf.mxu1  ;;  %4921 = vmatmul.bf16.gmra.mxu0 %v4607_v20 }
 0x44d   :  { %v4361_v0 = vadd.f32 %v4360_v30, %v15949_v27  ;;  %v4428_v13 = vpop.f32.mrf.mxu3  ;;  %v16027_v34 = vadd.f32 %v4305_v14, %v4237_v46  ;;  %v19448_v14 = vld [vmem:[#allocation38_spill] sm:$0xff] }
 0x44f   :  { %v4429_v11 = vadd.f32 %v4428_v13, %v4361_v0  ;;  %4989 = vmatmul.bf16.gmra.mxu1 %v4609_v49  ;;  %v4612_v49 = vrot.slane %v19448_v14, 2 }
 0x451   :  { %v16030_v10 = vadd.f32 %v4429_v11, %v15648_v12  ;;  %5047 = vmatmul.bf16.gmra.mxu2 %v4595_v2  ;;  %v4239_v60 = vpop.f32.mrf.mxu0  ;;  %v12993_v12 = vld [vmem:[%s19064_s1 + $0x6d0] sm:$0xff]  ;;  %v19447_v11 = vld [vmem:[#allocation5_spill] sm:$0xff] }
 0x452   :  { %5115 = vmatmul.bf16.gmra.mxu3 %v4597_v62  ;;  %v4610_v62 = vrot.slane %v19447_v11, 2  ;;  %v19456_v11 = vld [vmem:[#allocation21_spill] sm:$0xff] }
 0x453   :  { %6011 = vmatpush.bf16.msrb.mxu3 %v12993_v12  ;;  %v4632_v14 = vrot.slane %v19456_v11, 2  ;;  %v16145_v11 = vld [vmem:[%s19065_s0 + $0x30] sm:$0xff] }
 0x454   :  { %v4363_v27 = vpop.f32.mrf.mxu2  ;;  %v4307_v23 = vpop.f32.mrf.mxu1  ;;  %v4611_v32 = vsel %vm4545_vm3, %v4602_v9, %v4610_v62  ;;  %v12992_v9 = vld [vmem:[%s19064_s1 + $0x6c8] sm:$0xff]  ;;  %19458 = vst [vmem:[#allocation36_spill] sm:$0xff] %v16145_v11 }
 0x455   :  { %v4364_v39 = vadd.f32 %v4363_v27, %v15969_v48  ;;  %v4431_v5 = vpop.f32.mrf.mxu3  ;;  %v4614_v48 = vrot.slane %v15159_v61, 2  ;;  %v19449_v27 = vld [vmem:[#allocation40_spill] sm:$0xff] }
 0x456   :  { %v4622_v60 = vrot.slane %v19449_v27, 2 }
 0x457   :  { %v4432_v56 = vadd.f32 %v4431_v5, %v4364_v39  ;;  %v4615_v44 = vsel %vm4545_vm3, %v4606_v54, %v4614_v48  ;;  %v19446_v54 = vld [vmem:[#allocation17_spill] sm:$0xff]  ;;  %6012 = vmatpush.bf16.msrb.mxu3 %v12992_v9 }
 0x458   :  { %v19450_v39 = vld [vmem:[#allocation41_spill] sm:$0xff]  ;;  %v4623_v12 = vsel %vm4545_vm3, %v4614_v48, %v4622_v60 }
 0x459   :  { %v16034_v42 = vadd.f32 %v4432_v56, %v15660_v58  ;;  %v4887_v29 = vpop.f32.mrf.mxu0  ;;  %v4624_v5 = vrot.slane %v19450_v39, 2 }
 0x45c   :  { %v4365_v58 = vpop.f32.mrf.mxu2  ;;  %v4955_v28 = vpop.f32.mrf.mxu1  ;;  %4926 = vmatmul.bf16.gmra.mxu0 %v4615_v44  ;;  %v19451_v44 = vld [vmem:[#allocation33_spill] sm:$0xff] }
 0x45d   :  { %v4366_v33 = vadd.f32 %v4365_v58, %v15981_v47  ;;  %v4433_v36 = vpop.f32.mrf.mxu3  ;;  %v4617_v47 = vsel %vm4545_vm3, %v4608_v37, %v4616_v18  ;;  %v16057_v31 = vadd.f32 %v4955_v28, %v4887_v29  ;;  %v19452_v28 = vld [vmem:[#allocation23_spill] sm:$0xff] }
 0x45f   :  { %v4434_v61 = vadd.f32 %v4433_v36, %v4366_v33  ;;  %4994 = vmatmul.bf16.gmra.mxu1 %v4617_v47  ;;  %v4625_v33 = vsel %vm4545_vm3, %v4616_v18, %v4624_v5 }
 0x461   :  { %v16060_v30 = vadd.f32 %v4434_v61, %v19446_v54  ;;  %5052 = vmatmul.bf16.gmra.mxu2 %v4603_v51  ;;  %v4889_v0 = vpop.f32.mrf.mxu0  ;;  %v12968_v54 = vld [vmem:[%s19064_s1 + $0x608] sm:$0xff] }
 0x462   :  { %5120 = vmatmul.bf16.gmra.mxu3 %v4605_v59  ;;  %5808 = vmatpush.bf16.msra.mxu0 %v12968_v54 }
 0x464   :  { %v4368_v46 = vpop.f32.mrf.mxu2  ;;  %v4957_v20 = vpop.f32.mrf.mxu1 }
 0x465   :  { %v4369_v55 = vadd.f32 %v4368_v46, %v15995_v35  ;;  %v4436_v13 = vpop.f32.mrf.mxu3  ;;  %v16063_v2 = vadd.f32 %v4957_v20, %v4889_v0  ;;  %v12976_v46 = vld [vmem:[%s19064_s1 + $0x648] sm:$0xff]  ;;  %v19453_v0 = vld [vmem:[#allocation43_spill] sm:$0xff] }
 0x466   :  { %5876 = vmatpush.bf16.msra.mxu1 %v12976_v46 }
 0x467   :  { %v4437_v41 = vadd.f32 %v4436_v13, %v4369_v55  ;;  %v4618_v55 = vrot.slane %v19453_v0, 2  ;;  %v19454_v13 = vld [vmem:[#allocation44_spill] sm:$0xff]  ;;  %v19457_v0 = vld [vmem:[#allocation9_spill] sm:$0xff] }
 0x469   :  { %v16066_v37 = vadd.f32 %v4437_v41, %v15696_v6  ;;  %v4892_v23 = vpop.f32.mrf.mxu0  ;;  %v4613_v6 = vsel %vm4545_vm3, %v4604_v63, %v4612_v49  ;;  %v19455_v41 = vld [vmem:[#allocation16_spill] sm:$0xff] }
 0x46a   :  { %v4630_v20 = vrot.slane %v19455_v41, 2 }
 0x46c   :  { %v4370_v56 = vpop.f32.mrf.mxu2  ;;  %v4960_v29 = vpop.f32.mrf.mxu1  ;;  %4931 = vmatmul.bf16.gmra.mxu0 %v4623_v12 }
 0x46d   :  { %v4371_v35 = vadd.f32 %v4370_v56, %v16007_v40  ;;  %v4438_v45 = vpop.f32.mrf.mxu3  ;;  %v16077_v36 = vadd.f32 %v4960_v29, %v4892_v23  ;;  %v12984_v40 = vld [vmem:[%s19064_s1 + $0x688] sm:$0xff]  ;;  %v4631_v23 = vsel %vm4545_vm3, %v4622_v60, %v4630_v20 }
 0x46e   :  { %5944 = vmatpush.bf16.msrb.mxu2 %v12984_v40 }
 0x46f   :  { %v4439_v58 = vadd.f32 %v4438_v45, %v4371_v35  ;;  %4999 = vmatmul.bf16.gmra.mxu1 %v4625_v33  ;;  %v4619_v35 = vsel %vm4545_vm3, %v4610_v62, %v4618_v55 }
 0x471   :  { %v16080_v26 = vadd.f32 %v4439_v58, %v19451_v44  ;;  %5057 = vmatmul.bf16.gmra.mxu2 %v4611_v32  ;;  %v4894_v48 = vpop.f32.mrf.mxu0  ;;  %v4633_v32 = vsel %vm4545_vm3, %v4624_v5, %v4632_v14  ;;  %v12991_v5 = vld [vmem:[%s19064_s1 + $0x6c0] sm:$0xff] }
 0x472   :  { %5125 = vmatmul.bf16.gmra.mxu3 %v4613_v6 }
 0x473   :  { %6013 = vmatpush.bf16.msrb.mxu3 %v12991_v5 }
 0x474   :  { %v4373_v63 = vpop.f32.mrf.mxu2  ;;  %v4962_v61 = vpop.f32.mrf.mxu1 }
 0x475   :  { %v4374_v18 = vadd.f32 %v4373_v63, %v16027_v34  ;;  %v4441_v53 = vpop.f32.mrf.mxu3  ;;  %v16089_v59 = vadd.f32 %v4962_v61, %v4894_v48  ;;  %v4620_v34 = vrot.slane %v19454_v13, 2  ;;  %v4626_v63 = vrot.slane %v15298_v16, 2 }
 0x477   :  { %v4442_v51 = vadd.f32 %v4441_v53, %v4374_v18  ;;  %v4621_v45 = vsel %vm4545_vm3, %v4612_v49, %v4620_v34  ;;  %v12983_v49 = vld [vmem:[%s19064_s1 + $0x680] sm:$0xff] }
 0x478   :  { %5945 = vmatpush.bf16.msrb.mxu2 %v12983_v49 }
 0x479   :  { %v16092_v47 = vadd.f32 %v4442_v51, %v19452_v28  ;;  %v4897_v39 = vpop.f32.mrf.mxu0  ;;  %v4627_v51 = vsel %vm4545_vm3, %v4618_v55, %v4626_v63 }
 0x47c   :  { %v4375_v27 = vpop.f32.mrf.mxu2  ;;  %v4965_v12 = vpop.f32.mrf.mxu1  ;;  %4936 = vmatmul.bf16.gmra.mxu0 %v4631_v23 }
 0x47d   :  { %v4443_v56 = vpop.f32.mrf.mxu3  ;;  %v16108_v58 = vadd.f32 %v4965_v12, %v4897_v39  ;;  %v12927_v12 = vld [vmem:[%s19065_s0 + $0x44] sm:$0xf] }
 0x47f   :  { %5004 = vmatmul.bf16.gmra.mxu1 %v4633_v32  ;;  %v19186_v32 = vunpack.c.h.b16 %v16145_v11 }
 0x481   :  { %5062 = vmatmul.bf16.gmra.mxu2 %v4619_v35  ;;  %v4899_v29 = vpop.f32.mrf.mxu0 }
 0x482   :  { %5130 = vmatmul.bf16.gmra.mxu3 %v4621_v45  ;;  %v12929_v45 = vld [vmem:[%s19065_s0 + $0x4c] sm:$0xf0] }
 0x484   :  { %v5023_v6 = vpop.f32.mrf.mxu2  ;;  %v4967_v60 = vpop.f32.mrf.mxu1 }
 0x485   :  { %v5024_v33 = vadd.f32 %v5023_v6, %v16057_v31  ;;  %v5091_v44 = vpop.f32.mrf.mxu3  ;;  %v16111_v9 = vadd.f32 %v4967_v60, %v4899_v29  ;;  %v4628_v31 = vrot.slane %v15300_v17, 2  ;;  %v12967_v17 = vld [vmem:[%s19064_s1 + $0x600] sm:$0xff] }
 0x486   :  { %5809 = vmatpush.bf16.msra.mxu0 %v12967_v17 }
 0x487   :  { %v5092_v40 = vadd.f32 %v5091_v44, %v5024_v33  ;;  %v4629_v28 = vsel %vm4545_vm3, %v4620_v34, %v4628_v31  ;;  %v11403_v44 = vld [vmem:[%s19065_s0 + $0x50] sm:$0xf0] }
 0x488   :  { %v16177_v5 = vor.u32 %v12927_v12, %v11403_v44  ;;  %v11417_v12 = vld [vmem:[%s19065_s0 + $0x60] sm:$0xf]  ;;  %v12933_v44 = vld [vmem:[%s19065_s0 + $0x6c] sm:$0xf0] }
 0x489   :  { %v16114_v62 = vadd.f32 %v5092_v40, %v15774_v7  ;;  %v4902_v18 = vpop.f32.mrf.mxu0  ;;  %v19460_v40 = vld [vmem:[#allocation24_spill] sm:$0xff] }
 0x48a   :  { %v4634_v60 = vrot.slane %v19460_v40, 2  ;;  %v12931_v40 = vld [vmem:[%s19065_s0 + $0x64] sm:$0xf] }
 0x48c   :  { %v5025_v48 = vpop.f32.mrf.mxu2  ;;  %v4970_v54 = vpop.f32.mrf.mxu1  ;;  %4941 = vmatmul.bf16.gmra.mxu0 %v4630_v20  ;;  %v5173_v20 = vld [vmem:[%s19065_s0 + $0x20] sm:$0xcc] }
 0x48d   :  { %v5026_v53 = vadd.f32 %v5025_v48, %v16063_v2  ;;  %v5093_v7 = vpop.f32.mrf.mxu3  ;;  %v16127_v46 = vadd.f32 %v4970_v54, %v4902_v18  ;;  %v12975_v2 = vld [vmem:[%s19064_s1 + $0x640] sm:$0xff]  ;;  %v5330_v56 = vunpack.c.l.b16 %v5173_v20  ;;  %v5331_v23 = vunpack.c.h.b16 %v5173_v20 }
 0x48e   :  { %5877 = vmatpush.bf16.msra.mxu1 %v12975_v2  ;;  %v4635_v2 = vsel %vm4545_vm3, %v4626_v63, %v4634_v60  ;;  %v13030_v63 = vld [vmem:[%s19064_s1 + $0x7f8] sm:$0xff] }
 0x48f   :  { %v5094_v61 = vadd.f32 %v5093_v7, %v5026_v53  ;;  %5009 = vmatmul.bf16.gmra.mxu1 %v4632_v14  ;;  %v19187_v14 = vunpack.c.l.b16 %v16145_v11  ;;  %v16175_v49 = vpack.c.b16 %v19186_v32, %v5331_v23  ;;  %7047 = vmatpush.bf16.msra.mxu3 %v13030_v63 }
 0x491   :  { %v16130_v16 = vadd.f32 %v5094_v61, %v19457_v0  ;;  %5067 = vmatmul.bf16.gmra.mxu2 %v4627_v51  ;;  %v4904_v13 = vpop.f32.mrf.mxu0  ;;  %v16165_v29 = vpack.c.b16 %v19187_v14, %v5330_v56  ;;  %v5473_v61 = vrot.slane %v16175_v49, 2 }
 0x492   :  { %5135 = vmatmul.bf16.gmra.mxu3 %v4629_v28  ;;  %v5474_v28 = vrot.slane %v16177_v5, 2 }
 0x493   :  { %v5470_v18 = vrot.slane %v16165_v29, 2 }
 0x494   :  { %v5028_v55 = vpop.f32.mrf.mxu2  ;;  %v4972_v39 = vpop.f32.mrf.mxu1 }
 0x495   :  { %v5029_v34 = vadd.f32 %v5028_v55, %v16077_v36  ;;  %v5096_v41 = vpop.f32.mrf.mxu3  ;;  %v16148_v35 = vadd.f32 %v4972_v39, %v4904_v13  ;;  %v11401_v36 = vld [vmem:[%s19065_s0 + $0x40] sm:$0xf] }
 0x496   :  { %v16167_v33 = vor.u32 %v12929_v45, %v11401_v36 }
 0x497   :  { %v5097_v27 = vadd.f32 %v5096_v41, %v5029_v34  ;;  %v5475_v41 = vsel %vm4545_vm3, %v5473_v61, %v5474_v28 }
 0x498   :  { %19459 = vst [vmem:[#allocation37_spill] sm:$0xff] %v16167_v33  ;;  %v5471_v53 = vrot.slane %v16167_v33, 2 }
 0x499   :  { %v16161_v6 = vadd.f32 %v5097_v27, %v15811_v8  ;;  %v19461_v8 = vld [vmem:[#allocation7_spill] sm:$0xff]  ;;  %v4907_v51 = vpop.f32.mrf.mxu0 }
 0x49a   :  { %v4636_v48 = vrot.slane %v19461_v8, 2  ;;  %v5472_v17 = vsel %vm4545_vm3, %v5470_v18, %v5471_v53  ;;  %v13014_v18 = vld [vmem:[%s19064_s1 + $0x778] sm:$0xff] }
 0x49b   :  { %6911 = vmatpush.bf16.msrb.mxu1 %v13014_v18 }
 0x49c   :  { %v5030_v7 = vpop.f32.mrf.mxu2  ;;  %v4637_v13 = vsel %vm4545_vm3, %v4628_v31, %v4636_v48  ;;  %v4975_v34 = vpop.f32.mrf.mxu1  ;;  %5810 = vmatmul.bf16.vlgmr.msra.gmra.mxu0 %v5472_v17 }
 0x49d   :  { %v5031_v54 = vadd.f32 %v5030_v7, %v16089_v59  ;;  %v5098_v0 = vpop.f32.mrf.mxu3  ;;  %v16189_v20 = vadd.f32 %v4975_v34, %v4907_v51  ;;  %v13022_v59 = vld [vmem:[%s19064_s1 + $0x7b8] sm:$0xff]  ;;  %v16221_v7 = vor.u32 %v12933_v44, %v11417_v12  ;;  %v11419_v51 = vld [vmem:[%s19065_s0 + $0x70] sm:$0xf0] }
 0x49e   :  { %6979 = vmatpush.bf16.msra.mxu2 %v13022_v59  ;;  %v16226_v61 = vor.u32 %v12931_v40, %v11419_v51  ;;  %v16238_v59 = vld [vmem:[%s19065_s0 + $0x38] sm:$0xff] }
 0x49f   :  { %v5099_v55 = vadd.f32 %v5098_v0, %v5031_v54  ;;  %5878 = vmatmul.bf16.vlgmr.msra.gmra.mxu1 %v5475_v41  ;;  %v5174_v41 = vld [vmem:[%s19065_s0 + $0x28] sm:$0xcc]  ;;  %19462 = vst [vmem:[#allocation31_spill] sm:$0xff] %v16238_v59 }
 0x4a0   :  { %v5484_v17 = vrot.slane %v16226_v61, 2 }
 0x4a1   :  { %v16192_v27 = vadd.f32 %v5099_v55, %v15827_v57  ;;  %5072 = vmatmul.bf16.gmra.mxu2 %v4635_v2  ;;  %v4909_v39 = vpop.f32.mrf.mxu0 }
 0x4a2   :  { %5140 = vmatmul.bf16.gmra.mxu3 %v4637_v13 }
 0x4a4   :  { %v5033_v31 = vpop.f32.mrf.mxu2  ;;  %v4977_v36 = vpop.f32.mrf.mxu1 }
 0x4a5   :  { %v5034_v56 = vadd.f32 %v5033_v31, %v16108_v58  ;;  %v5101_v23 = vpop.f32.mrf.mxu3  ;;  %v16201_v45 = vadd.f32 %v4977_v36, %v4909_v39  ;;  %v13006_v58 = vld [vmem:[%s19064_s1 + $0x738] sm:$0xff]  ;;  %v5485_v31 = vsel %vm4545_vm3, %v5474_v28, %v5484_v17  ;;  %v5333_v28 = vunpack.c.h.b16 %v5174_v41 }
 0x4a6   :  { %6843 = vmatpush.bf16.msrb.mxu0 %v13006_v58  ;;  %v19184_v36 = vunpack.c.h.b16 %v16238_v59 }
 0x4a7   :  { %v5102_v57 = vadd.f32 %v5101_v23, %v5034_v56  ;;  %v19185_v56 = vunpack.c.l.b16 %v16238_v59  ;;  %v11409_v23 = vld [vmem:[%s19065_s0 + $0x48] sm:$0xf] }
 0x4a9   :  { %v16213_v8 = vadd.f32 %v5102_v57, %v15839_v38  ;;  %v5482_v38 = vrot.slane %v16221_v7, 2  ;;  %v4912_v0 = vpop.f32.mrf.mxu0  ;;  %v12930_v57 = vld [vmem:[%s19065_s0 + $0x54] sm:$0xf0] }
 0x4aa   :  { %v16265_v18 = vor.u32 %v12930_v57, %v11409_v23  ;;  %v11435_v23 = vld [vmem:[%s19065_s0 + $0x90] sm:$0xf0] }
 0x4ab   :  { %v5483_v13 = vsel %vm4545_vm3, %v5471_v53, %v5482_v38  ;;  %v5332_v53 = vunpack.c.l.b16 %v5174_v41 }
 0x4ac   :  { %v5035_v54 = vpop.f32.mrf.mxu2  ;;  %v4980_v63 = vpop.f32.mrf.mxu1  ;;  %5815 = vmatmul.bf16.gmra.mxu0 %v5483_v13  ;;  %19463 = vst [vmem:[#allocation39_spill] sm:$0xff] %v16265_v18  ;;  %v12937_v13 = vld [vmem:[%s19065_s0 + $0x8c] sm:$0xf0] }
 0x4ad   :  { %v5036_v2 = vadd.f32 %v5035_v54, %v16111_v9  ;;  %v5103_v55 = vpop.f32.mrf.mxu3  ;;  %v16241_v39 = vadd.f32 %v4980_v63, %v4912_v0  ;;  %v16263_v58 = vpack.c.b16 %v19185_v56, %v5332_v53  ;;  %v16269_v54 = vpack.c.b16 %v19184_v36, %v5333_v28  ;;  %v13021_v63 = vld [vmem:[%s19064_s1 + $0x7b0] sm:$0xff] }
 0x4ae   :  { %v5477_v28 = vrot.slane %v16265_v18, 2  ;;  %6980 = vmatpush.bf16.msra.mxu2 %v13021_v63 }
 0x4af   :  { %v5104_v34 = vadd.f32 %v5103_v55, %v5036_v2  ;;  %5883 = vmatmul.bf16.gmra.mxu1 %v5485_v31  ;;  %v13029_v31 = vld [vmem:[%s19064_s1 + $0x7f0] sm:$0xff]  ;;  %v5476_v57 = vrot.slane %v16263_v58, 2 }
 0x4b0   :  { %7048 = vmatpush.bf16.msra.mxu3 %v13029_v31 }
 0x4b1   :  { %v16244_v9 = vadd.f32 %v5104_v34, %v15858_v19  ;;  %5077 = vmatmul.bf16.gmra.mxu2 %v4634_v60  ;;  %v12928_v19 = vld [vmem:[%s19065_s0 + $0x4c] sm:$0xf]  ;;  %v11411_v60 = vld [vmem:[%s19065_s0 + $0x58] sm:$0xf0]  ;;  %v12935_v34 = vld [vmem:[%s19065_s0 + $0x84] sm:$0xf] }
 0x4b2   :  { %5145 = vmatmul.bf16.gmra.mxu3 %v4636_v48  ;;  %v4914_v48 = vpop.f32.mrf.mxu0  ;;  %v16271_v0 = vor.u32 %v12928_v19, %v11411_v60 }
 0x4b4   :  { %v5038_v12 = vpop.f32.mrf.mxu2  ;;  %19464 = vst [vmem:[#allocation42_spill] sm:$0xff] %v16271_v0  ;;  %v4982_v2 = vpop.f32.mrf.mxu1  ;;  %v5480_v19 = vrot.slane %v16271_v0, 2 }
 0x4b5   :  { %v5039_v44 = vadd.f32 %v5038_v12, %v16127_v46  ;;  %v5106_v40 = vpop.f32.mrf.mxu3  ;;  %v16273_v55 = vadd.f32 %v4982_v2, %v4914_v48  ;;  %v11433_v46 = vld [vmem:[%s19065_s0 + $0x80] sm:$0xf]  ;;  %v5479_v12 = vrot.slane %v16269_v54, 2 }
 0x4b6   :  { %v16293_v53 = vor.u32 %v12937_v13, %v11433_v46  ;;  %v5478_v13 = vsel %vm4545_vm3, %v5476_v57, %v5477_v28  ;;  %v12932_v57 = vld [vmem:[%s19065_s0 + $0x6c] sm:$0xf] }
 0x4b7   :  { %v5107_v51 = vadd.f32 %v5106_v40, %v5039_v44 }
 0x4b8   :  { %19465 = vst [vmem:[#allocation45_spill] sm:$0xff] %v16293_v53  ;;  %v5490_v60 = vrot.slane %v16293_v53, 2 }
 0x4b9   :  { %v16285_v41 = vadd.f32 %v5107_v51, %v15868_v25  ;;  %v16300_v25 = vor.u32 %v12935_v34, %v11435_v23  ;;  %v5481_v23 = vsel %vm4545_vm3, %v5479_v12, %v5480_v19  ;;  %v11427_v12 = vld [vmem:[%s19065_s0 + $0x78] sm:$0xf0] }
 0x4ba   :  { %v4917_v44 = vpop.f32.mrf.mxu0  ;;  %v5491_v46 = vsel %vm4545_vm3, %v5482_v38, %v5490_v60  ;;  %v13013_v38 = vld [vmem:[%s19064_s1 + $0x770] sm:$0xff] }
 0x4bb   :  { %19466 = vst [vmem:[#allocation46_spill] sm:$0xff] %v16300_v25  ;;  %v5492_v40 = vrot.slane %v16300_v25, 2  ;;  %6912 = vmatpush.bf16.msrb.mxu1 %v13013_v38 }
 0x4bc   :  { %v5040_v48 = vpop.f32.mrf.mxu2  ;;  %v4985_v36 = vpop.f32.mrf.mxu1  ;;  %5820 = vmatmul.bf16.gmra.mxu0 %v5491_v46 }
 0x4bd   :  { %v5041_v51 = vadd.f32 %v5040_v48, %v16148_v35  ;;  %v5108_v2 = vpop.f32.mrf.mxu3  ;;  %v5493_v63 = vsel %vm4545_vm3, %v5484_v17, %v5492_v40  ;;  %v16311_v31 = vadd.f32 %v4985_v36, %v4917_v44  ;;  %v13005_v35 = vld [vmem:[%s19064_s1 + $0x730] sm:$0xff]  ;;  %v11425_v17 = vld [vmem:[%s19065_s0 + $0x68] sm:$0xf] }
 0x4be   :  { %6844 = vmatpush.bf16.msrb.mxu0 %v13005_v35  ;;  %v12941_v35 = vld [vmem:[%s19065_s0 + $0xac] sm:$0xf0] }
 0x4bf   :  { %v5109_v34 = vadd.f32 %v5108_v2, %v5041_v51  ;;  %5888 = vmatmul.bf16.gmra.mxu1 %v5493_v63  ;;  %v11449_v63 = vld [vmem:[%s19065_s0 + $0xa0] sm:$0xf] }
 0x4c1   :  { %v16314_v56 = vadd.f32 %v5109_v34, %v15888_v1  ;;  %5946 = vmatmul.bf16.vlgmr.msrb.gmra.mxu2 %v5478_v13  ;;  %v12934_v1 = vld [vmem:[%s19065_s0 + $0x74] sm:$0xf0]  ;;  %v16337_v13 = vor.u32 %v12932_v57, %v11427_v12 }
 0x4c2   :  { %6014 = vmatmul.bf16.vlgmr.msrb.gmra.mxu3 %v5481_v23  ;;  %v4919_v48 = vpop.f32.mrf.mxu0  ;;  %v16335_v2 = vor.u32 %v12934_v1, %v11425_v17  ;;  %v16353_v17 = vor.u32 %v12941_v35, %v11449_v63  ;;  %v11451_v1 = vld [vmem:[%s19065_s0 + $0xb0] sm:$0xf0] }
 0x4c3   :  { %v5488_v12 = vrot.slane %v16337_v13, 2 }
 0x4c4   :  { %v5043_v36 = vpop.f32.mrf.mxu2  ;;  %v4987_v34 = vpop.f32.mrf.mxu1 }
 0x4c5   :  { %v5044_v44 = vadd.f32 %v5043_v36, %v16189_v20  ;;  %v5111_v51 = vpop.f32.mrf.mxu3  ;;  %v16339_v23 = vadd.f32 %v4987_v34, %v4919_v48  ;;  %v12939_v20 = vld [vmem:[%s19065_s0 + $0xa4] sm:$0xf]  ;;  %v5486_v36 = vrot.slane %v16335_v2, 2  ;;  %v5498_v48 = vrot.slane %v16353_v17, 2 }
 0x4c6   :  { %v16359_v57 = vor.u32 %v12939_v20, %v11451_v1  ;;  %v5489_v14 = vsel %vm4545_vm3, %v5480_v19, %v5488_v12  ;;  %v11441_v19 = vld [vmem:[%s19065_s0 + $0x88] sm:$0xf] }
 0x4c7   :  { %v5112_v46 = vadd.f32 %v5111_v51, %v5044_v44  ;;  %v5499_v63 = vsel %vm4545_vm3, %v5490_v60, %v5498_v48  ;;  %v5487_v35 = vsel %vm4545_vm3, %v5477_v28, %v5486_v36  ;;  %v13028_v28 = vld [vmem:[%s19064_s1 + $0x7e8] sm:$0xff]  ;;  %v11443_v60 = vld [vmem:[%s19065_s0 + $0x98] sm:$0xf0] }
 0x4c8   :  { %v5500_v34 = vrot.slane %v16359_v57, 2  ;;  %7049 = vmatpush.bf16.msra.mxu3 %v13028_v28 }
 0x4c9   :  { %v16351_v38 = vadd.f32 %v5112_v46, %v15900_v4 }
 0x4ca   :  { %v4922_v51 = vpop.f32.mrf.mxu0  ;;  %v5501_v1 = vsel %vm4545_vm3, %v5492_v40, %v5500_v34 }
 0x4cc   :  { %v5045_v44 = vpop.f32.mrf.mxu2  ;;  %v4990_v20 = vpop.f32.mrf.mxu1  ;;  %5825 = vmatmul.bf16.gmra.mxu0 %v5499_v63 }
 0x4cd   :  { %v5046_v4 = vadd.f32 %v5045_v44, %v16201_v45  ;;  %v5113_v46 = vpop.f32.mrf.mxu3  ;;  %v16369_v59 = vadd.f32 %v4990_v20, %v4922_v51  ;;  %v13020_v45 = vld [vmem:[%s19064_s1 + $0x7a8] sm:$0xff] }
 0x4ce   :  { %6981 = vmatpush.bf16.msra.mxu2 %v13020_v45  ;;  %v12945_v45 = vld [vmem:[%s19065_s0 + $0xcc] sm:$0xf0] }
 0x4cf   :  { %v5114_v32 = vadd.f32 %v5113_v46, %v5046_v4  ;;  %5893 = vmatmul.bf16.gmra.mxu1 %v5501_v1  ;;  %v11465_v1 = vld [vmem:[%s19065_s0 + $0xc0] sm:$0xf] }
 0x4d1   :  { %v16372_v11 = vadd.f32 %v5114_v32, %v15914_v22  ;;  %5951 = vmatmul.bf16.gmra.mxu2 %v5487_v35  ;;  %v12938_v22 = vld [vmem:[%s19065_s0 + $0x94] sm:$0xf0] }
 0x4d2   :  { %6019 = vmatmul.bf16.gmra.mxu3 %v5489_v14  ;;  %v12936_v14 = vld [vmem:[%s19065_s0 + $0x8c] sm:$0xf]  ;;  %v4924_v40 = vpop.f32.mrf.mxu0  ;;  %v16393_v4 = vor.u32 %v12938_v22, %v11441_v19 }
 0x4d3   :  { %19467 = vst [vmem:[#allocation47_spill] sm:$0xff] %v16372_v11  ;;  %v16395_v63 = vor.u32 %v12936_v14, %v11443_v60  ;;  %v13004_v19 = vld [vmem:[%s19064_s1 + $0x728] sm:$0xff]  ;;  %v11467_v14 = vld [vmem:[%s19065_s0 + $0xd0] sm:$0xf0] }
 0x4d4   :  { %v5048_v32 = vpop.f32.mrf.mxu2  ;;  %19468 = vst [vmem:[#allocation8_spill] sm:$0xff] %v16393_v4  ;;  %v4992_v35 = vpop.f32.mrf.mxu1  ;;  %v13012_v22 = vld [vmem:[%s19064_s1 + $0x768] sm:$0xff]  ;;  %v5494_v60 = vrot.slane %v16393_v4, 2  ;;  %6845 = vmatpush.bf16.msrb.mxu0 %v13004_v19 }
 0x4d5   :  { %v5049_v44 = vadd.f32 %v5048_v32, %v16241_v39  ;;  %v5116_v51 = vpop.f32.mrf.mxu3  ;;  %v16397_v20 = vadd.f32 %v4992_v35, %v4924_v40  ;;  %v12943_v39 = vld [vmem:[%s19065_s0 + $0xc4] sm:$0xf]  ;;  %v16417_v32 = vor.u32 %v12945_v45, %v11465_v1  ;;  %6913 = vmatpush.bf16.msrb.mxu1 %v13012_v22 }
 0x4d6   :  { %v16423_v40 = vor.u32 %v12943_v39, %v11467_v14  ;;  %v5495_v11 = vsel %vm4545_vm3, %v5486_v36, %v5494_v60  ;;  %v12942_v36 = vld [vmem:[%s19065_s0 + $0xb4] sm:$0xf0] }
 0x4d7   :  { %v5117_v46 = vadd.f32 %v5116_v51, %v5049_v44  ;;  %19470 = vst [vmem:[#allocation29_spill] sm:$0xff] %v16417_v32  ;;  %v5506_v44 = vrot.slane %v16417_v32, 2 }
 0x4d8   :  { %19471 = vst [vmem:[#allocation30_spill] sm:$0xff] %v16423_v40  ;;  %v5508_v35 = vrot.slane %v16423_v40, 2 }
 0x4d9   :  { %v16409_v28 = vadd.f32 %v5117_v46, %v15926_v43  ;;  %v5496_v43 = vrot.slane %v16395_v63, 2 }
 0x4da   :  { %v4927_v46 = vpop.f32.mrf.mxu0  ;;  %v5509_v19 = vsel %vm4545_vm3, %v5500_v34, %v5508_v35 }
 0x4db   :  { %19469 = vst [vmem:[#allocation11_spill] sm:$0xff] %v16409_v28  ;;  %v5507_v28 = vsel %vm4545_vm3, %v5498_v48, %v5506_v44  ;;  %v5497_v39 = vsel %vm4545_vm3, %v5488_v12, %v5496_v43  ;;  %v12940_v48 = vld [vmem:[%s19065_s0 + $0xac] sm:$0xf] }
 0x4dc   :  { %v5050_v51 = vpop.f32.mrf.mxu2  ;;  %v4995_v14 = vpop.f32.mrf.mxu1  ;;  %5830 = vmatmul.bf16.gmra.mxu0 %v5507_v28 }
 0x4dd   :  { %v5051_v1 = vadd.f32 %v5050_v51, %v16273_v55  ;;  %v5118_v45 = vpop.f32.mrf.mxu3  ;;  %v16433_v22 = vadd.f32 %v4995_v14, %v4927_v46  ;;  %v11457_v55 = vld [vmem:[%s19065_s0 + $0xa8] sm:$0xf]  ;;  %v12949_v14 = vld [vmem:[%s19065_s0 + $0xec] sm:$0xf0] }
 0x4de   :  { %v16451_v28 = vor.u32 %v12942_v36, %v11457_v55  ;;  %v13019_v55 = vld [vmem:[%s19064_s1 + $0x7a0] sm:$0xff] }
 0x4df   :  { %v5119_v4 = vadd.f32 %v5118_v45, %v5051_v1  ;;  %5898 = vmatmul.bf16.gmra.mxu1 %v5509_v19  ;;  %v13027_v36 = vld [vmem:[%s19064_s1 + $0x7e0] sm:$0xff]  ;;  %6982 = vmatpush.bf16.msra.mxu2 %v13019_v55 }
 0x4e0   :  { %19473 = vst [vmem:[#allocation13_spill] sm:$0xff] %v16451_v28  ;;  %7050 = vmatpush.bf16.msra.mxu3 %v13027_v36 }
 0x4e1   :  { %v16436_v32 = vadd.f32 %v5119_v4, %v15946_v15  ;;  %5956 = vmatmul.bf16.gmra.mxu2 %v5495_v11  ;;  %v11459_v15 = vld [vmem:[%s19065_s0 + $0xb8] sm:$0xf0] }
 0x4e2   :  { %6024 = vmatmul.bf16.gmra.mxu3 %v5497_v39  ;;  %v4929_v11 = vpop.f32.mrf.mxu0  ;;  %v16453_v46 = vor.u32 %v12940_v48, %v11459_v15  ;;  %v11481_v39 = vld [vmem:[%s19065_s0 + $0xe0] sm:$0xf]  ;;  %v11483_v48 = vld [vmem:[%s19065_s0 + $0xf0] sm:$0xf0]  ;;  %v5502_v15 = vrot.slane %v16451_v28, 2 }
 0x4e3   :  { %19472 = vst [vmem:[#allocation12_spill] sm:$0xff] %v16436_v32 }
 0x4e4   :  { %v5053_v12 = vpop.f32.mrf.mxu2  ;;  %19474 = vst [vmem:[#allocation14_spill] sm:$0xff] %v16453_v46  ;;  %v4997_v1 = vpop.f32.mrf.mxu1  ;;  %v5503_v32 = vsel %vm4545_vm3, %v5494_v60, %v5502_v15  ;;  %v13011_v60 = vld [vmem:[%s19064_s1 + $0x760] sm:$0xff] }
 0x4e5   :  { %v5054_v34 = vadd.f32 %v5053_v12, %v16311_v31  ;;  %v5121_v4 = vpop.f32.mrf.mxu3  ;;  %v16455_v45 = vadd.f32 %v4997_v1, %v4929_v11  ;;  %v12947_v31 = vld [vmem:[%s19065_s0 + $0xe4] sm:$0xf]  ;;  %v16475_v12 = vor.u32 %v12949_v14, %v11481_v39  ;;  %6914 = vmatpush.bf16.msrb.mxu1 %v13011_v60 }
 0x4e6   :  { %v16481_v11 = vor.u32 %v12947_v31, %v11483_v48 }
 0x4e7   :  { %v5122_v51 = vadd.f32 %v5121_v4, %v5054_v34  ;;  %19476 = vst [vmem:[#allocation19_spill] sm:$0xff] %v16475_v12  ;;  %v5514_v34 = vrot.slane %v16475_v12, 2 }
 0x4e8   :  { %19477 = vst [vmem:[#allocation34_spill] sm:$0xff] %v16481_v11  ;;  %v5516_v1 = vrot.slane %v16481_v11, 2 }
 0x4e9   :  { %v16467_v19 = vadd.f32 %v5122_v51, %v15952_v24  ;;  %v5504_v24 = vrot.slane %v16453_v46, 2 }
 0x4ea   :  { %v4932_v51 = vpop.f32.mrf.mxu0  ;;  %v5517_v55 = vsel %vm4545_vm3, %v5508_v35, %v5516_v1  ;;  %v11475_v35 = vld [vmem:[%s19065_s0 + $0xd8] sm:$0xf0] }
 0x4eb   :  { %19475 = vst [vmem:[#allocation18_spill] sm:$0xff] %v16467_v19  ;;  %v5515_v19 = vsel %vm4545_vm3, %v5506_v44, %v5514_v34  ;;  %v5505_v31 = vsel %vm4545_vm3, %v5496_v43, %v5504_v24  ;;  %v11473_v43 = vld [vmem:[%s19065_s0 + $0xc8] sm:$0xf]  ;;  %v12944_v44 = vld [vmem:[%s19065_s0 + $0xcc] sm:$0xf] }
 0x4ec   :  { %v5055_v4 = vpop.f32.mrf.mxu2  ;;  %v5000_v48 = vpop.f32.mrf.mxu1  ;;  %5835 = vmatmul.bf16.gmra.mxu0 %v5515_v19 }
 0x4ed   :  { %v5056_v39 = vadd.f32 %v5055_v4, %v16339_v23  ;;  %v5123_v14 = vpop.f32.mrf.mxu3  ;;  %v16491_v36 = vadd.f32 %v5000_v48, %v4932_v51  ;;  %v13003_v23 = vld [vmem:[%s19064_s1 + $0x720] sm:$0xff] }
 0x4ee   :  { %6846 = vmatpush.bf16.msrb.mxu0 %v13003_v23  ;;  %v12953_v23 = vld [vmem:[%s19065_s0 + $0x10c] sm:$0xf0] }
 0x4ef   :  { %v5124_v28 = vadd.f32 %v5123_v14, %v5056_v39  ;;  %5903 = vmatmul.bf16.gmra.mxu1 %v5517_v55  ;;  %v16517_v14 = vor.u32 %v12944_v44, %v11475_v35  ;;  %v11497_v55 = vld [vmem:[%s19065_s0 + $0x100] sm:$0xf] }
 0x4f1   :  { %v16494_v12 = vadd.f32 %v5124_v28, %v15972_v52  ;;  %5961 = vmatmul.bf16.gmra.mxu2 %v5503_v32  ;;  %v12946_v52 = vld [vmem:[%s19065_s0 + $0xd4] sm:$0xf0]  ;;  %19479 = vst [vmem:[#allocation20_spill] sm:$0xff] %v16517_v14  ;;  %v5512_v35 = vrot.slane %v16517_v14, 2 }
 0x4f2   :  { %6029 = vmatmul.bf16.gmra.mxu3 %v5505_v31  ;;  %v4934_v28 = vpop.f32.mrf.mxu0  ;;  %v16515_v51 = vor.u32 %v12946_v52, %v11473_v43  ;;  %v16533_v43 = vor.u32 %v12953_v23, %v11497_v55  ;;  %v11499_v52 = vld [vmem:[%s19065_s0 + $0x110] sm:$0xf0] }
 0x4f4   :  { %v5058_v32 = vpop.f32.mrf.mxu2  ;;  %19478 = vst [vmem:[#allocation22_spill] sm:$0xff] %v16515_v51  ;;  %v5002_v31 = vpop.f32.mrf.mxu1 }
 0x4f5   :  { %v5059_v19 = vadd.f32 %v5058_v32, %v16369_v59  ;;  %v5126_v4 = vpop.f32.mrf.mxu3  ;;  %v16519_v48 = vadd.f32 %v5002_v31, %v4934_v28  ;;  %v12951_v59 = vld [vmem:[%s19065_s0 + $0x104] sm:$0xf]  ;;  %19481 = vst [vmem:[#allocation25_spill] sm:$0xff] %v16533_v43  ;;  %v5510_v32 = vrot.slane %v16515_v51, 2  ;;  %v5522_v28 = vrot.slane %v16533_v43, 2 }
 0x4f6   :  { %v16539_v44 = vor.u32 %v12951_v59, %v11499_v52  ;;  %v5513_v51 = vsel %vm4545_vm3, %v5504_v24, %v5512_v35  ;;  %v11489_v24 = vld [vmem:[%s19065_s0 + $0xe8] sm:$0xf] }
 0x4f7   :  { %v5127_v39 = vadd.f32 %v5126_v4, %v5059_v19  ;;  %v5523_v55 = vsel %vm4545_vm3, %v5514_v34, %v5522_v28  ;;  %v5511_v23 = vsel %vm4545_vm3, %v5502_v15, %v5510_v32  ;;  %v13026_v15 = vld [vmem:[%s19064_s1 + $0x7d8] sm:$0xff] }
 0x4f8   :  { %19482 = vst [vmem:[#allocation6_spill] sm:$0xff] %v16539_v44  ;;  %v5524_v31 = vrot.slane %v16539_v44, 2  ;;  %7051 = vmatpush.bf16.msra.mxu3 %v13026_v15 }
 0x4f9   :  { %v16531_v60 = vadd.f32 %v5127_v39, %v15984_v3 }
 0x4fa   :  { %v4937_v4 = vpop.f32.mrf.mxu0  ;;  %v5525_v52 = vsel %vm4545_vm3, %v5516_v1, %v5524_v31  ;;  %v12948_v1 = vld [vmem:[%s19065_s0 + $0xec] sm:$0xf] }
 0x4fb   :  { %19480 = vst [vmem:[#allocation26_spill] sm:$0xff] %v16531_v60 }
 0x4fc   :  { %v5060_v19 = vpop.f32.mrf.mxu2  ;;  %v5005_v59 = vpop.f32.mrf.mxu1  ;;  %5840 = vmatmul.bf16.gmra.mxu0 %v5523_v55 }
 0x4fd   :  { %v5061_v3 = vadd.f32 %v5060_v19, %v16397_v20  ;;  %v5128_v39 = vpop.f32.mrf.mxu3  ;;  %v16549_v14 = vadd.f32 %v5005_v59, %v4937_v4  ;;  %v13018_v20 = vld [vmem:[%s19064_s1 + $0x798] sm:$0xff] }
 0x4fe   :  { %6983 = vmatpush.bf16.msra.mxu2 %v13018_v20  ;;  %v12957_v20 = vld [vmem:[%s19065_s0 + $0x12c] sm:$0xf0] }
 0x4ff   :  { %v5129_v60 = vadd.f32 %v5128_v39, %v5061_v3  ;;  %5908 = vmatmul.bf16.gmra.mxu1 %v5525_v52  ;;  %v11513_v52 = vld [vmem:[%s19065_s0 + $0x120] sm:$0xf] }
 0x501   :  { %v16552_v43 = vadd.f32 %v5129_v60, %v15998_v50  ;;  %5966 = vmatmul.bf16.gmra.mxu2 %v5511_v23  ;;  %v12950_v50 = vld [vmem:[%s19065_s0 + $0xf4] sm:$0xf0] }
 0x502   :  { %6034 = vmatmul.bf16.gmra.mxu3 %v5513_v51  ;;  %v11491_v51 = vld [vmem:[%s19065_s0 + $0xf8] sm:$0xf0]  ;;  %v4939_v60 = vpop.f32.mrf.mxu0  ;;  %v16573_v3 = vor.u32 %v12950_v50, %v11489_v24 }
 0x503   :  { %19483 = vst [vmem:[#allocation15_spill] sm:$0xff] %v16552_v43  ;;  %v16575_v55 = vor.u32 %v12948_v1, %v11491_v51  ;;  %v13002_v24 = vld [vmem:[%s19064_s1 + $0x718] sm:$0xff]  ;;  %v11515_v1 = vld [vmem:[%s19065_s0 + $0x130] sm:$0xf0] }
 0x504   :  { %v5063_v34 = vpop.f32.mrf.mxu2  ;;  %19484 = vst [vmem:[#allocation27_spill] sm:$0xff] %v16573_v3  ;;  %v5007_v23 = vpop.f32.mrf.mxu1  ;;  %v13010_v50 = vld [vmem:[%s19064_s1 + $0x758] sm:$0xff]  ;;  %v5518_v51 = vrot.slane %v16573_v3, 2  ;;  %6847 = vmatpush.bf16.msrb.mxu0 %v13002_v24 }
 0x505   :  { %v5064_v19 = vadd.f32 %v5063_v34, %v16433_v22  ;;  %v5131_v4 = vpop.f32.mrf.mxu3  ;;  %19485 = vst [vmem:[#allocation28_spill] sm:$0xff] %v16575_v55  ;;  %v16577_v59 = vadd.f32 %v5007_v23, %v4939_v60  ;;  %v12955_v22 = vld [vmem:[%s19065_s0 + $0x124] sm:$0xf]  ;;  %v16597_v34 = vor.u32 %v12957_v20, %v11513_v52  ;;  %6915 = vmatpush.bf16.msrb.mxu1 %v13010_v50 }
 0x506   :  { %v16603_v60 = vor.u32 %v12955_v22, %v11515_v1  ;;  %v5519_v43 = vsel %vm4545_vm3, %v5510_v32, %v5518_v51  ;;  %v12954_v32 = vld [vmem:[%s19065_s0 + $0x114] sm:$0xf0] }
 0x507   :  { %v5132_v39 = vadd.f32 %v5131_v4, %v5064_v19  ;;  %19487 = vst [vmem:[#allocation35_spill] sm:$0xff] %v16597_v34  ;;  %v5530_v19 = vrot.slane %v16597_v34, 2 }
 0x508   :  { %19488 = vst [vmem:[#allocation32_spill] sm:$0xff] %v16603_v60  ;;  %v5532_v23 = vrot.slane %v16603_v60, 2 }
 0x509   :  { %v16589_v15 = vadd.f32 %v5132_v39, %v16010_v21  ;;  %v5520_v21 = vrot.slane %v16575_v55, 2 }
 0x50a   :  { %v4942_v39 = vpop.f32.mrf.mxu0  ;;  %v5533_v24 = vsel %vm4545_vm3, %v5524_v31, %v5532_v23 }
 0x50b   :  { %19486 = vst [vmem:[#allocation10_spill] sm:$0xff] %v16589_v15  ;;  %v5531_v15 = vsel %vm4545_vm3, %v5522_v28, %v5530_v19  ;;  %v5521_v22 = vsel %vm4545_vm3, %v5512_v35, %v5520_v21  ;;  %v12952_v28 = vld [vmem:[%s19065_s0 + $0x10c] sm:$0xf] }
 0x50c   :  { %v5065_v4 = vpop.f32.mrf.mxu2  ;;  %v5010_v1 = vpop.f32.mrf.mxu1  ;;  %5845 = vmatmul.bf16.gmra.mxu0 %v5531_v15 }
 0x50d   :  { %v5066_v52 = vadd.f32 %v5065_v4, %v16455_v45  ;;  %v5133_v20 = vpop.f32.mrf.mxu3  ;;  %v16613_v50 = vadd.f32 %v5010_v1, %v4942_v39  ;;  %v11505_v45 = vld [vmem:[%s19065_s0 + $0x108] sm:$0xf]  ;;  %v12959_v1 = vld [vmem:[%s19065_s0 + $0x144] sm:$0xf] }
 0x50e   :  { %v16631_v15 = vor.u32 %v12954_v32, %v11505_v45  ;;  %v13025_v45 = vld [vmem:[%s19064_s1 + $0x7d0] sm:$0xff] }
 0x50f   :  { %v5134_v3 = vadd.f32 %v5133_v20, %v5066_v52  ;;  %5913 = vmatmul.bf16.gmra.mxu1 %v5533_v24  ;;  %v11529_v20 = vld [vmem:[%s19065_s0 + $0x140] sm:$0xf]  ;;  %v13017_v24 = vld [vmem:[%s19064_s1 + $0x790] sm:$0xff]  ;;  %7052 = vmatpush.bf16.msra.mxu3 %v13025_v45 }
 0x510   :  { %6984 = vmatpush.bf16.msra.mxu2 %v13017_v24  ;;  %v13009_v24 = vld [vmem:[%s19064_s1 + $0x750] sm:$0xff] }
 0x511   :  { %v16616_v34 = vadd.f32 %v5134_v3, %v16030_v10  ;;  %5971 = vmatmul.bf16.gmra.mxu2 %v5519_v43  ;;  %v11507_v10 = vld [vmem:[%s19065_s0 + $0x118] sm:$0xf0]  ;;  %6916 = vmatpush.bf16.msrb.mxu1 %v13009_v24 }
 0x512   :  { %6039 = vmatmul.bf16.gmra.mxu3 %v5521_v22  ;;  %v4944_v43 = vpop.f32.mrf.mxu0  ;;  %v16633_v39 = vor.u32 %v12952_v28, %v11507_v10  ;;  %v12961_v22 = vld [vmem:[%s19065_s0 + $0x14c] sm:$0xf0]  ;;  %v5526_v28 = vrot.slane %v16631_v15, 2 }
 0x513   :  { %v16653_v32 = vor.u32 %v12961_v22, %v11529_v20 }
 0x514   :  { %v5068_v35 = vpop.f32.mrf.mxu2  ;;  %v5012_v52 = vpop.f32.mrf.mxu1  ;;  %v5527_v45 = vsel %vm4545_vm3, %v5518_v51, %v5526_v28  ;;  %v11521_v51 = vld [vmem:[%s19065_s0 + $0x128] sm:$0xf] }
 0x515   :  { %v5069_v31 = vadd.f32 %v5068_v35, %v16491_v36  ;;  %v5136_v3 = vpop.f32.mrf.mxu3  ;;  %19490 = vst [vmem:[#allocation5_spill] sm:$0xff] %v16653_v32  ;;  %v11531_v35 = vld [vmem:[%s19065_s0 + $0x150] sm:$0xf0]  ;;  %v5538_v43 = vrot.slane %v16653_v32, 2 }
 0x516   :  { %v16659_v10 = vor.u32 %v12959_v1, %v11531_v35  ;;  %v13001_v1 = vld [vmem:[%s19064_s1 + $0x710] sm:$0xff] }
 0x517   :  { %v5137_v4 = vadd.f32 %v5136_v3, %v5069_v31  ;;  %v5539_v22 = vsel %vm4545_vm3, %v5530_v19, %v5538_v43  ;;  %6848 = vmatpush.bf16.msrb.mxu0 %v13001_v1 }
 0x518   :  { %19491 = vst [vmem:[#allocation38_spill] sm:$0xff] %v16659_v10 }
 0x519   :  { %v16645_v36 = vadd.f32 %v5137_v4, %v16034_v42  ;;  %v5528_v42 = vrot.slane %v16633_v39, 2  ;;  %v5540_v4 = vrot.slane %v16659_v10, 2 }
 0x51a   :  { %v5811_v3 = vpop.f32.mrf.mxu0 }
 0x51b   :  { %19489 = vst [vmem:[#allocation17_spill] sm:$0xff] %v16645_v36  ;;  %v5529_v36 = vsel %vm4545_vm3, %v5520_v21, %v5528_v42  ;;  %v12958_v21 = vld [vmem:[%s19065_s0 + $0x134] sm:$0xf0] }
 0x51c   :  { %v5070_v31 = vpop.f32.mrf.mxu2  ;;  %v5879_v32 = vpop.f32.mrf.mxu1  ;;  %5850 = vmatmul.bf16.gmra.mxu0 %v5539_v22 }
 0x51d   :  { %v5071_v52 = vadd.f32 %v5070_v31, %v16519_v48  ;;  %v5138_v20 = vpop.f32.mrf.mxu3  ;;  %v5541_v48 = vsel %vm4545_vm3, %v5532_v23, %v5540_v4  ;;  %v16675_v31 = vadd.f32 %v5879_v32, %v5811_v3  ;;  %v12956_v23 = vld [vmem:[%s19065_s0 + $0x12c] sm:$0xf] }
 0x51f   :  { %v5139_v35 = vadd.f32 %v5138_v20, %v5071_v52  ;;  %5918 = vmatmul.bf16.gmra.mxu1 %v5541_v48  ;;  %v16693_v20 = vor.u32 %v12958_v21, %v11521_v51  ;;  %v12965_v48 = vld [vmem:[%s19065_s0 + $0x16c] sm:$0xf0] }
 0x521   :  { %v16678_v19 = vadd.f32 %v5139_v35, %v16060_v30  ;;  %5976 = vmatmul.bf16.gmra.mxu2 %v5527_v45  ;;  %v11523_v30 = vld [vmem:[%s19065_s0 + $0x138] sm:$0xf0]  ;;  %19493 = vst [vmem:[#allocation41_spill] sm:$0xff] %v16693_v20  ;;  %v11545_v35 = vld [vmem:[%s19065_s0 + $0x160] sm:$0xf] }
 0x522   :  { %6044 = vmatmul.bf16.gmra.mxu3 %v5529_v36  ;;  %v5813_v32 = vpop.f32.mrf.mxu0  ;;  %v16695_v1 = vor.u32 %v12956_v23, %v11523_v30  ;;  %v16711_v21 = vor.u32 %v12965_v48, %v11545_v35  ;;  %v5534_v23 = vrot.slane %v16693_v20, 2 }
 0x523   :  { %19492 = vst [vmem:[#allocation40_spill] sm:$0xff] %v16678_v19 }
 0x524   :  { %v5073_v52 = vpop.f32.mrf.mxu2  ;;  %19494 = vst [vmem:[#allocation33_spill] sm:$0xff] %v16695_v1  ;;  %v5881_v24 = vpop.f32.mrf.mxu1  ;;  %v5535_v48 = vsel %vm4545_vm3, %v5526_v28, %v5534_v23  ;;  %v13024_v28 = vld [vmem:[%s19064_s1 + $0x7c8] sm:$0xff] }
 0x525   :  { %v5074_v36 = vadd.f32 %v5073_v52, %v16549_v14  ;;  %v5141_v3 = vpop.f32.mrf.mxu3  ;;  %v16697_v45 = vadd.f32 %v5881_v24, %v5813_v32  ;;  %v12963_v14 = vld [vmem:[%s19065_s0 + $0x164] sm:$0xf]  ;;  %19496 = vst [vmem:[#allocation43_spill] sm:$0xff] %v16711_v21  ;;  %v11547_v52 = vld [vmem:[%s19065_s0 + $0x170] sm:$0xf0]  ;;  %v5536_v32 = vrot.slane %v16695_v1, 2  ;;  %7053 = vmatpush.bf16.msra.mxu3 %v13024_v28 }
 0x526   :  { %v16717_v30 = vor.u32 %v12963_v14, %v11547_v52  ;;  %v13008_v28 = vld [vmem:[%s19064_s1 + $0x748] sm:$0xff] }
 0x527   :  { %v5142_v22 = vadd.f32 %v5141_v3, %v5074_v36  ;;  %v5546_v36 = vrot.slane %v16711_v21, 2  ;;  %v5537_v20 = vsel %vm4545_vm3, %v5528_v42, %v5536_v32  ;;  %v11537_v42 = vld [vmem:[%s19065_s0 + $0x148] sm:$0xf]  ;;  %6917 = vmatpush.bf16.msrb.mxu1 %v13008_v28 }
 0x528   :  { %19497 = vst [vmem:[#allocation44_spill] sm:$0xff] %v16717_v30  ;;  %v5548_v19 = vrot.slane %v16717_v30, 2 }
 0x529   :  { %v16709_v51 = vadd.f32 %v5142_v22, %v16066_v37  ;;  %v5547_v35 = vsel %vm4545_vm3, %v5538_v43, %v5546_v36 }
 0x52a   :  { %v5816_v24 = vpop.f32.mrf.mxu0  ;;  %v5549_v52 = vsel %vm4545_vm3, %v5540_v4, %v5548_v19  ;;  %v12960_v4 = vld [vmem:[%s19065_s0 + $0x14c] sm:$0xf] }
 0x52b   :  { %19495 = vst [vmem:[#allocation23_spill] sm:$0xff] %v16709_v51 }
 0x52c   :  { %v5075_v3 = vpop.f32.mrf.mxu2  ;;  %v5884_v14 = vpop.f32.mrf.mxu1  ;;  %5855 = vmatmul.bf16.gmra.mxu0 %v5547_v35 }
 0x52d   :  { %v5076_v37 = vadd.f32 %v5075_v3, %v16577_v59  ;;  %v5143_v22 = vpop.f32.mrf.mxu3  ;;  %v16727_v1 = vadd.f32 %v5884_v14, %v5816_v24  ;;  %v13016_v59 = vld [vmem:[%s19064_s1 + $0x788] sm:$0xff] }
 0x52e   :  { %6985 = vmatpush.bf16.msra.mxu2 %v13016_v59 }
 0x52f   :  { %v5144_v51 = vadd.f32 %v5143_v22, %v5076_v37  ;;  %5923 = vmatmul.bf16.gmra.mxu1 %v5549_v52  ;;  %v5217_v22 = vld [vmem:[%s19065_s0 + $0x180] sm:$0x77] }
 0x530   :  { %v5418_v52 = vunpack.c.l.b16 %v5217_v22 }
 0x531   :  { %v16730_v21 = vadd.f32 %v5144_v51, %v16080_v26  ;;  %5981 = vmatmul.bf16.gmra.mxu2 %v5535_v48  ;;  %v12962_v26 = vld [vmem:[%s19065_s0 + $0x154] sm:$0xf0] }
 0x532   :  { %6049 = vmatmul.bf16.gmra.mxu3 %v5537_v20  ;;  %v11539_v20 = vld [vmem:[%s19065_s0 + $0x158] sm:$0xf0]  ;;  %v5818_v51 = vpop.f32.mrf.mxu0  ;;  %v16751_v37 = vor.u32 %v12962_v26, %v11537_v42  ;;  %v5466_v42 = vpack.c.b16 %v5418_v52, %v5418_v52 }
 0x533   :  { %19498 = vst [vmem:[#allocation16_spill] sm:$0xff] %v16730_v21  ;;  %v16756_v48 = vor.u32 %v12960_v4, %v11539_v20  ;;  %v5419_v21 = vunpack.c.h.b16 %v5217_v22 }
 0x534   :  { %v5078_v43 = vpop.f32.mrf.mxu2  ;;  %19499 = vst [vmem:[#allocation21_spill] sm:$0xff] %v16751_v37  ;;  %v5886_v14 = vpop.f32.mrf.mxu1  ;;  %v5554_v20 = vrot.slane %v5466_v42, 2 }
 0x535   :  { %v5079_v3 = vadd.f32 %v5078_v43, %v16613_v50  ;;  %v5146_v24 = vpop.f32.mrf.mxu3  ;;  %19500 = vst [vmem:[#allocation9_spill] sm:$0xff] %v16756_v48  ;;  %v16758_v30 = vadd.f32 %v5886_v14, %v5818_v51  ;;  %v13000_v50 = vld [vmem:[%s19064_s1 + $0x708] sm:$0xff]  ;;  %v5467_v26 = vpack.c.b16 %v5419_v21, %v5419_v21  ;;  %v5542_v43 = vrot.slane %v16751_v37, 2 }
 0x536   :  { %v5544_v4 = vrot.slane %v16756_v48, 2  ;;  %6849 = vmatpush.bf16.msrb.mxu0 %v13000_v50  ;;  %v5555_v22 = vsel %vm4545_vm3, %v5546_v36, %v5554_v20  ;;  %v11553_v50 = vld [vmem:[%s19065_s0 + $0x168] sm:$0xf]  ;;  %v12966_v36 = vld [vmem:[%s19065_s0 + $0x174] sm:$0xf0] }
 0x537   :  { %v5147_v35 = vadd.f32 %v5146_v24, %v5079_v3  ;;  %v5556_v51 = vrot.slane %v5467_v26, 2  ;;  %v16790_v26 = vor.u32 %v12966_v36, %v11553_v50  ;;  %v5218_v36 = vld [vmem:[%s19065_s0 + $0x188] sm:$0x77] }
 0x538   :  { %v5545_v14 = vsel %vm4545_vm3, %v5536_v32, %v5544_v4  ;;  %v12964_v32 = vld [vmem:[%s19065_s0 + $0x16c] sm:$0xf] }
 0x539   :  { %v16761_v59 = vadd.f32 %v5147_v35, %v16092_v47  ;;  %v5543_v35 = vsel %vm4545_vm3, %v5534_v23, %v5542_v43  ;;  %v5557_v21 = vsel %vm4545_vm3, %v5548_v19, %v5556_v51  ;;  %v11555_v19 = vld [vmem:[%s19065_s0 + $0x178] sm:$0xf0]  ;;  %19502 = vst [vmem:[#allocation7_spill] sm:$0xff] %v16790_v26 }
 0x53a   :  { %v5821_v3 = vpop.f32.mrf.mxu0 }
 0x53b   :  { %19501 = vst [vmem:[#allocation24_spill] sm:$0xff] %v16761_v59 }
 0x53c   :  { %v5080_v47 = vpop.f32.mrf.mxu2  ;;  %v5889_v59 = vpop.f32.mrf.mxu1  ;;  %5860 = vmatmul.bf16.gmra.mxu0 %v5555_v22 }
 0x53d   :  { %v5148_v24 = vpop.f32.mrf.mxu3  ;;  %v16775_v52 = vadd.f32 %v5889_v59, %v5821_v3  ;;  %v16792_v3 = vor.u32 %v12964_v32, %v11555_v19 }
 0x53f   :  { %5928 = vmatmul.bf16.gmra.mxu1 %v5557_v21  ;;  %19503 = vst [vmem:[#allocation48_spill] sm:$0xff] %v16792_v3  ;;  %v5550_v21 = vrot.slane %v16790_v26, 2  ;;  %v19220_v50 = vrot.slane %v16792_v3, 2 }
 0x541   :  { %5986 = vmatmul.bf16.gmra.mxu2 %v5543_v35 }
 0x542   :  { %6054 = vmatmul.bf16.gmra.mxu3 %v5545_v14  ;;  %v5823_v59 = vpop.f32.mrf.mxu0  ;;  %v13015_v14 = vld [vmem:[%s19064_s1 + $0x780] sm:$0xff] }
 0x543   :  { %6986 = vmatpush.bf16.msra.mxu2 %v13015_v14 }
 0x544   :  { %v5947_v23 = vpop.f32.mrf.mxu2  ;;  %v5891_v24 = vpop.f32.mrf.mxu1 }
 0x545   :  { %v5948_v28 = vadd.f32 %v5947_v23, %v16675_v31  ;;  %v6015_v42 = vpop.f32.mrf.mxu3  ;;  %v16794_v22 = vadd.f32 %v5891_v24, %v5823_v59  ;;  %v13023_v31 = vld [vmem:[%s19064_s1 + $0x7c0] sm:$0xff]  ;;  %v5551_v59 = vsel %vm4545_vm3, %v5542_v43, %v5550_v21 }
 0x546   :  { %7054 = vmatpush.bf16.msra.mxu3 %v13023_v31  ;;  %v13007_v43 = vld [vmem:[%s19064_s1 + $0x740] sm:$0xff] }
 0x547   :  { %v6016_v47 = vadd.f32 %v6015_v42, %v5948_v28  ;;  %v5420_v28 = vunpack.c.l.b16 %v5218_v36  ;;  %6918 = vmatpush.bf16.msrb.mxu1 %v13007_v43 }
 0x549   :  { %v16797_v35 = vadd.f32 %v6016_v47, %v16114_v62  ;;  %v5553_v47 = vsel %vm4545_vm3, %v5544_v4, %v19220_v50  ;;  %v16826_v31 = vpack.c.b16 %v5420_v28, %v5420_v28  ;;  %v5421_v4 = vunpack.c.h.b16 %v5218_v36 }
 0x54a   :  { %v5826_v23 = vpop.f32.mrf.mxu0  ;;  %v6179_v28 = vshll.u32 %v16165_v29, 16  ;;  %v6184_v36 = vshrl.u32 %v16167_v33, 16 }
 0x54b   :  { %19504 = vst [vmem:[#allocation49_spill] sm:$0xff] %v16797_v35 }
 0x54c   :  { %v5949_v62 = vpop.f32.mrf.mxu2  ;;  %v5894_v24 = vpop.f32.mrf.mxu1  ;;  %5865 = vmatmul.bf16.gmra.mxu0 %v5554_v20 }
 0x54d   :  { %v5950_v32 = vadd.f32 %v5949_v62, %v16697_v45  ;;  %v6017_v19 = vpop.f32.mrf.mxu3  ;;  %v16815_v35 = vadd.f32 %v5894_v24, %v5826_v23  ;;  %v12999_v45 = vld [vmem:[%s19064_s1 + $0x700] sm:$0xff]  ;;  %v6176_v24 = vshrl.u32 %v16165_v29, 16  ;;  %v6201_v29 = vshrl.u32 %v16177_v5, 16 }
 0x54e   :  { %6850 = vmatpush.bf16.msrb.mxu0 %v12999_v45  ;;  %v6193_v45 = vshrl.u32 %v16175_v49, 16 }
 0x54f   :  { %v6018_v42 = vadd.f32 %v6017_v19, %v5950_v32  ;;  %5933 = vmatmul.bf16.gmra.mxu1 %v5556_v51  ;;  %v16830_v19 = vpack.c.b16 %v5421_v4, %v5421_v4  ;;  %v6178_v4 = vrot.slane %v6176_v24, 2  ;;  %v6203_v48 = vrot.slane %v6201_v29, 2 }
 0x550   :  { %v6195_v50 = vrot.slane %v6193_v45, 2 }
 0x551   :  { %v16818_v14 = vadd.f32 %v6018_v42, %v16130_v16  ;;  %5991 = vmatmul.bf16.gmra.mxu2 %v5551_v59 }
 0x552   :  { %6059 = vmatmul.bf16.gmra.mxu3 %v5553_v47  ;;  %v5828_v62 = vpop.f32.mrf.mxu0  ;;  %v6187_v47 = vshll.u32 %v16167_v33, 16  ;;  %v6204_v33 = vshll.u32 %v16177_v5, 16 }
 0x553   :  { %19505 = vst [vmem:[#allocation50_spill] sm:$0xff] %v16818_v14 }
 0x554   :  { %v5952_v20 = vpop.f32.mrf.mxu2  ;;  %v5896_v42 = vpop.f32.mrf.mxu1 }
 0x555   :  { %v5953_v16 = vadd.f32 %v5952_v20, %v16727_v1  ;;  %v6020_v23 = vpop.f32.mrf.mxu3  ;;  %v16835_v51 = vadd.f32 %v5896_v42, %v5828_v62  ;;  %v6196_v1 = vshll.u32 %v16175_v49, 16  ;;  %v6181_v20 = vrot.slane %v6179_v28, 3 }
 0x556   :  { %v5560_v62 = vrot.slane %v16830_v19, 2  ;;  %v6206_v28 = vrot.slane %v6204_v33, 3 }
 0x557   :  { %v6021_v59 = vadd.f32 %v6020_v23, %v5953_v16  ;;  %v6186_v16 = vrot.slane %v6184_v36, 2  ;;  %v6189_v23 = vrot.slane %v6187_v47, 3  ;;  %v6198_v32 = vrot.slane %v6196_v1, 3 }
 0x558   :  { %v6182_v42 = vor.u32 %v6181_v20, %v6178_v4  ;;  %v19506_v36 = vrot.slane %v16826_v31, 2  ;;  %v19507_v4 = vrot.slane %v16792_v3, 2 }
 0x559   :  { %v16841_v43 = vadd.f32 %v6021_v59, %v16161_v6  ;;  %v6190_v49 = vor.u32 %v6189_v23, %v6186_v16  ;;  %v6199_v24 = vor.u32 %v6198_v32, %v6195_v50  ;;  %v6207_v23 = vor.u32 %v6206_v28, %v6203_v48  ;;  %v13054_v50 = vld [vmem:[%s19064_s1 + $0x8b8] sm:$0xff] }
 0x55a   :  { %v5831_v26 = vpop.f32.mrf.mxu0  ;;  %v5559_v47 = vsel %vm4545_vm3, %v5550_v21, %v19506_v36  ;;  %v5561_v20 = vsel %vm4545_vm3, %v19507_v4, %v5560_v62  ;;  %7684 = vmatpush.bf16.msrb.mxu2 %v13054_v50  ;;  %v6256_v36 = vshll.u32 %v16226_v61, 16 }
 0x55b   :  { %v6191_v45 = vsel %vm6174_vm4, %v6182_v42, %v6190_v49  ;;  %v6208_v21 = vsel %vm6174_vm4, %v6199_v24, %v6207_v23  ;;  %v6253_v24 = vshrl.u32 %v16226_v61, 16 }
 0x55c   :  { %v5954_v14 = vpop.f32.mrf.mxu2  ;;  %v5899_v16 = vpop.f32.mrf.mxu1  ;;  %6851 = vmatmul.bf16.vlgmr.msrb.gmra.mxu0 %v6191_v45  ;;  %v13046_v45 = vld [vmem:[%s19064_s1 + $0x878] sm:$0xff] }
 0x55d   :  { %v5955_v6 = vadd.f32 %v5954_v14, %v16758_v30  ;;  %v6022_v59 = vpop.f32.mrf.mxu3  ;;  %v16856_v30 = vadd.f32 %v5899_v16, %v5831_v26  ;;  %v13062_v14 = vld [vmem:[%s19064_s1 + $0x8f8] sm:$0xff]  ;;  %v6258_v16 = vrot.slane %v6256_v36, 3  ;;  %7616 = vmatpush.bf16.msra.mxu1 %v13046_v45  ;;  %v19508_v36 = vrot.slane %v16826_v31, 2 }
 0x55e   :  { %7752 = vmatpush.bf16.msrb.mxu3 %v13062_v14  ;;  %v6230_v45 = vshll.u32 %v16269_v54, 16 }
 0x55f   :  { %v6023_v1 = vadd.f32 %v6022_v59, %v5955_v6  ;;  %6919 = vmatmul.bf16.vlgmr.msrb.gmra.mxu1 %v6208_v21  ;;  %v6244_v6 = vshrl.u32 %v16221_v7, 16  ;;  %v6247_v59 = vshll.u32 %v16221_v7, 16 }
 0x561   :  { %v16859_v33 = vadd.f32 %v6023_v1, %v16192_v27  ;;  %5996 = vmatmul.bf16.gmra.mxu2 %v5559_v47  ;;  %v6246_v1 = vrot.slane %v6244_v6, 2  ;;  %v6249_v4 = vrot.slane %v6247_v59, 3  ;;  %v6210_v6 = vshrl.u32 %v16263_v58, 16 }
 0x562   :  { %6064 = vmatmul.bf16.gmra.mxu3 %v5561_v20  ;;  %v5833_v48 = vpop.f32.mrf.mxu0  ;;  %v6255_v20 = vrot.slane %v6253_v24, 2 }
 0x563   :  { %v16884_v21 = vor.u32 %v6249_v4, %v6246_v1  ;;  %v6235_v1 = vshrl.u32 %v16271_v0, 16  ;;  %v6212_v4 = vrot.slane %v6210_v6, 2 }
 0x564   :  { %v5957_v32 = vpop.f32.mrf.mxu2  ;;  %v5901_v42 = vpop.f32.mrf.mxu1 }
 0x565   :  { %v5958_v27 = vadd.f32 %v5957_v32, %v16775_v52  ;;  %v6025_v26 = vpop.f32.mrf.mxu3  ;;  %v16872_v28 = vadd.f32 %v5901_v42, %v5833_v48  ;;  %v13038_v52 = vld [vmem:[%s19064_s1 + $0x838] sm:$0xff] }
 0x566   :  { %7548 = vmatpush.bf16.msra.mxu0 %v13038_v52  ;;  %v6221_v52 = vshll.u32 %v16265_v18, 16 }
 0x567   :  { %v6026_v29 = vadd.f32 %v6025_v26, %v5958_v27  ;;  %v6251_v27 = vsel %vm6174_vm4, %v6190_v49, %v16884_v21  ;;  %v6218_v49 = vshrl.u32 %v16265_v18, 16 }
 0x569   :  { %v16876_v47 = vadd.f32 %v6026_v29, %v16213_v8  ;;  %v16886_v8 = vor.u32 %v6258_v16, %v6255_v20 }
 0x56a   :  { %v5836_v14 = vpop.f32.mrf.mxu0 }
 0x56b   :  { %v6260_v42 = vsel %vm6174_vm4, %v6207_v23, %v16886_v8  ;;  %v6227_v23 = vshrl.u32 %v16269_v54, 16 }
 0x56c   :  { %v5959_v50 = vpop.f32.mrf.mxu2  ;;  %v5904_v29 = vpop.f32.mrf.mxu1  ;;  %6856 = vmatmul.bf16.gmra.mxu0 %v6251_v27 }
 0x56d   :  { %v5960_v32 = vadd.f32 %v5959_v50, %v16794_v22  ;;  %v6027_v48 = vpop.f32.mrf.mxu3  ;;  %v16894_v59 = vadd.f32 %v5904_v29, %v5836_v14  ;;  %v6213_v22 = vshll.u32 %v16263_v58, 16  ;;  %v6220_v14 = vrot.slane %v6218_v49, 2  ;;  %v13053_v49 = vld [vmem:[%s19064_s1 + $0x8b0] sm:$0xff] }
 0x56e   :  { %v6229_v19 = vrot.slane %v6227_v23, 2  ;;  %v6280_v29 = vshrl.u32 %v16293_v53, 16  ;;  %7685 = vmatpush.bf16.msrb.mxu2 %v13053_v49 }
 0x56f   :  { %v6028_v26 = vadd.f32 %v6027_v48, %v5960_v32  ;;  %6924 = vmatmul.bf16.gmra.mxu1 %v6260_v42  ;;  %v6215_v50 = vrot.slane %v6213_v22, 3  ;;  %v6223_v32 = vrot.slane %v6221_v52, 3  ;;  %v6237_v48 = vrot.slane %v6235_v1, 2  ;;  %v13061_v52 = vld [vmem:[%s19064_s1 + $0x8f0] sm:$0xff] }
 0x570   :  { %v6289_v42 = vshrl.u32 %v16300_v25, 16  ;;  %v6282_v23 = vrot.slane %v6280_v29, 2  ;;  %7753 = vmatpush.bf16.msrb.mxu3 %v13061_v52 }
 0x571   :  { %v16897_v24 = vadd.f32 %v6028_v26, %v16244_v9  ;;  %6001 = vmatmul.bf16.gmra.mxu2 %v19508_v36  ;;  %v6238_v9 = vshll.u32 %v16271_v0, 16  ;;  %v6283_v36 = vshll.u32 %v16293_v53, 16 }
 0x572   :  { %6069 = vmatmul.bf16.gmra.mxu3 %v5560_v62  ;;  %v5838_v20 = vpop.f32.mrf.mxu0  ;;  %v6232_v62 = vrot.slane %v6230_v45, 3  ;;  %v6291_v1 = vrot.slane %v6289_v42, 2 }
 0x573   :  { %v6240_v27 = vrot.slane %v6238_v9, 3  ;;  %v6285_v45 = vrot.slane %v6283_v36, 3  ;;  %v6216_v9 = vor.u32 %v6215_v50, %v6212_v4 }
 0x574   :  { %v5962_v31 = vpop.f32.mrf.mxu2  ;;  %v5906_v54 = vpop.f32.mrf.mxu1 }
 0x575   :  { %v5963_v58 = vadd.f32 %v5962_v31, %v16815_v35  ;;  %v6030_v16 = vpop.f32.mrf.mxu3  ;;  %v16914_v6 = vadd.f32 %v5906_v54, %v5838_v20  ;;  %v6292_v35 = vshll.u32 %v16300_v25, 16  ;;  %v6224_v31 = vor.u32 %v6223_v32, %v6220_v14 }
 0x577   :  { %v6031_v26 = vadd.f32 %v6030_v16, %v5963_v58  ;;  %v6294_v20 = vrot.slane %v6292_v35, 3  ;;  %v6233_v58 = vor.u32 %v6232_v62, %v6229_v19  ;;  %v6241_v16 = vor.u32 %v6240_v27, %v6237_v48 }
 0x578   :  { %v6225_v29 = vsel %vm6174_vm4, %v6216_v9, %v6224_v31  ;;  %v6319_v9 = vshll.u32 %v16353_v17, 16 }
 0x579   :  { %v16918_v22 = vadd.f32 %v6031_v26, %v16285_v41  ;;  %v6286_v41 = vor.u32 %v6285_v45, %v6282_v23  ;;  %v6295_v25 = vor.u32 %v6294_v20, %v6291_v1  ;;  %v6242_v4 = vsel %vm6174_vm4, %v6233_v58, %v6241_v16 }
 0x57a   :  { %v5841_v54 = vpop.f32.mrf.mxu0  ;;  %v6316_v1 = vshrl.u32 %v16353_v17, 16  ;;  %v6325_v20 = vshrl.u32 %v16359_v57, 16 }
 0x57b   :  { %v6287_v18 = vsel %vm6174_vm4, %v16884_v21, %v6286_v41  ;;  %v6296_v14 = vsel %vm6174_vm4, %v16886_v8, %v6295_v25  ;;  %v6271_v21 = vshrl.u32 %v16337_v13, 16  ;;  %v6274_v8 = vshll.u32 %v16337_v13, 16 }
 0x57c   :  { %v5964_v26 = vpop.f32.mrf.mxu2  ;;  %v5909_v50 = vpop.f32.mrf.mxu1  ;;  %6861 = vmatmul.bf16.gmra.mxu0 %v6287_v18  ;;  %v6262_v18 = vshrl.u32 %v16335_v2, 16 }
 0x57d   :  { %v5965_v53 = vadd.f32 %v5964_v26, %v16835_v51  ;;  %v6032_v0 = vpop.f32.mrf.mxu3  ;;  %v16933_v32 = vadd.f32 %v5909_v50, %v5841_v54  ;;  %v13037_v51 = vld [vmem:[%s19064_s1 + $0x830] sm:$0xff]  ;;  %v6273_v49 = vrot.slane %v6271_v21, 2  ;;  %v6276_v52 = vrot.slane %v6274_v8, 3 }
 0x57e   :  { %7549 = vmatpush.bf16.msra.mxu0 %v13037_v51  ;;  %v6264_v42 = vrot.slane %v6262_v18, 2  ;;  %v6328_v26 = vshll.u32 %v16359_v57, 16 }
 0x57f   :  { %v6033_v36 = vadd.f32 %v6032_v0, %v5965_v53  ;;  %v13045_v0 = vld [vmem:[%s19064_s1 + $0x870] sm:$0xff]  ;;  %v6265_v53 = vshll.u32 %v16335_v2, 16  ;;  %6929 = vmatmul.bf16.gmra.mxu1 %v6296_v14  ;;  %v16960_v14 = vor.u32 %v6276_v52, %v6273_v49 }
 0x580   :  { %7617 = vmatpush.bf16.msra.mxu1 %v13045_v0  ;;  %v6330_v50 = vrot.slane %v6328_v26, 3  ;;  %v19509_v49 = vld [vmem:[#allocation47_spill] sm:$0xff] }
 0x581   :  { %v16936_v19 = vadd.f32 %v6033_v36, %v16314_v56  ;;  %6987 = vmatmul.bf16.vlgmr.msra.gmra.mxu2 %v6225_v29  ;;  %v6267_v35 = vrot.slane %v6265_v53, 3  ;;  %v6321_v29 = vrot.slane %v6319_v9, 3  ;;  %v6327_v36 = vrot.slane %v6325_v20, 2 }
 0x582   :  { %7055 = vmatmul.bf16.vlgmr.msra.gmra.mxu3 %v6242_v4  ;;  %v5843_v62 = vpop.f32.mrf.mxu0 }
 0x583   :  { %v16958_v4 = vor.u32 %v6267_v35, %v6264_v42  ;;  %v6331_v53 = vor.u32 %v6330_v50, %v6327_v36 }
 0x584   :  { %v5967_v56 = vpop.f32.mrf.mxu2  ;;  %v5911_v45 = vpop.f32.mrf.mxu1 }
 0x585   :  { %v5968_v48 = vadd.f32 %v5967_v56, %v16856_v30  ;;  %v6035_v27 = vpop.f32.mrf.mxu3  ;;  %v16952_v58 = vadd.f32 %v5911_v45, %v5843_v62  ;;  %v6318_v30 = vrot.slane %v6316_v1, 2  ;;  %v6332_v42 = vsel %vm6174_vm4, %v6295_v25, %v6331_v53  ;;  %v13052_v25 = vld [vmem:[%s19064_s1 + $0x8a8] sm:$0xff] }
 0x586   :  { %v6310_v45 = vshll.u32 %v16395_v63, 16  ;;  %7686 = vmatpush.bf16.msrb.mxu2 %v13052_v25 }
 0x587   :  { %v6036_v23 = vadd.f32 %v6035_v27, %v5968_v48  ;;  %v6322_v51 = vor.u32 %v6321_v29, %v6318_v30  ;;  %v6278_v48 = vsel %vm6174_vm4, %v6241_v16, %v16960_v14  ;;  %v13060_v16 = vld [vmem:[%s19064_s1 + $0x8e8] sm:$0xff] }
 0x588   :  { %7754 = vmatpush.bf16.msrb.mxu3 %v13060_v16  ;;  %v6312_v50 = vrot.slane %v6310_v45, 3 }
 0x589   :  { %v16956_v54 = vadd.f32 %v6036_v23, %v16351_v38  ;;  %v6323_v56 = vsel %vm6174_vm4, %v6286_v41, %v6322_v51  ;;  %v6269_v38 = vsel %vm6174_vm4, %v6224_v31, %v16958_v4  ;;  %v6307_v31 = vshrl.u32 %v16395_v63, 16 }
 0x58a   :  { %v5846_v18 = vpop.f32.mrf.mxu0 }
 0x58b   :  { %v6309_v36 = vrot.slane %v6307_v31, 2 }
 0x58c   :  { %v5969_v0 = vpop.f32.mrf.mxu2  ;;  %v5914_v27 = vpop.f32.mrf.mxu1  ;;  %6866 = vmatmul.bf16.gmra.mxu0 %v6323_v56 }
 0x58d   :  { %v5970_v21 = vadd.f32 %v5969_v0, %v16872_v28  ;;  %v6037_v8 = vpop.f32.mrf.mxu3  ;;  %v16969_v35 = vadd.f32 %v5914_v27, %v5846_v18  ;;  %v19510_v28 = vld [vmem:[#allocation8_spill] sm:$0xff]  ;;  %v19512_v27 = vld [vmem:[#allocation11_spill] sm:$0xff]  ;;  %v6313_v16 = vor.u32 %v6312_v50, %v6309_v36 }
 0x58e   :  { %v6298_v41 = vshrl.u32 %v19510_v28, 16  ;;  %v6301_v23 = vshll.u32 %v19510_v28, 16 }
 0x58f   :  { %v6038_v62 = vadd.f32 %v6037_v8, %v5970_v21  ;;  %6934 = vmatmul.bf16.gmra.mxu1 %v6332_v42  ;;  %v19511_v21 = vld [vmem:[#allocation29_spill] sm:$0xff] }
 0x590   :  { %v6300_v30 = vrot.slane %v6298_v41, 2  ;;  %v6303_v29 = vrot.slane %v6301_v23, 3  ;;  %v6352_v8 = vshrl.u32 %v19511_v21, 16  ;;  %v6355_v56 = vshll.u32 %v19511_v21, 16 }
 0x591   :  { %v16972_v52 = vadd.f32 %v6038_v62, %v19509_v49  ;;  %6992 = vmatmul.bf16.gmra.mxu2 %v6269_v38  ;;  %v6361_v38 = vshrl.u32 %v16423_v40, 16  ;;  %v13044_v49 = vld [vmem:[%s19064_s1 + $0x868] sm:$0xff] }
 0x592   :  { %7060 = vmatmul.bf16.gmra.mxu3 %v6278_v48  ;;  %v5848_v9 = vpop.f32.mrf.mxu0  ;;  %v6364_v48 = vshll.u32 %v16423_v40, 16  ;;  %v6354_v41 = vrot.slane %v6352_v8, 2  ;;  %v6357_v23 = vrot.slane %v6355_v56, 3  ;;  %v6304_v45 = vor.u32 %v6303_v29, %v6300_v30  ;;  %7618 = vmatpush.bf16.msra.mxu1 %v13044_v49  ;;  %v19513_v56 = vld [vmem:[#allocation12_spill] sm:$0xff] }
 0x593   :  { %v6363_v31 = vrot.slane %v6361_v38, 2  ;;  %v6314_v30 = vsel %vm6174_vm4, %v16960_v14, %v6313_v16 }
 0x594   :  { %v5972_v1 = vpop.f32.mrf.mxu2  ;;  %v5916_v18 = vpop.f32.mrf.mxu1  ;;  %v6366_v25 = vrot.slane %v6364_v48, 3  ;;  %v6305_v40 = vsel %vm6174_vm4, %v16958_v4, %v6304_v45  ;;  %v6343_v4 = vshrl.u32 %v16453_v46, 16 }
 0x595   :  { %v5973_v20 = vadd.f32 %v5972_v1, %v16894_v59  ;;  %v6040_v26 = vpop.f32.mrf.mxu3  ;;  %v16988_v62 = vadd.f32 %v5916_v18, %v5848_v9  ;;  %v13036_v59 = vld [vmem:[%s19064_s1 + $0x828] sm:$0xff]  ;;  %v6358_v1 = vor.u32 %v6357_v23, %v6354_v41 }
 0x596   :  { %7550 = vmatpush.bf16.msra.mxu0 %v13036_v59  ;;  %v6346_v59 = vshll.u32 %v16453_v46, 16 }
 0x597   :  { %v6041_v0 = vadd.f32 %v6040_v26, %v5973_v20  ;;  %v6367_v26 = vor.u32 %v6366_v25, %v6363_v31  ;;  %v6345_v25 = vrot.slane %v6343_v4, 2 }
 0x599   :  { %v16992_v42 = vadd.f32 %v6041_v0, %v19512_v27  ;;  %v6359_v27 = vsel %vm6174_vm4, %v6322_v51, %v6358_v1  ;;  %v6368_v36 = vsel %vm6174_vm4, %v6331_v53, %v6367_v26 }
 0x59a   :  { %v5851_v20 = vpop.f32.mrf.mxu0 }
 0x59c   :  { %v5974_v9 = vpop.f32.mrf.mxu2  ;;  %v5919_v29 = vpop.f32.mrf.mxu1  ;;  %6871 = vmatmul.bf16.gmra.mxu0 %v6359_v27 }
 0x59d   :  { %v5975_v0 = vadd.f32 %v5974_v9, %v16914_v6  ;;  %v6042_v18 = vpop.f32.mrf.mxu3  ;;  %v17007_v50 = vadd.f32 %v5919_v29, %v5851_v20  ;;  %v19514_v6 = vld [vmem:[#allocation13_spill] sm:$0xff]  ;;  %v6348_v9 = vrot.slane %v6346_v59, 3  ;;  %v6400_v29 = vshll.u32 %v16481_v11, 16 }
 0x59e   :  { %v6334_v51 = vshrl.u32 %v19514_v6, 16  ;;  %v6337_v48 = vshll.u32 %v19514_v6, 16 }
 0x59f   :  { %v6043_v8 = vadd.f32 %v6042_v18, %v5975_v0  ;;  %6939 = vmatmul.bf16.gmra.mxu1 %v6368_v36  ;;  %v19515_v0 = vld [vmem:[#allocation19_spill] sm:$0xff]  ;;  %v19516_v36 = vld [vmem:[#allocation18_spill] sm:$0xff] }
 0x5a0   :  { %v6336_v23 = vrot.slane %v6334_v51, 2  ;;  %v6339_v31 = vrot.slane %v6337_v48, 3  ;;  %v6388_v18 = vshrl.u32 %v19515_v0, 16  ;;  %v6391_v27 = vshll.u32 %v19515_v0, 16  ;;  %v13059_v51 = vld [vmem:[%s19064_s1 + $0x8e0] sm:$0xff] }
 0x5a1   :  { %v17010_v38 = vadd.f32 %v6043_v8, %v19513_v56  ;;  %6997 = vmatmul.bf16.gmra.mxu2 %v6305_v40  ;;  %v6397_v8 = vshrl.u32 %v16481_v11, 16  ;;  %7755 = vmatpush.bf16.msrb.mxu3 %v13059_v51 }
 0x5a2   :  { %7065 = vmatmul.bf16.gmra.mxu3 %v6314_v30  ;;  %v5853_v49 = vpop.f32.mrf.mxu0  ;;  %v6390_v48 = vrot.slane %v6388_v18, 2  ;;  %v6393_v4 = vrot.slane %v6391_v27, 3 }
 0x5a3   :  { %v6399_v59 = vrot.slane %v6397_v8, 2 }
 0x5a4   :  { %v5977_v14 = vpop.f32.mrf.mxu2  ;;  %v5921_v20 = vpop.f32.mrf.mxu1 }
 0x5a5   :  { %v5978_v53 = vadd.f32 %v5977_v14, %v16933_v32  ;;  %v6045_v41 = vpop.f32.mrf.mxu3  ;;  %v17020_v30 = vadd.f32 %v5921_v20, %v5853_v49  ;;  %v13051_v32 = vld [vmem:[%s19064_s1 + $0x8a0] sm:$0xff]  ;;  %v6340_v14 = vor.u32 %v6339_v31, %v6336_v23  ;;  %v6349_v49 = vor.u32 %v6348_v9, %v6345_v25 }
 0x5a6   :  { %7687 = vmatpush.bf16.msrb.mxu2 %v13051_v32 }
 0x5a7   :  { %v6046_v40 = vadd.f32 %v6045_v41, %v5978_v53  ;;  %v6402_v53 = vrot.slane %v6400_v29, 3  ;;  %v6394_v41 = vor.u32 %v6393_v4, %v6390_v48  ;;  %v6341_v6 = vsel %vm6174_vm4, %v6304_v45, %v6340_v14  ;;  %v19518_v45 = vld [vmem:[#allocation22_spill] sm:$0xff] }
 0x5a8   :  { %v6350_v18 = vsel %vm6174_vm4, %v6313_v16, %v6349_v49  ;;  %v6370_v16 = vshrl.u32 %v19518_v45, 16 }
 0x5a9   :  { %v17024_v56 = vadd.f32 %v6046_v40, %v19516_v36  ;;  %v6403_v36 = vor.u32 %v6402_v53, %v6399_v59  ;;  %v6395_v46 = vsel %vm6174_vm4, %v6358_v1, %v6394_v41  ;;  %v19519_v1 = vld [vmem:[#allocation20_spill] sm:$0xff]  ;;  %v19520_v59 = vld [vmem:[#allocation25_spill] sm:$0xff] }
 0x5aa   :  { %v5856_v40 = vpop.f32.mrf.mxu0  ;;  %v6382_v9 = vshll.u32 %v19519_v1, 16  ;;  %v6372_v29 = vrot.slane %v6370_v16, 2  ;;  %v6424_v53 = vshrl.u32 %v19520_v59, 16 }
 0x5ab   :  { %19517 = vst [vmem:[#allocation47_spill] sm:$0xff] %v17024_v56  ;;  %v6404_v23 = vsel %vm6174_vm4, %v6367_v26, %v6403_v36  ;;  %v6379_v26 = vshrl.u32 %v19519_v1, 16 }
 0x5ac   :  { %v5979_v20 = vpop.f32.mrf.mxu2  ;;  %v5924_v27 = vpop.f32.mrf.mxu1  ;;  %6876 = vmatmul.bf16.gmra.mxu0 %v6395_v46  ;;  %v6373_v46 = vshll.u32 %v19518_v45, 16  ;;  %v6384_v51 = vrot.slane %v6382_v9, 3 }
 0x5ad   :  { %v5980_v11 = vadd.f32 %v5979_v20, %v16952_v58  ;;  %v6047_v0 = vpop.f32.mrf.mxu3  ;;  %v17037_v31 = vadd.f32 %v5924_v27, %v5856_v40  ;;  %v13035_v58 = vld [vmem:[%s19064_s1 + $0x820] sm:$0xff]  ;;  %v6381_v32 = vrot.slane %v6379_v26, 2  ;;  %v6427_v20 = vshll.u32 %v19520_v59, 16 }
 0x5ae   :  { %7551 = vmatpush.bf16.msra.mxu0 %v13035_v58  ;;  %v6433_v40 = vshrl.u32 %v16539_v44, 16  ;;  %v6436_v27 = vshll.u32 %v16539_v44, 16 }
 0x5af   :  { %v6048_v56 = vadd.f32 %v6047_v0, %v5980_v11  ;;  %v13043_v11 = vld [vmem:[%s19064_s1 + $0x860] sm:$0xff]  ;;  %6944 = vmatmul.bf16.gmra.mxu1 %v6404_v23  ;;  %v19521_v23 = vld [vmem:[#allocation26_spill] sm:$0xff]  ;;  %v17064_v9 = vor.u32 %v6384_v51, %v6381_v32 }
 0x5b0   :  { %7619 = vmatpush.bf16.msra.mxu1 %v13043_v11  ;;  %v6429_v11 = vrot.slane %v6427_v20, 3  ;;  %v6435_v16 = vrot.slane %v6433_v40, 2  ;;  %v6438_v26 = vrot.slane %v6436_v27, 3  ;;  %v19522_v20 = vld [vmem:[#allocation15_spill] sm:$0xff] }
 0x5b1   :  { %v17040_v25 = vadd.f32 %v6048_v56, %v16494_v12  ;;  %7002 = vmatmul.bf16.gmra.mxu2 %v6341_v6  ;;  %v6375_v56 = vrot.slane %v6373_v46, 3 }
 0x5b2   :  { %7070 = vmatmul.bf16.gmra.mxu3 %v6350_v18  ;;  %v5858_v6 = vpop.f32.mrf.mxu0  ;;  %v6439_v59 = vor.u32 %v6438_v26, %v6435_v16 }
 0x5b3   :  { %v17062_v46 = vor.u32 %v6375_v56, %v6372_v29  ;;  %v6386_v29 = vsel %vm6174_vm4, %v6349_v49, %v17064_v9  ;;  %v13058_v49 = vld [vmem:[%s19064_s1 + $0x8d8] sm:$0xff] }
 0x5b4   :  { %v5982_v12 = vpop.f32.mrf.mxu2  ;;  %v5926_v4 = vpop.f32.mrf.mxu1  ;;  %v6440_v32 = vsel %vm6174_vm4, %v6403_v36, %v6439_v59  ;;  %7756 = vmatpush.bf16.msrb.mxu3 %v13058_v49  ;;  %v19525_v49 = vld [vmem:[#allocation10_spill] sm:$0xff] }
 0x5b5   :  { %v5983_v0 = vadd.f32 %v5982_v12, %v16969_v35  ;;  %v6050_v8 = vpop.f32.mrf.mxu3  ;;  %v17056_v18 = vadd.f32 %v5926_v4, %v5858_v6  ;;  %v6426_v35 = vrot.slane %v6424_v53, 2 }
 0x5b7   :  { %v6051_v48 = vadd.f32 %v6050_v8, %v5983_v0  ;;  %v6430_v12 = vor.u32 %v6429_v11, %v6426_v35 }
 0x5b9   :  { %v17060_v58 = vadd.f32 %v6051_v48, %v19521_v23  ;;  %v6431_v44 = vsel %vm6174_vm4, %v6394_v41, %v6430_v12  ;;  %v6377_v48 = vsel %vm6174_vm4, %v6340_v14, %v17062_v46  ;;  %v6415_v14 = vshrl.u32 %v16575_v55, 16 }
 0x5ba   :  { %v5861_v8 = vpop.f32.mrf.mxu0  ;;  %v6418_v23 = vshll.u32 %v16575_v55, 16 }
 0x5bc   :  { %v5984_v0 = vpop.f32.mrf.mxu2  ;;  %v5929_v56 = vpop.f32.mrf.mxu1  ;;  %6881 = vmatmul.bf16.gmra.mxu0 %v6431_v44  ;;  %v13050_v44 = vld [vmem:[%s19064_s1 + $0x898] sm:$0xff] }
 0x5bd   :  { %v5985_v6 = vadd.f32 %v5984_v0, %v16988_v62  ;;  %v6052_v4 = vpop.f32.mrf.mxu3  ;;  %v17073_v51 = vadd.f32 %v5929_v56, %v5861_v8  ;;  %v19523_v62 = vld [vmem:[#allocation27_spill] sm:$0xff]  ;;  %7688 = vmatpush.bf16.msrb.mxu2 %v13050_v44  ;;  %v6417_v8 = vrot.slane %v6415_v14, 2  ;;  %v6472_v44 = vshll.u32 %v16603_v60, 16 }
 0x5be   :  { %v6406_v41 = vshrl.u32 %v19523_v62, 16  ;;  %v6409_v27 = vshll.u32 %v19523_v62, 16 }
 0x5bf   :  { %v6053_v53 = vadd.f32 %v6052_v4, %v5985_v6  ;;  %6949 = vmatmul.bf16.gmra.mxu1 %v6440_v32  ;;  %v6420_v6 = vrot.slane %v6418_v23, 3  ;;  %v6469_v32 = vshrl.u32 %v16603_v60, 16 }
 0x5c0   :  { %v6408_v26 = vrot.slane %v6406_v41, 2  ;;  %v6411_v0 = vrot.slane %v6409_v27, 3  ;;  %v13042_v41 = vld [vmem:[%s19064_s1 + $0x858] sm:$0xff] }
 0x5c1   :  { %v17076_v40 = vadd.f32 %v6053_v53, %v19522_v20  ;;  %7007 = vmatmul.bf16.gmra.mxu2 %v6377_v48  ;;  %v19524_v53 = vld [vmem:[#allocation35_spill] sm:$0xff]  ;;  %v6471_v23 = vrot.slane %v6469_v32, 2  ;;  %7620 = vmatpush.bf16.msra.mxu1 %v13042_v41 }
 0x5c2   :  { %7075 = vmatmul.bf16.gmra.mxu3 %v6386_v29  ;;  %v5863_v35 = vpop.f32.mrf.mxu0  ;;  %v6460_v29 = vshrl.u32 %v19524_v53, 16  ;;  %v6463_v56 = vshll.u32 %v19524_v53, 16 }
 0x5c4   :  { %v5987_v36 = vpop.f32.mrf.mxu2  ;;  %v5931_v48 = vpop.f32.mrf.mxu1  ;;  %v6462_v27 = vrot.slane %v6460_v29, 2  ;;  %v6465_v14 = vrot.slane %v6463_v56, 3 }
 0x5c5   :  { %v5988_v11 = vadd.f32 %v5987_v36, %v17007_v50  ;;  %v6055_v16 = vpop.f32.mrf.mxu3  ;;  %v17092_v20 = vadd.f32 %v5931_v48, %v5863_v35  ;;  %v13034_v50 = vld [vmem:[%s19064_s1 + $0x818] sm:$0xff]  ;;  %v6412_v36 = vor.u32 %v6411_v0, %v6408_v26  ;;  %v6421_v35 = vor.u32 %v6420_v6, %v6417_v8 }
 0x5c6   :  { %7552 = vmatpush.bf16.msra.mxu0 %v13034_v50 }
 0x5c7   :  { %v6056_v4 = vadd.f32 %v6055_v16, %v5988_v11  ;;  %v6474_v11 = vrot.slane %v6472_v44, 3  ;;  %v6466_v16 = vor.u32 %v6465_v14, %v6462_v27  ;;  %v6422_v26 = vsel %vm6174_vm4, %v17064_v9, %v6421_v35  ;;  %v19527_v27 = vld [vmem:[#allocation5_spill] sm:$0xff] }
 0x5c8   :  { %v6496_v14 = vshrl.u32 %v19527_v27, 16 }
 0x5c9   :  { %v17096_v55 = vadd.f32 %v6056_v4, %v19525_v49  ;;  %v6475_v49 = vor.u32 %v6474_v11, %v6471_v23  ;;  %v6467_v62 = vsel %vm6174_vm4, %v6430_v12, %v6466_v16  ;;  %v6445_v12 = vshll.u32 %v16631_v15, 16 }
 0x5ca   :  { %v5866_v4 = vpop.f32.mrf.mxu0  ;;  %v6499_v23 = vshll.u32 %v19527_v27, 16  ;;  %v6505_v11 = vshrl.u32 %v16659_v10, 16 }
 0x5cb   :  { %19526 = vst [vmem:[#allocation8_spill] sm:$0xff] %v17096_v55  ;;  %v6413_v55 = vsel %vm6174_vm4, %v17062_v46, %v6412_v36  ;;  %v6476_v8 = vsel %vm6174_vm4, %v6439_v59, %v6475_v49  ;;  %v6454_v46 = vshll.u32 %v16633_v39, 16  ;;  %v6447_v44 = vrot.slane %v6445_v12, 3 }
 0x5cc   :  { %v5989_v48 = vpop.f32.mrf.mxu2  ;;  %v5934_v0 = vpop.f32.mrf.mxu1  ;;  %6886 = vmatmul.bf16.gmra.mxu0 %v6467_v62 }
 0x5cd   :  { %v5990_v60 = vadd.f32 %v5989_v48, %v17020_v30  ;;  %v6057_v53 = vpop.f32.mrf.mxu3  ;;  %v17111_v6 = vadd.f32 %v5934_v0, %v5866_v4  ;;  %v6442_v30 = vshrl.u32 %v16631_v15, 16  ;;  %v6456_v50 = vrot.slane %v6454_v46, 3  ;;  %v19528_v4 = vld [vmem:[#allocation17_spill] sm:$0xff] }
 0x5ce   :  { %v6508_v48 = vshll.u32 %v16659_v10, 16  ;;  %v6498_v0 = vrot.slane %v6496_v14, 2  ;;  %v13033_v14 = vld [vmem:[%s19064_s1 + $0x810] sm:$0xff] }
 0x5cf   :  { %v6058_v29 = vadd.f32 %v6057_v53, %v5990_v60  ;;  %v6451_v60 = vshrl.u32 %v16633_v39, 16  ;;  %6954 = vmatmul.bf16.gmra.mxu1 %v6476_v8  ;;  %v6444_v32 = vrot.slane %v6442_v30, 2  ;;  %v6501_v8 = vrot.slane %v6499_v23, 3  ;;  %7553 = vmatpush.bf16.msra.mxu0 %v13033_v14 }
 0x5d0   :  { %v6507_v30 = vrot.slane %v6505_v11, 2 }
 0x5d1   :  { %v17114_v56 = vadd.f32 %v6058_v29, %v16616_v34  ;;  %7012 = vmatmul.bf16.gmra.mxu2 %v6413_v55  ;;  %v6453_v34 = vrot.slane %v6451_v60, 2  ;;  %v6448_v12 = vor.u32 %v6447_v44, %v6444_v32  ;;  %v6510_v60 = vrot.slane %v6508_v48, 3  ;;  %v13041_v32 = vld [vmem:[%s19064_s1 + $0x850] sm:$0xff] }
 0x5d2   :  { %7080 = vmatmul.bf16.gmra.mxu3 %v6422_v26  ;;  %v5868_v62 = vpop.f32.mrf.mxu0  ;;  %v13057_v26 = vld [vmem:[%s19064_s1 + $0x8d0] sm:$0xff]  ;;  %7621 = vmatpush.bf16.msra.mxu1 %v13041_v32 }
 0x5d3   :  { %v6457_v46 = vor.u32 %v6456_v50, %v6453_v34  ;;  %7757 = vmatpush.bf16.msrb.mxu3 %v13057_v26  ;;  %v6449_v44 = vsel %vm6174_vm4, %v6412_v36, %v6448_v12 }
 0x5d4   :  { %v5992_v9 = vpop.f32.mrf.mxu2  ;;  %v5936_v41 = vpop.f32.mrf.mxu1 }
 0x5d5   :  { %v5993_v59 = vadd.f32 %v5992_v9, %v17037_v31  ;;  %v6060_v53 = vpop.f32.mrf.mxu3  ;;  %v13049_v31 = vld [vmem:[%s19064_s1 + $0x890] sm:$0xff]  ;;  %v6502_v9 = vor.u32 %v6501_v8, %v6498_v0  ;;  %v6458_v50 = vsel %vm6174_vm4, %v6421_v35, %v6457_v46  ;;  %v19532_v0 = vld [vmem:[#allocation33_spill] sm:$0xff] }
 0x5d6   :  { %7689 = vmatpush.bf16.msrb.mxu2 %v13049_v31  ;;  %v19531_v31 = vld [vmem:[#allocation41_spill] sm:$0xff]  ;;  %v6487_v8 = vshrl.u32 %v19532_v0, 16  ;;  %v6490_v35 = vshll.u32 %v19532_v0, 16  ;;  %v19535_v0 = vld [vmem:[#allocation23_spill] sm:$0xff] }
 0x5d7   :  { %v6061_v55 = vadd.f32 %v6060_v53, %v5993_v59  ;;  %v6511_v53 = vor.u32 %v6510_v60, %v6507_v30  ;;  %v6478_v26 = vshrl.u32 %v19531_v31, 16  ;;  %v6481_v36 = vshll.u32 %v19531_v31, 16 }
 0x5d9   :  { %v17126_v29 = vadd.f32 %v6061_v55, %v19528_v4  ;;  %v6503_v4 = vsel %vm6174_vm4, %v6466_v16, %v6502_v9  ;;  %v19529_v16 = vld [vmem:[#allocation40_spill] sm:$0xff] }
 0x5da   :  { %v6852_v59 = vpop.f32.mrf.mxu0 }
 0x5dc   :  { %v5994_v62 = vpop.f32.mrf.mxu2  ;;  %v6920_v23 = vpop.f32.mrf.mxu1  ;;  %6891 = vmatmul.bf16.gmra.mxu0 %v6503_v4  ;;  %v6492_v4 = vrot.slane %v6490_v35, 3 }
 0x5dd   :  { %v5995_v55 = vadd.f32 %v5994_v62, %v17056_v18  ;;  %v6062_v41 = vpop.f32.mrf.mxu3  ;;  %v6512_v18 = vsel %vm6174_vm4, %v6475_v49, %v6511_v53  ;;  %v17145_v11 = vadd.f32 %v6920_v23, %v6852_v59  ;;  %v6480_v59 = vrot.slane %v6478_v26, 2  ;;  %v19534_v23 = vld [vmem:[#allocation44_spill] sm:$0xff] }
 0x5df   :  { %v6063_v34 = vadd.f32 %v6062_v41, %v5995_v55  ;;  %6959 = vmatmul.bf16.gmra.mxu1 %v6512_v18  ;;  %v6483_v55 = vrot.slane %v6481_v36, 3  ;;  %v6489_v41 = vrot.slane %v6487_v8, 2  ;;  %v6544_v18 = vshll.u32 %v19534_v23, 16 }
 0x5e1   :  { %v17148_v48 = vadd.f32 %v6063_v34, %v19529_v16  ;;  %7017 = vmatmul.bf16.gmra.mxu2 %v6449_v44  ;;  %v19533_v44 = vld [vmem:[#allocation43_spill] sm:$0xff]  ;;  %v6541_v16 = vshrl.u32 %v19534_v23, 16  ;;  %v17164_v8 = vor.u32 %v6483_v55, %v6480_v59  ;;  %v6546_v35 = vrot.slane %v6544_v18, 3 }
 0x5e2   :  { %7085 = vmatmul.bf16.gmra.mxu3 %v6458_v50  ;;  %v6854_v49 = vpop.f32.mrf.mxu0  ;;  %v6532_v34 = vshrl.u32 %v19533_v44, 16  ;;  %v6535_v50 = vshll.u32 %v19533_v44, 16 }
 0x5e3   :  { %19530 = vst [vmem:[#allocation29_spill] sm:$0xff] %v17148_v48  ;;  %v6543_v36 = vrot.slane %v6541_v16, 2  ;;  %v19538_v16 = vld [vmem:[#allocation9_spill] sm:$0xff] }
 0x5e4   :  { %v5997_v30 = vpop.f32.mrf.mxu2  ;;  %v6922_v32 = vpop.f32.mrf.mxu1  ;;  %v6537_v26 = vrot.slane %v6535_v50, 3  ;;  %v19536_v50 = vld [vmem:[#allocation16_spill] sm:$0xff]  ;;  %v6523_v18 = vshrl.u32 %v19538_v16, 16 }
 0x5e5   :  { %v5998_v60 = vadd.f32 %v5997_v30, %v17073_v51  ;;  %v6065_v62 = vpop.f32.mrf.mxu3  ;;  %v17158_v31 = vadd.f32 %v6922_v32, %v6854_v49  ;;  %v6534_v51 = vrot.slane %v6532_v34, 2  ;;  %v17166_v30 = vor.u32 %v6492_v4, %v6489_v41 }
 0x5e6   :  { %v17170_v10 = vor.u32 %v6546_v35, %v6543_v36 }
 0x5e7   :  { %v6066_v14 = vadd.f32 %v6065_v62, %v5998_v60  ;;  %v17168_v60 = vor.u32 %v6537_v26, %v6534_v51  ;;  %v6494_v55 = vsel %vm6174_vm4, %v6457_v46, %v17166_v30  ;;  %v6526_v46 = vshll.u32 %v19538_v16, 16  ;;  %v6097_v51 = vld [vmem:[%s19065_s0 + $0x180] sm:$0xff] }
 0x5e8   :  { %v6548_v4 = vsel %vm6174_vm4, %v6511_v53, %v17170_v10  ;;  %v13048_v53 = vld [vmem:[%s19064_s1 + $0x888] sm:$0xff]  ;;  %v6166_v26 = vunpack.c.l.b16 %v6097_v51  ;;  %v6167_v36 = vunpack.c.h.b16 %v6097_v51 }
 0x5e9   :  { %v17162_v48 = vadd.f32 %v6066_v14, %v19535_v0  ;;  %v6539_v0 = vsel %vm6174_vm4, %v6502_v9, %v17168_v60  ;;  %v6485_v14 = vsel %vm6174_vm4, %v6448_v12, %v17164_v8  ;;  %v6514_v9 = vshrl.u32 %v16751_v37, 16  ;;  %7690 = vmatpush.bf16.msrb.mxu2 %v13048_v53 }
 0x5ea   :  { %v6857_v44 = vpop.f32.mrf.mxu0  ;;  %v6517_v12 = vshll.u32 %v16751_v37, 16 }
 0x5ec   :  { %v5999_v62 = vpop.f32.mrf.mxu2  ;;  %v6925_v41 = vpop.f32.mrf.mxu1  ;;  %6896 = vmatmul.bf16.gmra.mxu0 %v6539_v0  ;;  %v17200_v0 = vpack.c.b16 %v6166_v26, %v6166_v26  ;;  %v19541_v26 = vld [vmem:[#allocation24_spill] sm:$0xff] }
 0x5ed   :  { %v6000_v49 = vadd.f32 %v5999_v62, %v17092_v20  ;;  %v6067_v32 = vpop.f32.mrf.mxu3  ;;  %v17181_v34 = vadd.f32 %v6925_v41, %v6857_v44  ;;  %v13056_v44 = vld [vmem:[%s19064_s1 + $0x8c8] sm:$0xff]  ;;  %v6525_v41 = vrot.slane %v6523_v18, 2 }
 0x5ee   :  { %7758 = vmatpush.bf16.msrb.mxu3 %v13056_v44  ;;  %19539 = vst [vmem:[#allocation12_spill] sm:$0xff] %v17200_v0  ;;  %v6568_v37 = vshrl.u32 %v17200_v0, 16  ;;  %v6571_v51 = vshll.u32 %v17200_v0, 16 }
 0x5ef   :  { %v6068_v59 = vadd.f32 %v6067_v32, %v6000_v49  ;;  %6964 = vmatmul.bf16.gmra.mxu1 %v6548_v4  ;;  %v6528_v4 = vrot.slane %v6526_v46, 3 }
 0x5f0   :  { %v6570_v18 = vrot.slane %v6568_v37, 2  ;;  %v6573_v46 = vrot.slane %v6571_v51, 3 }
 0x5f1   :  { %v17184_v20 = vadd.f32 %v6068_v59, %v19536_v50  ;;  %7022 = vmatmul.bf16.gmra.mxu2 %v6485_v14  ;;  %v17202_v14 = vpack.c.b16 %v6167_v36, %v6167_v36  ;;  %v6516_v59 = vrot.slane %v6514_v9, 2  ;;  %v13032_v9 = vld [vmem:[%s19064_s1 + $0x808] sm:$0xff] }
 0x5f2   :  { %7090 = vmatmul.bf16.gmra.mxu3 %v6494_v55  ;;  %v6859_v62 = vpop.f32.mrf.mxu0  ;;  %v6519_v55 = vrot.slane %v6517_v12, 3  ;;  %v13040_v12 = vld [vmem:[%s19064_s1 + $0x848] sm:$0xff]  ;;  %7554 = vmatpush.bf16.msra.mxu0 %v13032_v9 }
 0x5f3   :  { %19537 = vst [vmem:[#allocation11_spill] sm:$0xff] %v17184_v20  ;;  %v6577_v53 = vshrl.u32 %v17202_v14, 16  ;;  %7622 = vmatpush.bf16.msra.mxu1 %v13040_v12 }
 0x5f4   :  { %v6002_v35 = vpop.f32.mrf.mxu2  ;;  %19540 = vst [vmem:[#allocation18_spill] sm:$0xff] %v17202_v14  ;;  %v6927_v16 = vpop.f32.mrf.mxu1 }
 0x5f5   :  { %v6003_v49 = vadd.f32 %v6002_v35, %v17111_v6  ;;  %v6070_v32 = vpop.f32.mrf.mxu3  ;;  %v17207_v44 = vadd.f32 %v6927_v16, %v6859_v62  ;;  %v6580_v6 = vshll.u32 %v17202_v14, 16  ;;  %v6579_v36 = vrot.slane %v6577_v53, 2 }
 0x5f6   :  { %v6529_v16 = vor.u32 %v6528_v4, %v6525_v41  ;;  %v6574_v62 = vor.u32 %v6573_v46, %v6570_v18  ;;  %v6098_v18 = vld [vmem:[%s19065_s0 + $0x188] sm:$0xff] }
 0x5f7   :  { %v6071_v50 = vadd.f32 %v6070_v32, %v6003_v49  ;;  %v6520_v49 = vor.u32 %v6519_v55, %v6516_v59  ;;  %v6582_v32 = vrot.slane %v6580_v6, 3 }
 0x5f8   :  { %v6530_v37 = vsel %vm6174_vm4, %v17166_v30, %v6529_v16 }
 0x5f9   :  { %v17211_v35 = vadd.f32 %v6071_v50, %v19541_v26  ;;  %v6583_v26 = vor.u32 %v6582_v32, %v6579_v36  ;;  %v6521_v20 = vsel %vm6174_vm4, %v17164_v8, %v6520_v49  ;;  %v6562_v8 = vshll.u32 %v16792_v3, 16  ;;  %v19544_v32 = vld [vmem:[#allocation49_spill] sm:$0xff] }
 0x5fa   :  { %v6862_v50 = vpop.f32.mrf.mxu0 }
 0x5fb   :  { %19542 = vst [vmem:[#allocation22_spill] sm:$0xff] %v17211_v35  ;;  %v6575_v35 = vsel %vm6174_vm4, %v17168_v60, %v6574_v62  ;;  %v6584_v59 = vsel %vm6174_vm4, %v17170_v10, %v6583_v26  ;;  %v6559_v60 = vshrl.u32 %v16792_v3, 16 }
 0x5fc   :  { %v6004_v14 = vpop.f32.mrf.mxu2  ;;  %v6930_v51 = vpop.f32.mrf.mxu1  ;;  %6901 = vmatmul.bf16.gmra.mxu0 %v6575_v35 }
 0x5fd   :  { %v6072_v0 = vpop.f32.mrf.mxu3  ;;  %v17227_v55 = vadd.f32 %v6930_v51, %v6862_v50  ;;  %v19543_v14 = vld [vmem:[#allocation7_spill] sm:$0xff]  ;;  %v6561_v12 = vrot.slane %v6559_v60, 2 }
 0x5fe   :  { %v6550_v0 = vshrl.u32 %v19543_v14, 16  ;;  %v6553_v41 = vshll.u32 %v19543_v14, 16 }
 0x5ff   :  { %6969 = vmatmul.bf16.gmra.mxu1 %v6584_v59  ;;  %v6168_v59 = vunpack.c.l.b16 %v6098_v18 }
 0x600   :  { %v6552_v35 = vrot.slane %v6550_v0, 2  ;;  %v6555_v10 = vrot.slane %v6553_v41, 3  ;;  %v6169_v0 = vunpack.c.h.b16 %v6098_v18 }
 0x601   :  { %7027 = vmatmul.bf16.gmra.mxu2 %v6521_v20  ;;  %v6564_v20 = vrot.slane %v6562_v8, 3 }
 0x602   :  { %7095 = vmatmul.bf16.gmra.mxu3 %v6530_v37  ;;  %v6864_v30 = vpop.f32.mrf.mxu0  ;;  %v13055_v37 = vld [vmem:[%s19064_s1 + $0x8c0] sm:$0xff]  ;;  %v6556_v51 = vor.u32 %v6555_v10, %v6552_v35 }
 0x603   :  { %v6565_v41 = vor.u32 %v6564_v20, %v6561_v12  ;;  %7759 = vmatpush.bf16.msrb.mxu3 %v13055_v37  ;;  %v19547_v12 = vld [vmem:[#allocation50_spill] sm:$0xff] }
 0x604   :  { %v6988_v4 = vpop.f32.mrf.mxu2  ;;  %v6932_v46 = vpop.f32.mrf.mxu1 }
 0x605   :  { %v6989_v53 = vadd.f32 %v6988_v4, %v17145_v11  ;;  %v7056_v6 = vpop.f32.mrf.mxu3  ;;  %v17237_v36 = vadd.f32 %v6932_v46, %v6864_v30  ;;  %v13047_v11 = vld [vmem:[%s19064_s1 + $0x880] sm:$0xff] }
 0x606   :  { %7691 = vmatpush.bf16.msrb.mxu2 %v13047_v11 }
 0x607   :  { %v7057_v9 = vadd.f32 %v7056_v6, %v6989_v53  ;;  %v6557_v53 = vsel %vm6174_vm4, %v6520_v49, %v6556_v51  ;;  %v17250_v6 = vpack.c.b16 %v6168_v59, %v6168_v59  ;;  %v13039_v49 = vld [vmem:[%s19064_s1 + $0x840] sm:$0xff] }
 0x608   :  { %7623 = vmatpush.bf16.msra.mxu1 %v13039_v49  ;;  %v19549_v49 = vld [vmem:[#allocation36_spill] sm:$0xff] }
 0x609   :  { %v17240_v50 = vadd.f32 %v7057_v9, %v19544_v32  ;;  %19545 = vst [vmem:[#allocation20_spill] sm:$0xff] %v17250_v6  ;;  %v17252_v9 = vpack.c.b16 %v6169_v0, %v6169_v0  ;;  %v6566_v32 = vsel %vm6174_vm4, %v6529_v16, %v6565_v41  ;;  %v6586_v18 = vshrl.u32 %v17250_v6, 16 }
 0x60a   :  { %v6867_v8 = vpop.f32.mrf.mxu0  ;;  %v6589_v16 = vshll.u32 %v17250_v6, 16 }
 0x60b   :  { %19546 = vst [vmem:[#allocation26_spill] sm:$0xff] %v17252_v9  ;;  %v6598_v11 = vshll.u32 %v17252_v9, 16 }
 0x60c   :  { %v6990_v60 = vpop.f32.mrf.mxu2  ;;  %v6935_v35 = vpop.f32.mrf.mxu1  ;;  %6906 = vmatmul.bf16.gmra.mxu0 %v6574_v62  ;;  %v6595_v62 = vshrl.u32 %v17252_v9, 16 }
 0x60d   :  { %v6991_v4 = vadd.f32 %v6990_v60, %v17158_v31  ;;  %v7058_v30 = vpop.f32.mrf.mxu3  ;;  %v17255_v10 = vadd.f32 %v6935_v35, %v6867_v8  ;;  %v13031_v31 = vld [vmem:[%s19064_s1 + $0x800] sm:$0xff]  ;;  %v6588_v8 = vrot.slane %v6586_v18, 2  ;;  %v19551_v18 = vunpack.c.h.b16 %v19549_v49 }
 0x60e   :  { %7555 = vmatpush.bf16.msra.mxu0 %v13031_v31 }
 0x60f   :  { %v7059_v46 = vadd.f32 %v7058_v30, %v6991_v4  ;;  %6974 = vmatmul.bf16.gmra.mxu1 %v6583_v26  ;;  %v6591_v4 = vrot.slane %v6589_v16, 3  ;;  %v6597_v30 = vrot.slane %v6595_v62, 2 }
 0x611   :  { %v17258_v20 = vadd.f32 %v7059_v46, %v19547_v12  ;;  %7032 = vmatmul.bf16.gmra.mxu2 %v6557_v53  ;;  %v6600_v53 = vrot.slane %v6598_v11, 3  ;;  %v7138_v46 = vld [vmem:[%s19065_s0 + $0x20] sm:$0x88]  ;;  %v6592_v62 = vor.u32 %v6591_v4, %v6588_v8 }
 0x612   :  { %7100 = vmatmul.bf16.gmra.mxu3 %v6566_v32  ;;  %v6869_v59 = vpop.f32.mrf.mxu0  ;;  %v7207_v12 = vunpack.c.l.b16 %v7138_v46  ;;  %v7208_v9 = vunpack.c.h.b16 %v7138_v46 }
 0x613   :  { %19548 = vst [vmem:[#allocation15_spill] sm:$0xff] %v17258_v20  ;;  %v6601_v11 = vor.u32 %v6600_v53, %v6597_v30  ;;  %v19552_v20 = vld [vmem:[#allocation37_spill] sm:$0xff] }
 0x614   :  { %v6993_v37 = vpop.f32.mrf.mxu2  ;;  %v6937_v35 = vpop.f32.mrf.mxu1  ;;  %v7212_v16 = vpack.c.b16 %v19551_v18, %v7208_v9  ;;  %v7217_v3 = vrot.slane %v19552_v20, 3  ;;  %v7228_v18 = vrot.slane %v16221_v7, 3 }
 0x615   :  { %v6994_v0 = vadd.f32 %v6993_v37, %v17181_v34  ;;  %v7061_v60 = vpop.f32.mrf.mxu3  ;;  %v17274_v26 = vadd.f32 %v6937_v35, %v6869_v59  ;;  %v19550_v34 = vunpack.c.l.b16 %v19549_v49  ;;  %v6602_v9 = vsel %vm6174_vm4, %v6565_v41, %v6601_v11 }
 0x617   :  { %v7062_v32 = vadd.f32 %v7061_v60, %v6994_v0  ;;  %v7211_v37 = vpack.c.b16 %v19550_v34, %v7207_v12  ;;  %v7219_v0 = vrot.slane %v7212_v16, 3  ;;  %v7220_v60 = vrot.slane %v16177_v5, 3 }
 0x618   :  { %v6593_v12 = vsel %vm6174_vm4, %v6556_v51, %v6592_v62 }
 0x619   :  { %v17277_v31 = vadd.f32 %v7062_v32, %v16841_v43  ;;  %v7216_v6 = vrot.slane %v7211_v37, 3  ;;  %v7221_v20 = vsel %vm7215_vm5, %v7219_v0, %v7220_v60 }
 0x61a   :  { %v6872_v59 = vpop.f32.mrf.mxu0 }
 0x61b   :  { %v7218_v35 = vsel %vm7215_vm5, %v7216_v6, %v7217_v3 }
 0x61c   :  { %v6995_v46 = vpop.f32.mrf.mxu2  ;;  %v6940_v8 = vpop.f32.mrf.mxu1  ;;  %7556 = vmatmul.bf16.vlgmr.msra.gmra.mxu0 %v7218_v35 }
 0x61d   :  { %v6996_v43 = vadd.f32 %v6995_v46, %v17207_v44  ;;  %v7063_v32 = vpop.f32.mrf.mxu3  ;;  %v17290_v4 = vadd.f32 %v6940_v8, %v6872_v59 }
 0x61f   :  { %v7064_v49 = vadd.f32 %v7063_v32, %v6996_v43  ;;  %7624 = vmatmul.bf16.vlgmr.msra.gmra.mxu1 %v7221_v20  ;;  %v7229_v43 = vsel %vm7215_vm5, %v7217_v3, %v7228_v18  ;;  %v7139_v32 = vld [vmem:[%s19065_s0 + $0x28] sm:$0x88]  ;;  %v19553_v20 = vld [vmem:[#allocation31_spill] sm:$0xff] }
 0x621   :  { %v17293_v5 = vadd.f32 %v7064_v49, %v16859_v33  ;;  %7037 = vmatmul.bf16.gmra.mxu2 %v6593_v12  ;;  %v7230_v33 = vrot.slane %v16226_v61, 3  ;;  %v7209_v61 = vunpack.c.l.b16 %v7139_v32 }
 0x622   :  { %7105 = vmatmul.bf16.gmra.mxu3 %v6602_v9  ;;  %v6874_v30 = vpop.f32.mrf.mxu0 }
 0x624   :  { %v6998_v44 = vpop.f32.mrf.mxu2  ;;  %v6942_v34 = vpop.f32.mrf.mxu1 }
 0x625   :  { %v6999_v6 = vadd.f32 %v6998_v44, %v17227_v55  ;;  %v7066_v51 = vpop.f32.mrf.mxu3  ;;  %v17296_v41 = vadd.f32 %v6942_v34, %v6874_v30  ;;  %v19554_v44 = vunpack.c.l.b16 %v19553_v20  ;;  %v19556_v34 = vld [vmem:[#allocation39_spill] sm:$0xff] }
 0x627   :  { %v7067_v53 = vadd.f32 %v7066_v51, %v6999_v6  ;;  %v7213_v30 = vpack.c.b16 %v19554_v44, %v7209_v61 }
 0x629   :  { %v17299_v37 = vadd.f32 %v7067_v53, %v16876_v47  ;;  %v7231_v47 = vsel %vm7215_vm5, %v7220_v60, %v7230_v33  ;;  %v19555_v60 = vunpack.c.h.b16 %v19553_v20 }
 0x62a   :  { %v6877_v0 = vpop.f32.mrf.mxu0 }
 0x62c   :  { %v7000_v16 = vpop.f32.mrf.mxu2  ;;  %v6945_v35 = vpop.f32.mrf.mxu1  ;;  %7561 = vmatmul.bf16.gmra.mxu0 %v7229_v43 }
 0x62d   :  { %v7001_v46 = vadd.f32 %v7000_v16, %v17237_v36  ;;  %v7068_v59 = vpop.f32.mrf.mxu3  ;;  %v17309_v12 = vadd.f32 %v6945_v35, %v6877_v0  ;;  %v7210_v36 = vunpack.c.h.b16 %v7139_v32  ;;  %v7223_v16 = vrot.slane %v19556_v34, 3 }
 0x62f   :  { %v7069_v55 = vadd.f32 %v7068_v59, %v7001_v46  ;;  %7629 = vmatmul.bf16.gmra.mxu1 %v7231_v47  ;;  %v7214_v51 = vpack.c.b16 %v19555_v60, %v7210_v36  ;;  %v19557_v46 = vld [vmem:[#allocation42_spill] sm:$0xff]  ;;  %v19558_v59 = vld [vmem:[#allocation45_spill] sm:$0xff] }
 0x630   :  { %v7236_v43 = vrot.slane %v19558_v59, 3 }
 0x631   :  { %v17312_v7 = vadd.f32 %v7069_v55, %v16897_v24  ;;  %7042 = vmatmul.bf16.gmra.mxu2 %v6592_v62  ;;  %v7225_v0 = vrot.slane %v7214_v51, 3  ;;  %v19559_v55 = vld [vmem:[#allocation46_spill] sm:$0xff] }
 0x632   :  { %7110 = vmatmul.bf16.gmra.mxu3 %v6601_v11  ;;  %v6879_v49 = vpop.f32.mrf.mxu0  ;;  %v7222_v11 = vrot.slane %v7213_v30, 3  ;;  %v7238_v32 = vrot.slane %v19559_v55, 3 }
 0x634   :  { %v7003_v3 = vpop.f32.mrf.mxu2  ;;  %v6947_v53 = vpop.f32.mrf.mxu1  ;;  %v7239_v20 = vsel %vm7215_vm5, %v7230_v33, %v7238_v32  ;;  %v7232_v33 = vrot.slane %v16335_v2, 3 }
 0x635   :  { %v7004_v9 = vadd.f32 %v7003_v3, %v17255_v10  ;;  %v7071_v8 = vpop.f32.mrf.mxu3  ;;  %v17319_v24 = vadd.f32 %v6947_v53, %v6879_v49  ;;  %v7226_v10 = vrot.slane %v19557_v46, 3  ;;  %v7237_v3 = vsel %vm7215_vm5, %v7228_v18, %v7236_v43 }
 0x636   :  { %v7246_v46 = vrot.slane %v16359_v57, 3 }
 0x637   :  { %v7072_v6 = vadd.f32 %v7071_v8, %v7004_v9  ;;  %v7227_v9 = vsel %vm7215_vm5, %v7225_v0, %v7226_v10  ;;  %v7244_v0 = vrot.slane %v16353_v17, 3 }
 0x638   :  { %v7247_v2 = vsel %vm7215_vm5, %v7238_v32, %v7246_v46  ;;  %v7240_v32 = vrot.slane %v19510_v28, 3 }
 0x639   :  { %v17322_v62 = vadd.f32 %v7072_v6, %v16918_v22  ;;  %v7224_v22 = vsel %vm7215_vm5, %v7222_v11, %v7223_v16 }
 0x63a   :  { %v6882_v47 = vpop.f32.mrf.mxu0 }
 0x63c   :  { %v7005_v35 = vpop.f32.mrf.mxu2  ;;  %v6950_v8 = vpop.f32.mrf.mxu1  ;;  %7566 = vmatmul.bf16.gmra.mxu0 %v7237_v3 }
 0x63d   :  { %v7006_v61 = vadd.f32 %v7005_v35, %v17274_v26  ;;  %v7073_v36 = vpop.f32.mrf.mxu3  ;;  %v17333_v44 = vadd.f32 %v6950_v8, %v6882_v47  ;;  %v7245_v47 = vsel %vm7215_vm5, %v7236_v43, %v7244_v0  ;;  %v7252_v8 = vrot.slane %v19511_v21, 3 }
 0x63f   :  { %v7074_v49 = vadd.f32 %v7073_v36, %v7006_v61  ;;  %7634 = vmatmul.bf16.gmra.mxu1 %v7239_v20  ;;  %v7233_v61 = vsel %vm7215_vm5, %v7223_v16, %v7232_v33  ;;  %v19560_v20 = vld [vmem:[#allocation30_spill] sm:$0xff] }
 0x641   :  { %v17336_v30 = vadd.f32 %v7074_v49, %v16936_v19  ;;  %7692 = vmatmul.bf16.vlgmr.msrb.gmra.mxu2 %v7224_v22  ;;  %v7234_v19 = vrot.slane %v16337_v13, 3 }
 0x642   :  { %7760 = vmatmul.bf16.vlgmr.msrb.gmra.mxu3 %v7227_v9  ;;  %v6884_v6 = vpop.f32.mrf.mxu0 }
 0x644   :  { %v7008_v26 = vpop.f32.mrf.mxu2  ;;  %v6952_v53 = vpop.f32.mrf.mxu1 }
 0x645   :  { %v7009_v18 = vadd.f32 %v7008_v26, %v17290_v4  ;;  %v7076_v60 = vpop.f32.mrf.mxu3  ;;  %v17339_v11 = vadd.f32 %v6952_v53, %v6884_v6  ;;  %v7254_v26 = vrot.slane %v19560_v20, 3  ;;  %v7241_v53 = vsel %vm7215_vm5, %v7232_v33, %v7240_v32 }
 0x647   :  { %v7077_v51 = vadd.f32 %v7076_v60, %v7009_v18 }
 0x649   :  { %v17342_v34 = vadd.f32 %v7077_v51, %v16956_v54  ;;  %v7235_v54 = vsel %vm7215_vm5, %v7226_v10, %v7234_v19  ;;  %v7253_v51 = vsel %vm7215_vm5, %v7244_v0, %v7252_v8 }
 0x64a   :  { %v6887_v55 = vpop.f32.mrf.mxu0 }
 0x64c   :  { %v7010_v59 = vpop.f32.mrf.mxu2  ;;  %v6955_v3 = vpop.f32.mrf.mxu1  ;;  %7571 = vmatmul.bf16.gmra.mxu0 %v7245_v47 }
 0x64d   :  { %v7011_v4 = vadd.f32 %v7010_v59, %v17296_v41  ;;  %v7078_v35 = vpop.f32.mrf.mxu3  ;;  %v17353_v13 = vadd.f32 %v6955_v3, %v6887_v55  ;;  %v19563_v3 = vld [vmem:[#allocation14_spill] sm:$0xff] }
 0x64f   :  { %v7079_v36 = vadd.f32 %v7078_v35, %v7011_v4  ;;  %7639 = vmatmul.bf16.gmra.mxu1 %v7247_v2  ;;  %v19564_v2 = vld [vmem:[#allocation19_spill] sm:$0xff] }
 0x651   :  { %v17356_v17 = vadd.f32 %v7079_v36, %v16972_v52  ;;  %7697 = vmatmul.bf16.gmra.mxu2 %v7233_v61  ;;  %v7242_v52 = vrot.slane %v16395_v63, 3  ;;  %v7255_v63 = vsel %vm7215_vm5, %v7246_v46, %v7254_v26  ;;  %v19561_v61 = vld [vmem:[#allocation47_spill] sm:$0xff]  ;;  %v19562_v46 = vld [vmem:[#allocation13_spill] sm:$0xff] }
 0x652   :  { %7765 = vmatmul.bf16.gmra.mxu3 %v7235_v54  ;;  %v6889_v41 = vpop.f32.mrf.mxu0  ;;  %v7248_v54 = vrot.slane %v19562_v46, 3 }
 0x654   :  { %v7013_v57 = vpop.f32.mrf.mxu2  ;;  %v6957_v49 = vpop.f32.mrf.mxu1 }
 0x655   :  { %v7014_v43 = vadd.f32 %v7013_v57, %v17309_v12  ;;  %v7081_v16 = vpop.f32.mrf.mxu3  ;;  %v17359_v10 = vadd.f32 %v6957_v49, %v6889_v41  ;;  %v7260_v57 = vrot.slane %v19564_v2, 3  ;;  %v19565_v41 = vld [vmem:[#allocation34_spill] sm:$0xff] }
 0x657   :  { %v7082_v22 = vadd.f32 %v7081_v16, %v7014_v43  ;;  %v7262_v43 = vrot.slane %v19565_v41, 3  ;;  %v7261_v20 = vsel %vm7215_vm5, %v7252_v8, %v7260_v57 }
 0x659   :  { %v17362_v9 = vadd.f32 %v7082_v22, %v16992_v42  ;;  %v7243_v42 = vsel %vm7215_vm5, %v7234_v19, %v7242_v52 }
 0x65a   :  { %v6892_v18 = vpop.f32.mrf.mxu0 }
 0x65c   :  { %v7015_v6 = vpop.f32.mrf.mxu2  ;;  %v6960_v55 = vpop.f32.mrf.mxu1  ;;  %7576 = vmatmul.bf16.gmra.mxu0 %v7253_v51  ;;  %v7263_v51 = vsel %vm7215_vm5, %v7254_v26, %v7262_v43  ;;  %v7256_v26 = vrot.slane %v19518_v45, 3 }
 0x65d   :  { %v7016_v12 = vadd.f32 %v7015_v6, %v17319_v24  ;;  %v7083_v60 = vpop.f32.mrf.mxu3  ;;  %v17373_v28 = vadd.f32 %v6960_v55, %v6892_v18  ;;  %v7249_v6 = vsel %vm7215_vm5, %v7240_v32, %v7248_v54 }
 0x65e   :  { %v7257_v2 = vsel %vm7215_vm5, %v7248_v54, %v7256_v26 }
 0x65f   :  { %v7084_v59 = vadd.f32 %v7083_v60, %v7016_v12  ;;  %7644 = vmatmul.bf16.gmra.mxu1 %v7255_v63 }
 0x661   :  { %v17376_v21 = vadd.f32 %v7084_v59, %v17010_v38  ;;  %7702 = vmatmul.bf16.gmra.mxu2 %v7241_v53  ;;  %v7250_v38 = vrot.slane %v19563_v3, 3 }
 0x662   :  { %7770 = vmatmul.bf16.gmra.mxu3 %v7243_v42  ;;  %v6894_v4 = vpop.f32.mrf.mxu0 }
 0x663   :  { %v7251_v12 = vsel %vm7215_vm5, %v7242_v52, %v7250_v38 }
 0x664   :  { %v7018_v24 = vpop.f32.mrf.mxu2  ;;  %v6962_v47 = vpop.f32.mrf.mxu1 }
 0x665   :  { %v7019_v0 = vadd.f32 %v7018_v24, %v17333_v44  ;;  %v7086_v33 = vpop.f32.mrf.mxu3  ;;  %v17379_v19 = vadd.f32 %v6962_v47, %v6894_v4  ;;  %v19566_v4 = vld [vmem:[#allocation25_spill] sm:$0xff] }
 0x667   :  { %v7087_v35 = vadd.f32 %v7086_v33, %v7019_v0  ;;  %v7268_v0 = vrot.slane %v19566_v4, 3  ;;  %v19567_v33 = vld [vmem:[#allocation6_spill] sm:$0xff] }
 0x669   :  { %v17382_v36 = vadd.f32 %v7087_v35, %v19561_v61  ;;  %v7270_v35 = vrot.slane %v19567_v33, 3  ;;  %v7269_v3 = vsel %vm7215_vm5, %v7260_v57, %v7268_v0 }
 0x66a   :  { %v6897_v22 = vpop.f32.mrf.mxu0 }
 0x66b   :  { %v7271_v45 = vsel %vm7215_vm5, %v7262_v43, %v7270_v35 }
 0x66c   :  { %v7020_v16 = vpop.f32.mrf.mxu2  ;;  %v6965_v60 = vpop.f32.mrf.mxu1  ;;  %7581 = vmatmul.bf16.gmra.mxu0 %v7261_v20 }
 0x66d   :  { %v7021_v44 = vadd.f32 %v7020_v16, %v17339_v11  ;;  %v7088_v49 = vpop.f32.mrf.mxu3  ;;  %v17393_v53 = vadd.f32 %v6965_v60, %v6897_v22  ;;  %v19570_v60 = vld [vmem:[#allocation28_spill] sm:$0xff] }
 0x66f   :  { %v7089_v18 = vadd.f32 %v7088_v49, %v7021_v44  ;;  %7649 = vmatmul.bf16.gmra.mxu1 %v7263_v51  ;;  %v7266_v51 = vrot.slane %v19570_v60, 3 }
 0x671   :  { %v17396_v59 = vadd.f32 %v7089_v18, %v17040_v25  ;;  %7707 = vmatmul.bf16.gmra.mxu2 %v7249_v6  ;;  %v7258_v25 = vrot.slane %v19519_v1, 3 }
 0x672   :  { %7775 = vmatmul.bf16.gmra.mxu3 %v7251_v12  ;;  %v6899_v42 = vpop.f32.mrf.mxu0  ;;  %v19569_v12 = vld [vmem:[#allocation27_spill] sm:$0xff] }
 0x673   :  { %v7264_v43 = vrot.slane %v19569_v12, 3 }
 0x674   :  { %v7023_v11 = vpop.f32.mrf.mxu2  ;;  %v6967_v63 = vpop.f32.mrf.mxu1 }
 0x675   :  { %v7024_v8 = vadd.f32 %v7023_v11, %v17353_v13  ;;  %v7091_v32 = vpop.f32.mrf.mxu3  ;;  %v17399_v52 = vadd.f32 %v6967_v63, %v6899_v42  ;;  %v19572_v42 = vld [vmem:[#allocation32_spill] sm:$0xff]  ;;  %v7265_v33 = vsel %vm7215_vm5, %v7256_v26, %v7264_v43 }
 0x677   :  { %v7092_v55 = vadd.f32 %v7091_v32, %v7024_v8  ;;  %v7278_v8 = vrot.slane %v19572_v42, 3 }
 0x679   :  { %v17402_v24 = vadd.f32 %v7092_v55, %v17060_v58  ;;  %v7259_v58 = vsel %vm7215_vm5, %v7250_v38, %v7258_v25  ;;  %v19568_v38 = vld [vmem:[#allocation8_spill] sm:$0xff] }
 0x67a   :  { %v6902_v61 = vpop.f32.mrf.mxu0 }
 0x67c   :  { %v7025_v47 = vpop.f32.mrf.mxu2  ;;  %v6970_v16 = vpop.f32.mrf.mxu1  ;;  %7586 = vmatmul.bf16.gmra.mxu0 %v7269_v3 }
 0x67d   :  { %v7026_v13 = vadd.f32 %v7025_v47, %v17359_v10  ;;  %v7093_v46 = vpop.f32.mrf.mxu3  ;;  %v6971_v1 = vadd.f32 %v6970_v16, %v6902_v61  ;;  %v7267_v61 = vsel %vm7215_vm5, %v7258_v25, %v7266_v51 }
 0x67f   :  { %v7094_v41 = vadd.f32 %v7093_v46, %v7026_v13  ;;  %7654 = vmatmul.bf16.gmra.mxu1 %v7271_v45  ;;  %v7279_v46 = vsel %vm7215_vm5, %v7270_v35, %v7278_v8  ;;  %v7272_v35 = vrot.slane %v16631_v15, 3  ;;  %v7274_v45 = vrot.slane %v16633_v39, 3 }
 0x681   :  { %v17414_v22 = vadd.f32 %v7094_v41, %v17076_v40  ;;  %7712 = vmatmul.bf16.gmra.mxu2 %v7257_v2  ;;  %v19571_v40 = vld [vmem:[#allocation35_spill] sm:$0xff]  ;;  %v7275_v12 = vsel %vm7215_vm5, %v7266_v51, %v7274_v45 }
 0x682   :  { %7780 = vmatmul.bf16.gmra.mxu3 %v7259_v58  ;;  %v6904_v44 = vpop.f32.mrf.mxu0  ;;  %v7276_v11 = vrot.slane %v19571_v40, 3 }
 0x684   :  { %v7028_v10 = vpop.f32.mrf.mxu2  ;;  %v6972_v20 = vpop.f32.mrf.mxu1  ;;  %v7277_v4 = vsel %vm7215_vm5, %v7268_v0, %v7276_v11 }
 0x685   :  { %v7029_v57 = vadd.f32 %v7028_v10, %v17373_v28  ;;  %v7096_v49 = vpop.f32.mrf.mxu3  ;;  %v6973_v6 = vadd.f32 %v6972_v20, %v6904_v44  ;;  %v19573_v10 = vld [vmem:[#allocation38_spill] sm:$0xff] }
 0x686   :  { %v7286_v44 = vrot.slane %v19573_v10, 3  ;;  %v19578_v10 = vld [vmem:[#allocation11_spill] sm:$0xff] }
 0x687   :  { %v7097_v54 = vadd.f32 %v7096_v49, %v7029_v57 }
 0x688   :  { %v7287_v39 = vsel %vm7215_vm5, %v7278_v8, %v7286_v44  ;;  %v19576_v8 = vld [vmem:[#allocation33_spill] sm:$0xff] }
 0x689   :  { %v17418_v18 = vadd.f32 %v7097_v54, %v19568_v38  ;;  %v7273_v38 = vsel %vm7215_vm5, %v7264_v43, %v7272_v35 }
 0x68a   :  { %v6907_v55 = vpop.f32.mrf.mxu0 }
 0x68c   :  { %v7030_v32 = vpop.f32.mrf.mxu2  ;;  %v6975_v13 = vpop.f32.mrf.mxu1  ;;  %7591 = vmatmul.bf16.gmra.mxu0 %v7277_v4  ;;  %v19577_v4 = vld [vmem:[#allocation43_spill] sm:$0xff] }
 0x68d   :  { %v7031_v63 = vadd.f32 %v7030_v32, %v17379_v19  ;;  %v7098_v28 = vpop.f32.mrf.mxu3  ;;  %v17429_v3 = vadd.f32 %v6975_v13, %v6907_v55  ;;  %v19575_v55 = vld [vmem:[#allocation41_spill] sm:$0xff] }
 0x68f   :  { %v7099_v47 = vadd.f32 %v7098_v28, %v7031_v63  ;;  %7659 = vmatmul.bf16.gmra.mxu1 %v7279_v46  ;;  %v7280_v63 = vrot.slane %v19575_v55, 3  ;;  %v7282_v28 = vrot.slane %v19576_v8, 3 }
 0x691   :  { %v17432_v2 = vadd.f32 %v7099_v47, %v17114_v56  ;;  %7717 = vmatmul.bf16.gmra.mxu2 %v7265_v33  ;;  %v7284_v56 = vrot.slane %v19527_v27, 3  ;;  %v19574_v27 = vld [vmem:[#allocation29_spill] sm:$0xff]  ;;  %v7292_v33 = vrot.slane %v19577_v4, 3  ;;  %v7294_v47 = vrot.slane %v19534_v23, 3 }
 0x692   :  { %7785 = vmatmul.bf16.gmra.mxu3 %v7267_v61  ;;  %v6909_v41 = vpop.f32.mrf.mxu0  ;;  %v7283_v23 = vsel %vm7215_vm5, %v7274_v45, %v7282_v28  ;;  %v19579_v45 = vld [vmem:[#allocation22_spill] sm:$0xff] }
 0x693   :  { %v7285_v20 = vsel %vm7215_vm5, %v7276_v11, %v7284_v56  ;;  %v7293_v41 = vsel %vm7215_vm5, %v7284_v56, %v7292_v33 }
 0x694   :  { %v7033_v19 = vpop.f32.mrf.mxu2  ;;  %v6977_v16 = vpop.f32.mrf.mxu1 }
 0x695   :  { %v7034_v0 = vadd.f32 %v7033_v19, %v17393_v53  ;;  %v7101_v26 = vpop.f32.mrf.mxu3  ;;  %v12137_v19 = vld [vmem:[%s19067_s3 + $0x70] sm:$0xf] }
 0x697   :  { %v7102_v58 = vadd.f32 %v7101_v26, %v7034_v0  ;;  %v7281_v0 = vsel %vm7215_vm5, %v7272_v35, %v7280_v63 }
 0x699   :  { %v17436_v25 = vadd.f32 %v7102_v58, %v17126_v29 }
 0x69a   :  { %v17442_v49 = vpop.f32.mrf.mxu0 }
 0x69c   :  { %v7035_v57 = vpop.f32.mrf.mxu2  ;;  %v7625_v15 = vpop.f32.mrf.mxu1  ;;  %7596 = vmatmul.bf16.gmra.mxu0 %v7285_v20 }
 0x69d   :  { %v7036_v54 = vadd.f32 %v7035_v57, %v17399_v52  ;;  %v7103_v53 = vpop.f32.mrf.mxu3 }
 0x69f   :  { %v7104_v29 = vadd.f32 %v7103_v53, %v7036_v54  ;;  %7664 = vmatmul.bf16.gmra.mxu1 %v7287_v39  ;;  %v19581_v39 = vld [vmem:[#allocation9_spill] sm:$0xff] }
 0x6a1   :  { %v17450_v60 = vadd.f32 %v7104_v29, %v19574_v27  ;;  %7722 = vmatmul.bf16.gmra.mxu2 %v7273_v38  ;;  %v7290_v27 = vrot.slane %v19581_v39, 3 }
 0x6a2   :  { %7790 = vmatmul.bf16.gmra.mxu3 %v7275_v12  ;;  %v17452_v52 = vpop.f32.mrf.mxu0 }
 0x6a4   :  { %v7038_v40 = vpop.f32.mrf.mxu2  ;;  %v17454_v43 = vpop.f32.mrf.mxu1 }
 0x6a5   :  { %v7039_v42 = vadd.f32 %v7038_v40, %v6971_v1  ;;  %v7106_v11 = vpop.f32.mrf.mxu3  ;;  %v19582_v40 = vld [vmem:[#allocation12_spill] sm:$0xff] }
 0x6a7   :  { %v7107_v32 = vadd.f32 %v7106_v11, %v7039_v42  ;;  %v7300_v42 = vrot.slane %v19582_v40, 3  ;;  %v19583_v11 = vld [vmem:[#allocation18_spill] sm:$0xff] }
 0x6a9   :  { %v17457_v51 = vadd.f32 %v7107_v32, %v17162_v48  ;;  %v13080_v48 = vld [vmem:[%s19067_s3 + $0x74] sm:$0xf0]  ;;  %v7302_v32 = vrot.slane %v19583_v11, 3 }
 0x6aa   :  { %v17463_v13 = vpop.f32.mrf.mxu0  ;;  %v12138_v26 = vor.u32 %v13080_v48, %v12137_v19  ;;  %v7291_v48 = vsel %vm7215_vm5, %v7282_v28, %v7290_v27  ;;  %v17510_v28 = vld [vmem:[%s19066_s2] ss:$0 sm:$0xff] }
 0x6ac   :  { %v7040_v61 = vpop.f32.mrf.mxu2  ;;  %v7630_v16 = vpop.f32.mrf.mxu1  ;;  %7601 = vmatmul.bf16.gmra.mxu0 %v7293_v41 }
 0x6ad   :  { %v7041_v46 = vadd.f32 %v7040_v61, %v6973_v6  ;;  %v7108_v1 = vpop.f32.mrf.mxu3  ;;  %v7295_v6 = vsel %vm7215_vm5, %v7286_v44, %v7294_v47  ;;  %9357 = vmatpush.bf16.msrb.mxu0 %v12138_v26  ;;  %v19580_v44 = vld [vmem:[#allocation21_spill] sm:$0xff]  ;;  %v13096_v61 = vld [vmem:[%s19067_s3 + $0xf4] sm:$0xf0]  ;;  %v7626_v26 = vadd.f32 %v7625_v15, %v17442_v49  ;;  %v7296_v49 = vrot.slane %v19543_v14, 3 }
 0x6ae   :  { %v7288_v12 = vrot.slane %v19580_v44, 3  ;;  %v7628_v15 = vadd.f32 %v17454_v43, %v17452_v52  ;;  %v7631_v52 = vadd.f32 %v7630_v16, %v17463_v13  ;;  %v19585_v43 = vld [vmem:[#allocation15_spill] sm:$0xff] }
 0x6af   :  { %v7109_v58 = vadd.f32 %v7108_v1, %v7041_v46  ;;  %7669 = vmatmul.bf16.gmra.mxu1 %v7295_v6  ;;  %v7301_v46 = vsel %vm7215_vm5, %v7292_v33, %v7300_v42 }
 0x6b0   :  { %v7289_v1 = vsel %vm7215_vm5, %v7280_v63, %v7288_v12  ;;  %v7297_v40 = vsel %vm7215_vm5, %v7288_v12, %v7296_v49 }
 0x6b1   :  { %v17476_v57 = vadd.f32 %v7109_v58, %v19578_v10  ;;  %7727 = vmatmul.bf16.gmra.mxu2 %v7281_v0  ;;  %v7303_v0 = vsel %vm7215_vm5, %v7294_v47, %v7302_v32 }
 0x6b2   :  { %7795 = vmatmul.bf16.gmra.mxu3 %v7283_v23  ;;  %v17478_v53 = vpop.f32.mrf.mxu0 }
 0x6b4   :  { %v7043_v54 = vpop.f32.mrf.mxu2  ;;  %v17481_v38 = vpop.f32.mrf.mxu1 }
 0x6b5   :  { %v7044_v35 = vadd.f32 %v7043_v54, %v17429_v3  ;;  %v7111_v56 = vpop.f32.mrf.mxu3  ;;  %v12201_v3 = vld [vmem:[%s19067_s3 + $0xf0] sm:$0xf] }
 0x6b6   :  { %v12202_v19 = vor.u32 %v13096_v61, %v12201_v3  ;;  %v13078_v3 = vld [vmem:[%s19067_s3 + $0x64] sm:$0xf0] }
 0x6b7   :  { %v7112_v20 = vadd.f32 %v7111_v56, %v7044_v35  ;;  %v19584_v35 = vld [vmem:[#allocation48_spill] sm:$0xff] }
 0x6b8   :  { %9385 = vmatpush.bf16.msrb.mxu1 %v12202_v19  ;;  %v7298_v56 = vrot.slane %v19584_v35, 3 }
 0x6b9   :  { %v17484_v29 = vadd.f32 %v7112_v20, %v19579_v45 }
 0x6ba   :  { %v17490_v8 = vpop.f32.mrf.mxu0  ;;  %v7299_v14 = vsel %vm7215_vm5, %v7290_v27, %v7298_v56 }
 0x6bc   :  { %v7045_v55 = vpop.f32.mrf.mxu2  ;;  %v17501_v41 = vpop.f32.mrf.mxu1  ;;  %7606 = vmatmul.bf16.gmra.mxu0 %v7301_v46 }
 0x6bd   :  { %v7113_v4 = vpop.f32.mrf.mxu3 }
 0x6be   :  { %v12129_v4 = vld [vmem:[%s19067_s3 + $0x60] sm:$0xf] }
 0x6bf   :  { %7674 = vmatmul.bf16.gmra.mxu1 %v7303_v0  ;;  %v12130_v12 = vor.u32 %v13078_v3, %v12129_v4  ;;  %v12121_v0 = vld [vmem:[%s19067_s3 + $0x50] sm:$0xf]  ;;  %v7636_v4 = vadd.f32 %v17501_v41, %v17490_v8 }
 0x6c1   :  { %7732 = vmatmul.bf16.gmra.mxu2 %v7289_v1  ;;  %9358 = vmatpush.bf16.msrb.mxu0 %v12130_v12  ;;  %v12105_v12 = vld [vmem:[%s19067_s3 + $0x30] sm:$0xf] }
 0x6c2   :  { %7800 = vmatmul.bf16.gmra.mxu3 %v7291_v48  ;;  %v17505_v23 = vpop.f32.mrf.mxu0  ;;  %v12193_v48 = vld [vmem:[%s19067_s3 + $0xe0] sm:$0xf] }
 0x6c4   :  { %v7693_v58 = vpop.f32.mrf.mxu2  ;;  %v17512_v10 = vpop.f32.mrf.mxu1 }
 0x6c5   :  { %v7694_v33 = vadd.f32 %v7693_v58, %v7626_v26  ;;  %v7761_v6 = vpop.f32.mrf.mxu3  ;;  %v19586_v26 = vld [vmem:[#allocation20_spill] sm:$0xff] }
 0x6c6   :  { %v7304_v58 = vrot.slane %v19586_v26, 3 }
 0x6c7   :  { %v7762_v63 = vadd.f32 %v7761_v6, %v7694_v33  ;;  %v13076_v6 = vld [vmem:[%s19067_s3 + $0x54] sm:$0xf0] }
 0x6c8   :  { %v12122_v35 = vor.u32 %v13076_v6, %v12121_v0  ;;  %v13070_v0 = vld [vmem:[%s19067_s3 + $0x24] sm:$0xf0] }
 0x6c9   :  { %v7820_v47 = vadd.f32 %v7762_v63, %v17240_v50 }
 0x6ca   :  { %v17522_v45 = vpop.f32.mrf.mxu0  ;;  %9359 = vmatpush.bf16.msrb.mxu0 %v12122_v35 }
 0x6cb   :  { %v17519_v54 = vadd.f32 %v17510_v28, %v7820_v47  ;;  %v19587_v47 = vld [vmem:[#allocation26_spill] sm:$0xff] }
 0x6cc   :  { %v7695_v20 = vpop.f32.mrf.mxu2  ;;  %v17527_v11 = vpop.f32.mrf.mxu1  ;;  %7611 = vmatmul.bf16.gmra.mxu0 %v7300_v42 }
 0x6cd   :  { %7870 = vst [vmem:[#allocation2] sm:$0xff] %v17519_v54  ;;  %v7696_v44 = vadd.f32 %v7695_v20, %v7628_v15  ;;  %v7763_v39 = vpop.f32.mrf.mxu3  ;;  %v7306_v15 = vrot.slane %v19587_v47, 3  ;;  %v13128_v47 = vld [vmem:[%s19067_s3 + $0x1f4] sm:$0xf0] }
 0x6cf   :  { %v7764_v50 = vadd.f32 %v7763_v39, %v7696_v44  ;;  %7679 = vmatmul.bf16.gmra.mxu1 %v7302_v32  ;;  %v13094_v32 = vld [vmem:[%s19067_s3 + $0xe4] sm:$0xf0] }
 0x6d0   :  { %v12194_v33 = vor.u32 %v13094_v32, %v12193_v48  ;;  %v12097_v32 = vld [vmem:[%s19067_s3 + $0x20] sm:$0xf] }
 0x6d1   :  { %v7821_v55 = vadd.f32 %v7764_v50, %v19585_v43  ;;  %7737 = vmatmul.bf16.gmra.mxu2 %v7297_v40  ;;  %v12113_v50 = vld [vmem:[%s19067_s3 + $0x40] sm:$0xf]  ;;  %v7307_v43 = vsel %vm7215_vm5, %v7298_v56, %v7306_v15 }
 0x6d2   :  { %7805 = vmatmul.bf16.gmra.mxu3 %v7299_v14  ;;  %v17538_v42 = vpop.f32.mrf.mxu0  ;;  %9386 = vmatpush.bf16.msrb.mxu1 %v12194_v33  ;;  %v12098_v33 = vor.u32 %v13070_v0, %v12097_v32 }
 0x6d3   :  { %v7848_v27 = vadd.f32 %v17510_v28, %v7821_v55 }
 0x6d4   :  { %v7698_v61 = vpop.f32.mrf.mxu2  ;;  %v17540_v1 = vpop.f32.mrf.mxu1 }
 0x6d5   :  { %7871 = vst [vmem:[#allocation2 + $0x8] sm:$0xff] %v7848_v27  ;;  %v7699_v13 = vadd.f32 %v7698_v61, %v7631_v52  ;;  %v7766_v16 = vpop.f32.mrf.mxu3 }
 0x6d7   :  { %v7767_v46 = vadd.f32 %v7766_v16, %v7699_v13 }
 0x6d9   :  { %v7822_v19 = vadd.f32 %v7767_v46, %v17277_v31  ;;  %v7633_v31 = vadd.f32 %v17481_v38, %v17478_v53  ;;  %v13074_v53 = vld [vmem:[%s19067_s3 + $0x44] sm:$0xf0]  ;;  %v7305_v38 = vsel %vm7215_vm5, %v7296_v49, %v7304_v58  ;;  %v13072_v49 = vld [vmem:[%s19067_s3 + $0x34] sm:$0xf0] }
 0x6da   :  { %v17562_v44 = vpop.f32.mrf.mxu0  ;;  %v12114_v14 = vor.u32 %v13074_v53, %v12113_v50  ;;  %v12106_v56 = vor.u32 %v13072_v49, %v12105_v12  ;;  %v7638_v50 = vadd.f32 %v17512_v10, %v17505_v23  ;;  %v7641_v49 = vadd.f32 %v17527_v11, %v17522_v45  ;;  %v13112_v45 = vld [vmem:[%s19067_s3 + $0x174] sm:$0xf0]  ;;  %v12329_v11 = vld [vmem:[%s19067_s3 + $0x1f0] sm:$0xf] }
 0x6db   :  { %v17559_v63 = vadd.f32 %v17510_v28, %v7822_v19 }
 0x6dc   :  { %v7700_v20 = vpop.f32.mrf.mxu2  ;;  %v17577_v55 = vpop.f32.mrf.mxu1  ;;  %9360 = vmatpush.bf16.msrb.mxu0 %v12114_v14  ;;  %v7914_v27 = vld [vmem:[#allocation2 + $0x1] sm:$0xff] }
 0x6dd   :  { %7872 = vst [vmem:[#allocation2 + $0x10] sm:$0xff] %v17559_v63  ;;  %v7701_v39 = vadd.f32 %v7700_v20, %v7633_v31  ;;  %v7768_v40 = vpop.f32.mrf.mxu3  ;;  %v7935_v16 = vmax.f32 %v17519_v54, %v7914_v27  ;;  %v12089_v20 = vld [vmem:[%s19067_s3 + $0x10] sm:$0xf] }
 0x6df   :  { %v7769_v52 = vadd.f32 %v7768_v40, %v7701_v39  ;;  %v13068_v39 = vld [vmem:[%s19067_s3 + $0x14] sm:$0xf0] }
 0x6e0   :  { %9361 = vmatpush.bf16.msrb.mxu0 %v12106_v56  ;;  %v12090_v40 = vor.u32 %v13068_v39, %v12089_v20  ;;  %v12185_v56 = vld [vmem:[%s19067_s3 + $0xd0] sm:$0xf] }
 0x6e1   :  { %v7823_v3 = vadd.f32 %v7769_v52, %v17293_v5  ;;  %7742 = vmatmul.bf16.gmra.mxu2 %v7305_v38 }
 0x6e2   :  { %7810 = vmatmul.bf16.gmra.mxu3 %v7307_v43  ;;  %v17591_v5 = vpop.f32.mrf.mxu0  ;;  %v12081_v43 = vld [vmem:[%s19067_s3] sm:$0xf] }
 0x6e3   :  { %v17589_v61 = vadd.f32 %v17510_v28, %v7823_v3 }
 0x6e4   :  { %v7956_v13 = vld [vmem:[#allocation2 + $0xa] sm:$0xff]  ;;  %v7703_v41 = vpop.f32.mrf.mxu2  ;;  %v17601_v35 = vpop.f32.mrf.mxu1  ;;  %9362 = vmatpush.bf16.msrb.mxu0 %v12098_v33 }
 0x6e5   :  { %v7977_v8 = vld [vmem:[#allocation2 + $0xb] sm:$0xff]  ;;  %7873 = vst [vmem:[#allocation2 + $0x18] sm:$0xff] %v17589_v61  ;;  %v7704_v19 = vadd.f32 %v7703_v41, %v7636_v4  ;;  %v7771_v48 = vpop.f32.mrf.mxu3 }
 0x6e6   :  { %v7998_v46 = vmax.f32 %v7956_v13, %v7977_v8  ;;  %v13066_v4 = vld [vmem:[%s19067_s3 + $0x4] sm:$0xf0]  ;;  %v13092_v13 = vld [vmem:[%s19067_s3 + $0xd4] sm:$0xf0] }
 0x6e7   :  { %v7772_v31 = vadd.f32 %v7771_v48, %v7704_v19  ;;  %v12082_v3 = vor.u32 %v13066_v4, %v12081_v43  ;;  %v12186_v8 = vor.u32 %v13092_v13, %v12185_v56 }
 0x6e8   :  { %v8019_v6 = vmax.f32 %v7935_v16, %v7998_v46  ;;  %9363 = vmatpush.bf16.msrb.mxu0 %v12090_v40  ;;  %v12330_v46 = vor.u32 %v13128_v47, %v12329_v11  ;;  %v7643_v40 = vadd.f32 %v17540_v1, %v17538_v42  ;;  %v7646_v42 = vadd.f32 %v17577_v55, %v17562_v44  ;;  %v12257_v44 = vld [vmem:[%s19067_s3 + $0x160] sm:$0xf] }
 0x6e9   :  { %v7824_v54 = vadd.f32 %v7772_v31, %v17299_v37  ;;  %9387 = vmatpush.bf16.msrb.mxu1 %v12186_v8 }
 0x6ea   :  { %8040 = vst [vmem:[#allocation3] sm:$0xff] %v8019_v6  ;;  %v17613_v14 = vpop.f32.mrf.mxu0  ;;  %9441 = vmatpush.bf16.msra.mxu3 %v12330_v46 }
 0x6eb   :  { %v7851_v53 = vadd.f32 %v17510_v28, %v7824_v54 }
 0x6ec   :  { %v7705_v38 = vpop.f32.mrf.mxu2  ;;  %v17621_v23 = vpop.f32.mrf.mxu1  ;;  %v7916_v10 = vld [vmem:[#allocation2 + $0x11] sm:$0xff]  ;;  %9364 = vmatpush.bf16.msrb.mxu0 %v12082_v3 }
 0x6ed   :  { %7874 = vst [vmem:[#allocation2 + $0x20] sm:$0xff] %v7851_v53  ;;  %v7706_v37 = vadd.f32 %v7705_v38, %v7638_v50  ;;  %v7773_v52 = vpop.f32.mrf.mxu3  ;;  %v7937_v48 = vmax.f32 %v17559_v63, %v7916_v10 }
 0x6ef   :  { %v7774_v12 = vadd.f32 %v7773_v52, %v7706_v37 }
 0x6f1   :  { %v7825_v27 = vadd.f32 %v7774_v12, %v17312_v7  ;;  %7747 = vmatmul.bf16.gmra.mxu2 %v7304_v58  ;;  %v12265_v7 = vld [vmem:[%s19067_s3 + $0x170] sm:$0xf] }
 0x6f2   :  { %7815 = vmatmul.bf16.gmra.mxu3 %v7306_v15  ;;  %v12266_v58 = vor.u32 %v13112_v45, %v12265_v7  ;;  %v17651_v19 = vpop.f32.mrf.mxu0 }
 0x6f3   :  { %v17646_v26 = vadd.f32 %v17510_v28, %v7825_v27 }
 0x6f4   :  { %v7958_v15 = vld [vmem:[#allocation2 + $0x1a] sm:$0xff]  ;;  %v7708_v16 = vpop.f32.mrf.mxu2  ;;  %9413 = vmatpush.bf16.msra.mxu2 %v12266_v58  ;;  %v17655_v54 = vpop.f32.mrf.mxu1 }
 0x6f5   :  { %v7979_v41 = vld [vmem:[#allocation2 + $0x1b] sm:$0xff]  ;;  %7875 = vst [vmem:[#allocation2 + $0x28] sm:$0xff] %v17646_v26  ;;  %v7709_v0 = vadd.f32 %v7708_v16, %v7641_v49  ;;  %v7776_v33 = vpop.f32.mrf.mxu3 }
 0x6f6   :  { %v8000_v32 = vmax.f32 %v7958_v15, %v7979_v41  ;;  %v7917_v39 = vld [vmem:[#allocation2 + $0x19] sm:$0xff] }
 0x6f7   :  { %v7777_v31 = vadd.f32 %v7776_v33, %v7709_v0  ;;  %v7938_v52 = vmax.f32 %v17589_v61, %v7917_v39  ;;  %v8061_v49 = vld [vmem:[#allocation3] ss:$2 sm:$0xf]  ;;  %v7648_v39 = vadd.f32 %v17601_v35, %v17591_v5 }
 0x6f8   :  { %v8021_v6 = vmax.f32 %v7937_v48, %v8000_v32  ;;  %v8063_v61 = vrot.slane %v8061_v49, 1  ;;  %v8065_v13 = vrot.slane %v8061_v49, 7  ;;  %v8067_v55 = vrot.slane %v8061_v49, 5  ;;  %v12177_v48 = vld [vmem:[%s19067_s3 + $0xc0] sm:$0xf] }
 0x6f9   :  { %v7826_v20 = vadd.f32 %v7777_v31, %v17322_v62  ;;  %v13090_v32 = vld [vmem:[%s19067_s3 + $0xc4] sm:$0xf0] }
 0x6fa   :  { %8042 = vst [vmem:[#allocation3 + $0x10] sm:$0xff] %v8021_v6  ;;  %v17661_v37 = vpop.f32.mrf.mxu0  ;;  %v8070_v41 = vsel %vm8069_vm6, %v8063_v61, %v8065_v13  ;;  %v12178_v33 = vor.u32 %v13090_v32, %v12177_v48  ;;  %v12313_v61 = vld [vmem:[%s19067_s3 + $0x1d0] sm:$0xf]  ;;  %v13124_v13 = vld [vmem:[%s19067_s3 + $0x1d4] sm:$0xf0] }
 0x6fb   :  { %v7853_v63 = vadd.f32 %v17510_v28, %v7826_v20  ;;  %v12321_v20 = vld [vmem:[%s19067_s3 + $0x1e0] sm:$0xf] }
 0x6fc   :  { %v7959_v50 = vld [vmem:[#allocation2 + $0x22] sm:$0xff]  ;;  %v7710_v38 = vpop.f32.mrf.mxu2  ;;  %v17664_v62 = vpop.f32.mrf.mxu1  ;;  %9388 = vmatpush.bf16.msrb.mxu1 %v12178_v33 }
 0x6fd   :  { %v7980_v53 = vld [vmem:[#allocation2 + $0x23] sm:$0xff]  ;;  %7876 = vst [vmem:[#allocation2 + $0x30] sm:$0xff] %v7853_v63  ;;  %v7711_v4 = vadd.f32 %v7710_v38, %v7643_v40  ;;  %v7778_v3 = vpop.f32.mrf.mxu3  ;;  %v8072_v63 = vsel %vm7215_vm5, %v8070_v41, %v8067_v55 }
 0x6fe   :  { %v8001_v43 = vmax.f32 %v7959_v50, %v7980_v53  ;;  %v8107_v49 = vrot.slane %v8072_v63, 2  ;;  %v12305_v32 = vld [vmem:[%s19067_s3 + $0x1c0] sm:$0xf]  ;;  %v12297_v63 = vld [vmem:[%s19067_s3 + $0x1b0] sm:$0xf] }
 0x6ff   :  { %v7779_v10 = vadd.f32 %v7778_v3, %v7711_v4 }
 0x700   :  { %v8022_v12 = vmax.f32 %v7938_v52, %v8001_v43 }
 0x701   :  { %v7827_v1 = vadd.f32 %v7779_v10, %v17336_v30  ;;  %v13110_v30 = vld [vmem:[%s19067_s3 + $0x164] sm:$0xf0] }
 0x702   :  { %8043 = vst [vmem:[#allocation3 + $0x18] sm:$0xff] %v8022_v12  ;;  %v17673_v45 = vpop.f32.mrf.mxu0  ;;  %v12258_v15 = vor.u32 %v13110_v30, %v12257_v44  ;;  %v12314_v44 = vor.u32 %v13124_v13, %v12313_v61 }
 0x703   :  { %v17670_v27 = vadd.f32 %v17510_v28, %v7827_v1  ;;  %v13108_v1 = vld [vmem:[%s19067_s3 + $0x154] sm:$0xf0] }
 0x704   :  { %v7713_v56 = vpop.f32.mrf.mxu2  ;;  %v17681_v58 = vpop.f32.mrf.mxu1  ;;  %v7919_v47 = vld [vmem:[#allocation2 + $0x29] sm:$0xff]  ;;  %9414 = vmatpush.bf16.msra.mxu2 %v12258_v15 }
 0x705   :  { %7877 = vst [vmem:[#allocation2 + $0x38] sm:$0xff] %v17670_v27  ;;  %v7714_v8 = vadd.f32 %v7713_v56, %v7646_v42  ;;  %v7781_v7 = vpop.f32.mrf.mxu3  ;;  %v7940_v4 = vmax.f32 %v17646_v26, %v7919_v47  ;;  %v12249_v42 = vld [vmem:[%s19067_s3 + $0x150] sm:$0xf]  ;;  %v7651_v47 = vadd.f32 %v17621_v23, %v17613_v14 }
 0x706   :  { %v12250_v56 = vor.u32 %v13108_v1, %v12249_v42  ;;  %v12225_v42 = vld [vmem:[%s19067_s3 + $0x120] sm:$0xf]  ;;  %v13102_v1 = vld [vmem:[%s19067_s3 + $0x124] sm:$0xf0] }
 0x707   :  { %v7782_v11 = vadd.f32 %v7781_v7, %v7714_v8  ;;  %v12226_v61 = vor.u32 %v13102_v1, %v12225_v42  ;;  %v12145_v42 = vld [vmem:[%s19067_s3 + $0x80] sm:$0xf] }
 0x708   :  { %9415 = vmatpush.bf16.msra.mxu2 %v12250_v56  ;;  %v13118_v56 = vld [vmem:[%s19067_s3 + $0x1a4] sm:$0xf0] }
 0x709   :  { %v8074_v16 = vld [vmem:[#allocation3 + $0x14] ss:$2 sm:$0xf]  ;;  %v7828_v46 = vadd.f32 %v7782_v11, %v17342_v34  ;;  %v13126_v34 = vld [vmem:[%s19067_s3 + $0x1e4] sm:$0xf0] }
 0x70a   :  { %v8076_v0 = vrot.slane %v8074_v16, 1  ;;  %v8078_v6 = vrot.slane %v8074_v16, 7  ;;  %v8080_v31 = vrot.slane %v8074_v16, 5  ;;  %v12322_v50 = vor.u32 %v13126_v34, %v12321_v20  ;;  %v17709_v10 = vpop.f32.mrf.mxu0  ;;  %v12241_v16 = vld [vmem:[%s19067_s3 + $0x140] sm:$0xf] }
 0x70b   :  { %v17700_v40 = vadd.f32 %v17510_v28, %v7828_v46  ;;  %v13106_v46 = vld [vmem:[%s19067_s3 + $0x144] sm:$0xf0]  ;;  %v12233_v20 = vld [vmem:[%s19067_s3 + $0x130] sm:$0xf]  ;;  %v13104_v34 = vld [vmem:[%s19067_s3 + $0x134] sm:$0xf0] }
 0x70c   :  { %v7961_v53 = vld [vmem:[#allocation2 + $0x32] sm:$0xff]  ;;  %v7715_v52 = vpop.f32.mrf.mxu2  ;;  %v8082_v43 = vsel %vm8069_vm6, %v8076_v0, %v8078_v6  ;;  %9442 = vmatpush.bf16.msra.mxu3 %v12322_v50  ;;  %v17724_v11 = vpop.f32.mrf.mxu1  ;;  %v12242_v48 = vor.u32 %v13106_v46, %v12241_v16 }
 0x70d   :  { %v7982_v38 = vld [vmem:[#allocation2 + $0x33] sm:$0xff]  ;;  %7878 = vst [vmem:[#allocation2 + $0x40] sm:$0xff] %v17700_v40  ;;  %v7716_v12 = vadd.f32 %v7715_v52, %v7648_v39  ;;  %v7783_v5 = vpop.f32.mrf.mxu3  ;;  %v17707_v35 = vsel %vm7215_vm5, %v8082_v43, %v8080_v31  ;;  %v12234_v39 = vor.u32 %v13104_v34, %v12233_v20 }
 0x70e   :  { %v8003_v3 = vmax.f32 %v7961_v53, %v7982_v38  ;;  %v8110_v26 = vrot.slane %v17707_v35, 4  ;;  %v8118_v30 = vsel %vm4545_vm3, %v17707_v35, %v8107_v49  ;;  %9416 = vmatpush.bf16.msra.mxu2 %v12242_v48  ;;  %v13120_v50 = vld [vmem:[%s19067_s3 + $0x1b4] sm:$0xf0]  ;;  %v12169_v38 = vld [vmem:[%s19067_s3 + $0xb0] sm:$0xf] }
 0x70f   :  { %v7784_v7 = vadd.f32 %v7783_v5, %v7716_v12  ;;  %v13088_v52 = vld [vmem:[%s19067_s3 + $0xb4] sm:$0xf0]  ;;  %v12153_v20 = vld [vmem:[%s19067_s3 + $0x90] sm:$0xf] }
 0x710   :  { %v8024_v8 = vmax.f32 %v7940_v4, %v8003_v3  ;;  %v8120_v55 = vsel %vm8119_vm7, %v8107_v49, %v8110_v26  ;;  %9443 = vmatpush.bf16.msra.mxu3 %v12314_v44  ;;  %v12298_v4 = vor.u32 %v13120_v50, %v12297_v63  ;;  %v12170_v3 = vor.u32 %v13088_v52, %v12169_v38  ;;  %v12289_v49 = vld [vmem:[%s19067_s3 + $0x1a0] sm:$0xf]  ;;  %v13084_v34 = vld [vmem:[%s19067_s3 + $0x94] sm:$0xf0]  ;;  %v13098_v52 = vld [vmem:[%s19067_s3 + $0x104] sm:$0xf0] }
 0x711   :  { %v7829_v15 = vadd.f32 %v7784_v7, %v17356_v17  ;;  %v17734_v41 = vpack.c.bf16 %v8120_v55, %v8118_v30  ;;  %v13122_v17 = vld [vmem:[%s19067_s3 + $0x1c4] sm:$0xf0]  ;;  %v12290_v13 = vor.u32 %v13118_v56, %v12289_v49  ;;  %v7653_v55 = vadd.f32 %v17655_v54, %v17651_v19  ;;  %v13100_v19 = vld [vmem:[%s19067_s3 + $0x114] sm:$0xf0]  ;;  %v12281_v54 = vld [vmem:[%s19067_s3 + $0x190] sm:$0xf] }
 0x712   :  { %8045 = vst [vmem:[#allocation3 + $0x28] sm:$0xff] %v8024_v8  ;;  %v12306_v0 = vor.u32 %v13122_v17, %v12305_v32  ;;  %v17751_v31 = vpop.f32.mrf.mxu0  ;;  %9417 = vmatpush.bf16.msra.mxu2 %v12234_v39  ;;  %9389 = vmatpush.bf16.msrb.mxu1 %v12170_v3  ;;  %v12161_v8 = vld [vmem:[%s19067_s3 + $0xa0] sm:$0xf]  ;;  %v13086_v7 = vld [vmem:[%s19067_s3 + $0xa4] sm:$0xf0]  ;;  %v12154_v63 = vor.u32 %v13084_v34, %v12153_v20 }
 0x713   :  { %v7856_v14 = vadd.f32 %v17510_v28, %v7829_v15  ;;  %13213 = vst [vmem:[#allocation4] sm:$0xff] %v17734_v41   ;;  %9365 = vmatmul.bf16.vlgmr.msrb.gmra.mxu0 %v17734_v41  ;;  %v12162_v15 = vor.u32 %v13086_v7, %v12161_v8  ;;  %v12217_v17 = vld [vmem:[%s19067_s3 + $0x110] sm:$0xf]  ;;  %v7656_v50 = vadd.f32 %v17664_v62, %v17661_v37  ;;  %v12209_v38 = vld [vmem:[%s19067_s3 + $0x100] sm:$0xf] }
 0x714   :  { %v7718_v23 = vpop.f32.mrf.mxu2  ;;  %9444 = vmatpush.bf16.msra.mxu3 %v12306_v0  ;;  %v17771_v43 = vpop.f32.mrf.mxu1  ;;  %v7921_v12 = vld [vmem:[#allocation2 + $0x39] sm:$0xff]  ;;  %v13114_v62 = vld [vmem:[%s19067_s3 + $0x184] sm:$0xf0]  ;;  %v7661_v34 = vadd.f32 %v17724_v11, %v17709_v10 }
 0x715   :  { %7879 = vst [vmem:[#allocation2 + $0x48] sm:$0xff] %v7856_v14  ;;  %v7719_v33 = vadd.f32 %v7718_v23, %v7651_v47  ;;  %v7786_v6 = vpop.f32.mrf.mxu3  ;;  %v7942_v16 = vmax.f32 %v17670_v27, %v7921_v12  ;;  %v13116_v27 = vld [vmem:[%s19067_s3 + $0x194] sm:$0xf0]  ;;  %v12210_v12 = vor.u32 %v13098_v52, %v12209_v38  ;;  %v12273_v37 = vld [vmem:[%s19067_s3 + $0x180] sm:$0xf] }
 0x716   :  { %9418 = vmatpush.bf16.msra.mxu2 %v12226_v61  ;;  %9390 = vmatpush.bf16.msrb.mxu1 %v12162_v15 }
 0x717   :  { %v7787_v53 = vadd.f32 %v7786_v6, %v7719_v33  ;;  %v12218_v33 = vor.u32 %v13100_v19, %v12217_v17  ;;  %v12282_v6 = vor.u32 %v13116_v27, %v12281_v54 }
 0x718   :  { %9445 = vmatpush.bf16.msra.mxu3 %v12298_v4 }
 0x719   :  { %v7830_v5 = vadd.f32 %v7787_v53, %v17362_v9  ;;  %v8085_v53 = vld [vmem:[#allocation3 + $0x28] ss:$2 sm:$0xf] }
 0x71a   :  { %v17796_v32 = vpop.f32.mrf.mxu0  ;;  %9419 = vmatpush.bf16.msra.mxu2 %v12218_v33  ;;  %9391 = vmatpush.bf16.msrb.mxu1 %v12154_v63 }
 0x71b   :  { %v7857_v9 = vadd.f32 %v17510_v28, %v7830_v5  ;;  %v12274_v5 = vor.u32 %v13114_v62, %v12273_v37  ;;  %v8229_v62 = vld [vmem:[#allocation4] sm:$0xe] }
 0x71c   :  { %v7963_v44 = vld [vmem:[#allocation2 + $0x42] sm:$0xff]  ;;  %v7720_v47 = vpop.f32.mrf.mxu2  ;;  %9446 = vmatpush.bf16.msra.mxu3 %v12290_v13  ;;  %v17810_v0 = vpop.f32.mrf.mxu1 }
 0x71d   :  { %v7984_v30 = vld [vmem:[#allocation2 + $0x43] sm:$0xff]  ;;  %7880 = vst [vmem:[#allocation2 + $0x50] sm:$0xff] %v7857_v9  ;;  %v7788_v48 = vpop.f32.mrf.mxu3  ;;  %v7721_v14 = vadd.f32 %v7720_v47, %v7653_v55  ;;  %v8089_v55 = vrot.slane %v8085_v53, 7 }
 0x71e   :  { %v8005_v46 = vmax.f32 %v7963_v44, %v7984_v30  ;;  %v7922_v4 = vld [vmem:[#allocation2 + $0x41] sm:$0xff]  ;;  %9420 = vmatpush.bf16.msra.mxu2 %v12210_v12  ;;  %v8087_v30 = vrot.slane %v8085_v53, 1 }
 0x71f   :  { %v7789_v39 = vadd.f32 %v7788_v48, %v7721_v14  ;;  %v7943_v13 = vmax.f32 %v17700_v40, %v7922_v4  ;;  %v8091_v48 = vrot.slane %v8085_v53, 5  ;;  %v7658_v14 = vadd.f32 %v17681_v58, %v17673_v45 }
 0x720   :  { %v8026_v23 = vmax.f32 %v7942_v16, %v8005_v46  ;;  %9447 = vmatpush.bf16.msra.mxu3 %v12282_v6  ;;  %v8093_v40 = vsel %vm8069_vm6, %v8087_v30, %v8089_v55 }
 0x721   :  { %v7831_v3 = vadd.f32 %v7789_v39, %v17376_v21  ;;  %v13082_v21 = vld [vmem:[%s19067_s3 + $0x84] sm:$0xf0]  ;;  %v17853_v27 = vsel %vm7215_vm5, %v8093_v40, %v8091_v48  ;;  %v7666_v40 = vadd.f32 %v17810_v0, %v17796_v32 }
 0x722   :  { %8047 = vst [vmem:[#allocation3 + $0x38] sm:$0xff] %v8026_v23  ;;  %v12146_v61 = vor.u32 %v13082_v21, %v12145_v42  ;;  %v17841_v47 = vpop.f32.mrf.mxu0  ;;  %v8115_v52 = vrot.slane %v17853_v27, 2 }
 0x723   :  { %v7858_v56 = vadd.f32 %v17510_v28, %v7831_v3 }
 0x724   :  { %v7964_v1 = vld [vmem:[#allocation2 + $0x4a] sm:$0xff]  ;;  %v7723_v9 = vpop.f32.mrf.mxu2  ;;  %9448 = vmatpush.bf16.msra.mxu3 %v12274_v5  ;;  %9392 = vmatpush.bf16.msrb.mxu1 %v12146_v61  ;;  %v17843_v46 = vpop.f32.mrf.mxu1  ;;  %v8230_v5 = vld [vmem:[#allocation4] sm:$0x8]  ;;  %v8275_v61 = vshll.u32 %v17734_v41, 16 }
 0x725   :  { %v7985_v49 = vld [vmem:[#allocation2 + $0x4b] sm:$0xff]  ;;  %v7724_v7 = vadd.f32 %v7723_v9, %v7656_v50  ;;  %v7791_v44 = vpop.f32.mrf.mxu3  ;;  %7881 = vst [vmem:[#allocation2 + $0x58] sm:$0xff] %v7858_v56  ;;  %v8323_v35 = vunpack.c.l.b16 %v8230_v5  ;;  %v13232_v9 = vunpack.c.h.b16 %v17734_v41 }
 0x726   :  { %v8006_v8 = vmax.f32 %v7964_v1, %v7985_v49  ;;  %v8308_v1 = vunpack.c.l.b16 %v8229_v62 }
 0x727   :  { %v7792_v16 = vadd.f32 %v7791_v44, %v7724_v7  ;;  %v8325_v30 = vpack.c.b16 %v13232_v9, %v8323_v35 }
 0x728   :  { %v8027_v15 = vmax.f32 %v7943_v13, %v8006_v8  ;;  %v7663_v13 = vadd.f32 %v17771_v43, %v17751_v31  ;;  %v8309_v44 = vpack.c.b16 %v13232_v9, %v8308_v1 }
 0x729   :  { %v7832_v17 = vadd.f32 %v7792_v16, %v17382_v36  ;;  %v8113_v36 = vrot.slane %v17853_v27, 6  ;;  %v8277_v16 = vrot.slane %v8275_v61, 1 }
 0x72a   :  { %8048 = vst [vmem:[#allocation3 + $0x40] sm:$0xff] %v8027_v15  ;;  %v17859_v45 = vpop.f32.mrf.mxu0 }
 0x72b   :  { %v17850_v19 = vadd.f32 %v17510_v28, %v7832_v17  ;;  %v8122_v10 = vsel %vm8121_vm8, %v8110_v26, %v8113_v36 }
 0x72c   :  { %v7725_v54 = vpop.f32.mrf.mxu2  ;;  %v17861_v58 = vpop.f32.mrf.mxu1 }
 0x72d   :  { %7882 = vst [vmem:[#allocation2 + $0x60] sm:$0xff] %v17850_v19  ;;  %v7726_v23 = vadd.f32 %v7725_v54, %v7658_v14  ;;  %v7793_v33 = vpop.f32.mrf.mxu3  ;;  %v8310_v14 = vrot.slane %v8309_v44, 1  ;;  %v8327_v54 = vrot.slane %v8325_v30, 3 }
 0x72f   :  { %v7794_v6 = vadd.f32 %v7793_v33, %v7726_v23 }
 0x731   :  { %v8096_v20 = vld [vmem:[#allocation3 + $0x3c] ss:$2 sm:$0xf]  ;;  %v7833_v53 = vadd.f32 %v7794_v6, %v17396_v59 }
 0x732   :  { %v8098_v39 = vrot.slane %v8096_v20, 1  ;;  %v8100_v63 = vrot.slane %v8096_v20, 7  ;;  %v8102_v50 = vrot.slane %v8096_v20, 5  ;;  %v17880_v49 = vpop.f32.mrf.mxu0 }
 0x733   :  { %v17867_v4 = vadd.f32 %v17510_v28, %v7833_v53 }
 0x734   :  { %v8104_v38 = vsel %vm8069_vm6, %v8098_v39, %v8100_v63  ;;  %v7728_v11 = vpop.f32.mrf.mxu2  ;;  %v17882_v26 = vpop.f32.mrf.mxu1 }
 0x735   :  { %v8105_v3 = vsel %vm7215_vm5, %v8104_v38, %v8102_v50  ;;  %7883 = vst [vmem:[#allocation2 + $0x68] sm:$0xff] %v17867_v4  ;;  %v7729_v59 = vadd.f32 %v7728_v11, %v7661_v34  ;;  %v7796_v37 = vpop.f32.mrf.mxu3 }
 0x736   :  { %v8123_v12 = vsel %vm4545_vm3, %v8105_v3, %v8115_v52 }
 0x737   :  { %v17877_v42 = vpack.c.bf16 %v8123_v12, %v8122_v10  ;;  %v7797_v21 = vadd.f32 %v7796_v37, %v7729_v59 }
 0x739   :  { %13245 = vst [vmem:[#allocation4 + $0x8] sm:$0xff] %v17877_v42   ;;  %v7834_v56 = vadd.f32 %v7797_v21, %v17402_v24  ;;  %v8273_v24 = vshrl.u32 %v17734_v41, 16  ;;  %v7668_v21 = vadd.f32 %v17843_v46, %v17841_v47  ;;  %v7671_v47 = vadd.f32 %v17861_v58, %v17859_v45 }
 0x73a   :  { %v17895_v31 = vpop.f32.mrf.mxu0 }
 0x73b   :  { %v7861_v8 = vadd.f32 %v17510_v28, %v7834_v56  ;;  %v8278_v36 = vor.u32 %v8277_v16, %v8273_v24 }
 0x73c   :  { %v7730_v7 = vpop.f32.mrf.mxu2  ;;  %v17897_v43 = vpop.f32.mrf.mxu1  ;;  %v7926_v41 = vld [vmem:[#allocation2 + $0x61] sm:$0xff] }
 0x73d   :  { %7884 = vst [vmem:[#allocation2 + $0x70] sm:$0xff] %v7861_v8  ;;  %v7731_v55 = vadd.f32 %v7730_v7, %v7663_v13  ;;  %v7798_v15 = vpop.f32.mrf.mxu3  ;;  %v7947_v53 = vmax.f32 %v17850_v19, %v7926_v41 }
 0x73f   :  { %v7799_v48 = vadd.f32 %v7798_v15, %v7731_v55 }
 0x740   :  { %v17890_v17 = vld [vmem:[#allocation4 + $0x8] sm:$0xff] }
 0x741   :  { %v7835_v23 = vadd.f32 %v7799_v48, %v17414_v22  ;;  %9370 = vmatmul.bf16.gmra.mxu0 %v17890_v17  ;;  %v8311_v33 = vrot.slane %v17890_v17, 1  ;;  %v8328_v6 = vrot.slane %v17890_v17, 3  ;;  %v8280_v20 = vshll.u32 %v17890_v17, 16 }
 0x742   :  { %v17925_v37 = vpop.f32.mrf.mxu0 }
 0x743   :  { %v7862_v32 = vadd.f32 %v17510_v28, %v7835_v23  ;;  %v17908_v0 = vsel %vm1875_vm1, %v8310_v14, %v8311_v33  ;;  %v17913_v22 = vsel %vm7215_vm5, %v8327_v54, %v8328_v6  ;;  %v17915_v34 = vrot.slane %v8280_v20, 1 }
 0x744   :  { %v7968_v39 = vld [vmem:[#allocation2 + $0x6a] sm:$0xff]  ;;  %v7733_v50 = vpop.f32.mrf.mxu2  ;;  %9421 = vmatmul.bf16.vlgmr.msra.gmra.mxu2 %v17908_v0  ;;  %9449 = vmatmul.bf16.vlgmr.msra.gmra.mxu3 %v17913_v22  ;;  %v17927_v62 = vpop.f32.mrf.mxu1  ;;  %v7673_v20 = vadd.f32 %v17882_v26, %v17880_v49 }
 0x745   :  { %v7989_v63 = vld [vmem:[#allocation2 + $0x6b] sm:$0xff]  ;;  %7885 = vst [vmem:[#allocation2 + $0x78] sm:$0xff] %v7862_v32  ;;  %v7734_v3 = vadd.f32 %v7733_v50, %v7666_v40  ;;  %v7801_v10 = vpop.f32.mrf.mxu3  ;;  %v17922_v11 = vsel %vm383_vm0, %v8278_v36, %v17915_v34 }
 0x746   :  { %v8010_v38 = vmax.f32 %v7968_v39, %v7989_v63  ;;  %9393 = vmatmul.bf16.vlgmr.msrb.gmra.mxu1 %v17922_v11  ;;  %v7927_v19 = vld [vmem:[#allocation2 + $0x69] sm:$0xff] }
 0x747   :  { %v7802_v59 = vadd.f32 %v7801_v10, %v7734_v3  ;;  %v7948_v61 = vmax.f32 %v17867_v4, %v7927_v19 }
 0x748   :  { %v8031_v12 = vmax.f32 %v7947_v53, %v8010_v38 }
 0x749   :  { %v7836_v5 = vadd.f32 %v7802_v59, %v17418_v18 }
 0x74a   :  { %8052 = vst [vmem:[#allocation3 + $0x60] sm:$0xff] %v8031_v12  ;;  %v17934_v55 = vpop.f32.mrf.mxu0 }
 0x74b   :  { %v7863_v1 = vadd.f32 %v17510_v28, %v7836_v5 }
 0x74c   :  { %v7969_v35 = vld [vmem:[#allocation2 + $0x72] sm:$0xff]  ;;  %v7735_v9 = vpop.f32.mrf.mxu2  ;;  %v17936_v18 = vpop.f32.mrf.mxu1 }
 0x74d   :  { %v7990_v56 = vld [vmem:[#allocation2 + $0x73] sm:$0xff]  ;;  %7886 = vst [vmem:[#allocation2 + $0x80] sm:$0xff] %v7863_v1  ;;  %v7736_v8 = vadd.f32 %v7735_v9, %v7668_v21  ;;  %v7803_v7 = vpop.f32.mrf.mxu3 }
 0x74e   :  { %v8011_v13 = vmax.f32 %v7969_v35, %v7990_v56 }
 0x74f   :  { %v7804_v30 = vadd.f32 %v7803_v7, %v7736_v8  ;;  %v13144_v8 = vld [vmem:[%s19067_s3 + $0x274] sm:$0xf0]  ;;  %v12457_v7 = vld [vmem:[%s19067_s3 + $0x2f0] sm:$0xf] }
 0x750   :  { %v8032_v44 = vmax.f32 %v7948_v61, %v8011_v13  ;;  %v7678_v13 = vadd.f32 %v17927_v62, %v17925_v37 }
 0x751   :  { %v7837_v46 = vadd.f32 %v7804_v30, %v17432_v2 }
 0x752   :  { %8053 = vst [vmem:[#allocation3 + $0x68] sm:$0xff] %v8032_v44  ;;  %v7614_v40 = vpop.f32.mrf.mxu0  ;;  %v17976_v44 = vld [vmem:[%s19066_s2] ss:$0 sm:$0xff] }
 0x753   :  { %v17942_v15 = vadd.f32 %v17510_v28, %v7837_v46  ;;  %v12385_v46 = vld [vmem:[%s19067_s3 + $0x260] sm:$0xf] }
 0x754   :  { %v7738_v4 = vpop.f32.mrf.mxu2  ;;  %v7682_v14 = vpop.f32.mrf.mxu1  ;;  %v7929_v23 = vld [vmem:[#allocation2 + $0x79] sm:$0xff] }
 0x755   :  { %7887 = vst [vmem:[#allocation2 + $0x88] sm:$0xff] %v17942_v15  ;;  %v7739_v16 = vadd.f32 %v7738_v4, %v7671_v47  ;;  %v7806_v48 = vpop.f32.mrf.mxu3  ;;  %v7950_v36 = vmax.f32 %v7862_v32, %v7929_v23  ;;  %v13142_v4 = vld [vmem:[%s19067_s3 + $0x264] sm:$0xf0] }
 0x757   :  { %v7807_v24 = vadd.f32 %v7806_v48, %v7739_v16  ;;  %v12449_v16 = vld [vmem:[%s19067_s3 + $0x2e0] sm:$0xf] }
 0x759   :  { %v7838_v54 = vadd.f32 %v7807_v24, %v17436_v25  ;;  %v8125_v53 = vld [vmem:[#allocation3 + $0x64] ss:$2 sm:$0xf]  ;;  %v7676_v25 = vadd.f32 %v17897_v43, %v17895_v31 }
 0x75a   :  { %v8127_v26 = vrot.slane %v8125_v53, 1  ;;  %v8129_v10 = vrot.slane %v8125_v53, 7  ;;  %v8131_v32 = vrot.slane %v8125_v53, 5 }
 0x75b   :  { %v17949_v45 = vadd.f32 %v17510_v28, %v7838_v54 }
 0x75c   :  { %v7971_v2 = vld [vmem:[#allocation2 + $0x82] sm:$0xff]  ;;  %v7740_v41 = vpop.f32.mrf.mxu2  ;;  %v8133_v21 = vsel %vm8069_vm6, %v8127_v26, %v8129_v10  ;;  %v12377_v10 = vld [vmem:[%s19067_s3 + $0x250] sm:$0xf] }
 0x75d   :  { %v7992_v58 = vld [vmem:[#allocation2 + $0x83] sm:$0xff]  ;;  %7888 = vst [vmem:[#allocation2 + $0x90] sm:$0xff] %v17949_v45  ;;  %v7741_v63 = vadd.f32 %v7740_v41, %v7673_v20  ;;  %v7808_v50 = vpop.f32.mrf.mxu3  ;;  %v8134_v56 = vsel %vm7215_vm5, %v8133_v21, %v8131_v32 }
 0x75e   :  { %v8013_v39 = vmax.f32 %v7971_v2, %v7992_v58  ;;  %v8169_v23 = vrot.slane %v8134_v56, 2 }
 0x75f   :  { %v7809_v3 = vadd.f32 %v7808_v50, %v7741_v63 }
 0x760   :  { %v8034_v38 = vmax.f32 %v7950_v36, %v8013_v39  ;;  %v12386_v36 = vor.u32 %v13142_v4, %v12385_v46  ;;  %v13158_v39 = vld [vmem:[%s19067_s3 + $0x2e4] sm:$0xf0]  ;;  %v12369_v46 = vld [vmem:[%s19067_s3 + $0x240] sm:$0xf] }
 0x761   :  { %v7839_v49 = vadd.f32 %v7809_v3, %v17450_v60  ;;  %v12450_v63 = vor.u32 %v13158_v39, %v12449_v16  ;;  %v13138_v4 = vld [vmem:[%s19067_s3 + $0x244] sm:$0xf0] }
 0x762   :  { %8055 = vst [vmem:[#allocation3 + $0x78] sm:$0xff] %v8034_v38  ;;  %v12370_v16 = vor.u32 %v13138_v4, %v12369_v46  ;;  %v12345_v46 = vld [vmem:[%s19067_s3 + $0x210] sm:$0xf] }
 0x763   :  { %v7866_v12 = vadd.f32 %v17510_v28, %v7839_v49  ;;  %v12393_v28 = vld [vmem:[%s19067_s3 + $0x270] sm:$0xf]  ;;  %v7681_v49 = vadd.f32 %v17936_v18, %v17934_v55 }
 0x764   :  { %v7743_v59 = vpop.f32.mrf.mxu2  ;;  %v7931_v35 = vld [vmem:[#allocation2 + $0x89] sm:$0xff]  ;;  %v12394_v62 = vor.u32 %v13144_v8, %v12393_v28 }
 0x765   :  { %7889 = vst [vmem:[#allocation2 + $0x98] sm:$0xff] %v7866_v12  ;;  %v7744_v5 = vadd.f32 %v7743_v59, %v7676_v25  ;;  %v7811_v19 = vpop.f32.mrf.mxu3  ;;  %v7952_v48 = vmax.f32 %v17942_v15, %v7931_v35  ;;  %v13140_v12 = vld [vmem:[%s19067_s3 + $0x254] sm:$0xf0]  ;;  %v8371_v59 = vshrl.u32 %v17877_v42, 16  ;;  %v12441_v18 = vld [vmem:[%s19067_s3 + $0x2d0] sm:$0xf] }
 0x766   :  { %9469 = vmatpush.bf16.msra.mxu0 %v12394_v62 }
 0x767   :  { %v7812_v1 = vadd.f32 %v7811_v19, %v7744_v5  ;;  %v13156_v5 = vld [vmem:[%s19067_s3 + $0x2d4] sm:$0xf0]  ;;  %v8374_v19 = vshll.u32 %v17877_v42, 16 }
 0x768   :  { %v12442_v56 = vor.u32 %v13156_v5, %v12441_v18  ;;  %v12361_v5 = vld [vmem:[%s19067_s3 + $0x230] sm:$0xf] }
 0x769   :  { %v8136_v9 = vld [vmem:[#allocation3 + $0x78] ss:$2 sm:$0xf]  ;;  %v7840_v31 = vadd.f32 %v7812_v1, %v17457_v51  ;;  %v13160_v51 = vld [vmem:[%s19067_s3 + $0x2f4] sm:$0xf0]  ;;  %v8376_v8 = vrot.slane %v8374_v19, 4 }
 0x76a   :  { %v8138_v43 = vrot.slane %v8136_v9, 1  ;;  %v8140_v60 = vrot.slane %v8136_v9, 7  ;;  %v8142_v61 = vrot.slane %v8136_v9, 5  ;;  %v12458_v47 = vor.u32 %v13160_v51, %v12457_v7  ;;  %9470 = vmatpush.bf16.msra.mxu0 %v12386_v36  ;;  %v13136_v19 = vld [vmem:[%s19067_s3 + $0x234] sm:$0xf0] }
 0x76b   :  { %v7867_v30 = vadd.f32 %v17976_v44, %v7840_v31  ;;  %v8284_v36 = vshrl.u32 %v17890_v17, 16 }
 0x76c   :  { %v8144_v37 = vsel %vm8069_vm6, %v8138_v43, %v8140_v60  ;;  %v7973_v24 = vld [vmem:[#allocation2 + $0x92] sm:$0xff]  ;;  %v7745_v14 = vpop.f32.mrf.mxu2  ;;  %9497 = vmatpush.bf16.msra.mxu1 %v12458_v47  ;;  %v8373_v60 = vrot.slane %v8371_v59, 3 }
 0x76d   :  { %v7994_v40 = vld [vmem:[#allocation2 + $0x93] sm:$0xff]  ;;  %v17991_v54 = vsel %vm7215_vm5, %v8144_v37, %v8142_v61  ;;  %7890 = vst [vmem:[#allocation2 + $0xa0] sm:$0xff] %v7867_v30  ;;  %v7746_v2 = vadd.f32 %v7745_v14, %v7678_v13  ;;  %v7813_v58 = vpop.f32.mrf.mxu3 }
 0x76e   :  { %v8015_v20 = vmax.f32 %v7973_v24, %v7994_v40  ;;  %v8172_v41 = vrot.slane %v17991_v54, 4  ;;  %v8179_v15 = vsel %vm4545_vm3, %v17991_v54, %v8169_v23  ;;  %v7932_v21 = vld [vmem:[#allocation2 + $0x91] sm:$0xff]  ;;  %v18043_v24 = vor.u32 %v8376_v8, %v8373_v60  ;;  %v12353_v60 = vld [vmem:[%s19067_s3 + $0x220] sm:$0xf] }
 0x76f   :  { %v7814_v53 = vadd.f32 %v7813_v58, %v7746_v2  ;;  %v8187_v3 = vrot.slane %v8179_v15, 4  ;;  %v7953_v28 = vmax.f32 %v17949_v45, %v7932_v21  ;;  %v12433_v45 = vld [vmem:[%s19067_s3 + $0x2c0] sm:$0xf]  ;;  %v13152_v8 = vld [vmem:[%s19067_s3 + $0x2b4] sm:$0xf0] }
 0x770   :  { %v8036_v50 = vmax.f32 %v7952_v48, %v8015_v20  ;;  %v18002_v38 = vsel %vm8119_vm7, %v8169_v23, %v8172_v41  ;;  %9498 = vmatpush.bf16.msra.mxu1 %v12450_v63  ;;  %v13154_v48 = vld [vmem:[%s19067_s3 + $0x2c4] sm:$0xf0]  ;;  %v12337_v54 = vld [vmem:[%s19067_s3 + $0x200] sm:$0xf] }
 0x771   :  { %v8188_v25 = vrot.slane %v18002_v38, 4  ;;  %v7841_v26 = vadd.f32 %v7814_v53, %v17476_v57  ;;  %v8201_v55 = vsel %vm8119_vm7, %v8115_v52, %v8187_v3  ;;  %v12378_v57 = vor.u32 %v13140_v12, %v12377_v10  ;;  %v12489_v38 = vld [vmem:[%s19067_s3 + $0x330] sm:$0xf] }
 0x772   :  { %8057 = vst [vmem:[#allocation3 + $0x88] sm:$0xff] %v8036_v50  ;;  %v12434_v14 = vor.u32 %v13154_v48, %v12433_v45  ;;  %v8286_v53 = vor.u32 %v8284_v36, %v17915_v34  ;;  %v13132_v45 = vld [vmem:[%s19067_s3 + $0x214] sm:$0xf0]  ;;  %v12569_v36 = vld [vmem:[%s19067_s3 + $0x3d0] sm:$0xf] }
 0x773   :  { %v8189_v32 = vsel %vm8119_vm7, %v8187_v3, %v8188_v25  ;;  %v7868_v1 = vadd.f32 %v17976_v44, %v7841_v26  ;;  %9471 = vmatpush.bf16.msra.mxu0 %v12378_v57  ;;  %v13172_v48 = vld [vmem:[%s19067_s3 + $0x354] sm:$0xf0] }
 0x774   :  { %v13222_v35 = vpack.c.bf16 %v8189_v32, %v8201_v55  ;;  %v7748_v27 = vpop.f32.mrf.mxu2  ;;  %v7974_v9 = vld [vmem:[#allocation2 + $0x9a] sm:$0xff]  ;;  %9499 = vmatpush.bf16.msra.mxu1 %v12442_v56 }
 0x775   :  { %v7995_v52 = vld [vmem:[#allocation2 + $0x9b] sm:$0xff]  ;;  %7891 = vst [vmem:[#allocation2 + $0xa8] sm:$0xff] %v7868_v1  ;;  %v7749_v31 = vadd.f32 %v7748_v27, %v7681_v49  ;;  %v7816_v43 = vpop.f32.mrf.mxu3  ;;  %v12362_v1 = vor.u32 %v13136_v19, %v12361_v5  ;;  %v12585_v27 = vld [vmem:[%s19067_s3 + $0x3f0] sm:$0xf] }
 0x776   :  { %v8380_v61 = vshrl.u32 %v13222_v35, 16  ;;  %v8016_v13 = vmax.f32 %v7974_v9, %v7995_v52  ;;  %13246 = vst [vmem:[#allocation4 + $0x10] sm:$0xff] %v13222_v35   ;;  %v8383_v7 = vshll.u32 %v13222_v35, 16  ;;  %v7913_v26 = vld [vmem:[#allocation2 + $0xa0] sm:$0x7f] }
 0x777   :  { %v7817_v51 = vadd.f32 %v7816_v43, %v7749_v31  ;;  %9472 = vmatpush.bf16.msra.mxu0 %v12370_v16  ;;  %v7934_v10 = vld [vmem:[#allocation2 + $0xa1] sm:$0x7f]  ;;  %v12521_v35 = vld [vmem:[%s19067_s3 + $0x370] sm:$0xf]  ;;  %v13176_v56 = vld [vmem:[%s19067_s3 + $0x374] sm:$0xf0] }
 0x778   :  { %v8382_v30 = vrot.slane %v8380_v61, 3  ;;  %v8037_v37 = vmax.f32 %v7953_v28, %v8016_v13  ;;  %v8385_v62 = vrot.slane %v8383_v7, 4  ;;  %9500 = vmatpush.bf16.msra.mxu1 %v12434_v14  ;;  %v7955_v32 = vmax.f32 %v7913_v26, %v7934_v10  ;;  %v13192_v31 = vld [vmem:[%s19067_s3 + $0x3f4] sm:$0xf0]  ;;  %v13134_v61 = vld [vmem:[%s19067_s3 + $0x224] sm:$0xf0] }
 0x779   :  { %v7842_v47 = vadd.f32 %v7817_v51, %v17484_v29  ;;  %v12522_v52 = vor.u32 %v13176_v56, %v12521_v35  ;;  %v12586_v43 = vor.u32 %v13192_v31, %v12585_v27  ;;  %v12425_v28 = vld [vmem:[%s19067_s3 + $0x2b0] sm:$0xf]  ;;  %v12354_v13 = vor.u32 %v13134_v61, %v12353_v60  ;;  %v12513_v7 = vld [vmem:[%s19067_s3 + $0x360] sm:$0xf]  ;;  %v13174_v51 = vld [vmem:[%s19067_s3 + $0x364] sm:$0xf0] }
 0x77a   :  { %8058 = vst [vmem:[#allocation3 + $0x90] sm:$0xff] %v8037_v37  ;;  %v18045_v29 = vor.u32 %v8385_v62, %v8382_v30  ;;  %v12426_v30 = vor.u32 %v13152_v8, %v12425_v28  ;;  %v12514_v37 = vor.u32 %v13174_v51, %v12513_v7  ;;  %v12577_v62 = vld [vmem:[%s19067_s3 + $0x3e0] sm:$0xf]  ;;  %v12505_v16 = vld [vmem:[%s19067_s3 + $0x350] sm:$0xf] }
 0x77b   :  { %v7869_v40 = vadd.f32 %v17976_v44, %v7842_v47  ;;  %9473 = vmatpush.bf16.msra.mxu0 %v12362_v1  ;;  %9525 = vmatpush.bf16.msrb.mxu2 %v12522_v52  ;;  %v13190_v47 = vld [vmem:[%s19067_s3 + $0x3e4] sm:$0xf0]  ;;  %v12506_v26 = vor.u32 %v13172_v48, %v12505_v16  ;;  %v13188_v10 = vld [vmem:[%s19067_s3 + $0x3d4] sm:$0xf0]  ;;  %v12561_v35 = vld [vmem:[%s19067_s3 + $0x3c0] sm:$0xf] }
 0x77c   :  { %v7750_v23 = vpop.f32.mrf.mxu2  ;;  %v18051_v20 = vsel %vm8361_vm9, %v18043_v24, %v18045_v29  ;;  %9553 = vmatpush.bf16.msrb.mxu3 %v12586_v43  ;;  %v12578_v4 = vor.u32 %v13190_v47, %v12577_v62  ;;  %9501 = vmatpush.bf16.msra.mxu1 %v12426_v30  ;;  %v13170_v1 = vld [vmem:[%s19067_s3 + $0x344] sm:$0xf0]  ;;  %v12553_v28 = vld [vmem:[%s19067_s3 + $0x3b0] sm:$0xf]  ;;  %v13184_v8 = vld [vmem:[%s19067_s3 + $0x3b4] sm:$0xf0] }
 0x77d   :  { %7892 = vst [vmem:[#allocation2 + $0xb0] sm:$0x3] %v7869_v40  ;;  %v7818_v2 = vpop.f32.mrf.mxu3  ;;  %v18053_v58 = vld [vmem:[#allocation4 + $0x10] sm:$0xff]  ;;  %v13186_v52 = vld [vmem:[%s19067_s3 + $0x3c4] sm:$0xf0]  ;;  %v12554_v7 = vor.u32 %v13184_v8, %v12553_v28 }
 0x77e   :  { %9374 = vmatmul.bf16.gmra.mxu0 %v18053_v58  ;;  %v8313_v44 = vrot.slane %v18053_v58, 1  ;;  %v8330_v39 = vrot.slane %v18053_v58, 3  ;;  %v8288_v15 = vshll.u32 %v18053_v58, 16  ;;  %v12346_v2 = vor.u32 %v13132_v45, %v12345_v46  ;;  %v12409_v51 = vld [vmem:[%s19067_s3 + $0x290] sm:$0xf] }
 0x77f   :  { %9474 = vmatpush.bf16.msra.mxu0 %v12354_v13  ;;  %9526 = vmatpush.bf16.msrb.mxu2 %v12514_v37  ;;  %v12562_v60 = vor.u32 %v13186_v52, %v12561_v35  ;;  %v13148_v30 = vld [vmem:[%s19067_s3 + $0x294] sm:$0xf0]  ;;  %v8232_v62 = vld [vmem:[#allocation4] sm:$0x8]  ;;  %v13166_v46 = vld [vmem:[%s19067_s3 + $0x324] sm:$0xf0] }
 0x780   :  { %v18065_v63 = vsel %vm1875_vm1, %v8311_v33, %v8313_v44  ;;  %v18072_v50 = vsel %vm7215_vm5, %v8328_v6, %v8330_v39  ;;  %v18075_v3 = vrot.slane %v8288_v15, 1  ;;  %9554 = vmatpush.bf16.msrb.mxu3 %v12578_v4  ;;  %v12410_v37 = vor.u32 %v13148_v30, %v12409_v51  ;;  %v12481_v47 = vld [vmem:[%s19067_s3 + $0x320] sm:$0xf]  ;;  %v13182_v16 = vld [vmem:[%s19067_s3 + $0x3a4] sm:$0xf0] }
 0x781   :  { %v8147_v49 = vld [vmem:[#allocation3 + $0x8c] ss:$2 sm:$0xf]  ;;  %9426 = vmatmul.bf16.gmra.mxu2 %v18065_v63  ;;  %9454 = vmatmul.bf16.gmra.mxu3 %v18072_v50  ;;  %v12545_v4 = vld [vmem:[%s19067_s3 + $0x3a0] sm:$0xf]  ;;  %v12482_v45 = vor.u32 %v13166_v46, %v12481_v47 }
 0x782   :  { %v8149_v33 = vrot.slane %v8147_v49, 1  ;;  %v8151_v12 = vrot.slane %v8147_v49, 7  ;;  %v18081_v59 = vsel %vm383_vm0, %v8286_v53, %v18075_v3  ;;  %v8153_v34 = vrot.slane %v8147_v49, 5  ;;  %v12473_v48 = vld [vmem:[%s19067_s3 + $0x310] sm:$0xf] }
 0x783   :  { %9398 = vmatmul.bf16.gmra.mxu1 %v18081_v59  ;;  %9475 = vmatpush.bf16.msra.mxu0 %v12346_v2  ;;  %v12537_v2 = vld [vmem:[%s19067_s3 + $0x390] sm:$0xf]  ;;  %v13178_v52 = vld [vmem:[%s19067_s3 + $0x384] sm:$0xf0]  ;;  %v12139_v51 = vld [vmem:[%s19067_s3 + $0x78] sm:$0xf0] }
 0x784   :  { %v7976_v17 = vld [vmem:[#allocation2 + $0xaa] sm:$0x7f]  ;;  %v8155_v57 = vsel %vm8069_vm6, %v8149_v33, %v8151_v12  ;;  %v12570_v33 = vor.u32 %v13188_v10, %v12569_v36  ;;  %v12417_v12 = vld [vmem:[%s19067_s3 + $0x2a0] sm:$0xf]  ;;  %9527 = vmatpush.bf16.msrb.mxu2 %v12506_v26  ;;  %v13180_v36 = vld [vmem:[%s19067_s3 + $0x394] sm:$0xf0] }
 0x785   :  { %v7997_v6 = vld [vmem:[#allocation2 + $0xab] sm:$0x7f]  ;;  %v8156_v21 = vsel %vm7215_vm5, %v8155_v57, %v8153_v34  ;;  %v12538_v10 = vor.u32 %v13180_v36, %v12537_v2  ;;  %v12641_v47 = vld [vmem:[%s19067_s3 + $0x460] sm:$0xf]  ;;  %v8241_v36 = vld [vmem:[#allocation4 + $0x4] sm:$0xc] }
 0x786   :  { %v8018_v55 = vmax.f32 %v7976_v17, %v7997_v6  ;;  %v8175_v9 = vrot.slane %v8156_v21, 6  ;;  %v8177_v14 = vrot.slane %v8156_v21, 2  ;;  %v13150_v34 = vld [vmem:[%s19067_s3 + $0x2a4] sm:$0xf0]  ;;  %9555 = vmatpush.bf16.msrb.mxu3 %v12570_v33  ;;  %v12497_v21 = vld [vmem:[%s19067_s3 + $0x340] sm:$0xf] }
 0x787   :  { %v12418_v57 = vor.u32 %v13150_v34, %v12417_v12  ;;  %v8347_v12 = vunpack.c.l.b16 %v8232_v62  ;;  %v13146_v34 = vld [vmem:[%s19067_s3 + $0x284] sm:$0xf0] }
 0x788   :  { %v8039_v18 = vmax.f32 %v7955_v32, %v8018_v55  ;;  %v8181_v23 = vsel %vm8121_vm8, %v8172_v41, %v8175_v9  ;;  %v13130_v41 = vld [vmem:[%s19067_s3 + $0x204] sm:$0xf0]  ;;  %v8194_v19 = vrot.slane %v8177_v14, 4  ;;  %v12498_v9 = vor.u32 %v13170_v1, %v12497_v21  ;;  %v12465_v1 = vld [vmem:[%s19067_s3 + $0x300] sm:$0xf] }
 0x789   :  { %v12338_v6 = vor.u32 %v13130_v41, %v12337_v54  ;;  %v8190_v55 = vrot.slane %v8181_v23, 4  ;;  %9502 = vmatpush.bf16.msra.mxu1 %v12418_v57  ;;  %v12546_v23 = vor.u32 %v13182_v16, %v12545_v4  ;;  %v13206_v46 = vld [vmem:[%s19067_s3 + $0x464] sm:$0xf0]  ;;  %v13077_v4 = vld [vmem:[%s19067_s3 + $0x64] sm:$0xf] }
 0x78a   :  { %8060 = vst [vmem:[#allocation3 + $0xa0] sm:$0x7f] %v8039_v18  ;;  %9528 = vmatpush.bf16.msrb.mxu2 %v12498_v9  ;;  %9556 = vmatpush.bf16.msrb.mxu3 %v12562_v60  ;;  %v12529_v9 = vld [vmem:[%s19067_s3 + $0x380] sm:$0xf]  ;;  %v12131_v16 = vld [vmem:[%s19067_s3 + $0x68] sm:$0xf0] }
 0x78b   :  { %9476 = vmatpush.bf16.msra.mxu0 %v12338_v6  ;;  %v8191_v56 = vsel %vm8119_vm7, %v8188_v25, %v8190_v55  ;;  %v13168_v25 = vld [vmem:[%s19067_s3 + $0x334] sm:$0xf0]  ;;  %v12401_v6 = vld [vmem:[%s19067_s3 + $0x280] sm:$0xf] }
 0x78c   :  { %v12490_v13 = vor.u32 %v13168_v25, %v12489_v38  ;;  %v12402_v57 = vor.u32 %v13146_v34, %v12401_v6  ;;  %v12530_v38 = vor.u32 %v13178_v52, %v12529_v9  ;;  %v12649_v25 = vld [vmem:[%s19067_s3 + $0x470] sm:$0xf]  ;;  %v13075_v34 = vld [vmem:[%s19067_s3 + $0x54] sm:$0xf] }
 0x78d   :  { %9503 = vmatpush.bf16.msra.mxu1 %v12410_v37 }
 0x78e   :  { %9529 = vmatpush.bf16.msrb.mxu2 %v12490_v13  ;;  %9557 = vmatpush.bf16.msrb.mxu3 %v12554_v7  ;;  %v13079_v7 = vld [vmem:[%s19067_s3 + $0x74] sm:$0xf] }
 0x78f   :  { %v12142_v30 = vor.u32 %v13079_v7, %v12139_v51 }
 0x790   :  { %v9366_v28 = vpop.f32.mrf.mxu0 }
 0x791   :  { %v8158_v40 = vld [vmem:[#allocation3 + $0xa0] ss:$2 sm:$0xf]  ;;  %9504 = vmatpush.bf16.msra.mxu1 %v12402_v57  ;;  %v12625_v57 = vld [vmem:[%s19067_s3 + $0x440] sm:$0xf] }
 0x792   :  { %v8160_v15 = vrot.slane %v8158_v40, 1  ;;  %v8162_v53 = vrot.slane %v8158_v40, 7  ;;  %v8164_v49 = vrot.slane %v8158_v40, 5  ;;  %v13164_v40 = vld [vmem:[%s19067_s3 + $0x314] sm:$0xf0]  ;;  %9530 = vmatpush.bf16.msrb.mxu2 %v12482_v45  ;;  %9558 = vmatpush.bf16.msrb.mxu3 %v12546_v23  ;;  %v12642_v45 = vor.u32 %v13206_v46, %v12641_v47 }
 0x793   :  { %v12474_v26 = vor.u32 %v13164_v40, %v12473_v48  ;;  %v12134_v40 = vor.u32 %v13077_v4, %v12131_v16 }
 0x794   :  { %v8166_v17 = vsel %vm8069_vm6, %v8160_v15, %v8162_v53 }
 0x795   :  { %v8167_v32 = vsel %vm7215_vm5, %v8166_v17, %v8164_v49  ;;  %9609 = vmatpush.bf16.msrb.mxu1 %v12142_v30 }
 0x796   :  { %v8182_v18 = vsel %vm4545_vm3, %v8167_v32, %v8177_v14  ;;  %v18220_v14 = vld [vmem:[#allocation4 + $0x4] sm:$0xf]  ;;  %9531 = vmatpush.bf16.msrb.mxu2 %v12474_v26  ;;  %9559 = vmatpush.bf16.msrb.mxu3 %v12538_v10  ;;  %v8416_v26 = vunpack.c.l.b16 %v8241_v36  ;;  %v13200_v36 = vld [vmem:[%s19067_s3 + $0x434] sm:$0xf0] }
 0x797   :  { %v8192_v5 = vrot.slane %v8182_v18, 4  ;;  %v8348_v17 = vunpack.c.l.b16 %v18220_v14  ;;  %v8292_v18 = vshrl.u32 %v18053_v58, 16 }
 0x798   :  { %v18300_v23 = vpop.f32.mrf.mxu0 }
 0x799   :  { %v8193_v27 = vsel %vm8119_vm7, %v8190_v55, %v8192_v5  ;;  %v8195_v31 = vsel %vm8119_vm7, %v8192_v5, %v8194_v19  ;;  %v8294_v35 = vor.u32 %v8292_v18, %v18075_v3  ;;  %9610 = vmatpush.bf16.msrb.mxu1 %v12134_v40  ;;  %v12617_v40 = vld [vmem:[%s19067_s3 + $0x430] sm:$0xf] }
 0x79a   :  { %v18181_v43 = vpack.c.bf16 %v8193_v27, %v8191_v56  ;;  %v8210_v61 = vpack.c.bf16 %v8195_v31, %v8195_v31  ;;  %v8356_v56 = vpack.c.b16 %v8348_v17, %v8347_v12  ;;  %v13162_v27 = vld [vmem:[%s19067_s3 + $0x304] sm:$0xf0]  ;;  %9560 = vmatpush.bf16.msrb.mxu3 %v12530_v38 }
 0x79c   :  { %13247 = vst [vmem:[#allocation4 + $0x18] sm:$0xff] %v18181_v43   ;;  %v8363_v13 = vshrl.u32 %v8356_v56, 16  ;;  %v8366_v8 = vshll.u32 %v8356_v56, 16  ;;  %v8392_v4 = vshll.u32 %v18181_v43, 16 }
 0x79d   :  { %8219 = vst [vmem:[#allocation4 + $0x20] sm:$0xf] %v8210_v61  ;;  %v12466_v61 = vor.u32 %v13162_v27, %v12465_v1  ;;  %v13073_v1 = vld [vmem:[%s19067_s3 + $0x44] sm:$0xf] }
 0x79e   :  { %v8365_v37 = vrot.slane %v8363_v13, 3  ;;  %v8368_v62 = vrot.slane %v8366_v8, 4 }
 0x79f   :  { %9532 = vmatpush.bf16.msrb.mxu2 %v12466_v61 }
 0x7a0   :  { %v8369_v48 = vor.u32 %v8368_v62, %v8365_v37  ;;  %v8389_v62 = vshrl.u32 %v18181_v43, 16 }
 0x7a2   :  { %v18304_v2 = vsel %vm8361_vm9, %v8369_v48, %v18043_v24  ;;  %v12633_v24 = vld [vmem:[%s19067_s3 + $0x450] sm:$0xf] }
 0x7a3   :  { %v8226_v15 = vld [vmem:[#allocation4 + $0x18] sm:$0xff]  }
 0x7a4   :  { %v8227_v53 = vld [vmem:[#allocation4 + $0x1c] sm:$0x1]  ;;  %v8259_v33 = vunpack.c.l.b16 %v8226_v15  ;;  %v18241_v19 = vrot.slane %v8226_v15, 3  ;;  %v18307_v15 = vunpack.c.l.b16 %v17877_v42  ;;  %v13204_v42 = vld [vmem:[%s19067_s3 + $0x454] sm:$0xf0] }
 0x7a5   :  { %v8228_v49 = vld [vmem:[#allocation4 + $0x1c] sm:$0x3]  ;;  %v8260_v54 = vunpack.c.l.b16 %v8227_v53  ;;  %v18310_v53 = vld [vmem:[#allocation4 + $0xc] sm:$0xff]   ;;  %v12634_v6 = vor.u32 %v13204_v42, %v12633_v24  ;;  %v18352_v7 = vld [vmem:[#allocation4 + $0x14] sm:$0xff]  }
 0x7a6   :  { %v8270_v41 = vunpack.c.l.b16 %v8228_v49  ;;  %v18268_v31 = vsel %vm7215_vm5, %v8330_v39, %v18241_v19  ;;  %v8446_v12 = vshll.u32 %v18310_v53, 16  ;;  %v8421_v30 = vrot.slane %v18310_v53, 2 }
 0x7a7   :  { %v18235_v32 = vpack.c.b16 %v8260_v54, %v8259_v33  ;;  %9458 = vmatmul.bf16.gmra.mxu3 %v18268_v31  ;;  %v8418_v54 = vpack.c.b16 %v18307_v15, %v8416_v26  ;;  %v8452_v16 = vshrl.u32 %v18352_v7, 16  ;;  %v8455_v48 = vshll.u32 %v18352_v7, 16 }
 0x7a8   :  { %v8271_v55 = vpack.c.b16 %v8270_v41, %v8259_v33  ;;  %v8631_v33 = vld [vmem:[%s19068_s4] sm:$0x3]  ;;  %v8443_v41 = vshrl.u32 %v18310_v53, 16  ;;  %v12618_v26 = vor.u32 %v13200_v36, %v12617_v40  ;;  %v12251_v40 = vld [vmem:[%s19067_s3 + $0x158] sm:$0xf0] }
 0x7a9   :  { %9379 = vmatmul.bf16.gmra.mxu0 %v18235_v32  ;;  %v18347_v56 = vperm.slane %v8631_v33, 0  ;;  %v8435_v52 = vshrl.u32 %v8418_v54, 16  ;;  %v8420_v46 = vrot.slane %v8418_v54, 2  ;;  %v12593_v36 = vld [vmem:[%s19067_s3 + $0x400] sm:$0xf] }
 0x7aa   :  { %v18239_v5 = vrot.slane %v8271_v55, 1  ;;  %v8296_v21 = vshll.u32 %v8271_v55, 16  ;;  %v8300_v49 = vshrl.u32 %v8271_v55, 16  ;;  %v12123_v55 = vld [vmem:[%s19067_s3 + $0x58] sm:$0xf0]  ;;  %v8445_v38 = vrot.slane %v8443_v41, 2 }
 0x7ab   :  { %v12126_v18 = vor.u32 %v13075_v34, %v12123_v55  ;;  %v8437_v13 = vrot.slane %v8435_v52, 2  ;;  %v18371_v42 = vsel %vm4545_vm3, %v8420_v46, %v8421_v30  ;;  %v12203_v34 = vld [vmem:[%s19067_s3 + $0xf8] sm:$0xf0]  ;;  %v13111_v55 = vld [vmem:[%s19067_s3 + $0x174] sm:$0xf] }
 0x7ac   :  { %v18262_v3 = vsel %vm1875_vm1, %v8313_v44, %v18239_v5  ;;  %v8298_v60 = vrot.slane %v8296_v21, 1  ;;  %v13208_v44 = vld [vmem:[%s19067_s3 + $0x474] sm:$0xf0]  ;;  %v13202_v21 = vld [vmem:[%s19067_s3 + $0x444] sm:$0xf0] }
 0x7ad   :  { %9430 = vmatmul.bf16.gmra.mxu2 %v18262_v3  ;;  %v12650_v39 = vor.u32 %v13208_v44, %v12649_v25  ;;  %v12626_v9 = vor.u32 %v13202_v21, %v12625_v57  ;;  %9611 = vmatpush.bf16.msrb.mxu1 %v12126_v18  ;;  %v8448_v25 = vrot.slane %v8446_v12, 3  ;;  %v9367_v44 = vadd.f32 %v9366_v28, %v18347_v56  ;;  %v13071_v52 = vld [vmem:[%s19067_s3 + $0x34] sm:$0xf] }
 0x7ae   :  { %v18279_v58 = vsel %vm383_vm0, %v8294_v35, %v8298_v60  ;;  %v18314_v10 = vor.u32 %v8300_v49, %v8298_v60  ;;  %v12115_v35 = vld [vmem:[%s19067_s3 + $0x48] sm:$0xf0]  ;;  %v8438_v60 = vshll.u32 %v8418_v54, 16  ;;  %v8391_v54 = vrot.slane %v8389_v62, 3  ;;  %v8240_v62 = vld [vmem:[#allocation4 + $0x20] sm:$0x1] }
 0x7af   :  { %9402 = vmatmul.bf16.gmra.mxu1 %v18279_v58  ;;  %9581 = vmatpush.bf16.msrb.mxu0 %v12650_v39  ;;  %v12118_v61 = vor.u32 %v13073_v1, %v12115_v35  ;;  %v18355_v37 = vor.u32 %v8448_v25, %v8445_v38  ;;  %v18384_v12 = vpack.c.b16 %v18307_v15, %v8348_v17  ;;  %v8394_v57 = vrot.slane %v8392_v4, 4  ;;  %v12267_v17 = vld [vmem:[%s19067_s3 + $0x178] sm:$0xf0]  ;;  %v12609_v35 = vld [vmem:[%s19067_s3 + $0x420] sm:$0xf] }
 0x7b0   :  { %v8440_v8 = vrot.slane %v8438_v60, 3  ;;  %v8454_v18 = vrot.slane %v8452_v16, 2  ;;  %v8457_v21 = vrot.slane %v8455_v48, 3  ;;  %v12270_v1 = vor.u32 %v13111_v55, %v12267_v17  ;;  %v13093_v38 = vld [vmem:[%s19067_s3 + $0xe4] sm:$0xf] }
 0x7b1   :  { %9612 = vmatpush.bf16.msrb.mxu1 %v12118_v61  ;;  %v12107_v61 = vld [vmem:[%s19067_s3 + $0x38] sm:$0xf0]  ;;  %v12195_v25 = vld [vmem:[%s19067_s3 + $0xe8] sm:$0xf0]  ;;  %v13196_v4 = vld [vmem:[%s19067_s3 + $0x414] sm:$0xf0]  ;;  %v18455_v17 = vunpack.c.l.b16 %v8240_v62 }
 0x7b2   :  { %9665 = vmatpush.bf16.msra.mxu3 %v12270_v1  ;;  %v13107_v48 = vld [vmem:[%s19067_s3 + $0x154] sm:$0xf]  ;;  %v12235_v62 = vld [vmem:[%s19067_s3 + $0x138] sm:$0xf0] }
 0x7b3   :  { %9582 = vmatpush.bf16.msrb.mxu0 %v12642_v45  ;;  %v8441_v45 = vor.u32 %v8440_v8, %v8437_v13  ;;  %v13109_v13 = vld [vmem:[%s19067_s3 + $0x164] sm:$0xf]  ;;  %v12259_v8 = vld [vmem:[%s19067_s3 + $0x168] sm:$0xf0]  ;;  %v12254_v55 = vor.u32 %v13107_v48, %v12251_v40  ;;  %v12091_v48 = vld [vmem:[%s19067_s3 + $0x18] sm:$0xf0] }
 0x7b4   :  { %v12262_v46 = vor.u32 %v13109_v13, %v12259_v8  ;;  %v13087_v8 = vld [vmem:[%s19067_s3 + $0xb4] sm:$0xf]  ;;  %v13085_v40 = vld [vmem:[%s19067_s3 + $0xa4] sm:$0xf] }
 0x7b5   :  { %v18375_v33 = vsel %vm6174_vm4, %v8441_v45, %v18355_v37  ;;  %v12187_v45 = vld [vmem:[%s19067_s3 + $0xd8] sm:$0xf0] }
 0x7b6   :  { %9666 = vmatpush.bf16.msra.mxu3 %v12262_v46 }
 0x7b7   :  { %9463 = vmatmul.bf16.gmra.mxu3 %v18241_v19  ;;  %9583 = vmatpush.bf16.msrb.mxu0 %v12634_v6  ;;  %v13095_v6 = vld [vmem:[%s19067_s3 + $0xf4] sm:$0xf] }
 0x7b8   :  { %v12206_v14 = vor.u32 %v13095_v6, %v12203_v34  ;;  %v12099_v6 = vld [vmem:[%s19067_s3 + $0x28] sm:$0xf0]  ;;  %v18453_v34 = vor.u32 %v8394_v57, %v8391_v54  ;;  %v18466_v54 = vunpack.c.h.b16 %v18181_v43  ;;  %v13089_v57 = vld [vmem:[%s19067_s3 + $0xc4] sm:$0xf] }
 0x7b9   :  { %9477 = vmatmul.bf16.vlgmr.msra.gmra.mxu0 %v18304_v2 }
 0x7ba   :  { %9637 = vmatpush.bf16.msra.mxu2 %v12206_v14  ;;  %9667 = vmatpush.bf16.msra.mxu3 %v12254_v55 }
 0x7bb   :  { %9584 = vmatpush.bf16.msrb.mxu0 %v12626_v9  ;;  %v13198_v9 = vld [vmem:[%s19067_s3 + $0x424] sm:$0xf0] }
 0x7bc   :  { %v12610_v60 = vor.u32 %v13198_v9, %v12609_v35  ;;  %v8423_v9 = vrot.slane %v18352_v7, 2 }
 0x7bd   :  { %9435 = vmatmul.bf16.gmra.mxu2 %v18239_v5 }
 0x7be   :  { %v18349_v27 = vpop.f32.mrf.mxu0 }
 0x7bf   :  { %9407 = vmatmul.bf16.gmra.mxu1 %v18314_v10  ;;  %9585 = vmatpush.bf16.msrb.mxu0 %v12618_v26  ;;  %v13194_v26 = vld [vmem:[%s19067_s3 + $0x404] sm:$0xf0] }
 0x7c0   :  { %v12594_v35 = vor.u32 %v13194_v26, %v12593_v36  ;;  %v13101_v26 = vld [vmem:[%s19067_s3 + $0x124] sm:$0xf] }
 0x7c3   :  { %v9394_v39 = vpop.f32.mrf.mxu1  ;;  %9586 = vmatpush.bf16.msrb.mxu0 %v12610_v60  ;;  %v18463_v60 = vsel %vm8361_vm9, %v18045_v29, %v18453_v34  ;;  %v8360_v29 = vpack.c.b16 %v18455_v17, %v18455_v17 }
 0x7c4   :  { %v9395_v51 = vadd.f32 %v9394_v39, %v9367_v44  ;;  %v12110_v44 = vor.u32 %v13071_v52, %v12107_v61  ;;  %v12198_v39 = vor.u32 %v13093_v38, %v12195_v25  ;;  %v18458_v52 = vor.u32 %v8457_v21, %v8454_v18  ;;  %v12179_v18 = vld [vmem:[%s19067_s3 + $0xc8] sm:$0xf0]  ;;  %v13105_v21 = vld [vmem:[%s19067_s3 + $0x144] sm:$0xf] }
 0x7c5   :  { %v12182_v61 = vor.u32 %v13089_v57, %v12179_v18  ;;  %v12243_v38 = vld [vmem:[%s19067_s3 + $0x148] sm:$0xf0]  ;;  %v18491_v25 = vsel %vm4545_vm3, %v8421_v30, %v8423_v9  ;;  %v12171_v30 = vld [vmem:[%s19067_s3 + $0xb8] sm:$0xf0]  ;;  %v13083_v18 = vld [vmem:[%s19067_s3 + $0x94] sm:$0xf] }
 0x7c6   :  { %v9373_v47 = vpop.f32.mrf.mxu0  ;;  %9613 = vmatpush.bf16.msrb.mxu1 %v12110_v44  ;;  %9638 = vmatpush.bf16.msra.mxu2 %v12198_v39  ;;  %v18496_v44 = vsel %vm6174_vm4, %v18355_v37, %v18458_v52  ;;  %v8242_v39 = vld [vmem:[#allocation4 + $0x20] sm:$0x7]  ;;  %v12246_v13 = vor.u32 %v13105_v21, %v12243_v38  ;;  %v12174_v37 = vor.u32 %v13087_v8, %v12171_v30  ;;  %v12155_v21 = vld [vmem:[%s19067_s3 + $0x98] sm:$0xf0]  ;;  %v13065_v30 = vld [vmem:[%s19067_s3 + $0x4] sm:$0xf] }
 0x7c7   :  { %v9422_v28 = vpop.f32.mrf.mxu2  ;;  %v9450_v24 = vpop.f32.mrf.mxu3  ;;  %9561 = vmatmul.bf16.vlgmr.msrb.gmra.mxu3 %v18375_v33  ;;  %v8243_v47 = vld [vmem:[#allocation4 + $0x20] sm:$0xf]  ;;  %v12219_v38 = vld [vmem:[%s19067_s3 + $0x118] sm:$0xf0] }
 0x7c8   :  { %v9423_v49 = vadd.f32 %v9422_v28, %v9395_v51  ;;  %v12601_v51 = vld [vmem:[%s19067_s3 + $0x410] sm:$0xf]  ;;  %v13091_v28 = vld [vmem:[%s19067_s3 + $0xd4] sm:$0xf]  ;;  %v8432_v1 = vunpack.c.l.b16 %v8243_v47  ;;  %9668 = vmatpush.bf16.msra.mxu3 %v12246_v13  ;;  %v8398_v47 = vshll.u32 %v8360_v29, 16 }
 0x7c9   :  { %9482 = vmatmul.bf16.gmra.mxu0 %v18051_v20  ;;  %v12602_v16 = vor.u32 %v13196_v4, %v12601_v51  ;;  %v13103_v51 = vld [vmem:[%s19067_s3 + $0x134] sm:$0xf] }
 0x7ca   :  { %v18377_v41 = vadd.f32 %v9450_v24, %v9423_v49  ;;  %v12190_v49 = vor.u32 %v13091_v28, %v12187_v45  ;;  %v13069_v24 = vld [vmem:[%s19067_s3 + $0x24] sm:$0xf]  ;;  %v18481_v43 = vpack.c.b16 %v8432_v1, %v18466_v54  ;;  %v12238_v28 = vor.u32 %v13103_v51, %v12235_v62  ;;  %v13099_v29 = vld [vmem:[%s19067_s3 + $0x114] sm:$0xf]  ;;  %v12083_v51 = vld [vmem:[%s19067_s3 + $0x8] sm:$0xf0] }
 0x7cb   :  { %v12102_v14 = vor.u32 %v13069_v24, %v12099_v6  ;;  %9587 = vmatpush.bf16.msrb.mxu0 %v12602_v16  ;;  %v8417_v45 = vunpack.c.l.b16 %v8242_v39  ;;  %v13067_v16 = vld [vmem:[%s19067_s3 + $0x14] sm:$0xf]  ;;  %v12227_v24 = vld [vmem:[%s19067_s3 + $0x128] sm:$0xf0]  ;;  %v12222_v39 = vor.u32 %v13099_v29, %v12219_v38  ;;  %v12086_v62 = vor.u32 %v13065_v30, %v12083_v51  ;;  %v12315_v51 = vld [vmem:[%s19067_s3 + $0x1d8] sm:$0xf0] }
 0x7cc   :  { %9639 = vmatpush.bf16.msra.mxu2 %v12190_v49  ;;  %v8461_v46 = vshrl.u32 %v18481_v43, 16  ;;  %v8464_v4 = vshll.u32 %v18481_v43, 16  ;;  %v12094_v36 = vor.u32 %v13067_v16, %v12091_v48  ;;  %v12163_v49 = vld [vmem:[%s19067_s3 + $0xa8] sm:$0xf0]  ;;  %9669 = vmatpush.bf16.msra.mxu3 %v12238_v28  ;;  %v12230_v55 = vor.u32 %v13101_v26, %v12227_v24  ;;  %v12395_v26 = vld [vmem:[%s19067_s3 + $0x278] sm:$0xf0] }
 0x7cd   :  { %9533 = vmatmul.bf16.vlgmr.msrb.gmra.mxu2 %v18371_v42  ;;  %9614 = vmatpush.bf16.msrb.mxu1 %v12102_v14  ;;  %v12166_v6 = vor.u32 %v13085_v40, %v12163_v49  ;;  %v8400_v14 = vrot.slane %v8398_v47, 4  ;;  %v8419_v1 = vpack.c.b16 %v8417_v45, %v18466_v54  ;;  %v13081_v47 = vld [vmem:[%s19067_s3 + $0x84] sm:$0xf]  ;;  %v12211_v16 = vld [vmem:[%s19067_s3 + $0x108] sm:$0xf0]  ;;  %v8477_v29 = vrot.slane %v18310_v53, 3 }
 0x7ce   :  { %v8466_v57 = vrot.slane %v8464_v4, 3  ;;  %v13097_v4 = vld [vmem:[%s19067_s3 + $0x104] sm:$0xf]  ;;  %v12331_v40 = vld [vmem:[%s19067_s3 + $0x1f8] sm:$0xf0]  ;;  %v18623_v30 = vpack.c.b16 %v18455_v17, %v18466_v54 }
 0x7cf   :  { %9505 = vmatmul.bf16.vlgmr.msra.gmra.mxu1 %v18384_v12  ;;  %9588 = vmatpush.bf16.msrb.mxu0 %v12594_v35  ;;  %v8463_v35 = vrot.slane %v8461_v46, 2  ;;  %v18546_v13 = vrot.slane %v8419_v1, 2  ;;  %v12147_v46 = vld [vmem:[%s19067_s3 + $0x88] sm:$0xf0]  ;;  %v12214_v48 = vor.u32 %v13097_v4, %v12211_v16  ;;  %v13143_v49 = vld [vmem:[%s19067_s3 + $0x274] sm:$0xf]  ;;  %v18643_v4 = vpop.f32.mrf.mxu3 }
 0x7d0   :  { %9640 = vmatpush.bf16.msra.mxu2 %v12182_v61  ;;  %9670 = vmatpush.bf16.msra.mxu3 %v12230_v55  ;;  %v12158_v61 = vor.u32 %v13083_v18, %v12155_v21  ;;  %v12150_v45 = vor.u32 %v13081_v47, %v12147_v46  ;;  %v12398_v24 = vor.u32 %v13143_v49, %v12395_v26  ;;  %v12323_v55 = vld [vmem:[%s19067_s3 + $0x1e8] sm:$0xf0]  ;;  %v13139_v47 = vld [vmem:[%s19067_s3 + $0x254] sm:$0xf]  ;;  %v12379_v17 = vld [vmem:[%s19067_s3 + $0x258] sm:$0xf0]  ;;  %v18641_v46 = vpop.f32.mrf.mxu2 }
 0x7d1   :  { %9615 = vmatpush.bf16.msrb.mxu1 %v12094_v36  ;;  %v18548_v8 = vor.u32 %v8466_v57, %v8463_v35  ;;  %v12387_v57 = vld [vmem:[%s19067_s3 + $0x268] sm:$0xf0]  ;;  %v13121_v54 = vld [vmem:[%s19067_s3 + $0x1c4] sm:$0xf] }
 0x7d2   :  { %v12307_v16 = vld [vmem:[%s19067_s3 + $0x1c8] sm:$0xf0] }
 0x7d3   :  { %v18579_v28 = vsel %vm6174_vm4, %v18458_v52, %v18548_v8  ;;  %v8244_v52 = vld [vmem:[#allocation4 + $0x4] sm:$0x8] }
 0x7d4   :  { %9641 = vmatpush.bf16.msra.mxu2 %v12174_v37  ;;  %v18558_v37 = vsel %vm8361_vm9, %v18453_v34, %v8400_v14  ;;  %9671 = vmatpush.bf16.msra.mxu3 %v12222_v39  ;;  %v18574_v34 = vsel %vm4545_vm3, %v8423_v9, %v18546_v13  ;;  %v13127_v9 = vld [vmem:[%s19067_s3 + $0x1f4] sm:$0xf]  ;;  %v13141_v14 = vld [vmem:[%s19067_s3 + $0x264] sm:$0xf]  ;;  %v8474_v1 = vunpack.c.l.b16 %v8244_v52  ;;  %v18617_v39 = vpop.f32.mrf.mxu1 }
 0x7d5   :  { %9616 = vmatpush.bf16.msrb.mxu1 %v12086_v62  ;;  %v12334_v36 = vor.u32 %v13127_v9, %v12331_v40  ;;  %v12390_v18 = vor.u32 %v13141_v14, %v12387_v57  ;;  %v9372_v9 = vadd.f32 %v18349_v27, %v18347_v56 }
 0x7d6   :  { %v8475_v21 = vpack.c.b16 %v18307_v15, %v8474_v1  ;;  %v13123_v15 = vld [vmem:[%s19067_s3 + $0x1d4] sm:$0xf] }
 0x7d7   :  { %9566 = vmatmul.bf16.gmra.mxu3 %v18496_v44  ;;  %9693 = vmatpush.bf16.msra.mxu0 %v12334_v36  ;;  %v12318_v62 = vor.u32 %v13123_v15, %v12315_v51  ;;  %v8479_v36 = vrot.slane %v18352_v7, 3  ;;  %v13119_v1 = vld [vmem:[%s19067_s3 + $0x1b4] sm:$0xf] }
 0x7d8   :  { %9642 = vmatpush.bf16.msra.mxu2 %v12166_v6  ;;  %9672 = vmatpush.bf16.msra.mxu3 %v12214_v48  ;;  %v13125_v6 = vld [vmem:[%s19067_s3 + $0x1e4] sm:$0xf]  ;;  %v12310_v48 = vor.u32 %v13121_v54, %v12307_v16  ;;  %v13175_v15 = vld [vmem:[%s19067_s3 + $0x374] sm:$0xf] }
 0x7d9   :  { %9486 = vmatmul.bf16.gmra.mxu0 %v18463_v60  ;;  %v12326_v35 = vor.u32 %v13125_v6, %v12323_v55  ;;  %9721 = vmatpush.bf16.msra.mxu1 %v12398_v24  ;;  %v13137_v24 = vld [vmem:[%s19067_s3 + $0x244] sm:$0xf]  ;;  %v12371_v6 = vld [vmem:[%s19067_s3 + $0x248] sm:$0xf0]  ;;  %v18658_v14 = vsel %vm7215_vm5, %v8477_v29, %v8479_v36  ;;  %v13135_v16 = vld [vmem:[%s19067_s3 + $0x234] sm:$0xf] }
 0x7da   :  { %v12374_v27 = vor.u32 %v13137_v24, %v12371_v6  ;;  %v13117_v54 = vld [vmem:[%s19067_s3 + $0x1a4] sm:$0xf] }
 0x7db   :  { %9694 = vmatpush.bf16.msra.mxu0 %v12326_v35  ;;  %v12299_v35 = vld [vmem:[%s19067_s3 + $0x1b8] sm:$0xf0]  ;;  %v13173_v24 = vld [vmem:[%s19067_s3 + $0x364] sm:$0xf] }
 0x7dc   :  { %9643 = vmatpush.bf16.msra.mxu2 %v12158_v61  ;;  %v8476_v61 = vrot.slane %v8475_v21, 3 }
 0x7dd   :  { %9538 = vmatmul.bf16.gmra.mxu2 %v18491_v25  ;;  %9722 = vmatpush.bf16.msra.mxu1 %v12390_v18  ;;  %v12302_v18 = vor.u32 %v13119_v1, %v12299_v35 }
 0x7de   :  { %v18614_v38 = vsel %vm7215_vm5, %v8476_v61, %v8477_v29  ;;  %v13159_v29 = vld [vmem:[%s19067_s3 + $0x2f4] sm:$0xf]  ;;  %v12459_v61 = vld [vmem:[%s19067_s3 + $0x2f8] sm:$0xf0] }
 0x7df   :  { %9510 = vmatmul.bf16.gmra.mxu1 %v18310_v53  ;;  %9695 = vmatpush.bf16.msra.mxu0 %v12318_v62  ;;  %v12462_v51 = vor.u32 %v13159_v29, %v12459_v61  ;;  %v13283_v62 = vld [vmem:[#allocation4] sm:$0xff]  ;;  %v12443_v29 = vld [vmem:[%s19067_s3 + $0x2d8] sm:$0xf0]  ;;  %v13171_v61 = vld [vmem:[%s19067_s3 + $0x354] sm:$0xf] }
 0x7e0   :  { %9644 = vmatpush.bf16.msra.mxu2 %v12150_v45  ;;  %v12382_v45 = vor.u32 %v13139_v47, %v12379_v17 }
 0x7e2   :  { %9723 = vmatpush.bf16.msra.mxu1 %v12382_v45  ;;  %v12291_v45 = vld [vmem:[%s19067_s3 + $0x1a8] sm:$0xf0] }
 0x7e3   :  { %9696 = vmatpush.bf16.msra.mxu0 %v12310_v48  ;;  %v12294_v48 = vor.u32 %v13117_v54, %v12291_v45  ;;  %v12355_v45 = vld [vmem:[%s19067_s3 + $0x228] sm:$0xf0] }
 0x7e4   :  { %9749 = vmatpush.bf16.msrb.mxu2 %v12462_v51  ;;  %v12507_v51 = vld [vmem:[%s19067_s3 + $0x358] sm:$0xf0] }
 0x7e6   :  { %9724 = vmatpush.bf16.msra.mxu1 %v12374_v27  ;;  %v12283_v27 = vld [vmem:[%s19067_s3 + $0x198] sm:$0xf0] }
 0x7e7   :  { %9570 = vmatmul.bf16.gmra.mxu3 %v18579_v28  ;;  %9697 = vmatpush.bf16.msra.mxu0 %v12302_v18 }
 0x7e9   :  { %9491 = vmatmul.bf16.gmra.mxu0 %v18558_v37 }
 0x7eb   :  { %9698 = vmatpush.bf16.msra.mxu0 %v12294_v48  ;;  %v13153_v48 = vld [vmem:[%s19067_s3 + $0x2c4] sm:$0xf] }
 0x7ed   :  { %9542 = vmatmul.bf16.gmra.mxu2 %v18574_v34 }
 0x7ef   :  { %9514 = vmatmul.bf16.gmra.mxu1 %v18352_v7 }
 0x7f7   :  { %9575 = vmatmul.bf16.gmra.mxu3 %v18548_v8 }
 0x7f9   :  { %9589 = vmatmul.bf16.vlgmr.msrb.gmra.mxu0 %v18614_v38 }
 0x7fb   :  { %v18716_v1 = vpop.f32.mrf.mxu0 }
 0x7fd   :  { %9547 = vmatmul.bf16.gmra.mxu2 %v18546_v13 }
 0x7ff   :  { %9519 = vmatmul.bf16.gmra.mxu1 %v18623_v30 }
 0x800   :  { %v9399_v40 = vpop.f32.mrf.mxu1 }
 0x801   :  { %v9400_v52 = vadd.f32 %v9399_v40, %v9372_v9  ;;  %v12363_v9 = vld [vmem:[%s19067_s3 + $0x238] sm:$0xf0]  ;;  %v18696_v40 = vrot.slane %v18481_v43, 3  ;;  %v12515_v43 = vld [vmem:[%s19067_s3 + $0x368] sm:$0xf0] }
 0x802   :  { %v12518_v35 = vor.u32 %v13173_v24, %v12515_v43  ;;  %v13151_v24 = vld [vmem:[%s19067_s3 + $0x2b4] sm:$0xf] }
 0x803   :  { %v13167_v43 = vld [vmem:[%s19067_s3 + $0x334] sm:$0xf] }
 0x804   :  { %v9427_v49 = vpop.f32.mrf.mxu2  ;;  %v9455_v26 = vpop.f32.mrf.mxu3 }
 0x805   :  { %v9428_v55 = vadd.f32 %v9427_v49, %v9400_v52  ;;  %v12366_v52 = vor.u32 %v13135_v16, %v12363_v9  ;;  %v13157_v49 = vld [vmem:[%s19067_s3 + $0x2e4] sm:$0xf] }
 0x806   :  { %v13169_v9 = vld [vmem:[%s19067_s3 + $0x344] sm:$0xf] }
 0x807   :  { %v18667_v57 = vadd.f32 %v9455_v26, %v9428_v55  ;;  %9673 = vmatmul.bf16.vlgmr.msra.gmra.mxu3 %v17908_v0  ;;  %v12451_v26 = vld [vmem:[%s19067_s3 + $0x2e8] sm:$0xf0]  ;;  %9725 = vmatpush.bf16.msra.mxu1 %v12366_v52  ;;  %v13115_v55 = vld [vmem:[%s19067_s3 + $0x194] sm:$0xf] }
 0x808   :  { %v9401_v21 = vpop.f32.mrf.mxu1  ;;  %v12454_v6 = vor.u32 %v13157_v49, %v12451_v26  ;;  %v12286_v18 = vor.u32 %v13115_v55, %v12283_v27  ;;  %v12499_v49 = vld [vmem:[%s19067_s3 + $0x348] sm:$0xf0] }
 0x809   :  { %9594 = vmatmul.bf16.gmra.mxu0 %v18658_v14  ;;  %v13155_v21 = vld [vmem:[%s19067_s3 + $0x2d4] sm:$0xf]  ;;  %v12502_v26 = vor.u32 %v13169_v9, %v12499_v49  ;;  %v13284_v27 = vld [vmem:[#allocation4 + $0x8] sm:$0xff] }
 0x80a   :  { %9750 = vmatpush.bf16.msrb.mxu2 %v12454_v6  ;;  %9699 = vmatpush.bf16.msra.mxu0 %v12286_v18  ;;  %v12427_v6 = vld [vmem:[%s19067_s3 + $0x2b8] sm:$0xf0]  ;;  %v13131_v18 = vld [vmem:[%s19067_s3 + $0x214] sm:$0xf]  ;;  %v12339_v49 = vld [vmem:[%s19067_s3 + $0x208] sm:$0xf0] }
 0x80b   :  { %v12430_v55 = vor.u32 %v13151_v24, %v12427_v6  ;;  %v9376_v24 = vadd.f32 %v18716_v1, %v18347_v56  ;;  %v13145_v6 = vld [vmem:[%s19067_s3 + $0x284] sm:$0xf]  ;;  %v12467_v1 = vld [vmem:[%s19067_s3 + $0x308] sm:$0xf0] }
 0x80c   :  { %v9429_v47 = vpop.f32.mrf.mxu2  ;;  %v9457_v17 = vpop.f32.mrf.mxu3 }
 0x80d   :  { %9645 = vmatmul.bf16.vlgmr.msra.gmra.mxu2 %v17922_v11  ;;  %v12523_v11 = vld [vmem:[%s19067_s3 + $0x378] sm:$0xf0]  ;;  %v13133_v47 = vld [vmem:[%s19067_s3 + $0x224] sm:$0xf]  ;;  %v18741_v17 = vsel %vm7215_vm5, %v8479_v36, %v18696_v40  ;;  %v12435_v36 = vld [vmem:[%s19067_s3 + $0x2c8] sm:$0xf0] }
 0x80e   :  { %v12526_v0 = vor.u32 %v13175_v15, %v12523_v11  ;;  %v12446_v15 = vor.u32 %v13155_v21, %v12443_v29  ;;  %v12510_v11 = vor.u32 %v13171_v61, %v12507_v51  ;;  %v12358_v16 = vor.u32 %v13133_v47, %v12355_v45  ;;  %v12347_v21 = vld [vmem:[%s19067_s3 + $0x218] sm:$0xf0]  ;;  %v13149_v61 = vld [vmem:[%s19067_s3 + $0x2a4] sm:$0xf]  ;;  %v13147_v47 = vld [vmem:[%s19067_s3 + $0x294] sm:$0xf] }
 0x80f   :  { %9617 = vmatmul.bf16.vlgmr.msrb.gmra.mxu1 %v13283_v62  ;;  %v13113_v62 = vld [vmem:[%s19067_s3 + $0x184] sm:$0xf]  ;;  %v12438_v52 = vor.u32 %v13153_v48, %v12435_v36  ;;  %v12350_v29 = vor.u32 %v13131_v18, %v12347_v21  ;;  %v13163_v45 = vld [vmem:[%s19067_s3 + $0x314] sm:$0xf]  ;;  %v12475_v48 = vld [vmem:[%s19067_s3 + $0x318] sm:$0xf0] }
 0x810   :  { %9777 = vmatpush.bf16.msrb.mxu3 %v12526_v0  ;;  %v12275_v0 = vld [vmem:[%s19067_s3 + $0x188] sm:$0xf0]  ;;  %9751 = vmatpush.bf16.msrb.mxu2 %v12446_v15  ;;  %v13165_v51 = vld [vmem:[%s19067_s3 + $0x324] sm:$0xf]  ;;  %v12478_v9 = vor.u32 %v13163_v45, %v12475_v48  ;;  %v13191_v21 = vld [vmem:[%s19067_s3 + $0x3f4] sm:$0xf] }
 0x811   :  { %v12278_v54 = vor.u32 %v13113_v62, %v12275_v0  ;;  %9726 = vmatpush.bf16.msra.mxu1 %v12358_v16  ;;  %v12419_v15 = vld [vmem:[%s19067_s3 + $0x2a8] sm:$0xf0]  ;;  %v13189_v48 = vld [vmem:[%s19067_s3 + $0x3e4] sm:$0xf] }
 0x812   :  { %v12483_v62 = vld [vmem:[%s19067_s3 + $0x328] sm:$0xf0] }
 0x813   :  { %9700 = vmatpush.bf16.msra.mxu0 %v12278_v54  ;;  %v12486_v0 = vor.u32 %v13165_v51, %v12483_v62  ;;  %v12411_v54 = vld [vmem:[%s19067_s3 + $0x298] sm:$0xf0]  ;;  %v13285_v51 = vld [vmem:[#allocation4 + $0x10] sm:$0xff] }
 0x814   :  { %9778 = vmatpush.bf16.msrb.mxu3 %v12518_v35  ;;  %9752 = vmatpush.bf16.msrb.mxu2 %v12438_v52  ;;  %v12414_v16 = vor.u32 %v13147_v47, %v12411_v54  ;;  %v13129_v52 = vld [vmem:[%s19067_s3 + $0x204] sm:$0xf] }
 0x815   :  { %9727 = vmatpush.bf16.msra.mxu1 %v12350_v29  ;;  %v12587_v29 = vld [vmem:[%s19067_s3 + $0x3f8] sm:$0xf0] }
 0x817   :  { %9678 = vmatmul.bf16.gmra.mxu3 %v18065_v63  ;;  %v9377_v63 = vpop.f32.mrf.mxu0 }
 0x818   :  { %9779 = vmatpush.bf16.msrb.mxu3 %v12510_v11  ;;  %9753 = vmatpush.bf16.msrb.mxu2 %v12430_v55  ;;  %v12422_v11 = vor.u32 %v13149_v61, %v12419_v15  ;;  %v13161_v55 = vld [vmem:[%s19067_s3 + $0x304] sm:$0xf]  ;;  %v12590_v61 = vor.u32 %v13191_v21, %v12587_v29  ;;  %v13187_v21 = vld [vmem:[%s19067_s3 + $0x3d4] sm:$0xf]  ;;  %v12571_v29 = vld [vmem:[%s19067_s3 + $0x3d8] sm:$0xf0] }
 0x819   :  { %9598 = vmatmul.bf16.gmra.mxu0 %v18741_v17  ;;  %v12470_v18 = vor.u32 %v13161_v55, %v12467_v1  ;;  %v12643_v55 = vld [vmem:[%s19067_s3 + $0x468] sm:$0xf0] }
 0x81a   :  { %9805 = vmatpush.bf16.msrb.mxu0 %v12590_v61 }
 0x81c   :  { %9780 = vmatpush.bf16.msrb.mxu3 %v12502_v26  ;;  %9754 = vmatpush.bf16.msrb.mxu2 %v12422_v11  ;;  %v12342_v26 = vor.u32 %v13129_v52, %v12339_v49 }
 0x81d   :  { %9650 = vmatmul.bf16.gmra.mxu2 %v18081_v59  ;;  %v12491_v59 = vld [vmem:[%s19067_s3 + $0x338] sm:$0xf0] }
 0x81e   :  { %v12494_v35 = vor.u32 %v13167_v43, %v12491_v59  ;;  %9728 = vmatpush.bf16.msra.mxu1 %v12342_v26  ;;  %v12403_v43 = vld [vmem:[%s19067_s3 + $0x288] sm:$0xf0] }
 0x81f   :  { %9622 = vmatmul.bf16.gmra.mxu1 %v13284_v27  ;;  %v12406_v27 = vor.u32 %v13145_v6, %v12403_v43 }
 0x820   :  { %9781 = vmatpush.bf16.msrb.mxu3 %v12494_v35  ;;  %9755 = vmatpush.bf16.msrb.mxu2 %v12414_v16  ;;  %v9378_v16 = vadd.f32 %v9377_v63, %v18347_v56  ;;  %v13205_v63 = vld [vmem:[%s19067_s3 + $0x464] sm:$0xf] }
 0x824   :  { %9782 = vmatpush.bf16.msrb.mxu3 %v12486_v0  ;;  %9756 = vmatpush.bf16.msrb.mxu2 %v12406_v27  ;;  %v12646_v27 = vor.u32 %v13205_v63, %v12643_v55  ;;  %v12555_v63 = vld [vmem:[%s19067_s3 + $0x3b8] sm:$0xf0] }
 0x826   :  { %v9380_v36 = vpop.f32.mrf.mxu0 }
 0x827   :  { %9682 = vmatmul.bf16.gmra.mxu3 %v18262_v3  ;;  %v12651_v3 = vld [vmem:[%s19067_s3 + $0x478] sm:$0xf0]  ;;  %v9381_v1 = vadd.f32 %v9380_v36, %v18347_v56 }
 0x828   :  { %9783 = vmatpush.bf16.msrb.mxu3 %v12478_v9  ;;  %v12579_v9 = vld [vmem:[%s19067_s3 + $0x3e8] sm:$0xf0] }
 0x829   :  { %9603 = vmatmul.bf16.gmra.mxu0 %v18696_v40  ;;  %v12582_v52 = vor.u32 %v13189_v48, %v12579_v9 }
 0x82a   :  { %v9459_v62 = vpop.f32.mrf.mxu3 }
 0x82b   :  { %9806 = vmatpush.bf16.msrb.mxu0 %v12582_v52 }
 0x82c   :  { %v9403_v59 = vpop.f32.mrf.mxu1  ;;  %9784 = vmatpush.bf16.msrb.mxu3 %v12470_v18 }
 0x82d   :  { %v9404_v35 = vadd.f32 %v9403_v59, %v9376_v24  ;;  %9654 = vmatmul.bf16.gmra.mxu2 %v18279_v58  ;;  %v13207_v58 = vld [vmem:[%s19067_s3 + $0x474] sm:$0xf] }
 0x82e   :  { %v9382_v15 = vpop.f32.mrf.mxu0  ;;  %v12654_v0 = vor.u32 %v13207_v58, %v12651_v3 }
 0x82f   :  { %9626 = vmatmul.bf16.gmra.mxu1 %v13285_v51 }
 0x830   :  { %v9431_v11 = vpop.f32.mrf.mxu2  ;;  %9833 = vmatpush.bf16.msrb.mxu1 %v12654_v0 }
 0x831   :  { %v9432_v47 = vadd.f32 %v9431_v11, %v9404_v35  ;;  %v9383_v11 = vadd.f32 %v9382_v15, %v18347_v56  ;;  %v13201_v15 = vld [vmem:[%s19067_s3 + $0x444] sm:$0xf] }
 0x832   :  { %v9461_v43 = vpop.f32.mrf.mxu3 }
 0x833   :  { %v18838_v54 = vadd.f32 %v9459_v62, %v9432_v47  ;;  %v12563_v47 = vld [vmem:[%s19067_s3 + $0x3c8] sm:$0xf0] }
 0x834   :  { %v9405_v45 = vpop.f32.mrf.mxu1  ;;  %9834 = vmatpush.bf16.msrb.mxu1 %v12646_v27 }
 0x835   :  { %v9406_v49 = vadd.f32 %v9405_v45, %v9378_v16 }
 0x836   :  { %v9478_v26 = vpop.f32.mrf.mxu0 }
 0x837   :  { %v18848_v24 = vadd.f32 %v9478_v26, %v18377_v41  ;;  %9687 = vmatmul.bf16.gmra.mxu3 %v18239_v5  ;;  %v13203_v5 = vld [vmem:[%s19067_s3 + $0x454] sm:$0xf] }
 0x838   :  { %v9433_v6 = vpop.f32.mrf.mxu2 }
 0x839   :  { %v9434_v59 = vadd.f32 %v9433_v6, %v9406_v49  ;;  %9701 = vmatmul.bf16.vlgmr.msra.gmra.mxu0 %v17913_v22  ;;  %v12574_v22 = vor.u32 %v13187_v21, %v12571_v29  ;;  %v12627_v49 = vld [vmem:[%s19067_s3 + $0x448] sm:$0xf0] }
 0x83a   :  { %v9464_v51 = vpop.f32.mrf.mxu3  ;;  %v12630_v6 = vor.u32 %v13201_v15, %v12627_v49  ;;  %v12547_v21 = vld [vmem:[%s19067_s3 + $0x3a8] sm:$0xf0] }
 0x83b   :  { %v18858_v35 = vadd.f32 %v9461_v43, %v9434_v59  ;;  %9807 = vmatpush.bf16.msrb.mxu0 %v12574_v22  ;;  %v13183_v43 = vld [vmem:[%s19067_s3 + $0x3b4] sm:$0xf] }
 0x83c   :  { %v9408_v41 = vpop.f32.mrf.mxu1  ;;  %v12558_v59 = vor.u32 %v13183_v43, %v12555_v63  ;;  %v13179_v22 = vld [vmem:[%s19067_s3 + $0x394] sm:$0xf] }
 0x83d   :  { %v9409_v18 = vadd.f32 %v9408_v41, %v9381_v1  ;;  %9659 = vmatmul.bf16.gmra.mxu2 %v18314_v10  ;;  %v12635_v10 = vld [vmem:[%s19067_s3 + $0x458] sm:$0xf0] }
 0x83e   :  { %v18868_v61 = vpop.f32.mrf.mxu0  ;;  %v12638_v3 = vor.u32 %v13203_v5, %v12635_v10 }
 0x83f   :  { %9631 = vmatmul.bf16.gmra.mxu1 %v18235_v32  ;;  %v13185_v32 = vld [vmem:[%s19067_s3 + $0x3c4] sm:$0xf] }
 0x840   :  { %v9436_v36 = vpop.f32.mrf.mxu2  ;;  %9835 = vmatpush.bf16.msrb.mxu1 %v12638_v3  ;;  %v12566_v16 = vor.u32 %v13185_v32, %v12563_v47  ;;  %v12531_v32 = vld [vmem:[%s19067_s3 + $0x388] sm:$0xf0]  ;;  %v13197_v47 = vld [vmem:[%s19067_s3 + $0x424] sm:$0xf] }
 0x841   :  { %v9437_v58 = vadd.f32 %v9436_v36, %v9409_v18  ;;  %v13181_v18 = vld [vmem:[%s19067_s3 + $0x3a4] sm:$0xf]  ;;  %v12539_v36 = vld [vmem:[%s19067_s3 + $0x398] sm:$0xf0] }
 0x842   :  { %9808 = vmatpush.bf16.msrb.mxu0 %v12566_v16  ;;  %v9466_v52 = vpop.f32.mrf.mxu3  ;;  %v12542_v5 = vor.u32 %v13179_v22, %v12539_v36 }
 0x843   :  { %v18878_v62 = vadd.f32 %v9464_v51, %v9437_v58 }
 0x844   :  { %v9410_v0 = vpop.f32.mrf.mxu1  ;;  %9836 = vmatpush.bf16.msrb.mxu1 %v12630_v6  ;;  %v12603_v6 = vld [vmem:[%s19067_s3 + $0x418] sm:$0xf0] }
 0x845   :  { %v9411_v45 = vadd.f32 %v9410_v0, %v9383_v11  ;;  %v13177_v0 = vld [vmem:[%s19067_s3 + $0x384] sm:$0xf] }
 0x846   :  { %v18886_v48 = vpop.f32.mrf.mxu0  ;;  %9809 = vmatpush.bf16.msrb.mxu0 %v12558_v59 }
 0x847   :  { %9785 = vmatmul.bf16.vlgmr.msrb.gmra.mxu3 %v18371_v42  ;;  %v13199_v42 = vld [vmem:[%s19067_s3 + $0x434] sm:$0xf] }
 0x848   :  { %v9438_v9 = vpop.f32.mrf.mxu2 }
 0x849   :  { %v9439_v26 = vadd.f32 %v9438_v9, %v9411_v45  ;;  %9706 = vmatmul.bf16.gmra.mxu0 %v18072_v50  ;;  %v12534_v45 = vor.u32 %v13177_v0, %v12531_v32 }
 0x84a   :  { %v18910_v41 = vpop.f32.mrf.mxu3 }
 0x84b   :  { %v18901_v55 = vadd.f32 %v9466_v52, %v9439_v26  ;;  %v13195_v26 = vld [vmem:[%s19067_s3 + $0x414] sm:$0xf] }
 0x84c   :  { %v18903_v27 = vpop.f32.mrf.mxu1  ;;  %v12606_v43 = vor.u32 %v13195_v26, %v12603_v6 }
 0x84d   :  { %9757 = vmatmul.bf16.vlgmr.msrb.gmra.mxu2 %v18384_v12  ;;  %v12550_v12 = vor.u32 %v13181_v18, %v12547_v21  ;;  %v13193_v18 = vld [vmem:[%s19067_s3 + $0x404] sm:$0xf] }
 0x84e   :  { %v9485_v50 = vpop.f32.mrf.mxu0 }
 0x84f   :  { %9729 = vmatmul.bf16.vlgmr.msra.gmra.mxu1 %v18304_v2  ;;  %v12619_v2 = vld [vmem:[%s19067_s3 + $0x438] sm:$0xf0]  ;;  %9810 = vmatpush.bf16.msrb.mxu0 %v12550_v12 }
 0x850   :  { %v18908_v1 = vpop.f32.mrf.mxu2  ;;  %v12622_v29 = vor.u32 %v13199_v42, %v12619_v2 }
 0x852   :  { %9837 = vmatpush.bf16.msrb.mxu1 %v12622_v29  ;;  %v9564_v11 = vpop.f32.mrf.mxu3  ;;  %v9507_v29 = vadd.f32 %v18903_v27, %v18848_v24 }
 0x853   :  { %9811 = vmatpush.bf16.msrb.mxu0 %v12542_v5 }
 0x854   :  { %v9508_v51 = vpop.f32.mrf.mxu1  ;;  %v9535_v22 = vadd.f32 %v18908_v1, %v9507_v29 }
 0x856   :  { %v9487_v10 = vpop.f32.mrf.mxu0 }
 0x857   :  { %v18931_v58 = vadd.f32 %v9487_v10, %v18838_v54  ;;  %v12611_v54 = vld [vmem:[%s19067_s3 + $0x428] sm:$0xf0]  ;;  %9790 = vmatmul.bf16.gmra.mxu3 %v18491_v25  ;;  %9812 = vmatpush.bf16.msrb.mxu0 %v12534_v45 }
 0x858   :  { %v9536_v3 = vpop.f32.mrf.mxu2  ;;  %v12614_v9 = vor.u32 %v13197_v47, %v12611_v54 }
 0x859   :  { %9710 = vmatmul.bf16.gmra.mxu0 %v18268_v31 }
 0x85a   :  { %9838 = vmatpush.bf16.msrb.mxu1 %v12614_v9  ;;  %v9567_v15 = vpop.f32.mrf.mxu3 }
 0x85c   :  { %v9511_v16 = vpop.f32.mrf.mxu1 }
 0x85d   :  { %9762 = vmatmul.bf16.gmra.mxu2 %v18310_v53 }
 0x85e   :  { %v18948_v31 = vpop.f32.mrf.mxu0  ;;  %9839 = vmatpush.bf16.msrb.mxu1 %v12606_v43 }
 0x85f   :  { %9734 = vmatmul.bf16.gmra.mxu1 %v18051_v20  ;;  %v9369_v20 = vadd.f32 %v18300_v23, %v18347_v56 }
 0x860   :  { %v9539_v52 = vpop.f32.mrf.mxu2 }
 0x861   :  { %v9397_v21 = vadd.f32 %v18617_v39, %v9369_v20 }
 0x862   :  { %v9569_v59 = vpop.f32.mrf.mxu3 }
 0x863   :  { %v9425_v23 = vadd.f32 %v18641_v46, %v9397_v21  ;;  %v9563_v46 = vadd.f32 %v18910_v41, %v9535_v22 }
 0x864   :  { %v9513_v49 = vpop.f32.mrf.mxu1 }
 0x866   :  { %v9492_v53 = vpop.f32.mrf.mxu0 }
 0x867   :  { %v18958_v25 = vadd.f32 %v9492_v53, %v18878_v62  ;;  %9794 = vmatmul.bf16.gmra.mxu3 %v18574_v34  ;;  %v12595_v62 = vld [vmem:[%s19067_s3 + $0x408] sm:$0xf0]  ;;  %v9453_v34 = vadd.f32 %v18643_v4, %v9425_v23  ;;  %v9484_v4 = vadd.f32 %v18886_v48, %v18667_v57 }
 0x868   :  { %v9541_v63 = vpop.f32.mrf.mxu2 }
 0x869   :  { %9715 = vmatmul.bf16.gmra.mxu0 %v18241_v19  ;;  %v12598_v19 = vor.u32 %v13193_v18, %v12595_v62  ;;  %v9481_v2 = vadd.f32 %v18868_v61, %v9453_v34  ;;  %v9512_v1 = vadd.f32 %v9511_v16, %v9484_v4  ;;  %v9490_v18 = vadd.f32 %v18948_v31, %v18858_v35 }
 0x86b   :  { %9840 = vmatpush.bf16.msrb.mxu1 %v12598_v19  ;;  %v9509_v36 = vadd.f32 %v9508_v51, %v9481_v2  ;;  %v9540_v41 = vadd.f32 %v9539_v52, %v9512_v1  ;;  %v13286_v52 = vld [vmem:[%s19068_s4] sm:$0x3] }
 0x86c   :  { %v18963_v50 = vpop.f32.mrf.mxu1  ;;  %v19007_v49 = vperm.slane %v13286_v52, 1 }
 0x86d   :  { %9766 = vmatmul.bf16.gmra.mxu2 %v18352_v7  ;;  %v18978_v7 = vpop.f32.mrf.mxu3  ;;  %v9537_v10 = vadd.f32 %v9536_v3, %v9509_v36  ;;  %v9568_v57 = vadd.f32 %v9567_v15, %v9540_v41  ;;  %v9516_v62 = vadd.f32 %v18963_v50, %v18931_v58 }
 0x86e   :  { %v18974_v42 = vpop.f32.mrf.mxu0 }
 0x86f   :  { %9738 = vmatmul.bf16.gmra.mxu1 %v18463_v60  ;;  %v9565_v24 = vadd.f32 %v9564_v11, %v9537_v10 }
 0x870   :  { %v9543_v56 = vpop.f32.mrf.mxu2 }
 0x871   :  { %v9544_v23 = vadd.f32 %v9543_v56, %v9516_v62 }
 0x873   :  { %v9572_v36 = vadd.f32 %v18978_v7, %v9544_v23  ;;  %v9495_v7 = vadd.f32 %v18974_v42, %v18901_v55 }
 0x874   :  { %v9517_v12 = vpop.f32.mrf.mxu1 }
 0x875   :  { %v9573_v60 = vpop.f32.mrf.mxu3  ;;  %v9518_v34 = vadd.f32 %v9517_v12, %v9490_v18 }
 0x876   :  { %v9590_v39 = vpop.f32.mrf.mxu0 }
 0x877   :  { %9799 = vmatmul.bf16.gmra.mxu3 %v18546_v13  ;;  %v9591_v61 = vadd.f32 %v9590_v39, %v9563_v46 }
 0x878   :  { %v9545_v5 = vpop.f32.mrf.mxu2 }
 0x879   :  { %9813 = vmatmul.bf16.vlgmr.msrb.gmra.mxu0 %v18375_v33  ;;  %v9865_v32 = vrot.slane %v9591_v61, 2 }
 0x87c   :  { %v18987_v0 = vpop.f32.mrf.mxu1 }
 0x87d   :  { %9771 = vmatmul.bf16.gmra.mxu2 %v18623_v30  ;;  %v18996_v33 = vpop.f32.mrf.mxu3 }
 0x87e   :  { %v9592_v27 = vpop.f32.mrf.mxu0 }
 0x87f   :  { %9743 = vmatmul.bf16.gmra.mxu1 %v18558_v37  ;;  %v9593_v51 = vadd.f32 %v9592_v27, %v9565_v24 }
 0x880   :  { %v18994_v3 = vpop.f32.mrf.mxu2 }
 0x881   :  { %v9866_v47 = vrot.slane %v9593_v51, 2  ;;  %v9873_v16 = vrot.slane %v9593_v51, 4 }
 0x883   :  { %v9867_v30 = vsel %vm4545_vm3, %v9865_v32, %v9866_v47 }
 0x884   :  { %v9522_v13 = vpop.f32.mrf.mxu1  ;;  %v9907_v45 = vsel %vm8119_vm7, %v9591_v61, %v9867_v30 }
 0x885   :  { %9915 = vst [vmem:[%s19069_s5] sm:$0xff] %v9907_v45  ;;  %v9578_v54 = vpop.f32.mrf.mxu3  ;;  %v9523_v51 = vadd.f32 %v9522_v13, %v9495_v7 }
 0x886   :  { %v9595_v37 = vpop.f32.mrf.mxu0 }
 0x887   :  { %v9596_v48 = vadd.f32 %v9595_v37, %v9568_v57 }
 0x888   :  { %v9550_v11 = vpop.f32.mrf.mxu2 }
 0x889   :  { %v9879_v9 = vrot.slane %v9596_v48, 6  ;;  %9818 = vmatmul.bf16.gmra.mxu0 %v18496_v44  ;;  %v9551_v47 = vadd.f32 %v9550_v11, %v9523_v51 }
 0x88b   :  { %v9909_v15 = vsel %vm8119_vm7, %v9873_v16, %v9879_v9  ;;  %v9579_v57 = vadd.f32 %v9578_v54, %v9551_v47 }
 0x88c   :  { %v9618_v26 = vpop.f32.mrf.mxu1  ;;  %9917 = vst [vmem:[%s19069_s5 + $0x10] sm:$0xff] %v9909_v15 }
 0x88d   :  { %v9619_v6 = vadd.f32 %v9618_v26, %v19007_v49  ;;  %v9674_v44 = vpop.f32.mrf.mxu3 }
 0x88e   :  { %v9597_v53 = vpop.f32.mrf.mxu0 }
 0x88f   :  { %9841 = vmatmul.bf16.vlgmr.msrb.gmra.mxu1 %v18614_v38  ;;  %v9546_v38 = vadd.f32 %v9545_v5, %v9518_v34 }
 0x890   :  { %v9646_v43 = vpop.f32.mrf.mxu2 }
 0x891   :  { %v9647_v63 = vadd.f32 %v9646_v43, %v9619_v6  ;;  %v9574_v46 = vadd.f32 %v9573_v60, %v9546_v38 }
 0x893   :  { %v9675_v59 = vadd.f32 %v9674_v44, %v9647_v63 }
 0x894   :  { %v9620_v20 = vpop.f32.mrf.mxu1 }
 0x895   :  { %v9621_v21 = vadd.f32 %v9620_v20, %v19007_v49  ;;  %v9676_v29 = vpop.f32.mrf.mxu3 }
 0x896   :  { %v9599_v19 = vpop.f32.mrf.mxu0 }
 0x897   :  { %v9600_v35 = vadd.f32 %v9599_v19, %v9572_v36 }
 0x898   :  { %v9648_v2 = vpop.f32.mrf.mxu2 }
 0x899   :  { %v9649_v39 = vadd.f32 %v9648_v2, %v9621_v21  ;;  %9822 = vmatmul.bf16.gmra.mxu0 %v18579_v28  ;;  %v9885_v24 = vrot.slane %v9600_v35, 4 }
 0x89b   :  { %v9677_v22 = vadd.f32 %v9676_v29, %v9649_v39 }
 0x89c   :  { %v9623_v10 = vpop.f32.mrf.mxu1 }
 0x89d   :  { %v9624_v31 = vadd.f32 %v9623_v10, %v19007_v49  ;;  %v9679_v12 = vpop.f32.mrf.mxu3 }
 0x89e   :  { %v9601_v58 = vpop.f32.mrf.mxu0 }
 0x89f   :  { %9846 = vmatmul.bf16.gmra.mxu1 %v18658_v14  ;;  %v9602_v50 = vadd.f32 %v9601_v58, %v9574_v46  ;;  %v9521_v14 = vadd.f32 %v18987_v0, %v18958_v25 }
 0x8a0   :  { %v9651_v56 = vpop.f32.mrf.mxu2 }
 0x8a1   :  { %v9652_v4 = vadd.f32 %v9651_v56, %v9624_v31  ;;  %v9891_v61 = vrot.slane %v9602_v50, 6  ;;  %v9549_v1 = vadd.f32 %v18994_v3, %v9521_v14 }
 0x8a3   :  { %v9680_v5 = vadd.f32 %v9679_v12, %v9652_v4  ;;  %v9911_v28 = vsel %vm8119_vm7, %v9885_v24, %v9891_v61  ;;  %v9577_v30 = vadd.f32 %v18996_v33, %v9549_v1 }
 0x8a4   :  { %v9625_v27 = vpop.f32.mrf.mxu1  ;;  %9919 = vst [vmem:[%s19069_s5 + $0x20] sm:$0xff] %v9911_v28 }
 0x8a5   :  { %v9681_v32 = vpop.f32.mrf.mxu3 }
 0x8a6   :  { %v9604_v60 = vpop.f32.mrf.mxu0 }
 0x8a7   :  { %v9605_v37 = vadd.f32 %v9604_v60, %v9577_v30 }
 0x8a8   :  { %v9653_v41 = vpop.f32.mrf.mxu2 }
 0x8a9   :  { %9827 = vmatmul.bf16.gmra.mxu0 %v18548_v8  ;;  %v9899_v13 = vrot.slane %v9605_v37, 2 }
 0x8ac   :  { %v9627_v45 = vpop.f32.mrf.mxu1 }
 0x8ad   :  { %v9628_v48 = vadd.f32 %v9627_v45, %v19007_v49  ;;  %v9683_v0 = vpop.f32.mrf.mxu3 }
 0x8ae   :  { %v9606_v55 = vpop.f32.mrf.mxu0 }
 0x8af   :  { %9850 = vmatmul.bf16.gmra.mxu1 %v18741_v17  ;;  %v9607_v25 = vadd.f32 %v9606_v55, %v9579_v57 }
 0x8b0   :  { %v9655_v42 = vpop.f32.mrf.mxu2 }
 0x8b1   :  { %v9656_v3 = vadd.f32 %v9655_v42, %v9628_v48  ;;  %v9900_v16 = vrot.slane %v9607_v25, 2 }
 0x8b3   :  { %v9684_v9 = vadd.f32 %v9683_v0, %v9656_v3  ;;  %v9901_v11 = vsel %vm4545_vm3, %v9899_v13, %v9900_v16 }
 0x8b4   :  { %v9629_v8 = vpop.f32.mrf.mxu1  ;;  %v9913_v33 = vsel %vm8119_vm7, %v9605_v37, %v9901_v11 }
 0x8b5   :  { %9921 = vst [vmem:[%s19069_s5 + $0x30] sm:$0xff] %v9913_v33  ;;  %v9630_v54 = vadd.f32 %v9629_v8, %v19007_v49  ;;  %v9685_v26 = vpop.f32.mrf.mxu3 }
 0x8b6   :  { %v9702_v52 = vpop.f32.mrf.mxu0 }
 0x8b7   :  { %v9703_v17 = vadd.f32 %v9702_v52, %v9675_v59 }
 0x8b8   :  { %v9657_v15 = vpop.f32.mrf.mxu2 }
 0x8b9   :  { %v9658_v6 = vadd.f32 %v9657_v15, %v9630_v54 }
 0x8bb   :  { %v9686_v53 = vadd.f32 %v9685_v26, %v9658_v6 }
 0x8bc   :  { %v9632_v43 = vpop.f32.mrf.mxu1 }
 0x8bd   :  { %v9633_v44 = vadd.f32 %v9632_v43, %v19007_v49  ;;  %v9688_v62 = vpop.f32.mrf.mxu3 }
 0x8be   :  { %v9704_v63 = vpop.f32.mrf.mxu0 }
 0x8bf   :  { %9855 = vmatmul.bf16.gmra.mxu1 %v18696_v40  ;;  %v9705_v20 = vadd.f32 %v9704_v63, %v9677_v22 }
 0x8c0   :  { %v9660_v18 = vpop.f32.mrf.mxu2 }
 0x8c1   :  { %v9661_v21 = vadd.f32 %v9660_v18, %v9633_v44 }
 0x8c3   :  { %v9689_v19 = vadd.f32 %v9688_v62, %v9661_v21 }
 0x8c4   :  { %v9634_v23 = vpop.f32.mrf.mxu1 }
 0x8c5   :  { %v9635_v34 = vadd.f32 %v9634_v23, %v19007_v49  ;;  %v9690_v39 = vpop.f32.mrf.mxu3 }
 0x8c6   :  { %v9707_v2 = vpop.f32.mrf.mxu0 }
 0x8c7   :  { %v9708_v59 = vadd.f32 %v9707_v2, %v9680_v5 }
 0x8c8   :  { %v9662_v29 = vpop.f32.mrf.mxu2 }
 0x8c9   :  { %v9663_v38 = vadd.f32 %v9662_v29, %v9635_v34 }
 0x8cb   :  { %v9691_v36 = vadd.f32 %v9690_v39, %v9663_v38 }
 0x8cc   :  { %v9730_v10 = vpop.f32.mrf.mxu1 }
 0x8cd   :  { %v9731_v46 = vadd.f32 %v9730_v10, %v9703_v17  ;;  %v9786_v58 = vpop.f32.mrf.mxu3 }
 0x8ce   :  { %v9709_v35 = vpop.f32.mrf.mxu0 }
 0x8d0   :  { %v9758_v31 = vpop.f32.mrf.mxu2 }
 0x8d1   :  { %v9759_v40 = vadd.f32 %v9758_v31, %v9731_v46 }
 0x8d3   :  { %v9787_v22 = vadd.f32 %v9786_v58, %v9759_v40 }
 0x8d4   :  { %v9732_v50 = vpop.f32.mrf.mxu1 }
 0x8d5   :  { %v9788_v24 = vpop.f32.mrf.mxu3  ;;  %v9733_v0 = vadd.f32 %v9732_v50, %v9705_v20 }
 0x8d6   :  { %v9711_v56 = vpop.f32.mrf.mxu0 }
 0x8d7   :  { %v9712_v12 = vadd.f32 %v9711_v56, %v9684_v9 }
 0x8d8   :  { %v9760_v4 = vpop.f32.mrf.mxu2 }
 0x8d9   :  { %v9761_v13 = vadd.f32 %v9760_v4, %v9733_v0 }
 0x8db   :  { %v9789_v9 = vadd.f32 %v9788_v24, %v9761_v13 }
 0x8dc   :  { %v9735_v61 = vpop.f32.mrf.mxu1 }
 0x8dd   :  { %v9791_v27 = vpop.f32.mrf.mxu3  ;;  %v9736_v8 = vadd.f32 %v9735_v61, %v9708_v59 }
 0x8de   :  { %v9713_v49 = vpop.f32.mrf.mxu0 }
 0x8df   :  { %v9714_v28 = vadd.f32 %v9713_v49, %v9686_v53 }
 0x8e0   :  { %v9763_v5 = vpop.f32.mrf.mxu2 }
 0x8e1   :  { %v9764_v17 = vadd.f32 %v9763_v5, %v9736_v8 }
 0x8e3   :  { %v9792_v53 = vadd.f32 %v9791_v27, %v9764_v17 }
 0x8e4   :  { %v9737_v7 = vpop.f32.mrf.mxu1 }
 0x8e5   :  { %v9793_v51 = vpop.f32.mrf.mxu3 }
 0x8e6   :  { %v9716_v14 = vpop.f32.mrf.mxu0 }
 0x8e7   :  { %v9717_v60 = vadd.f32 %v9716_v14, %v9689_v19 }
 0x8e8   :  { %v9765_v1 = vpop.f32.mrf.mxu2 }
 0x8ec   :  { %v9739_v41 = vpop.f32.mrf.mxu1 }
 0x8ed   :  { %v9740_v32 = vadd.f32 %v9739_v41, %v9712_v12  ;;  %v9795_v23 = vpop.f32.mrf.mxu3 }
 0x8ee   :  { %v9718_v47 = vpop.f32.mrf.mxu0 }
 0x8ef   :  { %v9719_v30 = vadd.f32 %v9718_v47, %v9691_v36 }
 0x8f0   :  { %v9767_v20 = vpop.f32.mrf.mxu2 }
 0x8f1   :  { %v9768_v39 = vadd.f32 %v9767_v20, %v9740_v32 }
 0x8f3   :  { %v9796_v31 = vadd.f32 %v9795_v23, %v9768_v39 }
 0x8f4   :  { %v9741_v45 = vpop.f32.mrf.mxu1 }
 0x8f5   :  { %v9742_v38 = vadd.f32 %v9741_v45, %v9714_v28  ;;  %v9797_v36 = vpop.f32.mrf.mxu3 }
 0x8f6   :  { %v9814_v57 = vpop.f32.mrf.mxu0 }
 0x8f7   :  { %v9815_v11 = vadd.f32 %v9814_v57, %v9787_v22 }
 0x8f8   :  { %v9769_v29 = vpop.f32.mrf.mxu2 }
 0x8f9   :  { %v9770_v35 = vadd.f32 %v9769_v29, %v9742_v38 }
 0x8fb   :  { %v9798_v40 = vadd.f32 %v9797_v36, %v9770_v35 }
 0x8fc   :  { %v9744_v37 = vpop.f32.mrf.mxu1 }
 0x8fd   :  { %v9745_v48 = vadd.f32 %v9744_v37, %v9717_v60  ;;  %v9800_v24 = vpop.f32.mrf.mxu3 }
 0x8fe   :  { %v9816_v55 = vpop.f32.mrf.mxu0 }
 0x8ff   :  { %v9817_v33 = vadd.f32 %v9816_v55, %v9789_v9 }
 0x900   :  { %v9772_v58 = vpop.f32.mrf.mxu2 }
 0x901   :  { %v9773_v28 = vadd.f32 %v9772_v58, %v9745_v48 }
 0x903   :  { %v9801_v51 = vadd.f32 %v9800_v24, %v9773_v28 }
 0x904   :  { %v9746_v25 = vpop.f32.mrf.mxu1 }
 0x905   :  { %v9747_v14 = vadd.f32 %v9746_v25, %v9719_v30  ;;  %v9802_v41 = vpop.f32.mrf.mxu3 }
 0x906   :  { %v9819_v42 = vpop.f32.mrf.mxu0 }
 0x907   :  { %v9820_v63 = vadd.f32 %v9819_v42, %v9792_v53 }
 0x908   :  { %v9774_v7 = vpop.f32.mrf.mxu2 }
 0x909   :  { %v9775_v1 = vadd.f32 %v9774_v7, %v9747_v14 }
 0x90b   :  { %v9803_v47 = vadd.f32 %v9802_v41, %v9775_v1 }
 0x90c   :  { %v9842_v3 = vpop.f32.mrf.mxu1 }
 0x90d   :  { %v9843_v54 = vadd.f32 %v9842_v3, %v9815_v11 }
 0x90e   :  { %v9821_v16 = vpop.f32.mrf.mxu0 }
 0x90f   :  { %v9868_v26 = vrot.slane %v9843_v54, 2 }
 0x914   :  { %v9844_v52 = vpop.f32.mrf.mxu1 }
 0x915   :  { %v9845_v15 = vadd.f32 %v9844_v52, %v9817_v33 }
 0x916   :  { %v9823_v2 = vpop.f32.mrf.mxu0 }
 0x917   :  { %v9869_v6 = vrot.slane %v9845_v15, 2  ;;  %v9874_v21 = vrot.slane %v9845_v15, 4  ;;  %v9824_v22 = vadd.f32 %v9823_v2, %v9796_v31 }
 0x919   :  { %v9870_v43 = vsel %vm4545_vm3, %v9868_v26, %v9869_v6 }
 0x91a   :  { %v9908_v44 = vsel %vm8119_vm7, %v9843_v54, %v9870_v43 }
 0x91b   :  { %9916 = vst [vmem:[%s19069_s5 + $0x8] sm:$0xff] %v9908_v44 }
 0x91c   :  { %v9847_v18 = vpop.f32.mrf.mxu1 }
 0x91d   :  { %v9848_v62 = vadd.f32 %v9847_v18, %v9820_v63 }
 0x91e   :  { %v9825_v10 = vpop.f32.mrf.mxu0 }
 0x91f   :  { %v9880_v19 = vrot.slane %v9848_v62, 6  ;;  %v9826_v50 = vadd.f32 %v9825_v10, %v9798_v40 }
 0x921   :  { %v9910_v34 = vsel %vm8119_vm7, %v9874_v21, %v9880_v19 }
 0x922   :  { %9918 = vst [vmem:[%s19069_s5 + $0x18] sm:$0xff] %v9910_v34 }
 0x924   :  { %v9849_v59 = vpop.f32.mrf.mxu1 }
 0x926   :  { %v9828_v61 = vpop.f32.mrf.mxu0 }
 0x927   :  { %v9829_v45 = vadd.f32 %v9828_v61, %v9801_v51 }
 0x92c   :  { %v9851_v46 = vpop.f32.mrf.mxu1 }
 0x92d   :  { %v9852_v56 = vadd.f32 %v9851_v46, %v9824_v22 }
 0x92e   :  { %v9830_v32 = vpop.f32.mrf.mxu0 }
 0x92f   :  { %v9886_v49 = vrot.slane %v9852_v56, 4  ;;  %v9831_v57 = vadd.f32 %v9830_v32, %v9803_v47 }
 0x934   :  { %v9853_v12 = vpop.f32.mrf.mxu1 }
 0x935   :  { %v9854_v4 = vadd.f32 %v9853_v12, %v9826_v50 }
 0x937   :  { %v9892_v5 = vrot.slane %v9854_v4, 6 }
 0x939   :  { %v9912_v27 = vsel %vm8119_vm7, %v9886_v49, %v9892_v5 }
 0x93a   :  { %9920 = vst [vmem:[%s19069_s5 + $0x28] sm:$0xff] %v9912_v27 }
 0x93c   :  { %v9856_v60 = vpop.f32.mrf.mxu1 }
 0x93d   :  { %v9857_v37 = vadd.f32 %v9856_v60, %v9829_v45 }
 0x93f   :  { %v9902_v0 = vrot.slane %v9857_v37, 2 }
 0x944   :  { %v9858_v55 = vpop.f32.mrf.mxu1 }
 0x945   :  { %v9859_v42 = vadd.f32 %v9858_v55, %v9831_v57 }
 0x947   :  { %v9903_v3 = vrot.slane %v9859_v42, 2 }
 0x949   :  { %v9904_v13 = vsel %vm4545_vm3, %v9902_v0, %v9903_v3 }
 0x94a   :  { %v9914_v16 = vsel %vm8119_vm7, %v9857_v37, %v9904_v13 }
 0x94b   :  { %9922 = vst [vmem:[%s19069_s5 + $0x38] sm:$0xff] %v9914_v16 }

</bundles_post_ra>
